<compile_context>
chip_gen: v7x
topology: tpu7x:2x2x1
jax: 0.10.0
libtpu: 0.0.40
codegen_flags: <defaults>
</compile_context>

<pallas_src>
import functools
import math

import jax
import jax.numpy as jnp
from jax.experimental import pallas as pl
from jax.experimental.pallas import tpu as pltpu

LEAKY_SLOPE = 0.2
BN_EPS = 0.8  # second positional arg of nn.BatchNorm1d(out_feat, 0.8) is eps


def _leaky(h):
    return jnp.where(h > 0, h, LEAKY_SLOPE * h)


def _batchnorm(h, gamma, beta):
    # Training-mode BatchNorm1d: batch mean, biased batch variance, eps=0.8.
    # Keep the reduction and rsqrt in f32 even though matmul inputs are bf16.
    mean = jnp.mean(h, axis=0, keepdims=True)
    var = jnp.mean((h - mean) ** 2, axis=0, keepdims=True)
    return (h - mean) * jax.lax.rsqrt(var + BN_EPS) * gamma + beta


def trunk_kernel(noise_ref, image_ref,
                 w0n_ref, w0i_ref, b0_ref,
                 w1_ref, b1_ref, g1_ref, be1_ref,
                 w2_ref, b2_ref, g2_ref, be2_ref,
                 w3_ref, b3_ref, g3_ref, be3_ref,
                 h_ref):
    """Layers 0-3: Linear->LeakyReLU, then 3x Linear->BN->LeakyReLU (all in VMEM).

    bf16 matmul inputs, f32 accumulation / BN / activations. The split matmul
    (noise @ W0_noise + image @ W0_image) replaces the wrapper-side concat.
    """
    noise = noise_ref[...].astype(jnp.bfloat16)
    image = image_ref[...].astype(jnp.bfloat16)

    # block 0: Linear -> LeakyReLU (normalize=False)
    h = (jnp.dot(noise, w0n_ref[...], preferred_element_type=jnp.float32)
         + jnp.dot(image, w0i_ref[...], preferred_element_type=jnp.float32)
         + b0_ref[...])
    h = _leaky(h).astype(jnp.bfloat16)

    # block 1: Linear -> BN -> LeakyReLU
    h = jnp.dot(h, w1_ref[...], preferred_element_type=jnp.float32) + b1_ref[...]
    h = _leaky(_batchnorm(h, g1_ref[...], be1_ref[...])).astype(jnp.bfloat16)

    # block 2
    h = jnp.dot(h, w2_ref[...], preferred_element_type=jnp.float32) + b2_ref[...]
    h = _leaky(_batchnorm(h, g2_ref[...], be2_ref[...])).astype(jnp.bfloat16)

    # block 3
    h = jnp.dot(h, w3_ref[...], preferred_element_type=jnp.float32) + b3_ref[...]
    h = _leaky(_batchnorm(h, g3_ref[...], be3_ref[...])).astype(jnp.bfloat16)

    h_ref[...] = h


def head_kernel(h_ref, w4_ref, b4_ref, out_ref):
    """Head: Linear -> Tanh, tiled over output columns (grid axis 0, parallel)."""
    acc = jnp.dot(h_ref[...], w4_ref[...], preferred_element_type=jnp.float32)
    out_ref[...] = jnp.tanh(acc + b4_ref[...])


def _pick_head_tile(out_dim, d3, weight_budget_bytes=8 << 20):
    """Largest column tile (multiple of 512, divides out_dim) whose double-
    buffered bf16 weight slab fits the budget; keep >=2 grid steps if possible."""
    max_tn_budget = max(512, (weight_budget_bytes // (4 * d3)) // 512 * 512)
    max_tn = min(max_tn_budget, max(512, out_dim // 2), out_dim)
    tn = min(512, out_dim)
    for cand in range(512, max_tn + 1, 512):
        if out_dim % cand == 0:
            tn = cand
    return tn


def init_params(key, feat_dim, latent_dim, dim, n_ctx):
    """Deterministic init matching the module's shapes.

    Linear weights: kaiming_uniform_(mode='fan_in', nonlinearity='leaky_relu')
    (gain=sqrt(2), bound=gain*sqrt(3/fan_in)); stored transposed to [in, out]
    so the kernel computes x @ W directly.
    Biases: PyTorch Linear default U(-1/sqrt(fan_in), 1/sqrt(fan_in)).
    BatchNorm: gamma=1, beta=0. Master copies are kept in f32; the wrapper
    casts the weights to bf16 for streaming.
    """
    layer_dims = [
        (feat_dim + latent_dim, dim // 2),
        (dim // 2, dim),
        (dim, dim * 2),
        (dim * 2, dim * 4),
        (dim * 4, n_ctx * 512),
    ]
    lin_params = []
    for fin, fout in layer_dims:
        key, kw, kb = jax.random.split(key, 3)
        gain = math.sqrt(2.0)                      # leaky_relu, a=0
        wb = gain * math.sqrt(3.0 / fin)
        w = jax.random.uniform(kw, (fin, fout), jnp.float32, -wb, wb)
        bb = 1.0 / math.sqrt(fin)
        b = jax.random.uniform(kb, (1, fout), jnp.float32, -bb, bb)
        lin_params.append((w, b))
    bn_params = [(jnp.ones((1, d), jnp.float32), jnp.zeros((1, d), jnp.float32))
                 for d in (dim, dim * 2, dim * 4)]
    return lin_params, bn_params


def generator_forward(image, noise, lin_params, bn_params, n_ctx):
    """Glue: trunk pallas_call (layers 0-3) + column-tiled head pallas_call."""
    B = image.shape[0]
    image = image.reshape(B, -1).astype(jnp.float32)
    noise = noise.astype(jnp.float32)
    latent_dim = noise.shape[1]

    (w0, b0), (w1, b1), (w2, b2), (w3, b3), (w4, b4) = lin_params
    (g1, be1), (g2, be2), (g3, be3) = bn_params

    # bf16 weight streaming: this kernel is HBM/weight-bound at small batch,
    # so halving weight bytes is the dominant win. Accumulation stays f32.
    w0n = w0[:latent_dim].astype(jnp.bfloat16)
    w0i = w0[latent_dim:].astype(jnp.bfloat16)
    w1b = w1.astype(jnp.bfloat16)
    w2b = w2.astype(jnp.bfloat16)
    w3b = w3.astype(jnp.bfloat16)
    w4b = w4.astype(jnp.bfloat16)

    d1, d2, d3 = w1.shape[1], w2.shape[1], w3.shape[1]
    out_dim = w4.shape[1]                      # n_ctx * 512

    # ---------------- trunk: layers 0-3, whole batch resident in VMEM --------
    vmem = pl.BlockSpec(memory_space=pltpu.MemorySpace.VMEM)
    trunk_args = (noise, image,
                  w0n, w0i, b0,
                  w1b, b1, g1, be1,
                  w2b, b2, g2, be2,
                  w3b, b3, g3, be3)
    trunk_bytes = sum(int(a.size) * a.dtype.itemsize for a in trunk_args)
    trunk_bytes += B * d3 * 2                  # bf16 trunk output
    trunk_flops = 2 * B * (w0.shape[0] * w0.shape[1] + w1.size + w2.size + w3.size)
    trunk_vmem = int(min(max(4 * trunk_bytes, 8 << 20), 40 << 20))

    h = pl.pallas_call(
        trunk_kernel,
        out_shape=jax.ShapeDtypeStruct((B, d3), jnp.bfloat16),
        in_specs=[vmem] * len(trunk_args),
        out_specs=vmem,
        compiler_params=pltpu.CompilerParams(vmem_limit_bytes=trunk_vmem),
        cost_estimate=pl.CostEstimate(flops=int(trunk_flops),
                                      transcendentals=int(d1 + d2 + d3),
                                      bytes_accessed=int(trunk_bytes)),
    )(*trunk_args)

    # ---------------- head: Linear -> Tanh, tiled over output columns --------
    tn = _pick_head_tile(out_dim, d3)
    assert out_dim % tn == 0, (out_dim, tn)    # out_dim = n_ctx*512, tn | out_dim
    grid = (out_dim // tn,)

    # Double-buffered tiles: w4 tile (bf16) + b4 tile + out tile, plus resident h.
    head_tile_bytes = 2 * (d3 * tn * 2 + tn * 4 + B * tn * 4) + 2 * (B * d3 * 2)
    head_vmem = int(min(max(4 * head_tile_bytes, 8 << 20), 40 << 20))
    head_bytes = B * d3 * 2 + d3 * out_dim * 2 + out_dim * 4 + B * out_dim * 4
    head_flops = 2 * B * d3 * out_dim

    out = pl.pallas_call(
        head_kernel,
        out_shape=jax.ShapeDtypeStruct((B, out_dim), jnp.float32),
        grid=grid,
        in_specs=[
            pl.BlockSpec((B, d3), lambda j: (0, 0)),    # trunk activations, resident
            pl.BlockSpec((d3, tn), lambda j: (0, j)),   # w4 column tile (streamed)
            pl.BlockSpec((1, tn), lambda j: (0, j)),    # b4 column tile
        ],
        out_specs=pl.BlockSpec((B, tn), lambda j: (0, j)),
        compiler_params=pltpu.CompilerParams(
            dimension_semantics=("parallel",),          # v7x: shard tiles over 2 TCs
            vmem_limit_bytes=head_vmem),
        cost_estimate=pl.CostEstimate(flops=int(head_flops),
                                      transcendentals=int(B * out_dim),
                                      bytes_accessed=int(head_bytes)),
    )(h, w4b, b4)

    return out.reshape(B, n_ctx, 512)


def generator_reference(image, noise, lin_params, bn_params, n_ctx):
    """Pure-JAX f32 reference of the PyTorch forward (for a tolerance check)."""
    B = image.shape[0]
    x = jnp.concatenate([noise, image.reshape(B, -1)], axis=-1).astype(jnp.float32)
    (w0, b0), (w1, b1), (w2, b2), (w3, b3), (w4, b4) = lin_params
    (g1, be1), (g2, be2), (g3, be3) = bn_params
    h = _leaky(x @ w0 + b0)
    h = _leaky(_batchnorm(h @ w1 + b1, g1, be1))
    h = _leaky(_batchnorm(h @ w2 + b2, g2, be2))
    h = _leaky(_batchnorm(h @ w3 + b3, g3, be3))
    return jnp.tanh(h @ w4 + b4).reshape(B, n_ctx, 512)


if __name__ == "__main__":
    # Small, module-consistent config. dim=256 is the module default and keeps
    # every hidden width 128-lane aligned (128/256/512/1024 -> out 2048).
    B = 8            # batch (>1 so training-mode BatchNorm is well defined)
    FEAT_DIM = 32    # cfg.FEAT_DIM (image already feature-flattened upstream)
    LATENT_DIM = 16  # cfg.LATENT_DIM
    DIM = 256        # generator hidden dim (module default)
    N_CTX = 4        # n_ctx

    key = jax.random.PRNGKey(0)
    k_params, k_img, k_noise = jax.random.split(key, 3)

    lin_params, bn_params = init_params(k_params, FEAT_DIM, LATENT_DIM, DIM, N_CTX)

    image = jax.random.normal(k_img, (B, FEAT_DIM), jnp.float32)
    # torch.randn noise generated in forward(); passed in deterministically here.
    noise = jax.random.normal(k_noise, (B, LATENT_DIM), jnp.float32)

    fwd = jax.jit(functools.partial(generator_forward, n_ctx=N_CTX))
    out = jax.block_until_ready(fwd(image, noise, lin_params, bn_params))

    assert out.shape == (B, N_CTX, 512), out.shape
    assert bool(jnp.all(jnp.isfinite(out)))
    assert bool(jnp.all(jnp.abs(out) <= 1.0))  # tanh range

    # Loose tolerance vs f32 reference (only deliberate difference is bf16
    # matmul inputs; accumulation and BN stats are f32 in the kernel).
    ref = generator_reference(image, noise, lin_params, bn_params, N_CTX)
    max_err = float(jnp.max(jnp.abs(out - ref)))
    assert max_err < 0.1, f"max abs error vs f32 reference: {max_err}"

    print("KERNEL_OK")
</pallas_src>

<mosaic_0001>
module attributes {stable_mosaic.version = 11 : i64} {
  func.func @trunk_kernel(%arg0: memref<8x16xf32, #tpu.memory_space<vmem>>, %arg1: memref<8x32xf32, #tpu.memory_space<vmem>>, %arg2: memref<16x128xbf16, #tpu.memory_space<vmem>>, %arg3: memref<32x128xbf16, #tpu.memory_space<vmem>>, %arg4: memref<1x128xf32, #tpu.memory_space<vmem>>, %arg5: memref<128x256xbf16, #tpu.memory_space<vmem>>, %arg6: memref<1x256xf32, #tpu.memory_space<vmem>>, %arg7: memref<1x256xf32, #tpu.memory_space<vmem>>, %arg8: memref<1x256xf32, #tpu.memory_space<vmem>>, %arg9: memref<256x512xbf16, #tpu.memory_space<vmem>>, %arg10: memref<1x512xf32, #tpu.memory_space<vmem>>, %arg11: memref<1x512xf32, #tpu.memory_space<vmem>>, %arg12: memref<1x512xf32, #tpu.memory_space<vmem>>, %arg13: memref<512x1024xbf16, #tpu.memory_space<vmem>>, %arg14: memref<1x1024xf32, #tpu.memory_space<vmem>>, %arg15: memref<1x1024xf32, #tpu.memory_space<vmem>>, %arg16: memref<1x1024xf32, #tpu.memory_space<vmem>>, %arg17: memref<8x1024xbf16, #tpu.memory_space<vmem>>) attributes {dimension_semantics = [], scalar_prefetch = 0 : i64, scratch_operands = 0 : i64, tpu.core_type = #tpu.core_type<tc>} {
    %c0 = arith.constant 0 : index
    %c0_0 = arith.constant 0 : index
    %0 = vector.load %arg0[%c0, %c0_0] : memref<8x16xf32, #tpu.memory_space<vmem>>, vector<8x16xf32>
    %1 = arith.truncf %0 : vector<8x16xf32> to vector<8x16xbf16>
    %c0_1 = arith.constant 0 : index
    %c0_2 = arith.constant 0 : index
    %2 = vector.load %arg1[%c0_1, %c0_2] : memref<8x32xf32, #tpu.memory_space<vmem>>, vector<8x32xf32>
    %3 = arith.truncf %2 : vector<8x32xf32> to vector<8x32xbf16>
    %c0_3 = arith.constant 0 : index
    %c0_4 = arith.constant 0 : index
    %4 = vector.load %arg2[%c0_3, %c0_4] : memref<16x128xbf16, #tpu.memory_space<vmem>>, vector<16x128xbf16>
    %cst = arith.constant dense<0.000000e+00> : vector<8x128xf32>
    %5 = tpu.matmul %1, %4, %cst {dimension_numbers = #tpu.dot_dimension_numbers<[1], [0], [0], [1], [0, 0, 1, 1], [], []>} : vector<8x16xbf16>, vector<16x128xbf16>, vector<8x128xf32> -> vector<8x128xf32>
    %c0_5 = arith.constant 0 : index
    %c0_6 = arith.constant 0 : index
    %6 = vector.load %arg3[%c0_5, %c0_6] : memref<32x128xbf16, #tpu.memory_space<vmem>>, vector<32x128xbf16>
    %cst_7 = arith.constant dense<0.000000e+00> : vector<8x128xf32>
    %7 = tpu.matmul %3, %6, %cst_7 {dimension_numbers = #tpu.dot_dimension_numbers<[1], [0], [0], [1], [0, 0, 1, 1], [], []>} : vector<8x32xbf16>, vector<32x128xbf16>, vector<8x128xf32> -> vector<8x128xf32>
    %8 = arith.addf %5, %7 : vector<8x128xf32>
    %c0_8 = arith.constant 0 : index
    %c0_9 = arith.constant 0 : index
    %9 = vector.load %arg4[%c0_8, %c0_9] : memref<1x128xf32, #tpu.memory_space<vmem>>, vector<1x128xf32>
    %10 = vector.broadcast %9 : vector<1x128xf32> to vector<8x128xf32>
    %11 = arith.addf %8, %10 : vector<8x128xf32>
    %cst_10 = arith.constant 0.000000e+00 : f32
    %12 = vector.broadcast %cst_10 : f32 to vector<8x128xf32>
    %13 = arith.cmpf ogt, %11, %12 : vector<8x128xf32>
    %cst_11 = arith.constant 2.000000e-01 : f32
    %14 = vector.broadcast %cst_11 : f32 to vector<8x128xf32>
    %15 = arith.mulf %14, %11 : vector<8x128xf32>
    %16 = arith.select %13, %11, %15 : vector<8x128xi1>, vector<8x128xf32>
    %17 = arith.truncf %16 : vector<8x128xf32> to vector<8x128xbf16>
    %c0_12 = arith.constant 0 : index
    %c0_13 = arith.constant 0 : index
    %18 = vector.load %arg5[%c0_12, %c0_13] : memref<128x256xbf16, #tpu.memory_space<vmem>>, vector<128x256xbf16>
    %cst_14 = arith.constant dense<0.000000e+00> : vector<8x256xf32>
    %19 = tpu.matmul %17, %18, %cst_14 {dimension_numbers = #tpu.dot_dimension_numbers<[1], [0], [0], [1], [0, 0, 1, 1], [], []>} : vector<8x128xbf16>, vector<128x256xbf16>, vector<8x256xf32> -> vector<8x256xf32>
    %c0_15 = arith.constant 0 : index
    %c0_16 = arith.constant 0 : index
    %20 = vector.load %arg6[%c0_15, %c0_16] : memref<1x256xf32, #tpu.memory_space<vmem>>, vector<1x256xf32>
    %21 = vector.broadcast %20 : vector<1x256xf32> to vector<8x256xf32>
    %22 = arith.addf %19, %21 : vector<8x256xf32>
    %c0_17 = arith.constant 0 : index
    %c0_18 = arith.constant 0 : index
    %23 = vector.load %arg7[%c0_17, %c0_18] : memref<1x256xf32, #tpu.memory_space<vmem>>, vector<1x256xf32>
    %c0_19 = arith.constant 0 : index
    %c0_20 = arith.constant 0 : index
    %24 = vector.load %arg8[%c0_19, %c0_20] : memref<1x256xf32, #tpu.memory_space<vmem>>, vector<1x256xf32>
    %cst_21 = arith.constant dense<0.000000e+00> : vector<256xf32>
    %25 = vector.multi_reduction <add>, %22, %cst_21 [0] : vector<8x256xf32> to vector<256xf32>
    %26 = vector.shape_cast %25 : vector<256xf32> to vector<1x256xf32>
    %cst_22 = arith.constant 8.000000e+00 : f32
    %27 = vector.broadcast %cst_22 : f32 to vector<1x256xf32>
    %28 = arith.divf %26, %27 : vector<1x256xf32>
    %29 = vector.broadcast %28 : vector<1x256xf32> to vector<8x256xf32>
    %30 = arith.subf %22, %29 : vector<8x256xf32>
    %31 = arith.mulf %30, %30 : vector<8x256xf32>
    %cst_23 = arith.constant dense<0.000000e+00> : vector<256xf32>
    %32 = vector.multi_reduction <add>, %31, %cst_23 [0] : vector<8x256xf32> to vector<256xf32>
    %33 = vector.shape_cast %32 : vector<256xf32> to vector<1x256xf32>
    %cst_24 = arith.constant 8.000000e+00 : f32
    %34 = vector.broadcast %cst_24 : f32 to vector<1x256xf32>
    %35 = arith.divf %33, %34 : vector<1x256xf32>
    %36 = vector.broadcast %28 : vector<1x256xf32> to vector<8x256xf32>
    %37 = arith.subf %22, %36 : vector<8x256xf32>
    %cst_25 = arith.constant 8.000000e-01 : f32
    %38 = vector.broadcast %cst_25 : f32 to vector<1x256xf32>
    %39 = arith.addf %35, %38 : vector<1x256xf32>
    %40 = math.rsqrt %39 : vector<1x256xf32>
    %41 = vector.broadcast %40 : vector<1x256xf32> to vector<8x256xf32>
    %42 = arith.mulf %37, %41 : vector<8x256xf32>
    %43 = vector.broadcast %23 : vector<1x256xf32> to vector<8x256xf32>
    %44 = arith.mulf %42, %43 : vector<8x256xf32>
    %45 = vector.broadcast %24 : vector<1x256xf32> to vector<8x256xf32>
    %46 = arith.addf %44, %45 : vector<8x256xf32>
    %cst_26 = arith.constant 0.000000e+00 : f32
    %47 = vector.broadcast %cst_26 : f32 to vector<8x256xf32>
    %48 = arith.cmpf ogt, %46, %47 : vector<8x256xf32>
    %cst_27 = arith.constant 2.000000e-01 : f32
    %49 = vector.broadcast %cst_27 : f32 to vector<8x256xf32>
    %50 = arith.mulf %49, %46 : vector<8x256xf32>
    %51 = arith.select %48, %46, %50 : vector<8x256xi1>, vector<8x256xf32>
    %52 = arith.truncf %51 : vector<8x256xf32> to vector<8x256xbf16>
    %c0_28 = arith.constant 0 : index
    %c0_29 = arith.constant 0 : index
    %53 = vector.load %arg9[%c0_28, %c0_29] : memref<256x512xbf16, #tpu.memory_space<vmem>>, vector<256x512xbf16>
    %cst_30 = arith.constant dense<0.000000e+00> : vector<8x512xf32>
    %54 = tpu.matmul %52, %53, %cst_30 {dimension_numbers = #tpu.dot_dimension_numbers<[1], [0], [0], [1], [0, 0, 1, 1], [], []>} : vector<8x256xbf16>, vector<256x512xbf16>, vector<8x512xf32> -> vector<8x512xf32>
    %c0_31 = arith.constant 0 : index
    %c0_32 = arith.constant 0 : index
    %55 = vector.load %arg10[%c0_31, %c0_32] : memref<1x512xf32, #tpu.memory_space<vmem>>, vector<1x512xf32>
    %56 = vector.broadcast %55 : vector<1x512xf32> to vector<8x512xf32>
    %57 = arith.addf %54, %56 : vector<8x512xf32>
    %c0_33 = arith.constant 0 : index
    %c0_34 = arith.constant 0 : index
    %58 = vector.load %arg11[%c0_33, %c0_34] : memref<1x512xf32, #tpu.memory_space<vmem>>, vector<1x512xf32>
    %c0_35 = arith.constant 0 : index
    %c0_36 = arith.constant 0 : index
    %59 = vector.load %arg12[%c0_35, %c0_36] : memref<1x512xf32, #tpu.memory_space<vmem>>, vector<1x512xf32>
    %cst_37 = arith.constant dense<0.000000e+00> : vector<512xf32>
    %60 = vector.multi_reduction <add>, %57, %cst_37 [0] : vector<8x512xf32> to vector<512xf32>
    %61 = vector.shape_cast %60 : vector<512xf32> to vector<1x512xf32>
    %cst_38 = arith.constant 8.000000e+00 : f32
    %62 = vector.broadcast %cst_38 : f32 to vector<1x512xf32>
    %63 = arith.divf %61, %62 : vector<1x512xf32>
    %64 = vector.broadcast %63 : vector<1x512xf32> to vector<8x512xf32>
    %65 = arith.subf %57, %64 : vector<8x512xf32>
    %66 = arith.mulf %65, %65 : vector<8x512xf32>
    %cst_39 = arith.constant dense<0.000000e+00> : vector<512xf32>
    %67 = vector.multi_reduction <add>, %66, %cst_39 [0] : vector<8x512xf32> to vector<512xf32>
    %68 = vector.shape_cast %67 : vector<512xf32> to vector<1x512xf32>
    %cst_40 = arith.constant 8.000000e+00 : f32
    %69 = vector.broadcast %cst_40 : f32 to vector<1x512xf32>
    %70 = arith.divf %68, %69 : vector<1x512xf32>
    %71 = vector.broadcast %63 : vector<1x512xf32> to vector<8x512xf32>
    %72 = arith.subf %57, %71 : vector<8x512xf32>
    %cst_41 = arith.constant 8.000000e-01 : f32
    %73 = vector.broadcast %cst_41 : f32 to vector<1x512xf32>
    %74 = arith.addf %70, %73 : vector<1x512xf32>
    %75 = math.rsqrt %74 : vector<1x512xf32>
    %76 = vector.broadcast %75 : vector<1x512xf32> to vector<8x512xf32>
    %77 = arith.mulf %72, %76 : vector<8x512xf32>
    %78 = vector.broadcast %58 : vector<1x512xf32> to vector<8x512xf32>
    %79 = arith.mulf %77, %78 : vector<8x512xf32>
    %80 = vector.broadcast %59 : vector<1x512xf32> to vector<8x512xf32>
    %81 = arith.addf %79, %80 : vector<8x512xf32>
    %cst_42 = arith.constant 0.000000e+00 : f32
    %82 = vector.broadcast %cst_42 : f32 to vector<8x512xf32>
    %83 = arith.cmpf ogt, %81, %82 : vector<8x512xf32>
    %cst_43 = arith.constant 2.000000e-01 : f32
    %84 = vector.broadcast %cst_43 : f32 to vector<8x512xf32>
    %85 = arith.mulf %84, %81 : vector<8x512xf32>
    %86 = arith.select %83, %81, %85 : vector<8x512xi1>, vector<8x512xf32>
    %87 = arith.truncf %86 : vector<8x512xf32> to vector<8x512xbf16>
    %c0_44 = arith.constant 0 : index
    %c0_45 = arith.constant 0 : index
    %88 = vector.load %arg13[%c0_44, %c0_45] : memref<512x1024xbf16, #tpu.memory_space<vmem>>, vector<512x1024xbf16>
    %cst_46 = arith.constant dense<0.000000e+00> : vector<8x1024xf32>
    %89 = tpu.matmul %87, %88, %cst_46 {dimension_numbers = #tpu.dot_dimension_numbers<[1], [0], [0], [1], [0, 0, 1, 1], [], []>} : vector<8x512xbf16>, vector<512x1024xbf16>, vector<8x1024xf32> -> vector<8x1024xf32>
    %c0_47 = arith.constant 0 : index
    %c0_48 = arith.constant 0 : index
    %90 = vector.load %arg14[%c0_47, %c0_48] : memref<1x1024xf32, #tpu.memory_space<vmem>>, vector<1x1024xf32>
    %91 = vector.broadcast %90 : vector<1x1024xf32> to vector<8x1024xf32>
    %92 = arith.addf %89, %91 : vector<8x1024xf32>
    %c0_49 = arith.constant 0 : index
    %c0_50 = arith.constant 0 : index
    %93 = vector.load %arg15[%c0_49, %c0_50] : memref<1x1024xf32, #tpu.memory_space<vmem>>, vector<1x1024xf32>
    %c0_51 = arith.constant 0 : index
    %c0_52 = arith.constant 0 : index
    %94 = vector.load %arg16[%c0_51, %c0_52] : memref<1x1024xf32, #tpu.memory_space<vmem>>, vector<1x1024xf32>
    %cst_53 = arith.constant dense<0.000000e+00> : vector<1024xf32>
    %95 = vector.multi_reduction <add>, %92, %cst_53 [0] : vector<8x1024xf32> to vector<1024xf32>
    %96 = vector.shape_cast %95 : vector<1024xf32> to vector<1x1024xf32>
    %cst_54 = arith.constant 8.000000e+00 : f32
    %97 = vector.broadcast %cst_54 : f32 to vector<1x1024xf32>
    %98 = arith.divf %96, %97 : vector<1x1024xf32>
    %99 = vector.broadcast %98 : vector<1x1024xf32> to vector<8x1024xf32>
    %100 = arith.subf %92, %99 : vector<8x1024xf32>
    %101 = arith.mulf %100, %100 : vector<8x1024xf32>
    %cst_55 = arith.constant dense<0.000000e+00> : vector<1024xf32>
    %102 = vector.multi_reduction <add>, %101, %cst_55 [0] : vector<8x1024xf32> to vector<1024xf32>
    %103 = vector.shape_cast %102 : vector<1024xf32> to vector<1x1024xf32>
    %cst_56 = arith.constant 8.000000e+00 : f32
    %104 = vector.broadcast %cst_56 : f32 to vector<1x1024xf32>
    %105 = arith.divf %103, %104 : vector<1x1024xf32>
    %106 = vector.broadcast %98 : vector<1x1024xf32> to vector<8x1024xf32>
    %107 = arith.subf %92, %106 : vector<8x1024xf32>
    %cst_57 = arith.constant 8.000000e-01 : f32
    %108 = vector.broadcast %cst_57 : f32 to vector<1x1024xf32>
    %109 = arith.addf %105, %108 : vector<1x1024xf32>
    %110 = math.rsqrt %109 : vector<1x1024xf32>
    %111 = vector.broadcast %110 : vector<1x1024xf32> to vector<8x1024xf32>
    %112 = arith.mulf %107, %111 : vector<8x1024xf32>
    %113 = vector.broadcast %93 : vector<1x1024xf32> to vector<8x1024xf32>
    %114 = arith.mulf %112, %113 : vector<8x1024xf32>
    %115 = vector.broadcast %94 : vector<1x1024xf32> to vector<8x1024xf32>
    %116 = arith.addf %114, %115 : vector<8x1024xf32>
    %cst_58 = arith.constant 0.000000e+00 : f32
    %117 = vector.broadcast %cst_58 : f32 to vector<8x1024xf32>
    %118 = arith.cmpf ogt, %116, %117 : vector<8x1024xf32>
    %cst_59 = arith.constant 2.000000e-01 : f32
    %119 = vector.broadcast %cst_59 : f32 to vector<8x1024xf32>
    %120 = arith.mulf %119, %116 : vector<8x1024xf32>
    %121 = arith.select %118, %116, %120 : vector<8x1024xi1>, vector<8x1024xf32>
    %122 = arith.truncf %121 : vector<8x1024xf32> to vector<8x1024xbf16>
    %c0_60 = arith.constant 0 : index
    %c0_61 = arith.constant 0 : index
    %123 = vector.load %arg17[%c0_60, %c0_61] : memref<8x1024xbf16, #tpu.memory_space<vmem>>, vector<8x1024xbf16>
    tpu.vector_store %arg17[%c0_60, %c0_61], %122 {strides = array<i32>} : memref<8x1024xbf16, #tpu.memory_space<vmem>>, vector<8x1024xbf16>,
    return
  }
}

module attributes {stable_mosaic.version = 11 : i64} {
  func.func @head_kernel(%arg0: i32, %arg1: memref<8x1024xbf16, #tpu.memory_space<vmem>>, %arg2: memref<1024x1024xbf16, #tpu.memory_space<vmem>>, %arg3: memref<1x1024xf32, #tpu.memory_space<vmem>>, %arg4: memref<8x1024xf32, #tpu.memory_space<vmem>>) attributes {dimension_semantics = [#tpu.dimension_semantics<parallel>], iteration_bounds = array<i64: 2>, scalar_prefetch = 0 : i64, scratch_operands = 0 : i64, tpu.core_type = #tpu.core_type<tc>, window_params = [{pipeline_mode = #tpu.pipeline_mode<synchronous>, transform_indices = @transform_0, window_bounds = array<i64: 8, 1024>}, {transform_indices = @transform_1, window_bounds = array<i64: 1024, 1024>}, {transform_indices = @transform_2, window_bounds = array<i64: 1, 1024>}, {transform_indices = @transform_3, window_bounds = array<i64: 8, 1024>}]} {
    %c0 = arith.constant 0 : index
    %c0_0 = arith.constant 0 : index
    %0 = vector.load %arg1[%c0, %c0_0] : memref<8x1024xbf16, #tpu.memory_space<vmem>>, vector<8x1024xbf16>
    %c0_1 = arith.constant 0 : index
    %c0_2 = arith.constant 0 : index
    %1 = vector.load %arg2[%c0_1, %c0_2] : memref<1024x1024xbf16, #tpu.memory_space<vmem>>, vector<1024x1024xbf16>
    %cst = arith.constant dense<0.000000e+00> : vector<8x1024xf32>
    %2 = tpu.matmul %0, %1, %cst {dimension_numbers = #tpu.dot_dimension_numbers<[1], [0], [0], [1], [0, 0, 1, 1], [], []>} : vector<8x1024xbf16>, vector<1024x1024xbf16>, vector<8x1024xf32> -> vector<8x1024xf32>
    %c0_3 = arith.constant 0 : index
    %c0_4 = arith.constant 0 : index
    %3 = vector.load %arg3[%c0_3, %c0_4] : memref<1x1024xf32, #tpu.memory_space<vmem>>, vector<1x1024xf32>
    %4 = vector.broadcast %3 : vector<1x1024xf32> to vector<8x1024xf32>
    %5 = arith.addf %2, %4 : vector<8x1024xf32>
    %6 = math.tanh %5 : vector<8x1024xf32>
    %c0_5 = arith.constant 0 : index
    %c0_6 = arith.constant 0 : index
    %7 = vector.load %arg4[%c0_5, %c0_6] : memref<8x1024xf32, #tpu.memory_space<vmem>>, vector<8x1024xf32>
    tpu.vector_store %arg4[%c0_5, %c0_6], %6 {strides = array<i32>} : memref<8x1024xf32, #tpu.memory_space<vmem>>, vector<8x1024xf32>,
    return
  }
  func.func @transform_0(%arg0: i32) -> (i32, i32) {
    %c0_i32 = arith.constant 0 : i32
    %c0_i32_0 = arith.constant 0 : i32
    %c0_i32_1 = arith.constant 0 : i32
    return %c0_i32, %c0_i32_0 : i32, i32
  }
  func.func @transform_1(%arg0: i32) -> (i32, i32) {
    %c0_i32 = arith.constant 0 : i32
    %c0_i32_0 = arith.constant 0 : i32
    return %c0_i32, %arg0 : i32, i32
  }
  func.func @transform_2(%arg0: i32) -> (i32, i32) {
    %c0_i32 = arith.constant 0 : i32
    %c0_i32_0 = arith.constant 0 : i32
    return %c0_i32, %arg0 : i32, i32
  }
  func.func @transform_3(%arg0: i32) -> (i32, i32) {
    %c0_i32 = arith.constant 0 : i32
    %c0_i32_0 = arith.constant 0 : i32
    return %c0_i32, %arg0 : i32, i32
  }
}

</mosaic_0001>

<bundles_post_ra>
// kernel: generator_forward.2
= control target key start
LH: loop header
LB: loop body
LE: loop exit
PB: predicated region body
PF: predicated region fallthrough
CT: control target
= control target key end

     0   :  { %s5189_s0 = inlined_call_operand.vmem [shape: f32[8,16], index: 0, kind: input, shape index: {}]   ;;  %s5190_s1 = inlined_call_operand.hbm [shape: f32[8,32], index: 1, kind: input, shape index: {}]   ;;  %s5191_s2 = inlined_call_operand.vmem [shape: bf16[16,128], index: 2, kind: input, shape index: {}]   ;;  %s5192_s3 = inlined_call_operand.vmem [shape: bf16[32,128], index: 3, kind: input, shape index: {}]   ;;  %s5193_s4 = inlined_call_operand.vmem [shape: f32[1,128], index: 4, kind: input, shape index: {}]   ;;  %s5194_s5 = inlined_call_operand.vmem [shape: bf16[128,256], index: 5, kind: input, shape index: {}]   ;;  %s5195_s6 = inlined_call_operand.vmem [shape: f32[1,256], index: 6, kind: input, shape index: {}]   ;;  %s5196_s7 = inlined_call_operand.vmem [shape: f32[1,256], index: 7, kind: input, shape index: {}]   ;;  %s5197_s8 = inlined_call_operand.vmem [shape: f32[1,256], index: 8, kind: input, shape index: {}]   ;;  %s5198_s9 = inlined_call_operand.vmem [shape: bf16[256,512], index: 9, kind: input, shape index: {}]   ;;  %s5199_s10 = inlined_call_operand.vmem [shape: f32[1,512], index: 10, kind: input, shape index: {}]   ;;  %s5200_s11 = inlined_call_operand.vmem [shape: f32[1,512], index: 11, kind: input, shape index: {}]   ;;  %s5201_s12 = inlined_call_operand.vmem [shape: f32[1,512], index: 12, kind: input, shape index: {}]   ;;  %s5202_s13 = inlined_call_operand.vmem [shape: bf16[512,1024], index: 13, kind: input, shape index: {}]   ;;  %s5203_s14 = inlined_call_operand.vmem [shape: f32[1,1024], index: 14, kind: input, shape index: {}]   ;;  %s5204_s15 = inlined_call_operand.vmem [shape: f32[1,1024], index: 15, kind: input, shape index: {}]   ;;  %s5205_s16 = inlined_call_operand.vmem [shape: f32[1,1024], index: 16, kind: input, shape index: {}]   ;;  %s5206_s17 = inlined_call_operand.vmem [shape: bf16[8,1024], index: 17, kind: output, shape index: {}]  }
   0x1   :  { %5208 = sst [smem:[#allocation5_spill]] %s5189_s0 }
   0x2   :  { %5209 = sst [smem:[#allocation6_spill]] %s5190_s1 }
   0x3   :  { %5210 = sst [smem:[#allocation7_spill]] %s5201_s12 }
   0x4   :  { %22 = vsyncpa [#allocation3], 0  ;;  %s3848_s24 = smov [#allocation2]   ;;  %s5211_s28 = sld [smem:[#allocation6_spill]] }
   0x5   :  { %s31_s25 = sshll.u32 %s3848_s24, 4  ;;  %s32_s25 = int_to_ptr.vmem [resolvable:$true] %s31_s25 }
   0xa   :  { %s3824_s29 = scalar_lea.hbm %s5211_s28, 128 }
   0xb   :  { %p3825_p0 = scmp.ne.s32.totalorder %s5211_s28, %s3824_s29  ;;  %p3828_p1 = scmp.lt.u32.totalorder %s3824_s29, %s5211_s28 }
   0xd   :  { %p3830_p2 = pnand %p3828_p1, %p3825_p0 }
   0xf   :  { %3833 = shalt.err (!%p3830_p2)
}
  0x10   :  { %s3834_s19 = scalar_lea.vmem %s32_s25, 128  ;;  %p3839_p4 = scmp.lt.s32.totalorder %s32_s25, %s32_s25 }
  0x11   :  { %p3835_p3 = scmp.ne.s32.totalorder %s32_s25, %s3834_s19  ;;  %p3840_p5 = scmp.lt.s32.totalorder %s3834_s19, %s3834_s19 }
  0x13   :  { %p3841_p6 = por %p3840_p5, %p3839_p4 }
  0x15   :  { %p3842_p7 = pnand %p3841_p6, %p3835_p3 }
  0x17   :  { %3845 = shalt.err (!%p3842_p7)
}
  0x18   :  { %34 = dma.hbm_to_vmem [thread:$0]  %s5211_s28, 128, %s32_s25, [#allocation3]  }
  0x19   :  { %3846 = dma.done.wait [#allocation3], 128  }
  0x1a   :  { %3847 = vsyncadd [#allocation3], 4294967168  ;;  %v3849_v0 = vmov 0.0   ;;  %vm3850_vm0 = vmmov 0   ;;  %v3673_v1 = vld [vmem:[%s5192_s3] sm:$0xff]   ;;  %v3674_v2 = vld [vmem:[%s5192_s3 + $0x8] sm:$0xff]  }
  0x1b   :  { %3631 = vmatprep.subr.bf16.mxu0 %v3849_v0  ;;  %3635 = vmatprep.mubr.msk.bf16.mxu0 %vm3850_vm0, %v3849_v0  ;;  %v71_v3 = vld [vmem:[#allocation2] sm:$0xff]  ;;  %v3679_v7 = vld [vmem:[%s5194_s5 + $0x14] ss:$8 sps:$4 sm:$0xff]   ;;  %vm91_vm1 = vcmask 261120   ;;  %v3681_v9 = vld [vmem:[%s5194_s5 + $0x10] ss:$8 sps:$4 sm:$0xff]  }
  0x1c   :  { %3632 = vmatpush3.bf16.msra.mxu0 %v3673_v1  ;;  %v3676_v4 = vld [vmem:[%s5194_s5 + $0x4] ss:$8 sps:$4 sm:$0xff]   ;;  %v3678_v5 = vld [vmem:[%s5194_s5] ss:$8 sps:$4 sm:$0xff]   ;;  %v72_v6 = vpack.c.bf16 %v71_v3, %v71_v3  ;;  %s5212_s20 = sld [smem:[#allocation5_spill]]  ;;  %vm141_vm2 = vcmask 130048  }
  0x1d   :  { %3633 = vmatprep.subr.bf16.mxu0 %v3849_v0  ;;  %v3675_v8 = vld [vmem:[%s5191_s2] sm:$0xff]   ;;  %305 = vmatprep.subr.bf16.mxu1 %v3676_v4  ;;  %v3685_v13 = vld [vmem:[%s5194_s5 + $0x34] ss:$8 sps:$4 sm:$0xff]   ;;  %v3687_v15 = vld [vmem:[%s5194_s5 + $0x30] ss:$8 sps:$4 sm:$0xff]   ;;  %v3851_v24 = vmov 0  }
  0x1e   :  { %306 = vmatpush1.bf16.msra.mxu1 %v3678_v5  ;;  %v3682_v11 = vld [vmem:[%s5194_s5 + $0x24] ss:$8 sps:$4 sm:$0xff]   ;;  %v3684_v12 = vld [vmem:[%s5194_s5 + $0x20] ss:$8 sps:$4 sm:$0xff]   ;;  %v3691_v18 = vld [vmem:[%s5194_s5 + $0x54] ss:$8 sps:$4 sm:$0xff]   ;;  %337 = vmatprep.mubr.bf16.mxu1 %v3851_v24 }
  0x1f   :  { %307 = vmatprep.subr.bf16.mxu1 %v3679_v7  ;;  %v3688_v16 = vld [vmem:[%s5194_s5 + $0x44] ss:$8 sps:$4 sm:$0xff]   ;;  %v3690_v17 = vld [vmem:[%s5194_s5 + $0x40] ss:$8 sps:$4 sm:$0xff]   ;;  %v3693_v19 = vld [vmem:[%s5194_s5 + $0x50] ss:$8 sps:$4 sm:$0xff]  }
  0x20   :  { %3634 = vmatpush3.bf16.msra.mxu0 %v3674_v2  ;;  %v3694_v20 = vld [vmem:[%s5194_s5 + $0x64] ss:$8 sps:$4 sm:$0xff]   ;;  %v3696_v21 = vld [vmem:[%s5194_s5 + $0x60] ss:$8 sps:$4 sm:$0xff]   ;;  %v3697_v22 = vld [vmem:[%s5194_s5 + $0x74] ss:$8 sps:$4 sm:$0xff]  }
  0x21   :  { %3639 = vmatprep.subr.bf16.mxu0 %v3849_v0  ;;  %v3699_v23 = vld [vmem:[%s5194_s5 + $0x70] ss:$8 sps:$4 sm:$0xff]   ;;  %v3702_v26 = vld [vmem:[%s5198_s9 + $0x4] ss:$16 sps:$4 sm:$0xff]   ;;  %v3705_v27 = vld [vmem:[%s5198_s9 + $0xc] ss:$16 sps:$4 sm:$0xff]  }
  0x22   :  { %v69_v10 = vld [vmem:[%s5212_s20] sm:$0xff]  ;;  %308 = vmatpush1.bf16.msra.mxu1 %v3681_v9  ;;  %v3703_v41 = vld [vmem:[%s5198_s9 + $0x8] ss:$16 sps:$4 sm:$0xff]   ;;  %v3711_v44 = vld [vmem:[%s5198_s9 + $0x2c] ss:$16 sps:$4 sm:$0xff]   ;;  %s5213_s20 = sld [smem:[#allocation7_spill]] }
  0x23   :  { %3636 = vmatmul.mubr.msk.bf16.vlgmr.msra.gmra.mrb[0].mxu0 %vm91_vm1, %v72_v6  ;;  %309 = vmatprep.subr.bf16.mxu1 %v3682_v11  ;;  %v70_v14 = vpack.c.bf16 %v69_v10, %v69_v10  ;;  %v3700_v25 = vld [vmem:[%s5198_s9] ss:$16 sps:$4 sm:$0xff]   ;;  %v3708_v43 = vld [vmem:[%s5198_s9 + $0x24] ss:$16 sps:$4 sm:$0xff]   ;;  %v3709_v46 = vld [vmem:[%s5198_s9 + $0x28] ss:$16 sps:$4 sm:$0xff]  }
  0x24   :  { %3640 = vmatpush3.bf16.msra.mxu0 %v3675_v8  ;;  %3641 = vmatprep.mubr.msk.bf16.mxu0 %vm3850_vm0, %v3849_v0  ;;  %v3281_v33 = vld [vmem:[%s5193_s4] ss:$0 sm:$0xff]  ;;  %v3714_v47 = vld [vmem:[%s5198_s9 + $0x44] ss:$16 sps:$4 sm:$0xff]   ;;  %v3717_v48 = vld [vmem:[%s5198_s9 + $0x4c] ss:$16 sps:$4 sm:$0xff]  }
  0x25   :  { %827 = vmatprep.subr.bf16.mxu0 %v3702_v26  ;;  %v3706_v45 = vld [vmem:[%s5198_s9 + $0x20] ss:$16 sps:$4 sm:$0xff]   ;;  %v3715_v50 = vld [vmem:[%s5198_s9 + $0x48] ss:$16 sps:$4 sm:$0xff]   ;;  %v3720_v51 = vld [vmem:[%s5198_s9 + $0x64] ss:$16 sps:$4 sm:$0xff]  }
  0x26   :  { %310 = vmatpush1.bf16.msra.mxu1 %v3684_v12  ;;  %v3712_v49 = vld [vmem:[%s5198_s9 + $0x40] ss:$16 sps:$4 sm:$0xff]   ;;  %v3723_v52 = vld [vmem:[%s5198_s9 + $0x6c] ss:$16 sps:$4 sm:$0xff]   ;;  %v3721_v54 = vld [vmem:[%s5198_s9 + $0x68] ss:$16 sps:$4 sm:$0xff]  }
  0x27   :  { %311 = vmatprep.subr.bf16.mxu1 %v3685_v13  ;;  %v3718_v53 = vld [vmem:[%s5198_s9 + $0x60] ss:$16 sps:$4 sm:$0xff]   ;;  %v3726_v55 = vld [vmem:[%s5198_s9 + $0x84] ss:$16 sps:$4 sm:$0xff]   ;;  %v3729_v56 = vld [vmem:[%s5198_s9 + $0x8c] ss:$16 sps:$4 sm:$0xff]  }
  0x28   :  { %v3724_v57 = vld [vmem:[%s5198_s9 + $0x80] ss:$16 sps:$4 sm:$0xff]   ;;  %v3727_v58 = vld [vmem:[%s5198_s9 + $0x88] ss:$16 sps:$4 sm:$0xff]   ;;  %v3732_v59 = vld [vmem:[%s5198_s9 + $0xa4] ss:$16 sps:$4 sm:$0xff]  }
  0x29   :  { %v3735_v60 = vld [vmem:[%s5198_s9 + $0xac] ss:$16 sps:$4 sm:$0xff]   ;;  %v3730_v61 = vld [vmem:[%s5198_s9 + $0xa0] ss:$16 sps:$4 sm:$0xff]   ;;  %v3733_v62 = vld [vmem:[%s5198_s9 + $0xa8] ss:$16 sps:$4 sm:$0xff]  }
  0x2a   :  { %312 = vmatpush1.bf16.msra.mxu1 %v3687_v15  ;;  %v3738_v63 = vld [vmem:[%s5198_s9 + $0xc4] ss:$16 sps:$4 sm:$0xff]   ;;  %v3741_v0 = vld [vmem:[%s5198_s9 + $0xcc] ss:$16 sps:$4 sm:$0xff]   ;;  %v3736_v1 = vld [vmem:[%s5198_s9 + $0xc0] ss:$16 sps:$4 sm:$0xff]  }
  0x2b   :  { %3642 = vmatmul.mubr.msk.bf16.vlgmr.msra.gmra.mrb[4].mxu0 %vm141_vm2, %v70_v14  ;;  %313 = vmatprep.subr.bf16.mxu1 %v3688_v16  ;;  %v3739_v2 = vld [vmem:[%s5198_s9 + $0xc8] ss:$16 sps:$4 sm:$0xff]   ;;  %v3744_v3 = vld [vmem:[%s5198_s9 + $0xe4] ss:$16 sps:$4 sm:$0xff]   ;;  %v3747_v4 = vld [vmem:[%s5198_s9 + $0xec] ss:$16 sps:$4 sm:$0xff]  }
  0x2c   :  { %828 = vmatpush1.bf16.msra.mxu0 %v3700_v25  ;;  %v3742_v5 = vld [vmem:[%s5198_s9 + $0xe0] ss:$16 sps:$4 sm:$0xff]   ;;  %v3745_v6 = vld [vmem:[%s5198_s9 + $0xe8] ss:$16 sps:$4 sm:$0xff]   ;;  %v3750_v7 = vld [vmem:[%s5198_s9 + $0x104] ss:$16 sps:$4 sm:$0xff]  }
  0x2d   :  { %829 = vmatprep.subr.bf16.mxu0 %v3708_v43  ;;  %v3753_v8 = vld [vmem:[%s5198_s9 + $0x10c] ss:$16 sps:$4 sm:$0xff]   ;;  %v3748_v9 = vld [vmem:[%s5198_s9 + $0x100] ss:$16 sps:$4 sm:$0xff]   ;;  %v3751_v10 = vld [vmem:[%s5198_s9 + $0x108] ss:$16 sps:$4 sm:$0xff]  }
  0x2e   :  { %314 = vmatpush1.bf16.msra.mxu1 %v3690_v17  ;;  %v3756_v11 = vld [vmem:[%s5198_s9 + $0x124] ss:$16 sps:$4 sm:$0xff]   ;;  %v3759_v12 = vld [vmem:[%s5198_s9 + $0x12c] ss:$16 sps:$4 sm:$0xff]   ;;  %v3754_v13 = vld [vmem:[%s5198_s9 + $0x120] ss:$16 sps:$4 sm:$0xff]  }
  0x2f   :  { %315 = vmatprep.subr.bf16.mxu1 %v3691_v18  ;;  %v3757_v14 = vld [vmem:[%s5198_s9 + $0x128] ss:$16 sps:$4 sm:$0xff]   ;;  %v3762_v15 = vld [vmem:[%s5198_s9 + $0x144] ss:$16 sps:$4 sm:$0xff]   ;;  %v3765_v16 = vld [vmem:[%s5198_s9 + $0x14c] ss:$16 sps:$4 sm:$0xff]  }
  0x30   :  { %830 = vmatpush1.bf16.msra.mxu0 %v3706_v45  ;;  %v3760_v17 = vld [vmem:[%s5198_s9 + $0x140] ss:$16 sps:$4 sm:$0xff]   ;;  %v3763_v18 = vld [vmem:[%s5198_s9 + $0x148] ss:$16 sps:$4 sm:$0xff]   ;;  %v3777_v24 = vld [vmem:[%s5198_s9 + $0x18c] ss:$16 sps:$4 sm:$0xff]  }
  0x31   :  { %831 = vmatprep.subr.bf16.mxu0 %v3714_v47  ;;  %v3772_v25 = vld [vmem:[%s5198_s9 + $0x180] ss:$16 sps:$4 sm:$0xff]   ;;  %v3775_v26 = vld [vmem:[%s5198_s9 + $0x188] ss:$16 sps:$4 sm:$0xff]   ;;  %v215_v47 = vlaneseq }
  0x32   :  { %316 = vmatpush1.bf16.msra.mxu1 %v3693_v19  ;;  %v3768_v19 = vld [vmem:[%s5198_s9 + $0x164] ss:$16 sps:$4 sm:$0xff]  }
  0x33   :  { %317 = vmatprep.subr.bf16.mxu1 %v3694_v20  ;;  %v3771_v20 = vld [vmem:[%s5198_s9 + $0x16c] ss:$16 sps:$4 sm:$0xff]  }
  0x34   :  { %832 = vmatpush1.bf16.msra.mxu0 %v3712_v49 }
  0x35   :  { %833 = vmatprep.subr.bf16.mxu0 %v3720_v51 }
  0x36   :  { %318 = vmatpush1.bf16.msra.mxu1 %v3696_v21  ;;  %v3766_v21 = vld [vmem:[%s5198_s9 + $0x160] ss:$16 sps:$4 sm:$0xff]  }
  0x37   :  { %319 = vmatprep.subr.bf16.mxu1 %v3697_v22  ;;  %v3769_v22 = vld [vmem:[%s5198_s9 + $0x168] ss:$16 sps:$4 sm:$0xff]  }
  0x38   :  { %834 = vmatpush1.bf16.msra.mxu0 %v3718_v53 }
  0x39   :  { %835 = vmatprep.subr.bf16.mxu0 %v3726_v55 }
  0x3a   :  { %320 = vmatpush1.bf16.msra.mxu1 %v3699_v23  ;;  %v3774_v23 = vld [vmem:[%s5198_s9 + $0x184] ss:$16 sps:$4 sm:$0xff]  }
  0x3b   :  { %868 = vmatprep.subr.bf16.mxu1 %v3705_v27  ;;  %v3780_v27 = vld [vmem:[%s5198_s9 + $0x1a4] ss:$16 sps:$4 sm:$0xff]  }
  0x3c   :  { %836 = vmatpush1.bf16.msra.mxu0 %v3724_v57 }
  0x3d   :  { %837 = vmatprep.subr.bf16.mxu0 %v3732_v59 }
  0x40   :  { %838 = vmatpush1.bf16.msra.mxu0 %v3730_v61 }
  0x41   :  { %839 = vmatprep.subr.bf16.mxu0 %v3738_v63 }
  0x44   :  { %840 = vmatpush1.bf16.msra.mxu0 %v3736_v1 }
  0x45   :  { %841 = vmatprep.subr.bf16.mxu0 %v3744_v3 }
  0x48   :  { %842 = vmatpush1.bf16.msra.mxu0 %v3742_v5 }
  0x49   :  { %843 = vmatprep.subr.bf16.mxu0 %v3750_v7 }
  0x4c   :  { %844 = vmatpush1.bf16.msra.mxu0 %v3748_v9 }
  0x4d   :  { %845 = vmatprep.subr.bf16.mxu0 %v3756_v11 }
  0x50   :  { %846 = vmatpush1.bf16.msra.mxu0 %v3754_v13 }
  0x51   :  { %847 = vmatprep.subr.bf16.mxu0 %v3762_v15 }
  0x54   :  { %848 = vmatpush1.bf16.msra.mxu0 %v3760_v17 }
  0x55   :  { %849 = vmatprep.subr.bf16.mxu0 %v3768_v19 }
  0x58   :  { %850 = vmatpush1.bf16.msra.mxu0 %v3766_v21 }
  0x59   :  { %851 = vmatprep.subr.bf16.mxu0 %v3774_v23 }
  0x5c   :  { %852 = vmatpush1.bf16.msra.mxu0 %v3772_v25 }
  0x5d   :  { %853 = vmatprep.subr.bf16.mxu0 %v3780_v27 }
  0xf6   :  { %v129_v28 = vpop.f32.mrb[0].mxu0 }
  0xf7   :  { %v3637_v29 = vpop.f32.mrb[1].mxu0 }
  0xf8   :  { %v132_v30 = vpop.f32.mrb[2].mxu0  ;;  %v3778_v29 = vld [vmem:[%s5198_s9 + $0x1a0] ss:$16 sps:$4 sm:$0xff]  }
  0xf9   :  { %v3638_v31 = vpop.f32.mrb[3].mxu0  ;;  %v3781_v30 = vld [vmem:[%s5198_s9 + $0x1a8] ss:$16 sps:$4 sm:$0xff]   ;;  %854 = vmatpush1.bf16.msra.mxu0 %v3778_v29 }
  0xfa   :  { %v3786_v31 = vld [vmem:[%s5198_s9 + $0x1c4] ss:$16 sps:$4 sm:$0xff]  }
  0xfb   :  { %855 = vmatprep.subr.bf16.mxu0 %v3786_v31  ;;  %v347_v31 = vld [vmem:[%s5197_s8] sm:$0x3] }
  0xfe   :  { %v179_v32 = vpop.f32.mrb[4].mxu0 }
  0xff   :  { %v180_v34 = vadd.f32 %v179_v32, %v129_v28  ;;  %v3643_v35 = vpop.f32.mrb[5].mxu0  ;;  %v3783_v28 = vld [vmem:[%s5198_s9 + $0x1ac] ss:$16 sps:$4 sm:$0xff]  }
 0x100   :  { %v182_v36 = vpop.f32.mrb[6].mxu0  ;;  %v3789_v32 = vld [vmem:[%s5198_s9 + $0x1cc] ss:$16 sps:$4 sm:$0xff]   ;;  %v3792_v35 = vld [vmem:[%s5198_s9 + $0x1e4] ss:$16 sps:$4 sm:$0xff]  }
 0x101   :  { %v192_v37 = vadd.f32 %v3281_v33, %v180_v34  ;;  %v3644_v38 = vpop.f32.mrb[7].mxu0  ;;  %v3784_v33 = vld [vmem:[%s5198_s9 + $0x1c0] ss:$16 sps:$4 sm:$0xff]   ;;  %v3787_v34 = vld [vmem:[%s5198_s9 + $0x1c8] ss:$16 sps:$4 sm:$0xff]  }
 0x102   :  { %v3795_v36 = vld [vmem:[%s5198_s9 + $0x1ec] ss:$16 sps:$4 sm:$0xff]   ;;  %856 = vmatpush1.bf16.msra.mxu0 %v3784_v33  ;;  %v3793_v38 = vld [vmem:[%s5198_s9 + $0x1e8] ss:$16 sps:$4 sm:$0xff]  }
 0x103   :  { %v194_v39 = vmul.f32 0.2, %v192_v37  ;;  %vm193_vm3 = vcmp.gt.f32.partialorder %v192_v37, 0.0  ;;  %857 = vmatprep.subr.bf16.mxu0 %v3792_v35 }
 0x105   :  { %v195_v40 = vsel %vm193_vm3, %v192_v37, %v194_v39  ;;  %v3790_v37 = vld [vmem:[%s5198_s9 + $0x1e0] ss:$16 sps:$4 sm:$0xff]  }
 0x106   :  { %v196_v42 = vpack.c.bf16 %v195_v40, %v195_v40  ;;  %858 = vmatpush1.bf16.msra.mxu0 %v3790_v37  ;;  %v4214_v39 = vld [vmem:[%s5202_s13] sm:$0xff] }
 0x107   :  { %v4219_v40 = vld [vmem:[%s5202_s13 + $0x20] sm:$0xff] }
 0x108   :  { %338 = vmatmul.mubr.bf16.vlgmr.msra.gmra.mrb[0].mxu1 %v196_v42  ;;  %v3362_v42 = vcombine.low %v4214_v39, %v4219_v40  ;;  %v3363_v43 = vcombine.high %v4214_v39, %v4219_v40  ;;  %v1066_v39 = vld [vmem:[%s5202_s13 + $0x68] sm:$0xff] }
 0x109   :  { %869 = vmatpush1.bf16.msra.mxu1 %v3703_v41  ;;  %v4224_v41 = vld [vmem:[%s5202_s13 + $0x8] sm:$0xff] }
 0x10a   :  { %870 = vmatprep.subr.bf16.mxu1 %v3711_v44  ;;  %v4233_v44 = vld [vmem:[%s5202_s13 + $0x28] sm:$0xff]  ;;  %2631 = vmatprep.subr.bf16.mxu0 %v3363_v43 }
 0x10b   :  { %v3364_v45 = vcombine.low %v4224_v41, %v4233_v44 }
 0x10d   :  { %871 = vmatpush1.bf16.msra.mxu1 %v3709_v46  ;;  %v3365_v46 = vcombine.high %v4224_v41, %v4233_v44  ;;  %v1069_v44 = vld [vmem:[%s5202_s13 + $0x80] sm:$0xff] }
 0x10e   :  { %872 = vmatprep.subr.bf16.mxu1 %v3717_v48  ;;  %v4239_v48 = vshrl.u32 %v215_v47, 7 }
 0x110   :  { %v4242_v49 = vsub.s32 0, %v4239_v48  ;;  %v4248_v51 = vsub.s32 1, %v4239_v48 }
 0x111   :  { %873 = vmatpush1.bf16.msra.mxu1 %v3715_v50  ;;  %v213_v50 = vld [vmem:[%s5195_s6] sm:$0x3] }
 0x112   :  { %874 = vmatprep.subr.bf16.mxu1 %v3723_v52  ;;  %v218_v52 = vrot.slane %v213_v50, %v4242_v49  ;;  %v222_v53 = vrot.slane %v213_v50, %v4248_v51  ;;  %v404_v37 = vrot.slane %v347_v31, %v4242_v49  ;;  %v408_v43 = vrot.slane %v347_v31, %v4248_v51  ;;  %v1102_v31 = vld [vmem:[%s5202_s13 + $0x188] sm:$0xff] }
 0x115   :  { %875 = vmatpush1.bf16.msra.mxu1 %v3721_v54 }
 0x116   :  { %876 = vmatprep.subr.bf16.mxu1 %v3729_v56 }
 0x119   :  { %877 = vmatpush1.bf16.msra.mxu1 %v3727_v58 }
 0x11a   :  { %878 = vmatprep.subr.bf16.mxu1 %v3735_v60 }
 0x11d   :  { %879 = vmatpush1.bf16.msra.mxu1 %v3733_v62 }
 0x11e   :  { %880 = vmatprep.subr.bf16.mxu1 %v3741_v0 }
 0x121   :  { %881 = vmatpush1.bf16.msra.mxu1 %v3739_v2 }
 0x122   :  { %882 = vmatprep.subr.bf16.mxu1 %v3747_v4 }
 0x125   :  { %883 = vmatpush1.bf16.msra.mxu1 %v3745_v6 }
 0x126   :  { %884 = vmatprep.subr.bf16.mxu1 %v3753_v8 }
 0x129   :  { %885 = vmatpush1.bf16.msra.mxu1 %v3751_v10 }
 0x12a   :  { %886 = vmatprep.subr.bf16.mxu1 %v3759_v12 }
 0x12d   :  { %887 = vmatpush1.bf16.msra.mxu1 %v3757_v14 }
 0x12e   :  { %888 = vmatprep.subr.bf16.mxu1 %v3765_v16 }
 0x131   :  { %889 = vmatpush1.bf16.msra.mxu1 %v3763_v18 }
 0x132   :  { %890 = vmatprep.subr.bf16.mxu1 %v3771_v20 }
 0x135   :  { %891 = vmatpush1.bf16.msra.mxu1 %v3769_v22 }
 0x136   :  { %892 = vmatprep.subr.bf16.mxu1 %v3777_v24 }
 0x139   :  { %893 = vmatpush1.bf16.msra.mxu1 %v3775_v26 }
 0x13a   :  { %894 = vmatprep.subr.bf16.mxu1 %v3783_v28 }
 0x13d   :  { %895 = vmatpush1.bf16.msra.mxu1 %v3781_v30  ;;  %v346_v30 = vld [vmem:[%s5196_s7] sm:$0x3] }
 0x13e   :  { %896 = vmatprep.subr.bf16.mxu1 %v3789_v32  ;;  %v391_v32 = vrot.slane %v346_v30, %v4242_v49 }
 0x141   :  { %897 = vmatpush1.bf16.msra.mxu1 %v3787_v34  ;;  %v395_v34 = vrot.slane %v346_v30, %v4248_v51  ;;  %v1105_v30 = vld [vmem:[%s5202_s13 + $0x1a0] sm:$0xff] }
 0x142   :  { %898 = vmatprep.subr.bf16.mxu1 %v3795_v36 }
 0x145   :  { %899 = vmatpush1.bf16.msra.mxu1 %v3793_v38 }
 0x146   :  { %2713 = vmatprep.subr.bf16.mxu1 %v3365_v46 }
 0x1db   :  { %v339_v54 = vpop.f32.mrb[0].mxu1 }
 0x1dc   :  { %v340_v55 = vadd.f32 %v339_v54, %v218_v52  ;;  %v341_v56 = vpop.f32.mrb[1].mxu1 }
 0x1dd   :  { %v342_v57 = vadd.f32 %v341_v56, %v222_v53  ;;  %v343_v58 = vpop.f32.mrb[2].mxu1 }
 0x1de   :  { %v348_v59 = vrot.slane %v340_v55, 4  ;;  %v344_v60 = vpop.f32.mrb[3].mxu1 }
 0x1df   :  { %v354_v61 = vrot.slane %v342_v57, 4  ;;  %v1065_v60 = vld [vmem:[%s5202_s13 + $0x60] sm:$0xff] }
 0x1e0   :  { %v349_v62 = vadd.f32 %v348_v59, %v340_v55  ;;  %v1061_v59 = vld [vmem:[%s5202_s13 + $0x40] sm:$0xff] }
 0x1e1   :  { %v355_v63 = vadd.f32 %v354_v61, %v342_v57  ;;  %v1062_v61 = vld [vmem:[%s5202_s13 + $0x48] sm:$0xff]  ;;  %v3370_v40 = vcombine.low %v1061_v59, %v1065_v60 }
 0x1e2   :  { %v350_v0 = vrot.slane %v349_v62, 2  ;;  %v3372_v41 = vcombine.low %v1062_v61, %v1066_v39 }
 0x1e3   :  { %v356_v1 = vrot.slane %v355_v63, 2 }
 0x1e4   :  { %v351_v2 = vadd.f32 %v350_v0, %v349_v62  ;;  %v3371_v62 = vcombine.high %v1061_v59, %v1065_v60 }
 0x1e5   :  { %v357_v3 = vadd.f32 %v356_v1, %v355_v63  ;;  %v1070_v63 = vld [vmem:[%s5202_s13 + $0x88] sm:$0xff] }
 0x1e6   :  { %v352_v4 = vrot.slane %v351_v2, 1  ;;  %v1074_v1 = vld [vmem:[%s5202_s13 + $0xa8] sm:$0xff] }
 0x1e7   :  { %v358_v5 = vrot.slane %v357_v3, 1 }
 0x1e8   :  { %v353_v6 = vadd.f32 %v352_v4, %v351_v2  ;;  %v3381_v4 = vcombine.high %v1070_v63, %v1074_v1 }
 0x1e9   :  { %v359_v7 = vadd.f32 %v358_v5, %v357_v3  ;;  %v3380_v3 = vcombine.low %v1070_v63, %v1074_v1  ;;  %v1077_v5 = vld [vmem:[%s5202_s13 + $0xc0] sm:$0xff] }
 0x1ea   :  { %v361_v8 = vmul.f32 0.125, %v353_v6  ;;  %v1081_v6 = vld [vmem:[%s5202_s13 + $0xe0] sm:$0xff] }
 0x1eb   :  { %v362_v9 = vmul.f32 0.125, %v359_v7  ;;  %v1078_v7 = vld [vmem:[%s5202_s13 + $0xc8] sm:$0xff]  ;;  %v1137_v1 = vld [vmem:[%s5202_s13 + $0x2a0] sm:$0xff] }
 0x1ec   :  { %v363_v10 = vsub.f32 %v340_v55, %v361_v8  ;;  %v3387_v8 = vcombine.high %v1077_v5, %v1081_v6 }
 0x1ed   :  { %v364_v11 = vsub.f32 %v342_v57, %v362_v9  ;;  %v1082_v9 = vld [vmem:[%s5202_s13 + $0xe8] sm:$0xff] }
 0x1ee   :  { %v365_v12 = vmul.f32 %v363_v10, %v363_v10 }
 0x1ef   :  { %v366_v13 = vmul.f32 %v364_v11, %v364_v11 }
 0x1f0   :  { %v367_v14 = vrot.slane %v365_v12, 4 }
 0x1f1   :  { %v373_v15 = vrot.slane %v366_v13, 4 }
 0x1f2   :  { %v368_v16 = vadd.f32 %v367_v14, %v365_v12  ;;  %v3389_v12 = vcombine.high %v1078_v7, %v1082_v9  ;;  %v1089_v14 = vld [vmem:[%s5202_s13 + $0x120] sm:$0xff] }
 0x1f3   :  { %v374_v17 = vadd.f32 %v373_v15, %v366_v13  ;;  %v1085_v13 = vld [vmem:[%s5202_s13 + $0x100] sm:$0xff]  ;;  %v1086_v15 = vld [vmem:[%s5202_s13 + $0x108] sm:$0xff] }
 0x1f4   :  { %v369_v18 = vrot.slane %v368_v16, 2 }
 0x1f5   :  { %v375_v19 = vrot.slane %v374_v17, 2 }
 0x1f6   :  { %v370_v20 = vadd.f32 %v369_v18, %v368_v16  ;;  %v3395_v16 = vcombine.high %v1085_v13, %v1089_v14  ;;  %v3394_v18 = vcombine.low %v1085_v13, %v1089_v14 }
 0x1f7   :  { %v376_v21 = vadd.f32 %v375_v19, %v374_v17  ;;  %v1090_v17 = vld [vmem:[%s5202_s13 + $0x128] sm:$0xff] }
 0x1f8   :  { %v371_v22 = vrot.slane %v370_v20, 1  ;;  %v3396_v19 = vcombine.low %v1086_v15, %v1090_v17 }
 0x1f9   :  { %v377_v23 = vrot.slane %v376_v21, 1 }
 0x1fa   :  { %v372_v24 = vadd.f32 %v371_v22, %v370_v20  ;;  %v3397_v20 = vcombine.high %v1086_v15, %v1090_v17  ;;  %v1097_v22 = vld [vmem:[%s5202_s13 + $0x160] sm:$0xff] }
 0x1fb   :  { %v378_v25 = vadd.f32 %v377_v23, %v376_v21  ;;  %v1093_v21 = vld [vmem:[%s5202_s13 + $0x140] sm:$0xff]  ;;  %v1094_v23 = vld [vmem:[%s5202_s13 + $0x148] sm:$0xff] }
 0x1fc   :  { %v379_v26 = vmul.f32 0.125, %v372_v24  ;;  %v3403_v24 = vcombine.high %v1093_v21, %v1097_v22  ;;  %v1153_v17 = vld [vmem:[%s5202_s13 + $0x320] sm:$0xff] }
 0x1fd   :  { %v380_v27 = vmul.f32 0.125, %v378_v25  ;;  %v1098_v25 = vld [vmem:[%s5202_s13 + $0x168] sm:$0xff] }
 0x1fe   :  { %v381_v28 = vadd.f32 0.8, %v379_v26  ;;  %v3402_v26 = vcombine.low %v1093_v21, %v1097_v22 }
 0x1ff   :  { %v382_v29 = vadd.f32 0.8, %v380_v27  ;;  %v3404_v27 = vcombine.low %v1094_v23, %v1098_v25 }
 0x200   :  { %3796 = vrsqrt.f32 %v381_v28  ;;  %v3405_v28 = vcombine.high %v1094_v23, %v1098_v25  ;;  %v1161_v25 = vld [vmem:[%s5202_s13 + $0x360] sm:$0xff] }
 0x201   :  { %3798 = vrsqrt.f32 %v382_v29  ;;  %v1101_v29 = vld [vmem:[%s5202_s13 + $0x180] sm:$0xff] }
 0x20a   :  { %v3797_v33 = vpop.eup %3796 }
 0x20b   :  { %v3799_v35 = vpop.eup %3798  ;;  %v385_v36 = vmul.f32 %v3797_v33, %v363_v10  ;;  %v3386_v10 = vcombine.low %v1077_v5, %v1081_v6  ;;  %v1106_v33 = vld [vmem:[%s5202_s13 + $0x1a8] sm:$0xff] }
 0x20c   :  { %v386_v38 = vmul.f32 %v3799_v35, %v364_v11  ;;  %v3388_v11 = vcombine.low %v1078_v7, %v1082_v9  ;;  %v3412_v35 = vcombine.low %v1102_v31, %v1106_v33  ;;  %v1145_v9 = vld [vmem:[%s5202_s13 + $0x2e0] sm:$0xff] }
 0x20d   :  { %v398_v46 = vmul.f32 %v391_v32, %v385_v36  ;;  %v3411_v32 = vcombine.high %v1101_v29, %v1105_v30  ;;  %v3413_v36 = vcombine.high %v1102_v31, %v1106_v33  ;;  %v1169_v33 = vld [vmem:[%s5202_s13 + $0x3a0] sm:$0xff] }
 0x20e   :  { %v399_v47 = vmul.f32 %v395_v34, %v386_v38  ;;  %v3410_v34 = vcombine.low %v1101_v29, %v1105_v30  ;;  %v1113_v38 = vld [vmem:[%s5202_s13 + $0x1e0] sm:$0xff] }
 0x20f   :  { %v411_v50 = vadd.f32 %v404_v37, %v398_v46  ;;  %v1109_v37 = vld [vmem:[%s5202_s13 + $0x1c0] sm:$0xff] }
 0x210   :  { %v412_v52 = vadd.f32 %v408_v43, %v399_v47  ;;  %v1110_v43 = vld [vmem:[%s5202_s13 + $0x1c8] sm:$0xff]  ;;  %v3419_v46 = vcombine.high %v1109_v37, %v1113_v38 }
 0x211   :  { %vm413_vm4 = vcmp.gt.f32.partialorder %v411_v50, 0.0  ;;  %v415_v53 = vmul.f32 0.2, %v411_v50  ;;  %v1114_v47 = vld [vmem:[%s5202_s13 + $0x1e8] sm:$0xff] }
 0x212   :  { %vm414_vm5 = vcmp.gt.f32.partialorder %v412_v52, 0.0  ;;  %v416_v54 = vmul.f32 0.2, %v412_v52 }
 0x213   :  { %v417_v55 = vsel %vm413_vm4, %v411_v50, %v415_v53  ;;  %v3418_v50 = vcombine.low %v1109_v37, %v1113_v38  ;;  %v3421_v53 = vcombine.high %v1110_v43, %v1114_v47 }
 0x214   :  { %v418_v56 = vsel %vm414_vm5, %v412_v52, %v416_v54  ;;  %v419_v58 = vpack.c.bf16 %v417_v55, %v417_v55  ;;  %v3420_v52 = vcombine.low %v1110_v43, %v1114_v47  ;;  %v1117_v54 = vld [vmem:[%s5202_s13 + $0x200] sm:$0xff] }
 0x215   :  { %v420_v57 = vpack.c.bf16 %v418_v56, %v418_v56  ;;  %v1121_v55 = vld [vmem:[%s5202_s13 + $0x220] sm:$0xff]  ;;  %v1118_v56 = vld [vmem:[%s5202_s13 + $0x208] sm:$0xff] }
 0x216   :  { %v3426_v59 = vcombine.low %v1117_v54, %v1121_v55  ;;  %v1177_v47 = vld [vmem:[%s5202_s13 + $0x3e0] sm:$0xff] }
 0x217   :  { %859 = vmatprep.mubr.bf16.mxu0 %v420_v57  ;;  %900 = vmatprep.mubr.bf16.mxu1 %v420_v57  ;;  %v3427_v57 = vcombine.high %v1117_v54, %v1121_v55  ;;  %v1178_v54 = vld [vmem:[%s5202_s13 + $0x3e8] sm:$0xff] }
 0x218   :  { %860 = vmatmul.mubr.bf16.vlgmr.msra.gmra.mrb[8].mxu0 %v419_v58  ;;  %901 = vmatmul.mubr.bf16.vlgmr.msra.gmra.mrb[4].mxu1 %v419_v58  ;;  %v1122_v58 = vld [vmem:[%s5202_s13 + $0x228] sm:$0xff] }
 0x219   :  { %2632 = vmatpush1.bf16.msra.mxu0 %v3362_v42  ;;  %2714 = vmatpush1.bf16.msra.mxu1 %v3364_v45  ;;  %v3373_v42 = vcombine.high %v1062_v61, %v1066_v39  ;;  %v1073_v45 = vld [vmem:[%s5202_s13 + $0xa0] sm:$0xff]  ;;  %v3428_v60 = vcombine.low %v1118_v56, %v1122_v58  ;;  %v3429_v61 = vcombine.high %v1118_v56, %v1122_v58 }
 0x21a   :  { %2633 = vmatprep.subr.bf16.mxu0 %v3371_v62  ;;  %v3379_v0 = vcombine.high %v1069_v44, %v1073_v45  ;;  %v3378_v2 = vcombine.low %v1069_v44, %v1073_v45  ;;  %v1125_v62 = vld [vmem:[%s5202_s13 + $0x240] sm:$0xff] }
 0x21b   :  { %2715 = vmatprep.subr.bf16.mxu1 %v3373_v42  ;;  %v1129_v39 = vld [vmem:[%s5202_s13 + $0x260] sm:$0xff]  ;;  %v1130_v42 = vld [vmem:[%s5202_s13 + $0x268] sm:$0xff] }
 0x21c   :  { %v3434_v44 = vcombine.low %v1125_v62, %v1129_v39  ;;  %v4456_v58 = vld [vmem:[%s5202_s13 + $0x420] sm:$0xff] }
 0x21d   :  { %2634 = vmatpush1.bf16.msra.mxu0 %v3370_v40  ;;  %2716 = vmatpush1.bf16.msra.mxu1 %v3372_v41  ;;  %v1126_v40 = vld [vmem:[%s5202_s13 + $0x248] sm:$0xff]  ;;  %v3435_v41 = vcombine.high %v1125_v62, %v1129_v39 }
 0x21e   :  { %2635 = vmatprep.subr.bf16.mxu0 %v3379_v0  ;;  %2717 = vmatprep.subr.bf16.mxu1 %v3381_v4  ;;  %v3436_v45 = vcombine.low %v1126_v40, %v1130_v42  ;;  %v3437_v63 = vcombine.high %v1126_v40, %v1130_v42  ;;  %v1133_v0 = vld [vmem:[%s5202_s13 + $0x280] sm:$0xff]  ;;  %v1138_v4 = vld [vmem:[%s5202_s13 + $0x2a8] sm:$0xff] }
 0x21f   :  { %v3442_v5 = vcombine.low %v1133_v0, %v1137_v1  ;;  %v485_v42 = vld [vmem:[%s5199_s10] sm:$0xf] }
 0x221   :  { %2636 = vmatpush1.bf16.msra.mxu0 %v3378_v2  ;;  %2718 = vmatpush1.bf16.msra.mxu1 %v3380_v3  ;;  %v1134_v2 = vld [vmem:[%s5202_s13 + $0x288] sm:$0xff]  ;;  %v3443_v3 = vcombine.high %v1133_v0, %v1137_v1  ;;  %v494_v0 = vrot.slane %v485_v42, %v4248_v51 }
 0x222   :  { %2637 = vmatprep.subr.bf16.mxu0 %v3387_v8  ;;  %2719 = vmatprep.subr.bf16.mxu1 %v3389_v12  ;;  %v3444_v6 = vcombine.low %v1134_v2, %v1138_v4  ;;  %v3445_v7 = vcombine.high %v1134_v2, %v1138_v4  ;;  %v1141_v8 = vld [vmem:[%s5202_s13 + $0x2c0] sm:$0xff]  ;;  %v1146_v12 = vld [vmem:[%s5202_s13 + $0x2e8] sm:$0xff] }
 0x223   :  { %v3450_v13 = vcombine.low %v1141_v8, %v1145_v9 }
 0x225   :  { %2638 = vmatpush1.bf16.msra.mxu0 %v3386_v10  ;;  %2720 = vmatpush1.bf16.msra.mxu1 %v3388_v11  ;;  %v1142_v10 = vld [vmem:[%s5202_s13 + $0x2c8] sm:$0xff]  ;;  %v3451_v11 = vcombine.high %v1141_v8, %v1145_v9 }
 0x226   :  { %2639 = vmatprep.subr.bf16.mxu0 %v3395_v16  ;;  %2721 = vmatprep.subr.bf16.mxu1 %v3397_v20  ;;  %v3452_v14 = vcombine.low %v1142_v10, %v1146_v12  ;;  %v3453_v15 = vcombine.high %v1142_v10, %v1146_v12  ;;  %v1149_v16 = vld [vmem:[%s5202_s13 + $0x300] sm:$0xff]  ;;  %v1154_v20 = vld [vmem:[%s5202_s13 + $0x328] sm:$0xff] }
 0x227   :  { %v3458_v21 = vcombine.low %v1149_v16, %v1153_v17 }
 0x229   :  { %2640 = vmatpush1.bf16.msra.mxu0 %v3394_v18  ;;  %2722 = vmatpush1.bf16.msra.mxu1 %v3396_v19  ;;  %v1150_v18 = vld [vmem:[%s5202_s13 + $0x308] sm:$0xff]  ;;  %v3459_v19 = vcombine.high %v1149_v16, %v1153_v17 }
 0x22a   :  { %2641 = vmatprep.subr.bf16.mxu0 %v3403_v24  ;;  %2723 = vmatprep.subr.bf16.mxu1 %v3405_v28  ;;  %v3460_v22 = vcombine.low %v1150_v18, %v1154_v20  ;;  %v3461_v23 = vcombine.high %v1150_v18, %v1154_v20  ;;  %v1157_v24 = vld [vmem:[%s5202_s13 + $0x340] sm:$0xff]  ;;  %v1162_v28 = vld [vmem:[%s5202_s13 + $0x368] sm:$0xff] }
 0x22b   :  { %v3466_v29 = vcombine.low %v1157_v24, %v1161_v25 }
 0x22d   :  { %2642 = vmatpush1.bf16.msra.mxu0 %v3402_v26  ;;  %2724 = vmatpush1.bf16.msra.mxu1 %v3404_v27  ;;  %v1158_v26 = vld [vmem:[%s5202_s13 + $0x348] sm:$0xff]  ;;  %v3467_v27 = vcombine.high %v1157_v24, %v1161_v25 }
 0x22e   :  { %2643 = vmatprep.subr.bf16.mxu0 %v3411_v32  ;;  %2725 = vmatprep.subr.bf16.mxu1 %v3413_v36  ;;  %v3468_v30 = vcombine.low %v1158_v26, %v1162_v28  ;;  %v3469_v31 = vcombine.high %v1158_v26, %v1162_v28  ;;  %v1165_v32 = vld [vmem:[%s5202_s13 + $0x380] sm:$0xff]  ;;  %v1170_v36 = vld [vmem:[%s5202_s13 + $0x3a8] sm:$0xff] }
 0x22f   :  { %v3474_v37 = vcombine.low %v1165_v32, %v1169_v33 }
 0x231   :  { %2644 = vmatpush1.bf16.msra.mxu0 %v3410_v34  ;;  %2726 = vmatpush1.bf16.msra.mxu1 %v3412_v35  ;;  %v1166_v34 = vld [vmem:[%s5202_s13 + $0x388] sm:$0xff]  ;;  %v3475_v35 = vcombine.high %v1165_v32, %v1169_v33 }
 0x232   :  { %2645 = vmatprep.subr.bf16.mxu0 %v3419_v46  ;;  %2727 = vmatprep.subr.bf16.mxu1 %v3421_v53  ;;  %v3476_v38 = vcombine.low %v1166_v34, %v1170_v36  ;;  %v3477_v43 = vcombine.high %v1166_v34, %v1170_v36  ;;  %v1173_v46 = vld [vmem:[%s5202_s13 + $0x3c0] sm:$0xff] }
 0x233   :  { %v3483_v53 = vcombine.high %v1173_v46, %v1177_v47 }
 0x235   :  { %2646 = vmatpush1.bf16.msra.mxu0 %v3418_v50  ;;  %2728 = vmatpush1.bf16.msra.mxu1 %v3420_v52  ;;  %v1174_v50 = vld [vmem:[%s5202_s13 + $0x3c8] sm:$0xff]  ;;  %v3482_v52 = vcombine.low %v1173_v46, %v1177_v47 }
 0x236   :  { %2647 = vmatprep.subr.bf16.mxu0 %v3427_v57  ;;  %2729 = vmatprep.subr.bf16.mxu1 %v3429_v61  ;;  %v3484_v55 = vcombine.low %v1174_v50, %v1178_v54  ;;  %v3485_v56 = vcombine.high %v1174_v50, %v1178_v54  ;;  %v4451_v57 = vld [vmem:[%s5202_s13 + $0x400] sm:$0xff]  ;;  %v4468_v61 = vld [vmem:[%s5202_s13 + $0x428] sm:$0xff] }
 0x237   :  { %v3490_v62 = vcombine.low %v4451_v57, %v4456_v58 }
 0x239   :  { %2648 = vmatpush1.bf16.msra.mxu0 %v3426_v59  ;;  %2730 = vmatpush1.bf16.msra.mxu1 %v3428_v60  ;;  %v4461_v59 = vld [vmem:[%s5202_s13 + $0x408] sm:$0xff]  ;;  %v3491_v60 = vcombine.high %v4451_v57, %v4456_v58  ;;  %v1209_v57 = vld [vmem:[%s5202_s13 + $0x4e0] sm:$0xff] }
 0x23a   :  { %2649 = vmatprep.subr.bf16.mxu0 %v3435_v41  ;;  %2731 = vmatprep.subr.bf16.mxu1 %v3437_v63  ;;  %v3492_v39 = vcombine.low %v4461_v59, %v4468_v61  ;;  %v3493_v40 = vcombine.high %v4461_v59, %v4468_v61  ;;  %v4477_v41 = vsub.s32 2, %v4239_v48  ;;  %v1206_v58 = vld [vmem:[%s5202_s13 + $0x4c8] sm:$0xff] }
 0x23b   :  { %v1210_v59 = vld [vmem:[%s5202_s13 + $0x4e8] sm:$0xff] }
 0x23c   :  { %v498_v63 = vrot.slane %v485_v42, %v4477_v41 }
 0x23d   :  { %2650 = vmatpush1.bf16.msra.mxu0 %v3434_v44  ;;  %2732 = vmatpush1.bf16.msra.mxu1 %v3436_v45  ;;  %v4483_v44 = vsub.s32 3, %v4239_v48  ;;  %v490_v45 = vrot.slane %v485_v42, %v4242_v49 }
 0x23e   :  { %2651 = vmatprep.subr.bf16.mxu0 %v3443_v3  ;;  %2733 = vmatprep.subr.bf16.mxu1 %v3445_v7 }
 0x23f   :  { %v502_v1 = vrot.slane %v485_v42, %v4483_v44 }
 0x241   :  { %2652 = vmatpush1.bf16.msra.mxu0 %v3442_v5  ;;  %2734 = vmatpush1.bf16.msra.mxu1 %v3444_v6 }
 0x242   :  { %2653 = vmatprep.subr.bf16.mxu0 %v3451_v11  ;;  %2735 = vmatprep.subr.bf16.mxu1 %v3453_v15 }
 0x245   :  { %2654 = vmatpush1.bf16.msra.mxu0 %v3450_v13  ;;  %2736 = vmatpush1.bf16.msra.mxu1 %v3452_v14 }
 0x246   :  { %2655 = vmatprep.subr.bf16.mxu0 %v3459_v19  ;;  %2737 = vmatprep.subr.bf16.mxu1 %v3461_v23 }
 0x249   :  { %2656 = vmatpush1.bf16.msra.mxu0 %v3458_v21  ;;  %2738 = vmatpush1.bf16.msra.mxu1 %v3460_v22 }
 0x24a   :  { %2657 = vmatprep.subr.bf16.mxu0 %v3467_v27  ;;  %2739 = vmatprep.subr.bf16.mxu1 %v3469_v31 }
 0x24d   :  { %2658 = vmatpush1.bf16.msra.mxu0 %v3466_v29  ;;  %2740 = vmatpush1.bf16.msra.mxu1 %v3468_v30 }
 0x24e   :  { %2659 = vmatprep.subr.bf16.mxu0 %v3475_v35  ;;  %2741 = vmatprep.subr.bf16.mxu1 %v3477_v43 }
 0x251   :  { %2660 = vmatpush1.bf16.msra.mxu0 %v3474_v37  ;;  %2742 = vmatpush1.bf16.msra.mxu1 %v3476_v38 }
 0x252   :  { %2661 = vmatprep.subr.bf16.mxu0 %v3483_v53  ;;  %2743 = vmatprep.subr.bf16.mxu1 %v3485_v56 }
 0x255   :  { %2662 = vmatpush1.bf16.msra.mxu0 %v3482_v52  ;;  %2744 = vmatpush1.bf16.msra.mxu1 %v3484_v55 }
 0x256   :  { %2672 = vmatprep.subr.bf16.mxu0 %v3491_v60  ;;  %2754 = vmatprep.subr.bf16.mxu1 %v3493_v40 }
 0x2eb   :  { %v861_v2 = vpop.f32.mrb[8].mxu0  ;;  %v902_v3 = vpop.f32.mrb[4].mxu1 }
 0x2ec   :  { %v862_v4 = vadd.f32 %v861_v2, %v490_v45  ;;  %v903_v5 = vadd.f32 %v902_v3, %v498_v63  ;;  %v863_v6 = vpop.f32.mrb[9].mxu0  ;;  %v904_v7 = vpop.f32.mrb[5].mxu1 }
 0x2ed   :  { %v864_v8 = vadd.f32 %v863_v6, %v494_v0  ;;  %v905_v9 = vadd.f32 %v904_v7, %v502_v1  ;;  %v865_v10 = vpop.f32.mrb[10].mxu0  ;;  %v906_v11 = vpop.f32.mrb[6].mxu1 }
 0x2ee   :  { %v911_v12 = vrot.slane %v862_v4, 4  ;;  %v923_v13 = vrot.slane %v903_v5, 4  ;;  %v866_v14 = vpop.f32.mrb[11].mxu0  ;;  %v907_v15 = vpop.f32.mrb[7].mxu1 }
 0x2ef   :  { %v917_v16 = vrot.slane %v864_v8, 4  ;;  %v929_v17 = vrot.slane %v905_v9, 4 }
 0x2f0   :  { %v912_v18 = vadd.f32 %v911_v12, %v862_v4  ;;  %v924_v19 = vadd.f32 %v923_v13, %v903_v5 }
 0x2f1   :  { %v918_v20 = vadd.f32 %v917_v16, %v864_v8  ;;  %v930_v21 = vadd.f32 %v929_v17, %v905_v9 }
 0x2f2   :  { %v913_v22 = vrot.slane %v912_v18, 2  ;;  %v925_v23 = vrot.slane %v924_v19, 2 }
 0x2f3   :  { %v919_v24 = vrot.slane %v918_v20, 2  ;;  %v931_v25 = vrot.slane %v930_v21, 2 }
 0x2f4   :  { %v914_v26 = vadd.f32 %v913_v22, %v912_v18  ;;  %v926_v27 = vadd.f32 %v925_v23, %v924_v19 }
 0x2f5   :  { %v920_v28 = vadd.f32 %v919_v24, %v918_v20  ;;  %v932_v29 = vadd.f32 %v931_v25, %v930_v21 }
 0x2f6   :  { %v915_v30 = vrot.slane %v914_v26, 1  ;;  %v927_v31 = vrot.slane %v926_v27, 1 }
 0x2f7   :  { %v921_v32 = vrot.slane %v920_v28, 1  ;;  %v933_v33 = vrot.slane %v932_v29, 1 }
 0x2f8   :  { %v916_v34 = vadd.f32 %v915_v30, %v914_v26  ;;  %v928_v35 = vadd.f32 %v927_v31, %v926_v27  ;;  %v910_v30 = vld [vmem:[%s5213_s20] sm:$0xf] }
 0x2f9   :  { %v922_v36 = vadd.f32 %v921_v32, %v920_v28  ;;  %v934_v37 = vadd.f32 %v933_v33, %v932_v29  ;;  %v909_v29 = vld [vmem:[%s5200_s11] sm:$0xf] }
 0x2fa   :  { %v935_v38 = vmul.f32 0.125, %v916_v34  ;;  %v937_v43 = vmul.f32 0.125, %v928_v35  ;;  %v991_v31 = vrot.slane %v909_v29, %v4242_v49  ;;  %v999_v33 = vrot.slane %v909_v29, %v4477_v41 }
 0x2fb   :  { %v936_v46 = vmul.f32 0.125, %v922_v36  ;;  %v938_v47 = vmul.f32 0.125, %v934_v37  ;;  %v1016_v36 = vrot.slane %v910_v30, %v4242_v49  ;;  %v995_v37 = vrot.slane %v909_v29, %v4248_v51 }
 0x2fc   :  { %v939_v50 = vsub.f32 %v862_v4, %v935_v38  ;;  %v941_v52 = vsub.f32 %v903_v5, %v937_v43 }
 0x2fd   :  { %v940_v53 = vsub.f32 %v864_v8, %v936_v46  ;;  %v942_v54 = vsub.f32 %v905_v9, %v938_v47  ;;  %v1024_v46 = vrot.slane %v910_v30, %v4477_v41  ;;  %v1003_v47 = vrot.slane %v909_v29, %v4483_v44  ;;  %v1214_v29 = vld [vmem:[%s5202_s13 + $0x508] sm:$0xff] }
 0x2fe   :  { %v943_v55 = vmul.f32 %v939_v50, %v939_v50  ;;  %v945_v56 = vmul.f32 %v941_v52, %v941_v52 }
 0x2ff   :  { %v944_v60 = vmul.f32 %v940_v53, %v940_v53  ;;  %v946_v40 = vmul.f32 %v942_v54, %v942_v54 }
 0x300   :  { %v947_v42 = vrot.slane %v943_v55, 4  ;;  %v959_v45 = vrot.slane %v945_v56, 4 }
 0x301   :  { %v953_v63 = vrot.slane %v944_v60, 4  ;;  %v965_v0 = vrot.slane %v946_v40, 4 }
 0x302   :  { %v948_v1 = vadd.f32 %v947_v42, %v943_v55  ;;  %v960_v2 = vadd.f32 %v959_v45, %v945_v56 }
 0x303   :  { %v954_v3 = vadd.f32 %v953_v63, %v944_v60  ;;  %v966_v6 = vadd.f32 %v965_v0, %v946_v40  ;;  %v1020_v40 = vrot.slane %v910_v30, %v4248_v51  ;;  %v1028_v63 = vrot.slane %v910_v30, %v4483_v44  ;;  %v1218_v30 = vld [vmem:[%s5202_s13 + $0x528] sm:$0xff] }
 0x304   :  { %v949_v7 = vrot.slane %v948_v1, 2  ;;  %v961_v10 = vrot.slane %v960_v2, 2 }
 0x305   :  { %v955_v11 = vrot.slane %v954_v3, 2  ;;  %v967_v12 = vrot.slane %v966_v6, 2 }
 0x306   :  { %v950_v4 = vadd.f32 %v949_v7, %v948_v1  ;;  %v962_v5 = vadd.f32 %v961_v10, %v960_v2 }
 0x307   :  { %v956_v8 = vadd.f32 %v955_v11, %v954_v3  ;;  %v968_v9 = vadd.f32 %v967_v12, %v966_v6  ;;  %v1193_v12 = vld [vmem:[%s5202_s13 + $0x460] sm:$0xff] }
 0x308   :  { %v951_v13 = vrot.slane %v950_v4, 1  ;;  %v963_v14 = vrot.slane %v962_v5, 1 }
 0x309   :  { %v957_v15 = vrot.slane %v956_v8, 1  ;;  %v969_v16 = vrot.slane %v968_v9, 1 }
 0x30a   :  { %v952_v17 = vadd.f32 %v951_v13, %v950_v4  ;;  %v964_v18 = vadd.f32 %v963_v14, %v962_v5  ;;  %v1190_v4 = vld [vmem:[%s5202_s13 + $0x448] sm:$0xff]  ;;  %v1197_v14 = vld [vmem:[%s5202_s13 + $0x480] sm:$0xff] }
 0x30b   :  { %v958_v19 = vadd.f32 %v957_v15, %v956_v8  ;;  %v970_v20 = vadd.f32 %v969_v16, %v968_v9  ;;  %v1194_v5 = vld [vmem:[%s5202_s13 + $0x468] sm:$0xff] }
 0x30c   :  { %v971_v21 = vmul.f32 0.125, %v952_v17  ;;  %v973_v22 = vmul.f32 0.125, %v964_v18  ;;  %v3501_v16 = vcombine.high %v1190_v4, %v1194_v5  ;;  %v1201_v17 = vld [vmem:[%s5202_s13 + $0x4a0] sm:$0xff]  ;;  %v1198_v18 = vld [vmem:[%s5202_s13 + $0x488] sm:$0xff] }
 0x30d   :  { %v972_v23 = vmul.f32 0.125, %v958_v19  ;;  %v974_v24 = vmul.f32 0.125, %v970_v20  ;;  %v1202_v19 = vld [vmem:[%s5202_s13 + $0x4a8] sm:$0xff]  ;;  %v3506_v61 = vcombine.low %v1197_v14, %v1201_v17 }
 0x30e   :  { %v975_v25 = vadd.f32 0.8, %v971_v21  ;;  %v977_v26 = vadd.f32 0.8, %v973_v22  ;;  %v3500_v22 = vcombine.low %v1190_v4, %v1194_v5  ;;  %v1246_v4 = vld [vmem:[%s5202_s13 + $0x608] sm:$0xff] }
 0x30f   :  { %v976_v27 = vadd.f32 0.8, %v972_v23  ;;  %v978_v28 = vadd.f32 0.8, %v974_v24  ;;  %v3507_v23 = vcombine.high %v1197_v14, %v1201_v17  ;;  %v3509_v24 = vcombine.high %v1198_v18, %v1202_v19  ;;  %v1250_v5 = vld [vmem:[%s5202_s13 + $0x628] sm:$0xff]  ;;  %v1253_v17 = vld [vmem:[%s5202_s13 + $0x640] sm:$0xff] }
 0x310   :  { %3800 = vrsqrt.f32 %v975_v25  ;;  %v1205_v25 = vld [vmem:[%s5202_s13 + $0x4c0] sm:$0xff] }
 0x311   :  { %3802 = vrsqrt.f32 %v977_v26  ;;  %v3517_v26 = vcombine.high %v1206_v58, %v1210_v59 }
 0x312   :  { %3804 = vrsqrt.f32 %v976_v27  ;;  %v1213_v27 = vld [vmem:[%s5202_s13 + $0x500] sm:$0xff] }
 0x313   :  { %3806 = vrsqrt.f32 %v978_v28  ;;  %v1217_v28 = vld [vmem:[%s5202_s13 + $0x520] sm:$0xff] }
 0x31a   :  { %v3801_v32 = vpop.eup %3800 }
 0x31b   :  { %v3803_v34 = vpop.eup %3802  ;;  %v983_v35 = vmul.f32 %v3801_v32, %v939_v50  ;;  %v3516_v32 = vcombine.low %v1206_v58, %v1210_v59  ;;  %v1265_v58 = vld [vmem:[%s5202_s13 + $0x6a0] sm:$0xff]  ;;  %v1262_v59 = vld [vmem:[%s5202_s13 + $0x688] sm:$0xff] }
 0x31c   :  { %v3805_v38 = vpop.eup %3804  ;;  %v985_v43 = vmul.f32 %v3803_v34, %v941_v52  ;;  %v3525_v34 = vcombine.high %v1214_v29, %v1218_v30 }
 0x31d   :  { %v3807_v55 = vpop.eup %3806  ;;  %v1008_v56 = vmul.f32 %v991_v31, %v983_v35  ;;  %v984_v60 = vmul.f32 %v3805_v38, %v940_v53  ;;  %v3514_v31 = vcombine.low %v1205_v25, %v1209_v57  ;;  %v1221_v35 = vld [vmem:[%s5202_s13 + $0x540] sm:$0xff]  ;;  %v1226_v38 = vld [vmem:[%s5202_s13 + $0x568] sm:$0xff] }
 0x31e   :  { %v1010_v42 = vmul.f32 %v999_v33, %v985_v43  ;;  %v986_v45 = vmul.f32 %v3807_v55, %v942_v54  ;;  %v1189_v54 = vld [vmem:[%s5202_s13 + $0x440] sm:$0xff]  ;;  %v3523_v33 = vcombine.high %v1213_v27, %v1217_v28  ;;  %v3522_v43 = vcombine.low %v1213_v27, %v1217_v28 }
 0x31f   :  { %v1033_v50 = vadd.f32 %v1016_v36, %v1008_v56  ;;  %v1009_v0 = vmul.f32 %v995_v37, %v984_v60  ;;  %v3499_v15 = vcombine.high %v1189_v54, %v1193_v12  ;;  %v3498_v21 = vcombine.low %v1189_v54, %v1193_v12  ;;  %v1225_v36 = vld [vmem:[%s5202_s13 + $0x560] sm:$0xff]  ;;  %v1222_v37 = vld [vmem:[%s5202_s13 + $0x548] sm:$0xff] }
 0x320   :  { %v4503_v1 = vadd.f32 %v1024_v46, %v1010_v42  ;;  %v1011_v2 = vmul.f32 %v1003_v47, %v986_v45  ;;  %v3524_v46 = vcombine.low %v1214_v29, %v1218_v30  ;;  %v3531_v47 = vcombine.high %v1221_v35, %v1225_v36  ;;  %v1229_v56 = vld [vmem:[%s5202_s13 + $0x580] sm:$0xff]  ;;  %v1234_v42 = vld [vmem:[%s5202_s13 + $0x5a8] sm:$0xff] }
 0x321   :  { %v1034_v3 = vadd.f32 %v1020_v40, %v1009_v0  ;;  %vm1037_vm6 = vcmp.gt.f32.partialorder %v1033_v50, 0.0  ;;  %v1041_v52 = vmul.f32 0.2, %v1033_v50  ;;  %v3533_v55 = vcombine.high %v1222_v37, %v1226_v38  ;;  %v1233_v60 = vld [vmem:[%s5202_s13 + $0x5a0] sm:$0xff]  ;;  %v1230_v40 = vld [vmem:[%s5202_s13 + $0x588] sm:$0xff] }
 0x322   :  { %v1036_v6 = vadd.f32 %v1028_v63, %v1011_v2  ;;  %v3530_v45 = vcombine.low %v1221_v35, %v1225_v36  ;;  %v3532_v63 = vcombine.low %v1222_v37, %v1226_v38  ;;  %v3541_v0 = vcombine.high %v1230_v40, %v1234_v42  ;;  %v1237_v2 = vld [vmem:[%s5202_s13 + $0x5c0] sm:$0xff]  ;;  %v1270_v30 = vld [vmem:[%s5202_s13 + $0x6c8] sm:$0xff] }
 0x323   :  { %vm1038_vm7 = vcmp.gt.f32.partialorder %v1034_v3, 0.0  ;;  %v1042_v7 = vmul.f32 0.2, %v1034_v3  ;;  %v1045_v10 = vsel %vm1037_vm6, %v1033_v50, %v1041_v52  ;;  %v3539_v50 = vcombine.high %v1229_v56, %v1233_v60  ;;  %v1238_v52 = vld [vmem:[%s5202_s13 + $0x5c8] sm:$0xff]  ;;  %v1249_v12 = vld [vmem:[%s5202_s13 + $0x620] sm:$0xff] }
 0x324   :  { %vm1040_vm8 = vcmp.gt.f32.partialorder %v1036_v6, 0.0  ;;  %v1044_v53 = vmul.f32 0.2, %v1036_v6  ;;  %v4519_v13 = vpack.c.bf16 %v1045_v10, %v1045_v10  ;;  %v3540_v10 = vcombine.low %v1230_v40, %v1234_v42  ;;  %v1269_v28 = vld [vmem:[%s5202_s13 + $0x6c0] sm:$0xff]  ;;  %v1278_v38 = vld [vmem:[%s5202_s13 + $0x708] sm:$0xff] }
 0x325   :  { %v1046_v11 = vsel %vm1038_vm7, %v1034_v3, %v1042_v7  ;;  %v1241_v3 = vld [vmem:[%s5202_s13 + $0x5e0] sm:$0xff]  ;;  %v3538_v7 = vcombine.low %v1229_v56, %v1233_v60  ;;  %v1286_v42 = vld [vmem:[%s5202_s13 + $0x748] sm:$0xff]  ;;  %vm1039_vm9 = vcmp.gt.f32.partialorder %v4503_v1, 0.0 }
 0x326   :  { %v4517_v8 = vpack.c.bf16 %v1046_v11, %v1046_v11  ;;  %v1048_v9 = vsel %vm1040_vm8, %v1036_v6, %v1044_v53  ;;  %v1242_v6 = vld [vmem:[%s5202_s13 + $0x5e8] sm:$0xff]  ;;  %v3547_v53 = vcombine.high %v1237_v2, %v1241_v3  ;;  %v1245_v11 = vld [vmem:[%s5202_s13 + $0x600] sm:$0xff] }
 0x327   :  { %v4537_v20 = vpack.c.bf16 %v1048_v9, %v1048_v9  ;;  %v3549_v54 = vcombine.high %v1238_v52, %v1242_v6  ;;  %v3546_v9 = vcombine.low %v1237_v2, %v1241_v3  ;;  %v3548_v14 = vcombine.low %v1238_v52, %v1242_v6  ;;  %v1273_v29 = vld [vmem:[%s5202_s13 + $0x6e0] sm:$0xff]  ;;  %v1294_v6 = vld [vmem:[%s5202_s13 + $0x788] sm:$0xff] }
 0x328   :  { %2663 = vmatprep.mubr.bf16.mxu0 %v4517_v8  ;;  %2745 = vmatprep.mubr.bf16.mxu1 %v4517_v8  ;;  %v1277_v36 = vld [vmem:[%s5202_s13 + $0x700] sm:$0xff] }
 0x329   :  { %2664 = vmatmul.mubr.bf16.vlgmr.msra.gmra.mrb[12].mxu0 %v4519_v13  ;;  %2746 = vmatmul.mubr.bf16.vlgmr.msra.gmra.mrb[8].mxu1 %v4519_v13  ;;  %v1281_v37 = vld [vmem:[%s5202_s13 + $0x720] sm:$0xff] }
 0x32a   :  { %2673 = vmatpush1.bf16.msra.mxu0 %v3490_v62  ;;  %2755 = vmatpush1.bf16.msra.mxu1 %v3492_v39  ;;  %v3508_v62 = vcombine.low %v1198_v18, %v1202_v19  ;;  %v3515_v39 = vcombine.high %v1205_v25, %v1209_v57  ;;  %v1257_v18 = vld [vmem:[%s5202_s13 + $0x660] sm:$0xff]  ;;  %v1254_v19 = vld [vmem:[%s5202_s13 + $0x648] sm:$0xff] }
 0x32b   :  { %2704 = vmatprep.mubr.bf16.mxu0 %v4537_v20  ;;  %2786 = vmatprep.mubr.bf16.mxu1 %v4537_v20  ;;  %v1261_v57 = vld [vmem:[%s5202_s13 + $0x680] sm:$0xff] }
 0x32c   :  { %2674 = vmatprep.subr.bf16.mxu0 %v3499_v15  ;;  %2756 = vmatprep.subr.bf16.mxu1 %v3501_v16  ;;  %v3555_v15 = vcombine.high %v1245_v11, %v1249_v12  ;;  %v3557_v16 = vcombine.high %v1246_v4, %v1250_v5  ;;  %v1285_v60 = vld [vmem:[%s5202_s13 + $0x740] sm:$0xff] }
 0x32d   :  { %v1289_v40 = vld [vmem:[%s5202_s13 + $0x760] sm:$0xff] }
 0x32e   :  { %2675 = vmatpush1.bf16.msra.mxu0 %v3498_v21  ;;  %2757 = vmatpush1.bf16.msra.mxu1 %v3500_v22  ;;  %v1258_v21 = vld [vmem:[%s5202_s13 + $0x668] sm:$0xff]  ;;  %v3554_v22 = vcombine.low %v1245_v11, %v1249_v12  ;;  %v1293_v3 = vld [vmem:[%s5202_s13 + $0x780] sm:$0xff] }
 0x32f   :  { %2676 = vmatprep.subr.bf16.mxu0 %v3507_v23  ;;  %2758 = vmatprep.subr.bf16.mxu1 %v3509_v24  ;;  %v3556_v23 = vcombine.low %v1246_v4, %v1250_v5  ;;  %v3563_v24 = vcombine.high %v1253_v17, %v1257_v18  ;;  %v3565_v25 = vcombine.high %v1254_v19, %v1258_v21  ;;  %v1297_v52 = vld [vmem:[%s5202_s13 + $0x7a0] sm:$0xff]  ;;  %v1302_v5 = vld [vmem:[%s5202_s13 + $0x7c8] sm:$0xff] }
 0x330   :  { %v1301_v12 = vld [vmem:[%s5202_s13 + $0x7c0] sm:$0xff] }
 0x331   :  { %v1305_v4 = vld [vmem:[%s5202_s13 + $0x7e0] sm:$0xff] }
 0x332   :  { %2677 = vmatpush1.bf16.msra.mxu0 %v3506_v61  ;;  %2759 = vmatpush1.bf16.msra.mxu1 %v3508_v62  ;;  %v1266_v61 = vld [vmem:[%s5202_s13 + $0x6a8] sm:$0xff]  ;;  %v3562_v62 = vcombine.low %v1253_v17, %v1257_v18  ;;  %v1055_v18 = vld [vmem:[%s5202_s13 + $0x10] sm:$0xff] }
 0x333   :  { %2678 = vmatprep.subr.bf16.mxu0 %v3515_v39  ;;  %2760 = vmatprep.subr.bf16.mxu1 %v3517_v26  ;;  %v3564_v39 = vcombine.low %v1254_v19, %v1258_v21  ;;  %v3571_v26 = vcombine.high %v1261_v57, %v1265_v58  ;;  %v3573_v27 = vcombine.high %v1262_v59, %v1266_v61  ;;  %v1043_v19 = vmul.f32 0.2, %v4503_v1  ;;  %v1059_v21 = vld [vmem:[%s5202_s13 + $0x30] sm:$0xff] }
 0x336   :  { %2679 = vmatpush1.bf16.msra.mxu0 %v3514_v31  ;;  %2761 = vmatpush1.bf16.msra.mxu1 %v3516_v32  ;;  %v1274_v31 = vld [vmem:[%s5202_s13 + $0x6e8] sm:$0xff]  ;;  %v3570_v32 = vcombine.low %v1261_v57, %v1265_v58  ;;  %v3367_v57 = vcombine.high %v1055_v18, %v1059_v21 }
 0x337   :  { %2680 = vmatprep.subr.bf16.mxu0 %v3523_v33  ;;  %2762 = vmatprep.subr.bf16.mxu1 %v3525_v34  ;;  %v3572_v33 = vcombine.low %v1262_v59, %v1266_v61  ;;  %v3579_v34 = vcombine.high %v1269_v28, %v1273_v29  ;;  %v3581_v35 = vcombine.high %v1270_v30, %v1274_v31  ;;  %v1063_v61 = vld [vmem:[%s5202_s13 + $0x50] sm:$0xff] }
 0x338   :  { %v1047_v59 = vsel %vm1039_vm9, %v4503_v1, %v1043_v19 }
 0x339   :  { %v4730_v1 = vpack.c.bf16 %v1047_v59, %v1047_v59 }
 0x33a   :  { %2681 = vmatpush1.bf16.msra.mxu0 %v3522_v43  ;;  %2763 = vmatpush1.bf16.msra.mxu1 %v3524_v46  ;;  %v1282_v43 = vld [vmem:[%s5202_s13 + $0x728] sm:$0xff]  ;;  %v3578_v46 = vcombine.low %v1269_v28, %v1273_v29 }
 0x33b   :  { %2682 = vmatprep.subr.bf16.mxu0 %v3531_v47  ;;  %2764 = vmatprep.subr.bf16.mxu1 %v3533_v55  ;;  %v3580_v47 = vcombine.low %v1270_v30, %v1274_v31  ;;  %v3587_v55 = vcombine.high %v1277_v36, %v1281_v37  ;;  %v3589_v56 = vcombine.high %v1278_v38, %v1282_v43  ;;  %v1071_v31 = vld [vmem:[%s5202_s13 + $0x90] sm:$0xff] }
 0x33e   :  { %2683 = vmatpush1.bf16.msra.mxu0 %v3530_v45  ;;  %2765 = vmatpush1.bf16.msra.mxu1 %v3532_v63  ;;  %v1290_v45 = vld [vmem:[%s5202_s13 + $0x768] sm:$0xff]  ;;  %v3586_v63 = vcombine.low %v1277_v36, %v1281_v37 }
 0x33f   :  { %2684 = vmatprep.subr.bf16.mxu0 %v3539_v50  ;;  %2766 = vmatprep.subr.bf16.mxu1 %v3541_v0  ;;  %v3588_v50 = vcombine.low %v1278_v38, %v1282_v43  ;;  %v3595_v0 = vcombine.high %v1285_v60, %v1289_v40  ;;  %v3597_v2 = vcombine.high %v1286_v42, %v1290_v45  ;;  %v1079_v43 = vld [vmem:[%s5202_s13 + $0xd0] sm:$0xff] }
 0x342   :  { %2685 = vmatpush1.bf16.msra.mxu0 %v3538_v7  ;;  %2767 = vmatpush1.bf16.msra.mxu1 %v3540_v10  ;;  %v1298_v7 = vld [vmem:[%s5202_s13 + $0x7a8] sm:$0xff]  ;;  %v3594_v10 = vcombine.low %v1285_v60, %v1289_v40 }
 0x343   :  { %2686 = vmatprep.subr.bf16.mxu0 %v3547_v53  ;;  %2768 = vmatprep.subr.bf16.mxu1 %v3549_v54  ;;  %v3596_v53 = vcombine.low %v1286_v42, %v1290_v45  ;;  %v3603_v54 = vcombine.high %v1293_v3, %v1297_v52  ;;  %v3605_v11 = vcombine.high %v1294_v6, %v1298_v7  ;;  %v1087_v42 = vld [vmem:[%s5202_s13 + $0x110] sm:$0xff] }
 0x344   :  { %v1091_v45 = vld [vmem:[%s5202_s13 + $0x130] sm:$0xff] }
 0x346   :  { %2687 = vmatpush1.bf16.msra.mxu0 %v3546_v9  ;;  %2769 = vmatpush1.bf16.msra.mxu1 %v3548_v14  ;;  %v1306_v9 = vld [vmem:[%s5202_s13 + $0x7e8] sm:$0xff]  ;;  %v3602_v14 = vcombine.low %v1293_v3, %v1297_v52  ;;  %v3399_v3 = vcombine.high %v1087_v42, %v1091_v45 }
 0x347   :  { %2688 = vmatprep.subr.bf16.mxu0 %v3555_v15  ;;  %2770 = vmatprep.subr.bf16.mxu1 %v3557_v16  ;;  %v3604_v15 = vcombine.low %v1294_v6, %v1298_v7  ;;  %v3611_v16 = vcombine.high %v1301_v12, %v1305_v4  ;;  %v3613_v17 = vcombine.high %v1302_v5, %v1306_v9  ;;  %v1095_v6 = vld [vmem:[%s5202_s13 + $0x150] sm:$0xff] }
 0x348   :  { %v1099_v7 = vld [vmem:[%s5202_s13 + $0x170] sm:$0xff] }
 0x34a   :  { %2689 = vmatpush1.bf16.msra.mxu0 %v3554_v22  ;;  %2771 = vmatpush1.bf16.msra.mxu1 %v3556_v23  ;;  %v1056_v22 = vld [vmem:[%s5202_s13 + $0x18] sm:$0xff] }
 0x34b   :  { %2690 = vmatprep.subr.bf16.mxu0 %v3563_v24  ;;  %2772 = vmatprep.subr.bf16.mxu1 %v3565_v25  ;;  %v1060_v23 = vld [vmem:[%s5202_s13 + $0x38] sm:$0xff]  ;;  %v3610_v24 = vcombine.low %v1301_v12, %v1305_v4  ;;  %v3612_v25 = vcombine.low %v1302_v5, %v1306_v9  ;;  %v3407_v12 = vcombine.high %v1095_v6, %v1099_v7  ;;  %v1103_v5 = vld [vmem:[%s5202_s13 + $0x190] sm:$0xff] }
 0x34c   :  { %v3369_v58 = vcombine.high %v1056_v22, %v1060_v23  ;;  %v3368_v28 = vcombine.low %v1056_v22, %v1060_v23  ;;  %v1107_v9 = vld [vmem:[%s5202_s13 + $0x1b0] sm:$0xff]  ;;  %v1112_v23 = vld [vmem:[%s5202_s13 + $0x1d8] sm:$0xff] }
 0x34d   :  { %v1115_v22 = vld [vmem:[%s5202_s13 + $0x1f0] sm:$0xff] }
 0x34e   :  { %2691 = vmatpush1.bf16.msra.mxu0 %v3562_v62  ;;  %2773 = vmatpush1.bf16.msra.mxu1 %v3564_v39  ;;  %v1067_v62 = vld [vmem:[%s5202_s13 + $0x70] sm:$0xff]  ;;  %v1064_v39 = vld [vmem:[%s5202_s13 + $0x58] sm:$0xff] }
 0x34f   :  { %2692 = vmatprep.subr.bf16.mxu0 %v3571_v26  ;;  %2774 = vmatprep.subr.bf16.mxu1 %v3573_v27  ;;  %v1068_v26 = vld [vmem:[%s5202_s13 + $0x78] sm:$0xff]  ;;  %v3366_v27 = vcombine.low %v1055_v18, %v1059_v21  ;;  %v3375_v29 = vcombine.high %v1063_v61, %v1067_v62  ;;  %v3415_v18 = vcombine.high %v1103_v5, %v1107_v9  ;;  %v1111_v21 = vld [vmem:[%s5202_s13 + $0x1d0] sm:$0xff] }
 0x350   :  { %v3377_v30 = vcombine.high %v1064_v39, %v1068_v26  ;;  %v3376_v36 = vcombine.low %v1064_v39, %v1068_v26  ;;  %v1120_v39 = vld [vmem:[%s5202_s13 + $0x218] sm:$0xff] }
 0x351   :  { %v1124_v26 = vld [vmem:[%s5202_s13 + $0x238] sm:$0xff] }
 0x352   :  { %2693 = vmatpush1.bf16.msra.mxu0 %v3570_v32  ;;  %2775 = vmatpush1.bf16.msra.mxu1 %v3572_v33  ;;  %v1075_v32 = vld [vmem:[%s5202_s13 + $0xb0] sm:$0xff]  ;;  %v1072_v33 = vld [vmem:[%s5202_s13 + $0x98] sm:$0xff] }
 0x353   :  { %2694 = vmatprep.subr.bf16.mxu0 %v3579_v34  ;;  %2776 = vmatprep.subr.bf16.mxu1 %v3581_v35  ;;  %v1076_v34 = vld [vmem:[%s5202_s13 + $0xb8] sm:$0xff]  ;;  %v3374_v35 = vcombine.low %v1063_v61, %v1067_v62  ;;  %v3383_v37 = vcombine.high %v1071_v31, %v1075_v32  ;;  %v1119_v61 = vld [vmem:[%s5202_s13 + $0x210] sm:$0xff] }
 0x354   :  { %v3385_v38 = vcombine.high %v1072_v33, %v1076_v34  ;;  %v1123_v62 = vld [vmem:[%s5202_s13 + $0x230] sm:$0xff] }
 0x356   :  { %2695 = vmatpush1.bf16.msra.mxu0 %v3578_v46  ;;  %2777 = vmatpush1.bf16.msra.mxu1 %v3580_v47  ;;  %v1083_v46 = vld [vmem:[%s5202_s13 + $0xf0] sm:$0xff]  ;;  %v1080_v47 = vld [vmem:[%s5202_s13 + $0xd8] sm:$0xff] }
 0x357   :  { %2696 = vmatprep.subr.bf16.mxu0 %v3587_v55  ;;  %2778 = vmatprep.subr.bf16.mxu1 %v3589_v56  ;;  %v3382_v55 = vcombine.low %v1071_v31, %v1075_v32  ;;  %v3384_v56 = vcombine.low %v1072_v33, %v1076_v34  ;;  %v3391_v60 = vcombine.high %v1079_v43, %v1083_v46  ;;  %v1127_v31 = vld [vmem:[%s5202_s13 + $0x250] sm:$0xff]  ;;  %v1128_v33 = vld [vmem:[%s5202_s13 + $0x258] sm:$0xff] }
 0x358   :  { %v1131_v32 = vld [vmem:[%s5202_s13 + $0x270] sm:$0xff]  ;;  %v1132_v34 = vld [vmem:[%s5202_s13 + $0x278] sm:$0xff] }
 0x35a   :  { %2697 = vmatpush1.bf16.msra.mxu0 %v3586_v63  ;;  %2779 = vmatpush1.bf16.msra.mxu1 %v3588_v50  ;;  %v1088_v63 = vld [vmem:[%s5202_s13 + $0x118] sm:$0xff] }
 0x35b   :  { %2698 = vmatprep.subr.bf16.mxu0 %v3595_v0  ;;  %2780 = vmatprep.subr.bf16.mxu1 %v3597_v2  ;;  %v1092_v50 = vld [vmem:[%s5202_s13 + $0x138] sm:$0xff]  ;;  %v3390_v0 = vcombine.low %v1079_v43, %v1083_v46  ;;  %v1135_v43 = vld [vmem:[%s5202_s13 + $0x290] sm:$0xff] }
 0x35c   :  { %v3401_v52 = vcombine.high %v1088_v63, %v1092_v50  ;;  %v1139_v46 = vld [vmem:[%s5202_s13 + $0x2b0] sm:$0xff] }
 0x35e   :  { %2699 = vmatpush1.bf16.msra.mxu0 %v3594_v10  ;;  %2781 = vmatpush1.bf16.msra.mxu1 %v3596_v53  ;;  %v1096_v10 = vld [vmem:[%s5202_s13 + $0x158] sm:$0xff] }
 0x35f   :  { %2700 = vmatprep.subr.bf16.mxu0 %v3603_v54  ;;  %2782 = vmatprep.subr.bf16.mxu1 %v3605_v11  ;;  %v1100_v53 = vld [vmem:[%s5202_s13 + $0x178] sm:$0xff]  ;;  %v3398_v54 = vcombine.low %v1087_v42, %v1091_v45  ;;  %v3400_v11 = vcombine.low %v1088_v63, %v1092_v50  ;;  %v1143_v42 = vld [vmem:[%s5202_s13 + $0x2d0] sm:$0xff] }
 0x360   :  { %v3409_v4 = vcombine.high %v1096_v10, %v1100_v53  ;;  %v1147_v45 = vld [vmem:[%s5202_s13 + $0x2f0] sm:$0xff]  ;;  %v1144_v63 = vld [vmem:[%s5202_s13 + $0x2d8] sm:$0xff] }
 0x361   :  { %v1148_v50 = vld [vmem:[%s5202_s13 + $0x2f8] sm:$0xff] }
 0x362   :  { %2701 = vmatpush1.bf16.msra.mxu0 %v3602_v14  ;;  %2783 = vmatpush1.bf16.msra.mxu1 %v3604_v15  ;;  %v1104_v14 = vld [vmem:[%s5202_s13 + $0x198] sm:$0xff] }
 0x363   :  { %2702 = vmatprep.subr.bf16.mxu0 %v3611_v16  ;;  %2784 = vmatprep.subr.bf16.mxu1 %v3613_v17  ;;  %v1108_v15 = vld [vmem:[%s5202_s13 + $0x1b8] sm:$0xff]  ;;  %v3406_v16 = vcombine.low %v1095_v6, %v1099_v7  ;;  %v3408_v17 = vcombine.low %v1096_v10, %v1100_v53  ;;  %v1151_v6 = vld [vmem:[%s5202_s13 + $0x310] sm:$0xff] }
 0x364   :  { %v3417_v19 = vcombine.high %v1104_v14, %v1108_v15  ;;  %v1155_v7 = vld [vmem:[%s5202_s13 + $0x330] sm:$0xff]  ;;  %v1152_v10 = vld [vmem:[%s5202_s13 + $0x318] sm:$0xff] }
 0x365   :  { %v1156_v53 = vld [vmem:[%s5202_s13 + $0x338] sm:$0xff] }
 0x366   :  { %2703 = vmatpush1.bf16.msra.mxu0 %v3610_v24  ;;  %2785 = vmatpush1.bf16.msra.mxu1 %v3612_v25  ;;  %v1116_v24 = vld [vmem:[%s5202_s13 + $0x1f8] sm:$0xff]  ;;  %v3414_v25 = vcombine.low %v1103_v5, %v1107_v9  ;;  %v1159_v5 = vld [vmem:[%s5202_s13 + $0x350] sm:$0xff] }
 0x367   :  { %2795 = vmatprep.subr.bf16.mxu0 %v3367_v57  ;;  %2877 = vmatprep.subr.bf16.mxu1 %v3369_v58  ;;  %v3416_v57 = vcombine.low %v1104_v14, %v1108_v15  ;;  %v3423_v58 = vcombine.high %v1111_v21, %v1115_v22  ;;  %v3425_v59 = vcombine.high %v1112_v23, %v1116_v24  ;;  %v1163_v9 = vld [vmem:[%s5202_s13 + $0x370] sm:$0xff]  ;;  %v1160_v14 = vld [vmem:[%s5202_s13 + $0x358] sm:$0xff] }
 0x368   :  { %v1164_v15 = vld [vmem:[%s5202_s13 + $0x378] sm:$0xff] }
 0x369   :  { %2705 = vmatmul.mubr.bf16.vlgmr.msra.gmra.mrb[12].mxu0 %v4730_v1  ;;  %2787 = vmatmul.mubr.bf16.vlgmr.msra.gmra.mrb[8].mxu1 %v4730_v1 }
 0x36a   :  { %2796 = vmatpush1.bf16.msra.mxu0 %v3366_v27  ;;  %2827 = vmatprep.mubr.bf16.mxu0 %v4517_v8  ;;  %v3422_v27 = vcombine.low %v1111_v21, %v1115_v22  ;;  %v1167_v21 = vld [vmem:[%s5202_s13 + $0x390] sm:$0xff] }
 0x36b   :  { %2878 = vmatpush1.bf16.msra.mxu1 %v3368_v28  ;;  %2909 = vmatprep.mubr.bf16.mxu1 %v4517_v8  ;;  %v1084_v8 = vld [vmem:[%s5202_s13 + $0xf8] sm:$0xff]  ;;  %v3424_v28 = vcombine.low %v1112_v23, %v1116_v24  ;;  %v1171_v22 = vld [vmem:[%s5202_s13 + $0x3b0] sm:$0xff] }
 0x36c   :  { %2797 = vmatprep.subr.bf16.mxu0 %v3375_v29  ;;  %2879 = vmatprep.subr.bf16.mxu1 %v3377_v30  ;;  %v3393_v40 = vcombine.high %v1080_v47, %v1084_v8  ;;  %v3392_v2 = vcombine.low %v1080_v47, %v1084_v8  ;;  %v3431_v29 = vcombine.high %v1119_v61, %v1123_v62  ;;  %v1136_v47 = vld [vmem:[%s5202_s13 + $0x298] sm:$0xff] }
 0x36d   :  { %v3433_v30 = vcombine.high %v1120_v39, %v1124_v26  ;;  %v1140_v8 = vld [vmem:[%s5202_s13 + $0x2b8] sm:$0xff] }
 0x36e   :  { %2798 = vmatpush1.bf16.msra.mxu0 %v3374_v35  ;;  %v3430_v35 = vcombine.low %v1119_v61, %v1123_v62  ;;  %v1168_v23 = vld [vmem:[%s5202_s13 + $0x398] sm:$0xff]  ;;  %v1175_v61 = vld [vmem:[%s5202_s13 + $0x3d0] sm:$0xff] }
 0x36f   :  { %2880 = vmatpush1.bf16.msra.mxu1 %v3376_v36  ;;  %2799 = vmatprep.subr.bf16.mxu0 %v3383_v37  ;;  %v3432_v36 = vcombine.low %v1120_v39, %v1124_v26  ;;  %v3439_v37 = vcombine.high %v1127_v31, %v1131_v32  ;;  %v1172_v24 = vld [vmem:[%s5202_s13 + $0x3b8] sm:$0xff]  ;;  %v1179_v62 = vld [vmem:[%s5202_s13 + $0x3f0] sm:$0xff] }
 0x370   :  { %2881 = vmatprep.subr.bf16.mxu1 %v3385_v38  ;;  %v3441_v38 = vcombine.high %v1128_v33, %v1132_v34  ;;  %v1176_v39 = vld [vmem:[%s5202_s13 + $0x3d8] sm:$0xff] }
 0x371   :  { %v1180_v26 = vld [vmem:[%s5202_s13 + $0x3f8] sm:$0xff] }
 0x372   :  { %2800 = vmatpush1.bf16.msra.mxu0 %v3382_v55  ;;  %v3438_v55 = vcombine.low %v1127_v31, %v1131_v32  ;;  %v1183_v31 = vld [vmem:[%s5202_s13 + $0x410] sm:$0xff] }
 0x373   :  { %2882 = vmatpush1.bf16.msra.mxu1 %v3384_v56  ;;  %2801 = vmatprep.subr.bf16.mxu0 %v3391_v60  ;;  %v3440_v56 = vcombine.low %v1128_v33, %v1132_v34  ;;  %v3447_v60 = vcombine.high %v1135_v43, %v1139_v46  ;;  %v1187_v32 = vld [vmem:[%s5202_s13 + $0x430] sm:$0xff]  ;;  %v1184_v33 = vld [vmem:[%s5202_s13 + $0x418] sm:$0xff] }
 0x374   :  { %2883 = vmatprep.subr.bf16.mxu1 %v3393_v40  ;;  %v3449_v40 = vcombine.high %v1136_v47, %v1140_v8  ;;  %v1188_v34 = vld [vmem:[%s5202_s13 + $0x438] sm:$0xff] }
 0x376   :  { %2802 = vmatpush1.bf16.msra.mxu0 %v3390_v0  ;;  %v3446_v0 = vcombine.low %v1135_v43, %v1139_v46  ;;  %v1191_v43 = vld [vmem:[%s5202_s13 + $0x450] sm:$0xff] }
 0x377   :  { %2884 = vmatpush1.bf16.msra.mxu1 %v3392_v2  ;;  %2803 = vmatprep.subr.bf16.mxu0 %v3399_v3  ;;  %v3448_v2 = vcombine.low %v1136_v47, %v1140_v8  ;;  %v3455_v3 = vcombine.high %v1143_v42, %v1147_v45  ;;  %v1195_v46 = vld [vmem:[%s5202_s13 + $0x470] sm:$0xff]  ;;  %v3494_v47 = vcombine.low %v1183_v31, %v1187_v32  ;;  %v1192_v8 = vld [vmem:[%s5202_s13 + $0x458] sm:$0xff] }
 0x378   :  { %2885 = vmatprep.subr.bf16.mxu1 %v3401_v52  ;;  %v3457_v52 = vcombine.high %v1144_v63, %v1148_v50 }
 0x37a   :  { %2804 = vmatpush1.bf16.msra.mxu0 %v3398_v54  ;;  %v3454_v54 = vcombine.low %v1143_v42, %v1147_v45  ;;  %v1203_v42 = vld [vmem:[%s5202_s13 + $0x4b0] sm:$0xff] }
 0x37b   :  { %2886 = vmatpush1.bf16.msra.mxu1 %v3400_v11  ;;  %2805 = vmatprep.subr.bf16.mxu0 %v3407_v12  ;;  %v3456_v11 = vcombine.low %v1144_v63, %v1148_v50  ;;  %v3463_v12 = vcombine.high %v1151_v6, %v1155_v7  ;;  %v1200_v63 = vld [vmem:[%s5202_s13 + $0x498] sm:$0xff] }
 0x37c   :  { %2887 = vmatprep.subr.bf16.mxu1 %v3409_v4  ;;  %v3465_v4 = vcombine.high %v1152_v10, %v1156_v53  ;;  %v1204_v50 = vld [vmem:[%s5202_s13 + $0x4b8] sm:$0xff] }
 0x37e   :  { %2806 = vmatpush1.bf16.msra.mxu0 %v3406_v16  ;;  %v3462_v16 = vcombine.low %v1151_v6, %v1155_v7  ;;  %v1207_v6 = vld [vmem:[%s5202_s13 + $0x4d0] sm:$0xff] }
 0x37f   :  { %2888 = vmatpush1.bf16.msra.mxu1 %v3408_v17  ;;  %2807 = vmatprep.subr.bf16.mxu0 %v3415_v18  ;;  %v3464_v17 = vcombine.low %v1152_v10, %v1156_v53  ;;  %v3471_v18 = vcombine.high %v1159_v5, %v1163_v9  ;;  %v1211_v7 = vld [vmem:[%s5202_s13 + $0x4f0] sm:$0xff]  ;;  %v1212_v10 = vld [vmem:[%s5202_s13 + $0x4f8] sm:$0xff]  ;;  %v3512_v53 = vcombine.low %v1200_v63, %v1204_v50 }
 0x380   :  { %2889 = vmatprep.subr.bf16.mxu1 %v3417_v19  ;;  %v3473_v19 = vcombine.high %v1160_v14, %v1164_v15 }
 0x382   :  { %2808 = vmatpush1.bf16.msra.mxu0 %v3414_v25  ;;  %v3470_v25 = vcombine.low %v1159_v5, %v1163_v9  ;;  %v1216_v5 = vld [vmem:[%s5202_s13 + $0x518] sm:$0xff] }
 0x383   :  { %2890 = vmatpush1.bf16.msra.mxu1 %v3416_v57  ;;  %2809 = vmatprep.subr.bf16.mxu0 %v3423_v58  ;;  %v3472_v57 = vcombine.low %v1160_v14, %v1164_v15  ;;  %v3479_v58 = vcombine.high %v1167_v21, %v1171_v22  ;;  %v1220_v9 = vld [vmem:[%s5202_s13 + $0x538] sm:$0xff]  ;;  %v3518_v14 = vcombine.low %v1207_v6, %v1211_v7 }
 0x384   :  { %2891 = vmatprep.subr.bf16.mxu1 %v3425_v59  ;;  %v3481_v59 = vcombine.high %v1168_v23, %v1172_v24 }
 0x386   :  { %2810 = vmatpush1.bf16.msra.mxu0 %v3422_v27  ;;  %v3478_v27 = vcombine.low %v1167_v21, %v1171_v22  ;;  %v1224_v21 = vld [vmem:[%s5202_s13 + $0x558] sm:$0xff] }
 0x387   :  { %2892 = vmatpush1.bf16.msra.mxu1 %v3424_v28  ;;  %2811 = vmatprep.subr.bf16.mxu0 %v3431_v29  ;;  %v3480_v28 = vcombine.low %v1168_v23, %v1172_v24  ;;  %v3487_v29 = vcombine.high %v1175_v61, %v1179_v62  ;;  %v1228_v22 = vld [vmem:[%s5202_s13 + $0x578] sm:$0xff]  ;;  %v3528_v24 = vcombine.low %v1216_v5, %v1220_v9 }
 0x388   :  { %2893 = vmatprep.subr.bf16.mxu1 %v3433_v30  ;;  %v3489_v30 = vcombine.high %v1176_v39, %v1180_v26 }
 0x38a   :  { %2812 = vmatpush1.bf16.msra.mxu0 %v3430_v35  ;;  %v3486_v35 = vcombine.low %v1175_v61, %v1179_v62  ;;  %v1232_v61 = vld [vmem:[%s5202_s13 + $0x598] sm:$0xff] }
 0x38b   :  { %2894 = vmatpush1.bf16.msra.mxu1 %v3432_v36  ;;  %2813 = vmatprep.subr.bf16.mxu0 %v3439_v37  ;;  %v3488_v36 = vcombine.low %v1176_v39, %v1180_v26  ;;  %v3495_v37 = vcombine.high %v1183_v31, %v1187_v32  ;;  %v1236_v62 = vld [vmem:[%s5202_s13 + $0x5b8] sm:$0xff]  ;;  %v3536_v26 = vcombine.low %v1224_v21, %v1228_v22 }
 0x38c   :  { %2895 = vmatprep.subr.bf16.mxu1 %v3441_v38  ;;  %v3497_v38 = vcombine.high %v1184_v33, %v1188_v34  ;;  %v1240_v31 = vld [vmem:[%s5202_s13 + $0x5d8] sm:$0xff] }
 0x38d   :  { %v1244_v32 = vld [vmem:[%s5202_s13 + $0x5f8] sm:$0xff] }
 0x38e   :  { %2814 = vmatpush1.bf16.msra.mxu0 %v3438_v55  ;;  %v1196_v55 = vld [vmem:[%s5202_s13 + $0x478] sm:$0xff] }
 0x38f   :  { %2896 = vmatpush1.bf16.msra.mxu1 %v3440_v56  ;;  %2815 = vmatprep.subr.bf16.mxu0 %v3447_v60  ;;  %v3496_v56 = vcombine.low %v1184_v33, %v1188_v34  ;;  %v3503_v60 = vcombine.high %v1191_v43, %v1195_v46  ;;  %v3505_v45 = vcombine.high %v1192_v8, %v1196_v55 }
 0x390   :  { %2897 = vmatprep.subr.bf16.mxu1 %v3449_v40  ;;  %v1199_v40 = vld [vmem:[%s5202_s13 + $0x490] sm:$0xff]  ;;  %v3544_v34 = vcombine.low %v1232_v61, %v1236_v62 }
 0x392   :  { %2816 = vmatpush1.bf16.msra.mxu0 %v3446_v0  ;;  %v3502_v0 = vcombine.low %v1191_v43, %v1195_v46  ;;  %v1248_v43 = vld [vmem:[%s5202_s13 + $0x618] sm:$0xff] }
 0x393   :  { %2898 = vmatpush1.bf16.msra.mxu1 %v3448_v2  ;;  %2817 = vmatprep.subr.bf16.mxu0 %v3455_v3  ;;  %v3504_v2 = vcombine.low %v1192_v8, %v1196_v55  ;;  %v3511_v3 = vcombine.high %v1199_v40, %v1203_v42  ;;  %v1252_v46 = vld [vmem:[%s5202_s13 + $0x638] sm:$0xff]  ;;  %v3552_v8 = vcombine.low %v1240_v31, %v1244_v32 }
 0x394   :  { %2899 = vmatprep.subr.bf16.mxu1 %v3457_v52  ;;  %v3513_v52 = vcombine.high %v1200_v63, %v1204_v50  ;;  %v3560_v50 = vcombine.low %v1248_v43, %v1252_v46 }
 0x396   :  { %2818 = vmatpush1.bf16.msra.mxu0 %v3454_v54  ;;  %v3519_v54 = vcombine.high %v1207_v6, %v1211_v7  ;;  %v1264_v6 = vld [vmem:[%s5202_s13 + $0x698] sm:$0xff] }
 0x397   :  { %2900 = vmatpush1.bf16.msra.mxu1 %v3456_v11  ;;  %2819 = vmatprep.subr.bf16.mxu0 %v3463_v12  ;;  %v1215_v12 = vld [vmem:[%s5202_s13 + $0x510] sm:$0xff]  ;;  %v1268_v7 = vld [vmem:[%s5202_s13 + $0x6b8] sm:$0xff] }
 0x398   :  { %2901 = vmatprep.subr.bf16.mxu1 %v3465_v4  ;;  %v1219_v4 = vld [vmem:[%s5202_s13 + $0x530] sm:$0xff] }
 0x399   :  { %v3526_v23 = vcombine.low %v1215_v12, %v1219_v4 }
 0x39a   :  { %2820 = vmatpush1.bf16.msra.mxu0 %v3462_v16  ;;  %v3527_v16 = vcombine.high %v1215_v12, %v1219_v4  ;;  %v1272_v12 = vld [vmem:[%s5202_s13 + $0x6d8] sm:$0xff] }
 0x39b   :  { %2902 = vmatpush1.bf16.msra.mxu1 %v3464_v17  ;;  %2821 = vmatprep.subr.bf16.mxu0 %v3471_v18  ;;  %v3529_v17 = vcombine.high %v1216_v5, %v1220_v9  ;;  %v1223_v18 = vld [vmem:[%s5202_s13 + $0x550] sm:$0xff]  ;;  %v1276_v4 = vld [vmem:[%s5202_s13 + $0x6f8] sm:$0xff]  ;;  %v3576_v9 = vcombine.low %v1264_v6, %v1268_v7 }
 0x39c   :  { %2903 = vmatprep.subr.bf16.mxu1 %v3473_v19  ;;  %v1227_v19 = vld [vmem:[%s5202_s13 + $0x570] sm:$0xff] }
 0x39d   :  { %v3534_v39 = vcombine.low %v1223_v18, %v1227_v19 }
 0x39e   :  { %2822 = vmatpush1.bf16.msra.mxu0 %v3470_v25  ;;  %v3535_v25 = vcombine.high %v1223_v18, %v1227_v19  ;;  %v1280_v18 = vld [vmem:[%s5202_s13 + $0x718] sm:$0xff] }
 0x39f   :  { %2904 = vmatpush1.bf16.msra.mxu1 %v3472_v57  ;;  %2823 = vmatprep.subr.bf16.mxu0 %v3479_v58  ;;  %v3537_v57 = vcombine.high %v1224_v21, %v1228_v22  ;;  %v1231_v58 = vld [vmem:[%s5202_s13 + $0x590] sm:$0xff]  ;;  %v1284_v19 = vld [vmem:[%s5202_s13 + $0x738] sm:$0xff]  ;;  %v3584_v22 = vcombine.low %v1272_v12, %v1276_v4 }
 0x3a0   :  { %2905 = vmatprep.subr.bf16.mxu1 %v3481_v59  ;;  %v1235_v59 = vld [vmem:[%s5202_s13 + $0x5b0] sm:$0xff] }
 0x3a1   :  { %v3542_v33 = vcombine.low %v1231_v58, %v1235_v59 }
 0x3a2   :  { %2824 = vmatpush1.bf16.msra.mxu0 %v3478_v27  ;;  %v3543_v27 = vcombine.high %v1231_v58, %v1235_v59  ;;  %v1288_v58 = vld [vmem:[%s5202_s13 + $0x758] sm:$0xff] }
 0x3a3   :  { %2906 = vmatpush1.bf16.msra.mxu1 %v3480_v28  ;;  %2825 = vmatprep.subr.bf16.mxu0 %v3487_v29  ;;  %v3545_v28 = vcombine.high %v1232_v61, %v1236_v62  ;;  %v1239_v29 = vld [vmem:[%s5202_s13 + $0x5d0] sm:$0xff]  ;;  %v1292_v59 = vld [vmem:[%s5202_s13 + $0x778] sm:$0xff]  ;;  %v3592_v62 = vcombine.low %v1280_v18, %v1284_v19 }
 0x3a4   :  { %2907 = vmatprep.subr.bf16.mxu1 %v3489_v30  ;;  %v1243_v30 = vld [vmem:[%s5202_s13 + $0x5f0] sm:$0xff] }
 0x3a6   :  { %2826 = vmatpush1.bf16.msra.mxu0 %v3486_v35  ;;  %v3551_v35 = vcombine.high %v1239_v29, %v1243_v30 }
 0x3a7   :  { %2908 = vmatpush1.bf16.msra.mxu1 %v3488_v36  ;;  %2836 = vmatprep.subr.bf16.mxu0 %v3495_v37  ;;  %v3553_v36 = vcombine.high %v1240_v31, %v1244_v32  ;;  %v1247_v37 = vld [vmem:[%s5202_s13 + $0x610] sm:$0xff]  ;;  %v3600_v32 = vcombine.low %v1288_v58, %v1292_v59 }
 0x3a8   :  { %2918 = vmatprep.subr.bf16.mxu1 %v3497_v38  ;;  %v1251_v38 = vld [vmem:[%s5202_s13 + $0x630] sm:$0xff] }
 0x3a9   :  { %2828 = vmatmul.mubr.bf16.vlgmr.msra.gmra.mrb[16].mxu0 %v4519_v13  ;;  %v3559_v55 = vcombine.high %v1247_v37, %v1251_v38  ;;  %v3558_v63 = vcombine.low %v1247_v37, %v1251_v38  ;;  %v1304_v37 = vld [vmem:[%s5202_s13 + $0x7d8] sm:$0xff] }
 0x3aa   :  { %2910 = vmatmul.mubr.bf16.vlgmr.msra.gmra.mrb[12].mxu1 %v4519_v13  ;;  %2837 = vmatpush1.bf16.msra.mxu0 %v3494_v47  ;;  %v1208_v13 = vld [vmem:[%s5202_s13 + $0x4d8] sm:$0xff]  ;;  %v3550_v47 = vcombine.low %v1239_v29, %v1243_v30 }
 0x3ab   :  { %2868 = vmatprep.mubr.bf16.mxu0 %v4537_v20  ;;  %2919 = vmatpush1.bf16.msra.mxu1 %v3496_v56  ;;  %v3521_v11 = vcombine.high %v1208_v13, %v1212_v10  ;;  %v3520_v15 = vcombine.low %v1208_v13, %v1212_v10  ;;  %v3561_v56 = vcombine.high %v1248_v43, %v1252_v46  ;;  %v1296_v29 = vld [vmem:[%s5202_s13 + $0x798] sm:$0xff] }
 0x3ac   :  { %2950 = vmatprep.mubr.bf16.mxu1 %v4537_v20  ;;  %2838 = vmatprep.subr.bf16.mxu0 %v3503_v60  ;;  %v3510_v20 = vcombine.low %v1199_v40, %v1203_v42  ;;  %v1255_v60 = vld [vmem:[%s5202_s13 + $0x650] sm:$0xff]  ;;  %v1256_v42 = vld [vmem:[%s5202_s13 + $0x658] sm:$0xff] }
 0x3ad   :  { %2920 = vmatprep.subr.bf16.mxu1 %v3505_v45  ;;  %v1259_v40 = vld [vmem:[%s5202_s13 + $0x670] sm:$0xff]  ;;  %v1260_v45 = vld [vmem:[%s5202_s13 + $0x678] sm:$0xff] }
 0x3ae   :  { %2839 = vmatpush1.bf16.msra.mxu0 %v3502_v0  ;;  %v3567_v0 = vcombine.high %v1255_v60, %v1259_v40  ;;  %v3566_v13 = vcombine.low %v1255_v60, %v1259_v40  ;;  %v3568_v10 = vcombine.low %v1256_v42, %v1260_v45  ;;  %v1300_v30 = vld [vmem:[%s5202_s13 + $0x7b8] sm:$0xff]  ;;  %v5105_v60 = vld [vmem:[%s5203_s14] sm:$0xff] }
 0x3af   :  { %2921 = vmatpush1.bf16.msra.mxu1 %v3504_v2  ;;  %2840 = vmatprep.subr.bf16.mxu0 %v3511_v3  ;;  %v3569_v2 = vcombine.high %v1256_v42, %v1260_v45  ;;  %v1263_v3 = vld [vmem:[%s5202_s13 + $0x690] sm:$0xff]  ;;  %v1308_v38 = vld [vmem:[%s5202_s13 + $0x7f8] sm:$0xff]  ;;  %v3608_v46 = vcombine.low %v1296_v29, %v1300_v30  ;;  %v1314_v40 = vrot.slane %v5105_v60, %v4242_v49 }
 0x3b0   :  { %2922 = vmatprep.subr.bf16.mxu1 %v3513_v52  ;;  %v1267_v52 = vld [vmem:[%s5202_s13 + $0x6b0] sm:$0xff]  ;;  %v1322_v42 = vrot.slane %v5105_v60, %v4477_v41  ;;  %v1318_v45 = vrot.slane %v5105_v60, %v4248_v51 }
 0x3b1   :  { %v3574_v5 = vcombine.low %v1263_v3, %v1267_v52 }
 0x3b2   :  { %2841 = vmatpush1.bf16.msra.mxu0 %v3510_v20  ;;  %v3575_v20 = vcombine.high %v1263_v3, %v1267_v52 }
 0x3b3   :  { %2923 = vmatpush1.bf16.msra.mxu1 %v3512_v53  ;;  %2842 = vmatprep.subr.bf16.mxu0 %v3519_v54  ;;  %v3577_v53 = vcombine.high %v1264_v6, %v1268_v7  ;;  %v1271_v54 = vld [vmem:[%s5202_s13 + $0x6d0] sm:$0xff] }
 0x3b4   :  { %2924 = vmatprep.subr.bf16.mxu1 %v3521_v11  ;;  %v1275_v11 = vld [vmem:[%s5202_s13 + $0x6f0] sm:$0xff] }
 0x3b5   :  { %v3582_v21 = vcombine.low %v1271_v54, %v1275_v11 }
 0x3b6   :  { %2843 = vmatpush1.bf16.msra.mxu0 %v3518_v14  ;;  %v3583_v14 = vcombine.high %v1271_v54, %v1275_v11 }
 0x3b7   :  { %2925 = vmatpush1.bf16.msra.mxu1 %v3520_v15  ;;  %2844 = vmatprep.subr.bf16.mxu0 %v3527_v16  ;;  %v3585_v15 = vcombine.high %v1272_v12, %v1276_v4  ;;  %v1279_v16 = vld [vmem:[%s5202_s13 + $0x710] sm:$0xff] }
 0x3b8   :  { %2926 = vmatprep.subr.bf16.mxu1 %v3529_v17  ;;  %v1283_v17 = vld [vmem:[%s5202_s13 + $0x730] sm:$0xff] }
 0x3b9   :  { %v3590_v61 = vcombine.low %v1279_v16, %v1283_v17 }
 0x3ba   :  { %2845 = vmatpush1.bf16.msra.mxu0 %v3526_v23  ;;  %v3591_v23 = vcombine.high %v1279_v16, %v1283_v17 }
 0x3bb   :  { %2927 = vmatpush1.bf16.msra.mxu1 %v3528_v24  ;;  %2846 = vmatprep.subr.bf16.mxu0 %v3535_v25  ;;  %v3593_v24 = vcombine.high %v1280_v18, %v1284_v19  ;;  %v1287_v25 = vld [vmem:[%s5202_s13 + $0x750] sm:$0xff] }
 0x3bc   :  { %2928 = vmatprep.subr.bf16.mxu1 %v3537_v57  ;;  %v1291_v57 = vld [vmem:[%s5202_s13 + $0x770] sm:$0xff] }
 0x3bd   :  { %v3598_v31 = vcombine.low %v1287_v25, %v1291_v57 }
 0x3be   :  { %2847 = vmatpush1.bf16.msra.mxu0 %v3534_v39  ;;  %v3599_v39 = vcombine.high %v1287_v25, %v1291_v57 }
 0x3bf   :  { %2929 = vmatpush1.bf16.msra.mxu1 %v3536_v26  ;;  %2848 = vmatprep.subr.bf16.mxu0 %v3543_v27  ;;  %v3601_v26 = vcombine.high %v1288_v58, %v1292_v59  ;;  %v1295_v27 = vld [vmem:[%s5202_s13 + $0x790] sm:$0xff] }
 0x3c0   :  { %2930 = vmatprep.subr.bf16.mxu1 %v3545_v28  ;;  %v1299_v28 = vld [vmem:[%s5202_s13 + $0x7b0] sm:$0xff] }
 0x3c1   :  { %v3606_v43 = vcombine.low %v1295_v27, %v1299_v28 }
 0x3c2   :  { %2849 = vmatpush1.bf16.msra.mxu0 %v3542_v33  ;;  %v3607_v33 = vcombine.high %v1295_v27, %v1299_v28 }
 0x3c3   :  { %2931 = vmatpush1.bf16.msra.mxu1 %v3544_v34  ;;  %2850 = vmatprep.subr.bf16.mxu0 %v3551_v35  ;;  %v3609_v34 = vcombine.high %v1296_v29, %v1300_v30  ;;  %v1303_v35 = vld [vmem:[%s5202_s13 + $0x7d0] sm:$0xff] }
 0x3c4   :  { %2932 = vmatprep.subr.bf16.mxu1 %v3553_v36  ;;  %v1307_v36 = vld [vmem:[%s5202_s13 + $0x7f0] sm:$0xff] }
 0x3c6   :  { %2851 = vmatpush1.bf16.msra.mxu0 %v3550_v47  ;;  %v3615_v47 = vcombine.high %v1303_v35, %v1307_v36 }
 0x3c7   :  { %2933 = vmatpush1.bf16.msra.mxu1 %v3552_v8  ;;  %2852 = vmatprep.subr.bf16.mxu0 %v3559_v55  ;;  %v3617_v8 = vcombine.high %v1304_v37, %v1308_v38  ;;  %v3614_v55 = vcombine.low %v1303_v35, %v1307_v36 }
 0x3c8   :  { %2934 = vmatprep.subr.bf16.mxu1 %v3561_v56  ;;  %v3616_v56 = vcombine.low %v1304_v37, %v1308_v38 }
 0x3ca   :  { %2853 = vmatpush1.bf16.msra.mxu0 %v3558_v63  ;;  %v1326_v63 = vrot.slane %v5105_v60, %v4483_v44 }
 0x3cb   :  { %2935 = vmatpush1.bf16.msra.mxu1 %v3560_v50  ;;  %2854 = vmatprep.subr.bf16.mxu0 %v3567_v0 }
 0x3cc   :  { %2936 = vmatprep.subr.bf16.mxu1 %v3569_v2 }
 0x3ce   :  { %2855 = vmatpush1.bf16.msra.mxu0 %v3566_v13 }
 0x3cf   :  { %2937 = vmatpush1.bf16.msra.mxu1 %v3568_v10  ;;  %2856 = vmatprep.subr.bf16.mxu0 %v3575_v20 }
 0x3d0   :  { %2938 = vmatprep.subr.bf16.mxu1 %v3577_v53 }
 0x3d2   :  { %2857 = vmatpush1.bf16.msra.mxu0 %v3574_v5 }
 0x3d3   :  { %2939 = vmatpush1.bf16.msra.mxu1 %v3576_v9  ;;  %2858 = vmatprep.subr.bf16.mxu0 %v3583_v14 }
 0x3d4   :  { %2940 = vmatprep.subr.bf16.mxu1 %v3585_v15 }
 0x3d6   :  { %2859 = vmatpush1.bf16.msra.mxu0 %v3582_v21 }
 0x3d7   :  { %2941 = vmatpush1.bf16.msra.mxu1 %v3584_v22  ;;  %2860 = vmatprep.subr.bf16.mxu0 %v3591_v23 }
 0x3d8   :  { %2942 = vmatprep.subr.bf16.mxu1 %v3593_v24 }
 0x3da   :  { %2861 = vmatpush1.bf16.msra.mxu0 %v3590_v61 }
 0x3db   :  { %2943 = vmatpush1.bf16.msra.mxu1 %v3592_v62  ;;  %2862 = vmatprep.subr.bf16.mxu0 %v3599_v39 }
 0x3dc   :  { %2944 = vmatprep.subr.bf16.mxu1 %v3601_v26 }
 0x3de   :  { %2863 = vmatpush1.bf16.msra.mxu0 %v3598_v31 }
 0x3df   :  { %2945 = vmatpush1.bf16.msra.mxu1 %v3600_v32  ;;  %2864 = vmatprep.subr.bf16.mxu0 %v3607_v33 }
 0x3e0   :  { %2946 = vmatprep.subr.bf16.mxu1 %v3609_v34 }
 0x3e2   :  { %2865 = vmatpush1.bf16.msra.mxu0 %v3606_v43 }
 0x3e3   :  { %2947 = vmatpush1.bf16.msra.mxu1 %v3608_v46  ;;  %2866 = vmatprep.subr.bf16.mxu0 %v3615_v47 }
 0x3e4   :  { %2948 = vmatprep.subr.bf16.mxu1 %v3617_v8 }
 0x3e6   :  { %2867 = vmatpush1.bf16.msra.mxu0 %v3614_v55 }
 0x3e7   :  { %2949 = vmatpush1.bf16.msra.mxu1 %v3616_v56 }
 0x3e9   :  { %2869 = vmatmul.mubr.bf16.vlgmr.msra.gmra.mrb[16].mxu0 %v4730_v1 }
 0x3ea   :  { %2951 = vmatmul.mubr.bf16.vlgmr.msra.gmra.mrb[12].mxu1 %v4730_v1 }
 0x43c   :  { %v2706_v50 = vpop.f32.mrb[12].mxu0  ;;  %v2788_v0 = vpop.f32.mrb[8].mxu1 }
 0x43d   :  { %v3645_v1 = vadd.f32 %v2706_v50, %v1314_v40  ;;  %v3647_v2 = vadd.f32 %v2788_v0, %v1322_v42  ;;  %v2708_v3 = vpop.f32.mrb[13].mxu0  ;;  %v2790_v52 = vpop.f32.mrb[9].mxu1 }
 0x43e   :  { %v3646_v6 = vadd.f32 %v2708_v3, %v1318_v45  ;;  %v3648_v7 = vadd.f32 %v2790_v52, %v1326_v63  ;;  %v2710_v13 = vpop.f32.mrb[14].mxu0  ;;  %v2792_v10 = vpop.f32.mrb[10].mxu1 }
 0x43f   :  { %v2961_v20 = vrot.slane %v3645_v1, 4  ;;  %v2973_v53 = vrot.slane %v3647_v2, 4  ;;  %v2711_v54 = vpop.f32.mrb[15].mxu0  ;;  %v2793_v11 = vpop.f32.mrb[11].mxu1 }
 0x440   :  { %v2967_v12 = vrot.slane %v3646_v6, 4  ;;  %v2979_v4 = vrot.slane %v3648_v7, 4 }
 0x441   :  { %v2962_v5 = vadd.f32 %v3645_v1, %v2961_v20  ;;  %v2974_v9 = vadd.f32 %v3647_v2, %v2973_v53 }
 0x442   :  { %v2968_v14 = vadd.f32 %v3646_v6, %v2967_v12  ;;  %v2980_v15 = vadd.f32 %v3648_v7, %v2979_v4 }
 0x443   :  { %v2963_v16 = vrot.slane %v2962_v5, 2  ;;  %v2975_v17 = vrot.slane %v2974_v9, 2 }
 0x444   :  { %v2969_v18 = vrot.slane %v2968_v14, 2  ;;  %v2981_v19 = vrot.slane %v2980_v15, 2 }
 0x445   :  { %v2964_v21 = vadd.f32 %v2963_v16, %v2962_v5  ;;  %v2976_v22 = vadd.f32 %v2975_v17, %v2974_v9 }
 0x446   :  { %v2970_v23 = vadd.f32 %v2969_v18, %v2968_v14  ;;  %v2982_v24 = vadd.f32 %v2981_v19, %v2980_v15  ;;  %v5118_v18 = vld [vmem:[%s5204_s15] sm:$0xff] }
 0x447   :  { %v2965_v25 = vrot.slane %v2964_v21, 1  ;;  %v2977_v57 = vrot.slane %v2976_v22, 1  ;;  %v5123_v19 = vld [vmem:[%s5205_s16] sm:$0xff] }
 0x448   :  { %v2971_v58 = vrot.slane %v2970_v23, 1  ;;  %v2983_v59 = vrot.slane %v2982_v24, 1 }
 0x449   :  { %v2966_v61 = vadd.f32 %v2965_v25, %v2964_v21  ;;  %v2978_v62 = vadd.f32 %v2977_v57, %v2976_v22  ;;  %v3117_v21 = vrot.slane %v5118_v18, %v4242_v49  ;;  %v3166_v57 = vrot.slane %v5123_v19, %v4242_v49 }
 0x44a   :  { %v2972_v39 = vadd.f32 %v2971_v58, %v2970_v23  ;;  %v2984_v26 = vadd.f32 %v2983_v59, %v2982_v24  ;;  %v3125_v23 = vrot.slane %v5118_v18, %v4477_v41  ;;  %v3121_v58 = vrot.slane %v5118_v18, %v4248_v51 }
 0x44b   :  { %v3009_v27 = vmul.f32 0.125, %v2966_v61  ;;  %v3011_v28 = vmul.f32 0.125, %v2978_v62  ;;  %v3174_v62 = vrot.slane %v5123_v19, %v4477_v41  ;;  %v3178_v49 = vrot.slane %v5123_v19, %v4483_v44 }
 0x44c   :  { %v3010_v29 = vmul.f32 0.125, %v2972_v39  ;;  %v3012_v30 = vmul.f32 0.125, %v2984_v26  ;;  %v3129_v39 = vrot.slane %v5118_v18, %v4483_v44 }
 0x44d   :  { %v3017_v31 = vsub.f32 %v3645_v1, %v3009_v27  ;;  %v3019_v32 = vsub.f32 %v3647_v2, %v3011_v28 }
 0x44e   :  { %v3018_v33 = vsub.f32 %v3646_v6, %v3010_v29  ;;  %v3020_v34 = vsub.f32 %v3648_v7, %v3012_v30  ;;  %v3170_v29 = vrot.slane %v5123_v19, %v4248_v51 }
 0x44f   :  { %v3025_v35 = vmul.f32 %v3017_v31, %v3017_v31  ;;  %v3027_v36 = vmul.f32 %v3019_v32, %v3019_v32 }
 0x450   :  { %v3026_v37 = vmul.f32 %v3018_v33, %v3018_v33  ;;  %v3028_v38 = vmul.f32 %v3020_v34, %v3020_v34 }
 0x451   :  { %v3033_v43 = vrot.slane %v3025_v35, 4  ;;  %v3045_v46 = vrot.slane %v3027_v36, 4 }
 0x452   :  { %v3039_v47 = vrot.slane %v3026_v37, 4  ;;  %v3051_v8 = vrot.slane %v3028_v38, 4 }
 0x453   :  { %v3034_v55 = vadd.f32 %v3033_v43, %v3025_v35  ;;  %v3046_v56 = vadd.f32 %v3045_v46, %v3027_v36 }
 0x454   :  { %v3040_v40 = vadd.f32 %v3039_v47, %v3026_v37  ;;  %v3052_v42 = vadd.f32 %v3051_v8, %v3028_v38 }
 0x455   :  { %v3035_v45 = vrot.slane %v3034_v55, 2  ;;  %v3047_v63 = vrot.slane %v3046_v56, 2 }
 0x456   :  { %v3041_v50 = vrot.slane %v3040_v40, 2  ;;  %v3053_v0 = vrot.slane %v3052_v42, 2 }
 0x457   :  { %v3036_v1 = vadd.f32 %v3035_v45, %v3034_v55  ;;  %v3048_v2 = vadd.f32 %v3047_v63, %v3046_v56  ;;  %v5154_v45 = vsub.s32 5, %v4239_v48  ;;  %v5157_v63 = vsub.s32 7, %v4239_v48 }
 0x458   :  { %v3042_v3 = vadd.f32 %v3041_v50, %v3040_v40  ;;  %v3054_v52 = vadd.f32 %v3053_v0, %v3052_v42  ;;  %v5148_v40 = vsub.s32 4, %v4239_v48  ;;  %v5151_v42 = vsub.s32 6, %v4239_v48 }
 0x459   :  { %v3037_v6 = vrot.slane %v3036_v1, 1  ;;  %v3049_v7 = vrot.slane %v3048_v2, 1 }
 0x45a   :  { %v3043_v13 = vrot.slane %v3042_v3, 1  ;;  %v3055_v10 = vrot.slane %v3054_v52, 1  ;;  %v1330_v50 = vrot.slane %v5105_v60, %v5148_v40  ;;  %v1338_v0 = vrot.slane %v5105_v60, %v5151_v42 }
 0x45b   :  { %v3038_v20 = vadd.f32 %v3037_v6, %v3036_v1  ;;  %v3050_v53 = vadd.f32 %v3049_v7, %v3048_v2  ;;  %v1334_v1 = vrot.slane %v5105_v60, %v5154_v45  ;;  %v1342_v2 = vrot.slane %v5105_v60, %v5157_v63 }
 0x45c   :  { %v3044_v54 = vadd.f32 %v3043_v13, %v3042_v3  ;;  %v3056_v11 = vadd.f32 %v3055_v10, %v3054_v52 }
 0x45d   :  { %v3081_v12 = vmul.f32 0.125, %v3038_v20  ;;  %v3083_v4 = vmul.f32 0.125, %v3050_v53 }
 0x45e   :  { %v3082_v5 = vmul.f32 0.125, %v3044_v54  ;;  %v3084_v9 = vmul.f32 0.125, %v3056_v11 }
 0x45f   :  { %v3089_v14 = vadd.f32 0.8, %v3081_v12  ;;  %v3091_v15 = vadd.f32 0.8, %v3083_v4 }
 0x460   :  { %v3090_v16 = vadd.f32 0.8, %v3082_v5  ;;  %v3092_v17 = vadd.f32 0.8, %v3084_v9 }
 0x461   :  { %3808 = vrsqrt.f32 %v3089_v14 }
 0x462   :  { %3810 = vrsqrt.f32 %v3091_v15 }
 0x463   :  { %3812 = vrsqrt.f32 %v3090_v16 }
 0x464   :  { %3814 = vrsqrt.f32 %v3092_v17 }
 0x46b   :  { %v3809_v22 = vpop.eup %3808 }
 0x46c   :  { %v3811_v24 = vpop.eup %3810  ;;  %v3105_v25 = vmul.f32 %v3809_v22, %v3017_v31 }
 0x46d   :  { %v3813_v59 = vpop.eup %3812  ;;  %v3107_v61 = vmul.f32 %v3811_v24, %v3019_v32 }
 0x46e   :  { %v3815_v26 = vpop.eup %3814  ;;  %v3154_v27 = vmul.f32 %v3117_v21, %v3105_v25  ;;  %v3106_v28 = vmul.f32 %v3813_v59, %v3018_v33 }
 0x46f   :  { %v3156_v30 = vmul.f32 %v3125_v23, %v3107_v61  ;;  %v3108_v31 = vmul.f32 %v3815_v26, %v3020_v34 }
 0x470   :  { %v3203_v35 = vadd.f32 %v3166_v57, %v3154_v27  ;;  %v3155_v36 = vmul.f32 %v3121_v58, %v3106_v28 }
 0x471   :  { %v3205_v32 = vadd.f32 %v3174_v62, %v3156_v30  ;;  %v3157_v37 = vmul.f32 %v3129_v39, %v3108_v31 }
 0x472   :  { %vm3211_vm10 = vcmp.gt.f32.partialorder %v3203_v35, 0.0  ;;  %v3219_v41 = vmul.f32 0.2, %v3203_v35  ;;  %v3204_v38 = vadd.f32 %v3170_v29, %v3155_v36 }
 0x473   :  { %vm3213_vm11 = vcmp.gt.f32.partialorder %v3205_v32, 0.0  ;;  %v3221_v43 = vmul.f32 0.2, %v3205_v32  ;;  %v3206_v46 = vadd.f32 %v3178_v49, %v3157_v37 }
 0x474   :  { %v3227_v47 = vsel %vm3211_vm10, %v3203_v35, %v3219_v41  ;;  %vm3212_vm12 = vcmp.gt.f32.partialorder %v3204_v38, 0.0  ;;  %v3220_v33 = vmul.f32 0.2, %v3204_v38 }
 0x475   :  { %v3229_v8 = vsel %vm3213_vm11, %v3205_v32, %v3221_v43  ;;  %vm3214_vm13 = vcmp.gt.f32.partialorder %v3206_v46, 0.0  ;;  %v3222_v51 = vmul.f32 0.2, %v3206_v46 }
 0x476   :  { %v3228_v34 = vsel %vm3212_vm12, %v3204_v38, %v3220_v33 }
 0x477   :  { %v3622_v55 = vpack.c.bf16 %v3228_v34, %v3227_v47  ;;  %v3230_v56 = vsel %vm3214_vm13, %v3206_v46, %v3222_v51 }
 0x478   :  { %v3623_v44 = vpack.c.bf16 %v3230_v56, %v3229_v8 }
 0x479   :  { %3267 = vst [vmem:[%s5206_s17] sm:$0xff] %v3622_v55 }
 0x47a   :  { %3268 = vst [vmem:[%s5206_s17 + $0x8] sm:$0xff] %v3623_v44 }
 0x4bc   :  { %v2870_v3 = vpop.f32.mrb[16].mxu0 }
 0x4bd   :  { %v3649_v52 = vadd.f32 %v2870_v3, %v1330_v50  ;;  %v2952_v6 = vpop.f32.mrb[12].mxu1  ;;  %v2872_v7 = vpop.f32.mrb[17].mxu0 }
 0x4be   :  { %v3651_v13 = vadd.f32 %v2952_v6, %v1338_v0  ;;  %v3650_v10 = vadd.f32 %v2872_v7, %v1334_v1  ;;  %v2954_v48 = vpop.f32.mrb[13].mxu1  ;;  %v2874_v20 = vpop.f32.mrb[18].mxu0 }
 0x4bf   :  { %v2985_v53 = vrot.slane %v3649_v52, 4  ;;  %v3652_v54 = vadd.f32 %v2954_v48, %v1342_v2  ;;  %v2956_v11 = vpop.f32.mrb[14].mxu1  ;;  %v2875_v12 = vpop.f32.mrb[19].mxu0 }
 0x4c0   :  { %v2997_v4 = vrot.slane %v3651_v13, 4  ;;  %v2991_v5 = vrot.slane %v3650_v10, 4  ;;  %v2957_v9 = vpop.f32.mrb[15].mxu1 }
 0x4c1   :  { %v2986_v14 = vadd.f32 %v3649_v52, %v2985_v53  ;;  %v3003_v15 = vrot.slane %v3652_v54, 4 }
 0x4c2   :  { %v2998_v16 = vadd.f32 %v3651_v13, %v2997_v4  ;;  %v2992_v17 = vadd.f32 %v3650_v10, %v2991_v5 }
 0x4c3   :  { %v2987_v60 = vrot.slane %v2986_v14, 2  ;;  %v3004_v21 = vadd.f32 %v3652_v54, %v3003_v15 }
 0x4c4   :  { %v2999_v22 = vrot.slane %v2998_v16, 2  ;;  %v2993_v23 = vrot.slane %v2992_v17, 2 }
 0x4c5   :  { %v2988_v24 = vadd.f32 %v2987_v60, %v2986_v14  ;;  %v3005_v25 = vrot.slane %v3004_v21, 2 }
 0x4c6   :  { %v3000_v57 = vadd.f32 %v2999_v22, %v2998_v16  ;;  %v2994_v58 = vadd.f32 %v2993_v23, %v2992_v17  ;;  %v3133_v23 = vrot.slane %v5118_v18, %v5148_v40 }
 0x4c7   :  { %v2989_v59 = vrot.slane %v2988_v24, 1  ;;  %v3006_v61 = vadd.f32 %v3005_v25, %v3004_v21  ;;  %v3141_v25 = vrot.slane %v5118_v18, %v5151_v42 }
 0x4c8   :  { %v3001_v62 = vrot.slane %v3000_v57, 1  ;;  %v2995_v39 = vrot.slane %v2994_v58, 1 }
 0x4c9   :  { %v2990_v26 = vadd.f32 %v2989_v59, %v2988_v24  ;;  %v3007_v27 = vrot.slane %v3006_v61, 1  ;;  %v3182_v59 = vrot.slane %v5123_v19, %v5148_v40  ;;  %v3194_v40 = vrot.slane %v5123_v19, %v5157_v63 }
 0x4ca   :  { %v3002_v28 = vadd.f32 %v3001_v62, %v3000_v57  ;;  %v2996_v29 = vadd.f32 %v2995_v39, %v2994_v58 }
 0x4cb   :  { %v3013_v30 = vmul.f32 0.125, %v2990_v26  ;;  %v3008_v31 = vadd.f32 %v3007_v27, %v3006_v61  ;;  %v3137_v61 = vrot.slane %v5118_v18, %v5154_v45  ;;  %v3190_v26 = vrot.slane %v5123_v19, %v5151_v42 }
 0x4cc   :  { %v3015_v49 = vmul.f32 0.125, %v3002_v28  ;;  %v3014_v35 = vmul.f32 0.125, %v2996_v29  ;;  %v3145_v27 = vrot.slane %v5118_v18, %v5157_v63 }
 0x4cd   :  { %v3021_v36 = vsub.f32 %v3649_v52, %v3013_v30  ;;  %v3016_v32 = vmul.f32 0.125, %v3008_v31  ;;  %v3186_v31 = vrot.slane %v5123_v19, %v5154_v45 }
 0x4ce   :  { %v3023_v37 = vsub.f32 %v3651_v13, %v3015_v49  ;;  %v3022_v41 = vsub.f32 %v3650_v10, %v3014_v35 }
 0x4cf   :  { %v3029_v38 = vmul.f32 %v3021_v36, %v3021_v36  ;;  %v3024_v43 = vsub.f32 %v3652_v54, %v3016_v32 }
 0x4d0   :  { %v3031_v46 = vmul.f32 %v3023_v37, %v3023_v37  ;;  %v3030_v47 = vmul.f32 %v3022_v41, %v3022_v41 }
 0x4d1   :  { %v3057_v33 = vrot.slane %v3029_v38, 4  ;;  %v3032_v8 = vmul.f32 %v3024_v43, %v3024_v43 }
 0x4d2   :  { %v3069_v51 = vrot.slane %v3031_v46, 4  ;;  %v3063_v34 = vrot.slane %v3030_v47, 4 }
 0x4d3   :  { %v3058_v55 = vadd.f32 %v3057_v33, %v3029_v38  ;;  %v3075_v56 = vrot.slane %v3032_v8, 4 }
 0x4d4   :  { %v3070_v44 = vadd.f32 %v3069_v51, %v3031_v46  ;;  %v3064_v50 = vadd.f32 %v3063_v34, %v3030_v47 }
 0x4d5   :  { %v3059_v0 = vrot.slane %v3058_v55, 2  ;;  %v3076_v1 = vadd.f32 %v3075_v56, %v3032_v8 }
 0x4d6   :  { %v3071_v2 = vrot.slane %v3070_v44, 2  ;;  %v3065_v3 = vrot.slane %v3064_v50, 2 }
 0x4d7   :  { %v3060_v52 = vadd.f32 %v3059_v0, %v3058_v55  ;;  %v3077_v6 = vrot.slane %v3076_v1, 2 }
 0x4d8   :  { %v3072_v7 = vadd.f32 %v3071_v2, %v3070_v44  ;;  %v3066_v13 = vadd.f32 %v3065_v3, %v3064_v50 }
 0x4d9   :  { %v3061_v10 = vrot.slane %v3060_v52, 1  ;;  %v3078_v48 = vadd.f32 %v3077_v6, %v3076_v1 }
 0x4da   :  { %v3073_v20 = vrot.slane %v3072_v7, 1  ;;  %v3067_v53 = vrot.slane %v3066_v13, 1 }
 0x4db   :  { %v3062_v54 = vadd.f32 %v3061_v10, %v3060_v52  ;;  %v3079_v11 = vrot.slane %v3078_v48, 1 }
 0x4dc   :  { %v3074_v12 = vadd.f32 %v3073_v20, %v3072_v7  ;;  %v3068_v4 = vadd.f32 %v3067_v53, %v3066_v13 }
 0x4dd   :  { %v3085_v5 = vmul.f32 0.125, %v3062_v54  ;;  %v3080_v9 = vadd.f32 %v3079_v11, %v3078_v48 }
 0x4de   :  { %v3087_v14 = vmul.f32 0.125, %v3074_v12  ;;  %v3086_v15 = vmul.f32 0.125, %v3068_v4 }
 0x4df   :  { %v3093_v16 = vadd.f32 0.8, %v3085_v5  ;;  %v3088_v17 = vmul.f32 0.125, %v3080_v9 }
 0x4e0   :  { %v3095_v60 = vadd.f32 0.8, %v3087_v14  ;;  %v3094_v21 = vadd.f32 0.8, %v3086_v15 }
 0x4e1   :  { %3816 = vrsqrt.f32 %v3093_v16  ;;  %v3096_v22 = vadd.f32 0.8, %v3088_v17 }
 0x4e2   :  { %3818 = vrsqrt.f32 %v3095_v60 }
 0x4e3   :  { %3820 = vrsqrt.f32 %v3094_v21 }
 0x4e4   :  { %3822 = vrsqrt.f32 %v3096_v22 }
 0x4eb   :  { %v3817_v24 = vpop.eup %3816 }
 0x4ec   :  { %v3819_v57 = vpop.eup %3818  ;;  %v3109_v58 = vmul.f32 %v3817_v24, %v3021_v36 }
 0x4ed   :  { %v3821_v62 = vpop.eup %3820  ;;  %v3111_v39 = vmul.f32 %v3819_v57, %v3023_v37 }
 0x4ee   :  { %v3823_v28 = vpop.eup %3822  ;;  %v3158_v29 = vmul.f32 %v3133_v23, %v3109_v58  ;;  %v3110_v30 = vmul.f32 %v3821_v62, %v3022_v41 }
 0x4ef   :  { %v3160_v49 = vmul.f32 %v3141_v25, %v3111_v39  ;;  %v3112_v35 = vmul.f32 %v3823_v28, %v3024_v43 }
 0x4f0   :  { %v3207_v36 = vadd.f32 %v3182_v59, %v3158_v29  ;;  %v3159_v32 = vmul.f32 %v3137_v61, %v3110_v30 }
 0x4f1   :  { %v3209_v37 = vadd.f32 %v3190_v26, %v3160_v49  ;;  %v3161_v38 = vmul.f32 %v3145_v27, %v3112_v35 }
 0x4f2   :  { %vm3215_vm14 = vcmp.gt.f32.partialorder %v3207_v36, 0.0  ;;  %v3223_v42 = vmul.f32 0.2, %v3207_v36  ;;  %v3208_v46 = vadd.f32 %v3186_v31, %v3159_v32 }
 0x4f3   :  { %vm3217_vm15 = vcmp.gt.f32.partialorder %v3209_v37, 0.0  ;;  %v3225_v18 = vmul.f32 0.2, %v3209_v37  ;;  %v3210_v47 = vadd.f32 %v3194_v40, %v3161_v38 }
 0x4f4   :  { %v3231_v33 = vsel %vm3215_vm14, %v3207_v36, %v3223_v42  ;;  %vm3216_vm0 = vcmp.gt.f32.partialorder %v3208_v46, 0.0  ;;  %v3224_v41 = vmul.f32 0.2, %v3208_v46 }
 0x4f5   :  { %v3233_v8 = vsel %vm3217_vm15, %v3209_v37, %v3225_v18  ;;  %vm3218_vm1 = vcmp.gt.f32.partialorder %v3210_v47, 0.0  ;;  %v3226_v45 = vmul.f32 0.2, %v3210_v47 }
 0x4f6   :  { %v3232_v43 = vsel %vm3216_vm0, %v3208_v46, %v3224_v41 }
 0x4f7   :  { %v3624_v51 = vpack.c.bf16 %v3232_v43, %v3231_v33  ;;  %v3234_v34 = vsel %vm3218_vm1, %v3210_v47, %v3226_v45 }
 0x4f8   :  { %v3625_v19 = vpack.c.bf16 %v3234_v34, %v3233_v8 }
 0x4f9   :  { %3269 = vst [vmem:[%s5206_s17 + $0x10] sm:$0xff] %v3624_v51 }
 0x4fa   :  { %3270 = vst [vmem:[%s5206_s17 + $0x18] sm:$0xff] %v3625_v19 }
 0x4fb   :  { %3275 = vsyncpa [#allocation3], 1 }

// kernel: generator_forward.3
= control target key start
LH: loop header
LB: loop body
LE: loop exit
PB: predicated region body
PF: predicated region fallthrough
CT: control target
= control target key end

     0   :  { %s5806_s12 = smov 0   ;;  %s5808_s13 = smov 0   ;;  %s7522_s0 = inlined_call_operand.vmem [shape: bf16[8,1024], index: 0, kind: input, shape index: {}]   ;;  %s7523_s1 = inlined_call_operand.vmem [shape: bf16[1024,2048], index: 1, kind: input, shape index: {}]   ;;  %s7524_s2 = inlined_call_operand.vmem [shape: f32[1,2048], index: 2, kind: input, shape index: {}]   ;;  %s7525_s3 = inlined_call_operand.vmem [shape: f32[8,2048], index: 3, kind: output, shape index: {}]  }
   0x1   :  { %s5810_s14 = smov 0  }
   0x2 LB: > { %s5123_s15 = sadd.s32 4294967295, %s5784_s14   ;;  %s5823_s16 = sadd.s32 1, %s5784_s14   ;;  %s5784_s14 = sphi %s5810_s14, %s7528_s14   ;;  %s5780_s13 = sphi %s5808_s13, %s7527_s13   ;;  %s5776_s12 = sphi %s5806_s12, %s7526_s12  }
   0x3   : > { %s38_s17 = ssub.s32 %s5784_s14, %s5823_s16  ;;  %s41_s18 = sadd.s32 1, %s5780_s13 }
   0x4   : > { %p39_p0 = scmp.eq.s32.totalorder %s38_s17, 0  ;;  %p48_p1 = scmp.ne.s32.totalorder %s5780_s13, %s5776_s12 }
   0x5   : > { %p49_p2 = scmp.eq.s32.totalorder %s5784_s14, 0  ;;  %p5126_p4 = scmp.ge.s32.totalorder %s5784_s14, 2 }
   0x6   : > { %s5832_s19 = scalar_select %p39_p0, %s5780_s13, %s41_s18  }
   0x7   : > { %p50_p3 = por %p49_p2, %p48_p1  ;;  %129 = sbr.rel (%p5126_p4) target bundleno = 274 (0x112), region = 20 }
   0xe   : > { %132 = sbr.rel (!%p50_p3) target bundleno = 274 (0x112), region = 24  ;;  %s134_s20 = sand.u32 (%p50_p3), 1, %s5780_s13  }
   0xf   : > { %s5657_s21 = sshll.u32 (%p50_p3), %s5784_s14, 5  ;;  %s5127_s22 = sshll.u32 (%p50_p3), %s134_s20, 12 }
  0x10   : > { %s5840_s25 = scalar_lea.vmem (%p50_p3), %s7523_s1, %s5657_s21  ;;  %s5845_s26 = scalar_lea.vmem (%p50_p3), [#allocation2], %s5127_s22 }
  0x11   : > { %v152_v0 = vld [vmem:[%s5840_s25] sm:$0xff] (%p50_p3)  ;;  %v154_v1 = vld [vmem:[%s5840_s25 + $0x8] sm:$0xff] (%p50_p3)  ;;  %v156_v2 = vld [vmem:[%s5840_s25 + $0x10] sm:$0xff] (%p50_p3) }
  0x12   : > { %153 = vst [vmem:[%s5845_s26] sm:$0xff] (%p50_p3), %v152_v0  ;;  %155 = vst [vmem:[%s5845_s26 + $0x8] sm:$0xff] (%p50_p3), %v154_v1  ;;  %v158_v3 = vld [vmem:[%s5840_s25 + $0x18] sm:$0xff] (%p50_p3)  ;;  %v160_v4 = vld [vmem:[%s5840_s25 + $0x40] sm:$0xff] (%p50_p3) }
  0x13   : > { %157 = vst [vmem:[%s5845_s26 + $0x10] sm:$0xff] (%p50_p3), %v156_v2  ;;  %v162_v5 = vld [vmem:[%s5840_s25 + $0x48] sm:$0xff] (%p50_p3)  ;;  %159 = vst [vmem:[%s5845_s26 + $0x18] sm:$0xff] (%p50_p3), %v158_v3  ;;  %v164_v6 = vld [vmem:[%s5840_s25 + $0x50] sm:$0xff] (%p50_p3) }
  0x14   : > { %161 = vst [vmem:[%s5845_s26 + $0x20] sm:$0xff] (%p50_p3), %v160_v4  ;;  %163 = vst [vmem:[%s5845_s26 + $0x28] sm:$0xff] (%p50_p3), %v162_v5  ;;  %v166_v7 = vld [vmem:[%s5840_s25 + $0x58] sm:$0xff] (%p50_p3)  ;;  %v168_v8 = vld [vmem:[%s5840_s25 + $0x80] sm:$0xff] (%p50_p3) }
  0x15   : > { %165 = vst [vmem:[%s5845_s26 + $0x30] sm:$0xff] %v164_v6  ;;  %167 = vst [vmem:[%s5845_s26 + $0x38] sm:$0xff] %v166_v7  ;;  %v170_v9 = vld [vmem:[%s5840_s25 + $0x88] sm:$0xff]  ;;  %v172_v10 = vld [vmem:[%s5840_s25 + $0x90] sm:$0xff] }
  0x16   : > { %169 = vst [vmem:[%s5845_s26 + $0x40] sm:$0xff] %v168_v8  ;;  %v174_v11 = vld [vmem:[%s5840_s25 + $0x98] sm:$0xff]  ;;  %171 = vst [vmem:[%s5845_s26 + $0x48] sm:$0xff] %v170_v9  ;;  %v176_v12 = vld [vmem:[%s5840_s25 + $0xc0] sm:$0xff] }
  0x17   : > { %173 = vst [vmem:[%s5845_s26 + $0x50] sm:$0xff] %v172_v10  ;;  %175 = vst [vmem:[%s5845_s26 + $0x58] sm:$0xff] %v174_v11  ;;  %v178_v13 = vld [vmem:[%s5840_s25 + $0xc8] sm:$0xff]  ;;  %v180_v14 = vld [vmem:[%s5840_s25 + $0xd0] sm:$0xff] }
  0x18   : > { %177 = vst [vmem:[%s5845_s26 + $0x60] sm:$0xff] %v176_v12  ;;  %179 = vst [vmem:[%s5845_s26 + $0x68] sm:$0xff] %v178_v13  ;;  %v182_v15 = vld [vmem:[%s5840_s25 + $0xd8] sm:$0xff]  ;;  %v184_v16 = vld [vmem:[%s5840_s25 + $0x100] sm:$0xff] }
  0x19   : > { %181 = vst [vmem:[%s5845_s26 + $0x70] sm:$0xff] %v180_v14  ;;  %v186_v17 = vld [vmem:[%s5840_s25 + $0x108] sm:$0xff]  ;;  %183 = vst [vmem:[%s5845_s26 + $0x78] sm:$0xff] %v182_v15  ;;  %v188_v18 = vld [vmem:[%s5840_s25 + $0x110] sm:$0xff] }
  0x1a   : > { %185 = vst [vmem:[%s5845_s26 + $0x80] sm:$0xff] %v184_v16  ;;  %187 = vst [vmem:[%s5845_s26 + $0x88] sm:$0xff] %v186_v17  ;;  %v190_v19 = vld [vmem:[%s5840_s25 + $0x118] sm:$0xff]  ;;  %v192_v20 = vld [vmem:[%s5840_s25 + $0x140] sm:$0xff] }
  0x1b   : > { %189 = vst [vmem:[%s5845_s26 + $0x90] sm:$0xff] %v188_v18  ;;  %191 = vst [vmem:[%s5845_s26 + $0x98] sm:$0xff] %v190_v19  ;;  %v194_v21 = vld [vmem:[%s5840_s25 + $0x148] sm:$0xff]  ;;  %v196_v22 = vld [vmem:[%s5840_s25 + $0x150] sm:$0xff] }
  0x1c   : > { %193 = vst [vmem:[%s5845_s26 + $0xa0] sm:$0xff] %v192_v20  ;;  %v198_v23 = vld [vmem:[%s5840_s25 + $0x158] sm:$0xff]  ;;  %195 = vst [vmem:[%s5845_s26 + $0xa8] sm:$0xff] %v194_v21  ;;  %v200_v24 = vld [vmem:[%s5840_s25 + $0x180] sm:$0xff] }
  0x1d   : > { %197 = vst [vmem:[%s5845_s26 + $0xb0] sm:$0xff] %v196_v22  ;;  %199 = vst [vmem:[%s5845_s26 + $0xb8] sm:$0xff] %v198_v23  ;;  %v202_v25 = vld [vmem:[%s5840_s25 + $0x188] sm:$0xff]  ;;  %v204_v26 = vld [vmem:[%s5840_s25 + $0x190] sm:$0xff] }
  0x1e   : > { %201 = vst [vmem:[%s5845_s26 + $0xc0] sm:$0xff] %v200_v24  ;;  %203 = vst [vmem:[%s5845_s26 + $0xc8] sm:$0xff] %v202_v25  ;;  %v206_v27 = vld [vmem:[%s5840_s25 + $0x198] sm:$0xff]  ;;  %v208_v28 = vld [vmem:[%s5840_s25 + $0x1c0] sm:$0xff] }
  0x1f   : > { %205 = vst [vmem:[%s5845_s26 + $0xd0] sm:$0xff] %v204_v26  ;;  %v210_v29 = vld [vmem:[%s5840_s25 + $0x1c8] sm:$0xff]  ;;  %207 = vst [vmem:[%s5845_s26 + $0xd8] sm:$0xff] %v206_v27  ;;  %v212_v30 = vld [vmem:[%s5840_s25 + $0x1d0] sm:$0xff] }
  0x20   : > { %209 = vst [vmem:[%s5845_s26 + $0xe0] sm:$0xff] %v208_v28  ;;  %211 = vst [vmem:[%s5845_s26 + $0xe8] sm:$0xff] %v210_v29  ;;  %v214_v31 = vld [vmem:[%s5840_s25 + $0x1d8] sm:$0xff]  ;;  %v216_v32 = vld [vmem:[%s5840_s25 + $0x200] sm:$0xff] }
  0x21   : > { %213 = vst [vmem:[%s5845_s26 + $0xf0] sm:$0xff] %v212_v30  ;;  %215 = vst [vmem:[%s5845_s26 + $0xf8] sm:$0xff] %v214_v31  ;;  %v218_v33 = vld [vmem:[%s5840_s25 + $0x208] sm:$0xff]  ;;  %v220_v34 = vld [vmem:[%s5840_s25 + $0x210] sm:$0xff] }
  0x22   : > { %217 = vst [vmem:[%s5845_s26 + $0x100] sm:$0xff] %v216_v32  ;;  %v222_v35 = vld [vmem:[%s5840_s25 + $0x218] sm:$0xff]  ;;  %219 = vst [vmem:[%s5845_s26 + $0x108] sm:$0xff] %v218_v33  ;;  %v224_v36 = vld [vmem:[%s5840_s25 + $0x240] sm:$0xff] }
  0x23   : > { %221 = vst [vmem:[%s5845_s26 + $0x110] sm:$0xff] %v220_v34  ;;  %223 = vst [vmem:[%s5845_s26 + $0x118] sm:$0xff] %v222_v35  ;;  %v226_v37 = vld [vmem:[%s5840_s25 + $0x248] sm:$0xff]  ;;  %v228_v38 = vld [vmem:[%s5840_s25 + $0x250] sm:$0xff] }
  0x24   : > { %225 = vst [vmem:[%s5845_s26 + $0x120] sm:$0xff] %v224_v36  ;;  %227 = vst [vmem:[%s5845_s26 + $0x128] sm:$0xff] %v226_v37  ;;  %v230_v39 = vld [vmem:[%s5840_s25 + $0x258] sm:$0xff]  ;;  %v232_v40 = vld [vmem:[%s5840_s25 + $0x280] sm:$0xff] }
  0x25   : > { %229 = vst [vmem:[%s5845_s26 + $0x130] sm:$0xff] %v228_v38  ;;  %v234_v41 = vld [vmem:[%s5840_s25 + $0x288] sm:$0xff]  ;;  %231 = vst [vmem:[%s5845_s26 + $0x138] sm:$0xff] %v230_v39  ;;  %v236_v42 = vld [vmem:[%s5840_s25 + $0x290] sm:$0xff] }
  0x26   : > { %233 = vst [vmem:[%s5845_s26 + $0x140] sm:$0xff] %v232_v40  ;;  %235 = vst [vmem:[%s5845_s26 + $0x148] sm:$0xff] %v234_v41  ;;  %v238_v43 = vld [vmem:[%s5840_s25 + $0x298] sm:$0xff]  ;;  %v240_v44 = vld [vmem:[%s5840_s25 + $0x2c0] sm:$0xff] }
  0x27   : > { %237 = vst [vmem:[%s5845_s26 + $0x150] sm:$0xff] %v236_v42  ;;  %239 = vst [vmem:[%s5845_s26 + $0x158] sm:$0xff] %v238_v43  ;;  %v242_v45 = vld [vmem:[%s5840_s25 + $0x2c8] sm:$0xff]  ;;  %v244_v46 = vld [vmem:[%s5840_s25 + $0x2d0] sm:$0xff] }
  0x28   : > { %241 = vst [vmem:[%s5845_s26 + $0x160] sm:$0xff] %v240_v44  ;;  %v246_v47 = vld [vmem:[%s5840_s25 + $0x2d8] sm:$0xff]  ;;  %243 = vst [vmem:[%s5845_s26 + $0x168] sm:$0xff] %v242_v45  ;;  %v248_v48 = vld [vmem:[%s5840_s25 + $0x300] sm:$0xff] }
  0x29   : > { %245 = vst [vmem:[%s5845_s26 + $0x170] sm:$0xff] %v244_v46  ;;  %247 = vst [vmem:[%s5845_s26 + $0x178] sm:$0xff] %v246_v47  ;;  %v250_v49 = vld [vmem:[%s5840_s25 + $0x308] sm:$0xff]  ;;  %v252_v50 = vld [vmem:[%s5840_s25 + $0x310] sm:$0xff] }
  0x2a   : > { %249 = vst [vmem:[%s5845_s26 + $0x180] sm:$0xff] %v248_v48  ;;  %251 = vst [vmem:[%s5845_s26 + $0x188] sm:$0xff] %v250_v49  ;;  %v254_v51 = vld [vmem:[%s5840_s25 + $0x318] sm:$0xff]  ;;  %v256_v52 = vld [vmem:[%s5840_s25 + $0x340] sm:$0xff] }
  0x2b   : > { %253 = vst [vmem:[%s5845_s26 + $0x190] sm:$0xff] %v252_v50  ;;  %v258_v53 = vld [vmem:[%s5840_s25 + $0x348] sm:$0xff]  ;;  %255 = vst [vmem:[%s5845_s26 + $0x198] sm:$0xff] %v254_v51  ;;  %v260_v54 = vld [vmem:[%s5840_s25 + $0x350] sm:$0xff] }
  0x2c   : > { %257 = vst [vmem:[%s5845_s26 + $0x1a0] sm:$0xff] %v256_v52  ;;  %259 = vst [vmem:[%s5845_s26 + $0x1a8] sm:$0xff] %v258_v53  ;;  %v262_v55 = vld [vmem:[%s5840_s25 + $0x358] sm:$0xff]  ;;  %v264_v56 = vld [vmem:[%s5840_s25 + $0x380] sm:$0xff] }
  0x2d   : > { %261 = vst [vmem:[%s5845_s26 + $0x1b0] sm:$0xff] %v260_v54  ;;  %263 = vst [vmem:[%s5845_s26 + $0x1b8] sm:$0xff] %v262_v55  ;;  %v266_v57 = vld [vmem:[%s5840_s25 + $0x388] sm:$0xff]  ;;  %v268_v58 = vld [vmem:[%s5840_s25 + $0x390] sm:$0xff] }
  0x2e   : > { %265 = vst [vmem:[%s5845_s26 + $0x1c0] sm:$0xff] %v264_v56  ;;  %v270_v59 = vld [vmem:[%s5840_s25 + $0x398] sm:$0xff]  ;;  %267 = vst [vmem:[%s5845_s26 + $0x1c8] sm:$0xff] %v266_v57  ;;  %v272_v60 = vld [vmem:[%s5840_s25 + $0x3c0] sm:$0xff] }
  0x2f   : > { %269 = vst [vmem:[%s5845_s26 + $0x1d0] sm:$0xff] %v268_v58  ;;  %271 = vst [vmem:[%s5845_s26 + $0x1d8] sm:$0xff] %v270_v59  ;;  %v274_v61 = vld [vmem:[%s5840_s25 + $0x3c8] sm:$0xff]  ;;  %v276_v62 = vld [vmem:[%s5840_s25 + $0x3d0] sm:$0xff] }
  0x30   : > { %273 = vst [vmem:[%s5845_s26 + $0x1e0] sm:$0xff] %v272_v60  ;;  %275 = vst [vmem:[%s5845_s26 + $0x1e8] sm:$0xff] %v274_v61  ;;  %v278_v63 = vld [vmem:[%s5840_s25 + $0x3d8] sm:$0xff]  ;;  %v280_v0 = vld [vmem:[%s5840_s25 + $0x400] sm:$0xff] }
  0x31   : > { %277 = vst [vmem:[%s5845_s26 + $0x1f0] sm:$0xff] %v276_v62  ;;  %v282_v1 = vld [vmem:[%s5840_s25 + $0x408] sm:$0xff]  ;;  %279 = vst [vmem:[%s5845_s26 + $0x1f8] sm:$0xff] %v278_v63  ;;  %v284_v2 = vld [vmem:[%s5840_s25 + $0x410] sm:$0xff] }
  0x32   : > { %281 = vst [vmem:[%s5845_s26 + $0x200] sm:$0xff] %v280_v0  ;;  %283 = vst [vmem:[%s5845_s26 + $0x208] sm:$0xff] %v282_v1  ;;  %v286_v3 = vld [vmem:[%s5840_s25 + $0x418] sm:$0xff]  ;;  %v288_v4 = vld [vmem:[%s5840_s25 + $0x440] sm:$0xff] }
  0x33   : > { %285 = vst [vmem:[%s5845_s26 + $0x210] sm:$0xff] %v284_v2  ;;  %287 = vst [vmem:[%s5845_s26 + $0x218] sm:$0xff] %v286_v3  ;;  %v290_v5 = vld [vmem:[%s5840_s25 + $0x448] sm:$0xff]  ;;  %v292_v6 = vld [vmem:[%s5840_s25 + $0x450] sm:$0xff] }
  0x34   : > { %289 = vst [vmem:[%s5845_s26 + $0x220] sm:$0xff] %v288_v4  ;;  %v294_v7 = vld [vmem:[%s5840_s25 + $0x458] sm:$0xff]  ;;  %291 = vst [vmem:[%s5845_s26 + $0x228] sm:$0xff] %v290_v5  ;;  %v296_v8 = vld [vmem:[%s5840_s25 + $0x480] sm:$0xff] }
  0x35   : > { %293 = vst [vmem:[%s5845_s26 + $0x230] sm:$0xff] %v292_v6  ;;  %295 = vst [vmem:[%s5845_s26 + $0x238] sm:$0xff] %v294_v7  ;;  %v298_v9 = vld [vmem:[%s5840_s25 + $0x488] sm:$0xff]  ;;  %v300_v10 = vld [vmem:[%s5840_s25 + $0x490] sm:$0xff] }
  0x36   : > { %297 = vst [vmem:[%s5845_s26 + $0x240] sm:$0xff] %v296_v8  ;;  %299 = vst [vmem:[%s5845_s26 + $0x248] sm:$0xff] %v298_v9  ;;  %v302_v11 = vld [vmem:[%s5840_s25 + $0x498] sm:$0xff]  ;;  %v304_v12 = vld [vmem:[%s5840_s25 + $0x4c0] sm:$0xff] }
  0x37   : > { %301 = vst [vmem:[%s5845_s26 + $0x250] sm:$0xff] %v300_v10  ;;  %v306_v13 = vld [vmem:[%s5840_s25 + $0x4c8] sm:$0xff]  ;;  %303 = vst [vmem:[%s5845_s26 + $0x258] sm:$0xff] %v302_v11  ;;  %v308_v14 = vld [vmem:[%s5840_s25 + $0x4d0] sm:$0xff] }
  0x38   : > { %305 = vst [vmem:[%s5845_s26 + $0x260] sm:$0xff] %v304_v12  ;;  %307 = vst [vmem:[%s5845_s26 + $0x268] sm:$0xff] %v306_v13  ;;  %v310_v15 = vld [vmem:[%s5840_s25 + $0x4d8] sm:$0xff]  ;;  %v312_v16 = vld [vmem:[%s5840_s25 + $0x500] sm:$0xff] }
  0x39   : > { %309 = vst [vmem:[%s5845_s26 + $0x270] sm:$0xff] %v308_v14  ;;  %311 = vst [vmem:[%s5845_s26 + $0x278] sm:$0xff] %v310_v15  ;;  %v314_v17 = vld [vmem:[%s5840_s25 + $0x508] sm:$0xff]  ;;  %v316_v18 = vld [vmem:[%s5840_s25 + $0x510] sm:$0xff] }
  0x3a   : > { %313 = vst [vmem:[%s5845_s26 + $0x280] sm:$0xff] %v312_v16  ;;  %v318_v19 = vld [vmem:[%s5840_s25 + $0x518] sm:$0xff]  ;;  %315 = vst [vmem:[%s5845_s26 + $0x288] sm:$0xff] %v314_v17  ;;  %v320_v20 = vld [vmem:[%s5840_s25 + $0x540] sm:$0xff] }
  0x3b   : > { %317 = vst [vmem:[%s5845_s26 + $0x290] sm:$0xff] %v316_v18  ;;  %319 = vst [vmem:[%s5845_s26 + $0x298] sm:$0xff] %v318_v19  ;;  %v322_v21 = vld [vmem:[%s5840_s25 + $0x548] sm:$0xff]  ;;  %v324_v22 = vld [vmem:[%s5840_s25 + $0x550] sm:$0xff] }
  0x3c   : > { %321 = vst [vmem:[%s5845_s26 + $0x2a0] sm:$0xff] %v320_v20  ;;  %323 = vst [vmem:[%s5845_s26 + $0x2a8] sm:$0xff] %v322_v21  ;;  %v326_v23 = vld [vmem:[%s5840_s25 + $0x558] sm:$0xff]  ;;  %v328_v24 = vld [vmem:[%s5840_s25 + $0x580] sm:$0xff] }
  0x3d   : > { %325 = vst [vmem:[%s5845_s26 + $0x2b0] sm:$0xff] %v324_v22  ;;  %v330_v25 = vld [vmem:[%s5840_s25 + $0x588] sm:$0xff]  ;;  %327 = vst [vmem:[%s5845_s26 + $0x2b8] sm:$0xff] %v326_v23  ;;  %v332_v26 = vld [vmem:[%s5840_s25 + $0x590] sm:$0xff] }
  0x3e   : > { %329 = vst [vmem:[%s5845_s26 + $0x2c0] sm:$0xff] %v328_v24  ;;  %331 = vst [vmem:[%s5845_s26 + $0x2c8] sm:$0xff] %v330_v25  ;;  %v334_v27 = vld [vmem:[%s5840_s25 + $0x598] sm:$0xff]  ;;  %v336_v28 = vld [vmem:[%s5840_s25 + $0x5c0] sm:$0xff] }
  0x3f   : > { %333 = vst [vmem:[%s5845_s26 + $0x2d0] sm:$0xff] %v332_v26  ;;  %335 = vst [vmem:[%s5845_s26 + $0x2d8] sm:$0xff] %v334_v27  ;;  %v338_v29 = vld [vmem:[%s5840_s25 + $0x5c8] sm:$0xff]  ;;  %v340_v30 = vld [vmem:[%s5840_s25 + $0x5d0] sm:$0xff] }
  0x40   : > { %337 = vst [vmem:[%s5845_s26 + $0x2e0] sm:$0xff] %v336_v28  ;;  %v342_v31 = vld [vmem:[%s5840_s25 + $0x5d8] sm:$0xff]  ;;  %339 = vst [vmem:[%s5845_s26 + $0x2e8] sm:$0xff] %v338_v29  ;;  %v344_v32 = vld [vmem:[%s5840_s25 + $0x600] sm:$0xff] }
  0x41   : > { %341 = vst [vmem:[%s5845_s26 + $0x2f0] sm:$0xff] %v340_v30  ;;  %343 = vst [vmem:[%s5845_s26 + $0x2f8] sm:$0xff] %v342_v31  ;;  %v346_v33 = vld [vmem:[%s5840_s25 + $0x608] sm:$0xff]  ;;  %v348_v34 = vld [vmem:[%s5840_s25 + $0x610] sm:$0xff] }
  0x42   : > { %345 = vst [vmem:[%s5845_s26 + $0x300] sm:$0xff] %v344_v32  ;;  %347 = vst [vmem:[%s5845_s26 + $0x308] sm:$0xff] %v346_v33  ;;  %v350_v35 = vld [vmem:[%s5840_s25 + $0x618] sm:$0xff]  ;;  %v352_v36 = vld [vmem:[%s5840_s25 + $0x640] sm:$0xff] }
  0x43   : > { %349 = vst [vmem:[%s5845_s26 + $0x310] sm:$0xff] %v348_v34  ;;  %v354_v37 = vld [vmem:[%s5840_s25 + $0x648] sm:$0xff]  ;;  %351 = vst [vmem:[%s5845_s26 + $0x318] sm:$0xff] %v350_v35  ;;  %v356_v38 = vld [vmem:[%s5840_s25 + $0x650] sm:$0xff] }
  0x44   : > { %353 = vst [vmem:[%s5845_s26 + $0x320] sm:$0xff] %v352_v36  ;;  %355 = vst [vmem:[%s5845_s26 + $0x328] sm:$0xff] %v354_v37  ;;  %v358_v39 = vld [vmem:[%s5840_s25 + $0x658] sm:$0xff]  ;;  %v360_v40 = vld [vmem:[%s5840_s25 + $0x680] sm:$0xff] }
  0x45   : > { %357 = vst [vmem:[%s5845_s26 + $0x330] sm:$0xff] %v356_v38  ;;  %359 = vst [vmem:[%s5845_s26 + $0x338] sm:$0xff] %v358_v39  ;;  %v362_v41 = vld [vmem:[%s5840_s25 + $0x688] sm:$0xff]  ;;  %v364_v42 = vld [vmem:[%s5840_s25 + $0x690] sm:$0xff] }
  0x46   : > { %361 = vst [vmem:[%s5845_s26 + $0x340] sm:$0xff] %v360_v40  ;;  %v366_v43 = vld [vmem:[%s5840_s25 + $0x698] sm:$0xff]  ;;  %363 = vst [vmem:[%s5845_s26 + $0x348] sm:$0xff] %v362_v41  ;;  %v368_v44 = vld [vmem:[%s5840_s25 + $0x6c0] sm:$0xff] }
  0x47   : > { %365 = vst [vmem:[%s5845_s26 + $0x350] sm:$0xff] %v364_v42  ;;  %367 = vst [vmem:[%s5845_s26 + $0x358] sm:$0xff] %v366_v43  ;;  %v370_v45 = vld [vmem:[%s5840_s25 + $0x6c8] sm:$0xff]  ;;  %v372_v46 = vld [vmem:[%s5840_s25 + $0x6d0] sm:$0xff] }
  0x48   : > { %369 = vst [vmem:[%s5845_s26 + $0x360] sm:$0xff] %v368_v44  ;;  %371 = vst [vmem:[%s5845_s26 + $0x368] sm:$0xff] %v370_v45  ;;  %v374_v47 = vld [vmem:[%s5840_s25 + $0x6d8] sm:$0xff]  ;;  %v376_v48 = vld [vmem:[%s5840_s25 + $0x700] sm:$0xff] }
  0x49   : > { %373 = vst [vmem:[%s5845_s26 + $0x370] sm:$0xff] %v372_v46  ;;  %v378_v49 = vld [vmem:[%s5840_s25 + $0x708] sm:$0xff]  ;;  %375 = vst [vmem:[%s5845_s26 + $0x378] sm:$0xff] %v374_v47  ;;  %v380_v50 = vld [vmem:[%s5840_s25 + $0x710] sm:$0xff] }
  0x4a   : > { %377 = vst [vmem:[%s5845_s26 + $0x380] sm:$0xff] %v376_v48  ;;  %379 = vst [vmem:[%s5845_s26 + $0x388] sm:$0xff] %v378_v49  ;;  %v382_v51 = vld [vmem:[%s5840_s25 + $0x718] sm:$0xff]  ;;  %v384_v52 = vld [vmem:[%s5840_s25 + $0x740] sm:$0xff] }
  0x4b   : > { %381 = vst [vmem:[%s5845_s26 + $0x390] sm:$0xff] %v380_v50  ;;  %383 = vst [vmem:[%s5845_s26 + $0x398] sm:$0xff] %v382_v51  ;;  %v386_v53 = vld [vmem:[%s5840_s25 + $0x748] sm:$0xff]  ;;  %v388_v54 = vld [vmem:[%s5840_s25 + $0x750] sm:$0xff] }
  0x4c   : > { %385 = vst [vmem:[%s5845_s26 + $0x3a0] sm:$0xff] %v384_v52  ;;  %v390_v55 = vld [vmem:[%s5840_s25 + $0x758] sm:$0xff]  ;;  %387 = vst [vmem:[%s5845_s26 + $0x3a8] sm:$0xff] %v386_v53  ;;  %v392_v56 = vld [vmem:[%s5840_s25 + $0x780] sm:$0xff] }
  0x4d   : > { %389 = vst [vmem:[%s5845_s26 + $0x3b0] sm:$0xff] %v388_v54  ;;  %391 = vst [vmem:[%s5845_s26 + $0x3b8] sm:$0xff] %v390_v55  ;;  %v394_v57 = vld [vmem:[%s5840_s25 + $0x788] sm:$0xff]  ;;  %v396_v58 = vld [vmem:[%s5840_s25 + $0x790] sm:$0xff] }
  0x4e   : > { %393 = vst [vmem:[%s5845_s26 + $0x3c0] sm:$0xff] %v392_v56  ;;  %395 = vst [vmem:[%s5845_s26 + $0x3c8] sm:$0xff] %v394_v57  ;;  %v398_v59 = vld [vmem:[%s5840_s25 + $0x798] sm:$0xff]  ;;  %v400_v60 = vld [vmem:[%s5840_s25 + $0x7c0] sm:$0xff] }
  0x4f   : > { %397 = vst [vmem:[%s5845_s26 + $0x3d0] sm:$0xff] %v396_v58  ;;  %v402_v61 = vld [vmem:[%s5840_s25 + $0x7c8] sm:$0xff]  ;;  %399 = vst [vmem:[%s5845_s26 + $0x3d8] sm:$0xff] %v398_v59  ;;  %v404_v62 = vld [vmem:[%s5840_s25 + $0x7d0] sm:$0xff] }
  0x50   : > { %401 = vst [vmem:[%s5845_s26 + $0x3e0] sm:$0xff] %v400_v60  ;;  %403 = vst [vmem:[%s5845_s26 + $0x3e8] sm:$0xff] %v402_v61  ;;  %v406_v63 = vld [vmem:[%s5840_s25 + $0x7d8] sm:$0xff]  ;;  %v408_v0 = vld [vmem:[%s5840_s25 + $0x800] sm:$0xff] }
  0x51   : > { %405 = vst [vmem:[%s5845_s26 + $0x3f0] sm:$0xff] %v404_v62  ;;  %407 = vst [vmem:[%s5845_s26 + $0x3f8] sm:$0xff] %v406_v63  ;;  %v410_v1 = vld [vmem:[%s5840_s25 + $0x808] sm:$0xff]  ;;  %v412_v2 = vld [vmem:[%s5840_s25 + $0x810] sm:$0xff] }
  0x52   : > { %409 = vst [vmem:[%s5845_s26 + $0x400] sm:$0xff] %v408_v0  ;;  %v414_v3 = vld [vmem:[%s5840_s25 + $0x818] sm:$0xff]  ;;  %411 = vst [vmem:[%s5845_s26 + $0x408] sm:$0xff] %v410_v1  ;;  %v416_v4 = vld [vmem:[%s5840_s25 + $0x840] sm:$0xff] }
  0x53   : > { %413 = vst [vmem:[%s5845_s26 + $0x410] sm:$0xff] %v412_v2  ;;  %415 = vst [vmem:[%s5845_s26 + $0x418] sm:$0xff] %v414_v3  ;;  %v418_v5 = vld [vmem:[%s5840_s25 + $0x848] sm:$0xff]  ;;  %v420_v6 = vld [vmem:[%s5840_s25 + $0x850] sm:$0xff] }
  0x54   : > { %417 = vst [vmem:[%s5845_s26 + $0x420] sm:$0xff] %v416_v4  ;;  %419 = vst [vmem:[%s5845_s26 + $0x428] sm:$0xff] %v418_v5  ;;  %v422_v7 = vld [vmem:[%s5840_s25 + $0x858] sm:$0xff]  ;;  %v424_v8 = vld [vmem:[%s5840_s25 + $0x880] sm:$0xff] }
  0x55   : > { %421 = vst [vmem:[%s5845_s26 + $0x430] sm:$0xff] %v420_v6  ;;  %v426_v9 = vld [vmem:[%s5840_s25 + $0x888] sm:$0xff]  ;;  %423 = vst [vmem:[%s5845_s26 + $0x438] sm:$0xff] %v422_v7  ;;  %v428_v10 = vld [vmem:[%s5840_s25 + $0x890] sm:$0xff] }
  0x56   : > { %425 = vst [vmem:[%s5845_s26 + $0x440] sm:$0xff] %v424_v8  ;;  %427 = vst [vmem:[%s5845_s26 + $0x448] sm:$0xff] %v426_v9  ;;  %v430_v11 = vld [vmem:[%s5840_s25 + $0x898] sm:$0xff]  ;;  %v432_v12 = vld [vmem:[%s5840_s25 + $0x8c0] sm:$0xff] }
  0x57   : > { %429 = vst [vmem:[%s5845_s26 + $0x450] sm:$0xff] %v428_v10  ;;  %431 = vst [vmem:[%s5845_s26 + $0x458] sm:$0xff] %v430_v11  ;;  %v434_v13 = vld [vmem:[%s5840_s25 + $0x8c8] sm:$0xff]  ;;  %v436_v14 = vld [vmem:[%s5840_s25 + $0x8d0] sm:$0xff] }
  0x58   : > { %433 = vst [vmem:[%s5845_s26 + $0x460] sm:$0xff] %v432_v12  ;;  %v438_v15 = vld [vmem:[%s5840_s25 + $0x8d8] sm:$0xff]  ;;  %435 = vst [vmem:[%s5845_s26 + $0x468] sm:$0xff] %v434_v13  ;;  %v440_v16 = vld [vmem:[%s5840_s25 + $0x900] sm:$0xff] }
  0x59   : > { %437 = vst [vmem:[%s5845_s26 + $0x470] sm:$0xff] %v436_v14  ;;  %439 = vst [vmem:[%s5845_s26 + $0x478] sm:$0xff] %v438_v15  ;;  %v442_v17 = vld [vmem:[%s5840_s25 + $0x908] sm:$0xff]  ;;  %v444_v18 = vld [vmem:[%s5840_s25 + $0x910] sm:$0xff] }
  0x5a   : > { %441 = vst [vmem:[%s5845_s26 + $0x480] sm:$0xff] %v440_v16  ;;  %443 = vst [vmem:[%s5845_s26 + $0x488] sm:$0xff] %v442_v17  ;;  %v446_v19 = vld [vmem:[%s5840_s25 + $0x918] sm:$0xff]  ;;  %v448_v20 = vld [vmem:[%s5840_s25 + $0x940] sm:$0xff] }
  0x5b   : > { %445 = vst [vmem:[%s5845_s26 + $0x490] sm:$0xff] %v444_v18  ;;  %v450_v21 = vld [vmem:[%s5840_s25 + $0x948] sm:$0xff]  ;;  %447 = vst [vmem:[%s5845_s26 + $0x498] sm:$0xff] %v446_v19  ;;  %v452_v22 = vld [vmem:[%s5840_s25 + $0x950] sm:$0xff] }
  0x5c   : > { %449 = vst [vmem:[%s5845_s26 + $0x4a0] sm:$0xff] %v448_v20  ;;  %451 = vst [vmem:[%s5845_s26 + $0x4a8] sm:$0xff] %v450_v21  ;;  %v454_v23 = vld [vmem:[%s5840_s25 + $0x958] sm:$0xff]  ;;  %v456_v24 = vld [vmem:[%s5840_s25 + $0x980] sm:$0xff] }
  0x5d   : > { %453 = vst [vmem:[%s5845_s26 + $0x4b0] sm:$0xff] %v452_v22  ;;  %455 = vst [vmem:[%s5845_s26 + $0x4b8] sm:$0xff] %v454_v23  ;;  %v458_v25 = vld [vmem:[%s5840_s25 + $0x988] sm:$0xff]  ;;  %v460_v26 = vld [vmem:[%s5840_s25 + $0x990] sm:$0xff] }
  0x5e   : > { %457 = vst [vmem:[%s5845_s26 + $0x4c0] sm:$0xff] %v456_v24  ;;  %v462_v27 = vld [vmem:[%s5840_s25 + $0x998] sm:$0xff]  ;;  %459 = vst [vmem:[%s5845_s26 + $0x4c8] sm:$0xff] %v458_v25  ;;  %v464_v28 = vld [vmem:[%s5840_s25 + $0x9c0] sm:$0xff] }
  0x5f   : > { %461 = vst [vmem:[%s5845_s26 + $0x4d0] sm:$0xff] %v460_v26  ;;  %463 = vst [vmem:[%s5845_s26 + $0x4d8] sm:$0xff] %v462_v27  ;;  %v466_v29 = vld [vmem:[%s5840_s25 + $0x9c8] sm:$0xff]  ;;  %v468_v30 = vld [vmem:[%s5840_s25 + $0x9d0] sm:$0xff] }
  0x60   : > { %465 = vst [vmem:[%s5845_s26 + $0x4e0] sm:$0xff] %v464_v28  ;;  %467 = vst [vmem:[%s5845_s26 + $0x4e8] sm:$0xff] %v466_v29  ;;  %v470_v31 = vld [vmem:[%s5840_s25 + $0x9d8] sm:$0xff]  ;;  %v472_v32 = vld [vmem:[%s5840_s25 + $0xa00] sm:$0xff] }
  0x61   : > { %469 = vst [vmem:[%s5845_s26 + $0x4f0] sm:$0xff] %v468_v30  ;;  %v474_v33 = vld [vmem:[%s5840_s25 + $0xa08] sm:$0xff]  ;;  %471 = vst [vmem:[%s5845_s26 + $0x4f8] sm:$0xff] %v470_v31  ;;  %v476_v34 = vld [vmem:[%s5840_s25 + $0xa10] sm:$0xff] }
  0x62   : > { %473 = vst [vmem:[%s5845_s26 + $0x500] sm:$0xff] %v472_v32  ;;  %475 = vst [vmem:[%s5845_s26 + $0x508] sm:$0xff] %v474_v33  ;;  %v478_v35 = vld [vmem:[%s5840_s25 + $0xa18] sm:$0xff]  ;;  %v480_v36 = vld [vmem:[%s5840_s25 + $0xa40] sm:$0xff] }
  0x63   : > { %477 = vst [vmem:[%s5845_s26 + $0x510] sm:$0xff] %v476_v34  ;;  %479 = vst [vmem:[%s5845_s26 + $0x518] sm:$0xff] %v478_v35  ;;  %v482_v37 = vld [vmem:[%s5840_s25 + $0xa48] sm:$0xff]  ;;  %v484_v38 = vld [vmem:[%s5840_s25 + $0xa50] sm:$0xff] }
  0x64   : > { %481 = vst [vmem:[%s5845_s26 + $0x520] sm:$0xff] %v480_v36  ;;  %v486_v39 = vld [vmem:[%s5840_s25 + $0xa58] sm:$0xff]  ;;  %483 = vst [vmem:[%s5845_s26 + $0x528] sm:$0xff] %v482_v37  ;;  %v488_v40 = vld [vmem:[%s5840_s25 + $0xa80] sm:$0xff] }
  0x65   : > { %485 = vst [vmem:[%s5845_s26 + $0x530] sm:$0xff] %v484_v38  ;;  %487 = vst [vmem:[%s5845_s26 + $0x538] sm:$0xff] %v486_v39  ;;  %v490_v41 = vld [vmem:[%s5840_s25 + $0xa88] sm:$0xff]  ;;  %v492_v42 = vld [vmem:[%s5840_s25 + $0xa90] sm:$0xff] }
  0x66   : > { %489 = vst [vmem:[%s5845_s26 + $0x540] sm:$0xff] %v488_v40  ;;  %491 = vst [vmem:[%s5845_s26 + $0x548] sm:$0xff] %v490_v41  ;;  %v494_v43 = vld [vmem:[%s5840_s25 + $0xa98] sm:$0xff]  ;;  %v496_v44 = vld [vmem:[%s5840_s25 + $0xac0] sm:$0xff] }
  0x67   : > { %493 = vst [vmem:[%s5845_s26 + $0x550] sm:$0xff] %v492_v42  ;;  %v498_v45 = vld [vmem:[%s5840_s25 + $0xac8] sm:$0xff]  ;;  %495 = vst [vmem:[%s5845_s26 + $0x558] sm:$0xff] %v494_v43  ;;  %v500_v46 = vld [vmem:[%s5840_s25 + $0xad0] sm:$0xff] }
  0x68   : > { %497 = vst [vmem:[%s5845_s26 + $0x560] sm:$0xff] %v496_v44  ;;  %499 = vst [vmem:[%s5845_s26 + $0x568] sm:$0xff] %v498_v45  ;;  %v502_v47 = vld [vmem:[%s5840_s25 + $0xad8] sm:$0xff]  ;;  %v504_v48 = vld [vmem:[%s5840_s25 + $0xb00] sm:$0xff] }
  0x69   : > { %501 = vst [vmem:[%s5845_s26 + $0x570] sm:$0xff] %v500_v46  ;;  %503 = vst [vmem:[%s5845_s26 + $0x578] sm:$0xff] %v502_v47  ;;  %v506_v49 = vld [vmem:[%s5840_s25 + $0xb08] sm:$0xff]  ;;  %v508_v50 = vld [vmem:[%s5840_s25 + $0xb10] sm:$0xff] }
  0x6a   : > { %505 = vst [vmem:[%s5845_s26 + $0x580] sm:$0xff] %v504_v48  ;;  %v510_v51 = vld [vmem:[%s5840_s25 + $0xb18] sm:$0xff]  ;;  %507 = vst [vmem:[%s5845_s26 + $0x588] sm:$0xff] %v506_v49  ;;  %v512_v52 = vld [vmem:[%s5840_s25 + $0xb40] sm:$0xff] }
  0x6b   : > { %509 = vst [vmem:[%s5845_s26 + $0x590] sm:$0xff] %v508_v50  ;;  %511 = vst [vmem:[%s5845_s26 + $0x598] sm:$0xff] %v510_v51  ;;  %v514_v53 = vld [vmem:[%s5840_s25 + $0xb48] sm:$0xff]  ;;  %v516_v54 = vld [vmem:[%s5840_s25 + $0xb50] sm:$0xff] }
  0x6c   : > { %513 = vst [vmem:[%s5845_s26 + $0x5a0] sm:$0xff] %v512_v52  ;;  %515 = vst [vmem:[%s5845_s26 + $0x5a8] sm:$0xff] %v514_v53  ;;  %v518_v55 = vld [vmem:[%s5840_s25 + $0xb58] sm:$0xff]  ;;  %v520_v56 = vld [vmem:[%s5840_s25 + $0xb80] sm:$0xff] }
  0x6d   : > { %517 = vst [vmem:[%s5845_s26 + $0x5b0] sm:$0xff] %v516_v54  ;;  %v522_v57 = vld [vmem:[%s5840_s25 + $0xb88] sm:$0xff]  ;;  %519 = vst [vmem:[%s5845_s26 + $0x5b8] sm:$0xff] %v518_v55  ;;  %v524_v58 = vld [vmem:[%s5840_s25 + $0xb90] sm:$0xff] }
  0x6e   : > { %521 = vst [vmem:[%s5845_s26 + $0x5c0] sm:$0xff] %v520_v56  ;;  %523 = vst [vmem:[%s5845_s26 + $0x5c8] sm:$0xff] %v522_v57  ;;  %v526_v59 = vld [vmem:[%s5840_s25 + $0xb98] sm:$0xff]  ;;  %v528_v60 = vld [vmem:[%s5840_s25 + $0xbc0] sm:$0xff] }
  0x6f   : > { %525 = vst [vmem:[%s5845_s26 + $0x5d0] sm:$0xff] %v524_v58  ;;  %527 = vst [vmem:[%s5845_s26 + $0x5d8] sm:$0xff] %v526_v59  ;;  %v530_v61 = vld [vmem:[%s5840_s25 + $0xbc8] sm:$0xff]  ;;  %v532_v62 = vld [vmem:[%s5840_s25 + $0xbd0] sm:$0xff] }
  0x70   : > { %529 = vst [vmem:[%s5845_s26 + $0x5e0] sm:$0xff] %v528_v60  ;;  %v534_v63 = vld [vmem:[%s5840_s25 + $0xbd8] sm:$0xff]  ;;  %531 = vst [vmem:[%s5845_s26 + $0x5e8] sm:$0xff] %v530_v61  ;;  %v536_v0 = vld [vmem:[%s5840_s25 + $0xc00] sm:$0xff] }
  0x71   : > { %533 = vst [vmem:[%s5845_s26 + $0x5f0] sm:$0xff] %v532_v62  ;;  %535 = vst [vmem:[%s5845_s26 + $0x5f8] sm:$0xff] %v534_v63  ;;  %v538_v1 = vld [vmem:[%s5840_s25 + $0xc08] sm:$0xff]  ;;  %v540_v2 = vld [vmem:[%s5840_s25 + $0xc10] sm:$0xff] }
  0x72   : > { %537 = vst [vmem:[%s5845_s26 + $0x600] sm:$0xff] %v536_v0  ;;  %539 = vst [vmem:[%s5845_s26 + $0x608] sm:$0xff] %v538_v1  ;;  %v542_v3 = vld [vmem:[%s5840_s25 + $0xc18] sm:$0xff]  ;;  %v544_v4 = vld [vmem:[%s5840_s25 + $0xc40] sm:$0xff] }
  0x73   : > { %541 = vst [vmem:[%s5845_s26 + $0x610] sm:$0xff] %v540_v2  ;;  %v546_v5 = vld [vmem:[%s5840_s25 + $0xc48] sm:$0xff]  ;;  %543 = vst [vmem:[%s5845_s26 + $0x618] sm:$0xff] %v542_v3  ;;  %v548_v6 = vld [vmem:[%s5840_s25 + $0xc50] sm:$0xff] }
  0x74   : > { %545 = vst [vmem:[%s5845_s26 + $0x620] sm:$0xff] %v544_v4  ;;  %547 = vst [vmem:[%s5845_s26 + $0x628] sm:$0xff] %v546_v5  ;;  %v550_v7 = vld [vmem:[%s5840_s25 + $0xc58] sm:$0xff]  ;;  %v552_v8 = vld [vmem:[%s5840_s25 + $0xc80] sm:$0xff] }
  0x75   : > { %549 = vst [vmem:[%s5845_s26 + $0x630] sm:$0xff] %v548_v6  ;;  %551 = vst [vmem:[%s5845_s26 + $0x638] sm:$0xff] %v550_v7  ;;  %v554_v9 = vld [vmem:[%s5840_s25 + $0xc88] sm:$0xff]  ;;  %v556_v10 = vld [vmem:[%s5840_s25 + $0xc90] sm:$0xff] }
  0x76   : > { %553 = vst [vmem:[%s5845_s26 + $0x640] sm:$0xff] %v552_v8  ;;  %v558_v11 = vld [vmem:[%s5840_s25 + $0xc98] sm:$0xff]  ;;  %555 = vst [vmem:[%s5845_s26 + $0x648] sm:$0xff] %v554_v9  ;;  %v560_v12 = vld [vmem:[%s5840_s25 + $0xcc0] sm:$0xff] }
  0x77   : > { %557 = vst [vmem:[%s5845_s26 + $0x650] sm:$0xff] %v556_v10  ;;  %559 = vst [vmem:[%s5845_s26 + $0x658] sm:$0xff] %v558_v11  ;;  %v562_v13 = vld [vmem:[%s5840_s25 + $0xcc8] sm:$0xff]  ;;  %v564_v14 = vld [vmem:[%s5840_s25 + $0xcd0] sm:$0xff] }
  0x78   : > { %561 = vst [vmem:[%s5845_s26 + $0x660] sm:$0xff] %v560_v12  ;;  %563 = vst [vmem:[%s5845_s26 + $0x668] sm:$0xff] %v562_v13  ;;  %v566_v15 = vld [vmem:[%s5840_s25 + $0xcd8] sm:$0xff]  ;;  %v568_v16 = vld [vmem:[%s5840_s25 + $0xd00] sm:$0xff] }
  0x79   : > { %565 = vst [vmem:[%s5845_s26 + $0x670] sm:$0xff] %v564_v14  ;;  %v570_v17 = vld [vmem:[%s5840_s25 + $0xd08] sm:$0xff]  ;;  %567 = vst [vmem:[%s5845_s26 + $0x678] sm:$0xff] %v566_v15  ;;  %v572_v18 = vld [vmem:[%s5840_s25 + $0xd10] sm:$0xff] }
  0x7a   : > { %569 = vst [vmem:[%s5845_s26 + $0x680] sm:$0xff] %v568_v16  ;;  %571 = vst [vmem:[%s5845_s26 + $0x688] sm:$0xff] %v570_v17  ;;  %v574_v19 = vld [vmem:[%s5840_s25 + $0xd18] sm:$0xff]  ;;  %v576_v20 = vld [vmem:[%s5840_s25 + $0xd40] sm:$0xff] }
  0x7b   : > { %573 = vst [vmem:[%s5845_s26 + $0x690] sm:$0xff] %v572_v18  ;;  %575 = vst [vmem:[%s5845_s26 + $0x698] sm:$0xff] %v574_v19  ;;  %v578_v21 = vld [vmem:[%s5840_s25 + $0xd48] sm:$0xff]  ;;  %v580_v22 = vld [vmem:[%s5840_s25 + $0xd50] sm:$0xff] }
  0x7c   : > { %577 = vst [vmem:[%s5845_s26 + $0x6a0] sm:$0xff] %v576_v20  ;;  %v582_v23 = vld [vmem:[%s5840_s25 + $0xd58] sm:$0xff]  ;;  %579 = vst [vmem:[%s5845_s26 + $0x6a8] sm:$0xff] %v578_v21  ;;  %v584_v24 = vld [vmem:[%s5840_s25 + $0xd80] sm:$0xff] }
  0x7d   : > { %581 = vst [vmem:[%s5845_s26 + $0x6b0] sm:$0xff] %v580_v22  ;;  %583 = vst [vmem:[%s5845_s26 + $0x6b8] sm:$0xff] %v582_v23  ;;  %v586_v25 = vld [vmem:[%s5840_s25 + $0xd88] sm:$0xff]  ;;  %v588_v26 = vld [vmem:[%s5840_s25 + $0xd90] sm:$0xff] }
  0x7e   : > { %585 = vst [vmem:[%s5845_s26 + $0x6c0] sm:$0xff] %v584_v24  ;;  %587 = vst [vmem:[%s5845_s26 + $0x6c8] sm:$0xff] %v586_v25  ;;  %v590_v27 = vld [vmem:[%s5840_s25 + $0xd98] sm:$0xff]  ;;  %v592_v28 = vld [vmem:[%s5840_s25 + $0xdc0] sm:$0xff] }
  0x7f   : > { %589 = vst [vmem:[%s5845_s26 + $0x6d0] sm:$0xff] %v588_v26  ;;  %v594_v29 = vld [vmem:[%s5840_s25 + $0xdc8] sm:$0xff]  ;;  %591 = vst [vmem:[%s5845_s26 + $0x6d8] sm:$0xff] %v590_v27  ;;  %v596_v30 = vld [vmem:[%s5840_s25 + $0xdd0] sm:$0xff] }
  0x80   : > { %593 = vst [vmem:[%s5845_s26 + $0x6e0] sm:$0xff] %v592_v28  ;;  %595 = vst [vmem:[%s5845_s26 + $0x6e8] sm:$0xff] %v594_v29  ;;  %v598_v31 = vld [vmem:[%s5840_s25 + $0xdd8] sm:$0xff]  ;;  %v600_v32 = vld [vmem:[%s5840_s25 + $0xe00] sm:$0xff] }
  0x81   : > { %597 = vst [vmem:[%s5845_s26 + $0x6f0] sm:$0xff] %v596_v30  ;;  %599 = vst [vmem:[%s5845_s26 + $0x6f8] sm:$0xff] %v598_v31  ;;  %v602_v33 = vld [vmem:[%s5840_s25 + $0xe08] sm:$0xff]  ;;  %v604_v34 = vld [vmem:[%s5840_s25 + $0xe10] sm:$0xff] }
  0x82   : > { %601 = vst [vmem:[%s5845_s26 + $0x700] sm:$0xff] %v600_v32  ;;  %v606_v35 = vld [vmem:[%s5840_s25 + $0xe18] sm:$0xff]  ;;  %603 = vst [vmem:[%s5845_s26 + $0x708] sm:$0xff] %v602_v33  ;;  %v608_v36 = vld [vmem:[%s5840_s25 + $0xe40] sm:$0xff] }
  0x83   : > { %605 = vst [vmem:[%s5845_s26 + $0x710] sm:$0xff] %v604_v34  ;;  %607 = vst [vmem:[%s5845_s26 + $0x718] sm:$0xff] %v606_v35  ;;  %v610_v37 = vld [vmem:[%s5840_s25 + $0xe48] sm:$0xff]  ;;  %v612_v38 = vld [vmem:[%s5840_s25 + $0xe50] sm:$0xff] }
  0x84   : > { %609 = vst [vmem:[%s5845_s26 + $0x720] sm:$0xff] %v608_v36  ;;  %611 = vst [vmem:[%s5845_s26 + $0x728] sm:$0xff] %v610_v37  ;;  %v614_v39 = vld [vmem:[%s5840_s25 + $0xe58] sm:$0xff]  ;;  %v616_v40 = vld [vmem:[%s5840_s25 + $0xe80] sm:$0xff] }
  0x85   : > { %613 = vst [vmem:[%s5845_s26 + $0x730] sm:$0xff] %v612_v38  ;;  %v618_v41 = vld [vmem:[%s5840_s25 + $0xe88] sm:$0xff]  ;;  %615 = vst [vmem:[%s5845_s26 + $0x738] sm:$0xff] %v614_v39  ;;  %v620_v42 = vld [vmem:[%s5840_s25 + $0xe90] sm:$0xff] }
  0x86   : > { %617 = vst [vmem:[%s5845_s26 + $0x740] sm:$0xff] %v616_v40  ;;  %619 = vst [vmem:[%s5845_s26 + $0x748] sm:$0xff] %v618_v41  ;;  %v622_v43 = vld [vmem:[%s5840_s25 + $0xe98] sm:$0xff]  ;;  %v624_v44 = vld [vmem:[%s5840_s25 + $0xec0] sm:$0xff] }
  0x87   : > { %621 = vst [vmem:[%s5845_s26 + $0x750] sm:$0xff] %v620_v42  ;;  %623 = vst [vmem:[%s5845_s26 + $0x758] sm:$0xff] %v622_v43  ;;  %v626_v45 = vld [vmem:[%s5840_s25 + $0xec8] sm:$0xff]  ;;  %v628_v46 = vld [vmem:[%s5840_s25 + $0xed0] sm:$0xff] }
  0x88   : > { %625 = vst [vmem:[%s5845_s26 + $0x760] sm:$0xff] %v624_v44  ;;  %v630_v47 = vld [vmem:[%s5840_s25 + $0xed8] sm:$0xff]  ;;  %627 = vst [vmem:[%s5845_s26 + $0x768] sm:$0xff] %v626_v45  ;;  %v632_v48 = vld [vmem:[%s5840_s25 + $0xf00] sm:$0xff] }
  0x89   : > { %629 = vst [vmem:[%s5845_s26 + $0x770] sm:$0xff] %v628_v46  ;;  %631 = vst [vmem:[%s5845_s26 + $0x778] sm:$0xff] %v630_v47  ;;  %v634_v49 = vld [vmem:[%s5840_s25 + $0xf08] sm:$0xff]  ;;  %v636_v50 = vld [vmem:[%s5840_s25 + $0xf10] sm:$0xff] }
  0x8a   : > { %633 = vst [vmem:[%s5845_s26 + $0x780] sm:$0xff] %v632_v48  ;;  %635 = vst [vmem:[%s5845_s26 + $0x788] sm:$0xff] %v634_v49  ;;  %v638_v51 = vld [vmem:[%s5840_s25 + $0xf18] sm:$0xff]  ;;  %v640_v52 = vld [vmem:[%s5840_s25 + $0xf40] sm:$0xff] }
  0x8b   : > { %637 = vst [vmem:[%s5845_s26 + $0x790] sm:$0xff] %v636_v50  ;;  %v642_v53 = vld [vmem:[%s5840_s25 + $0xf48] sm:$0xff]  ;;  %639 = vst [vmem:[%s5845_s26 + $0x798] sm:$0xff] %v638_v51  ;;  %v644_v54 = vld [vmem:[%s5840_s25 + $0xf50] sm:$0xff] }
  0x8c   : > { %641 = vst [vmem:[%s5845_s26 + $0x7a0] sm:$0xff] %v640_v52  ;;  %643 = vst [vmem:[%s5845_s26 + $0x7a8] sm:$0xff] %v642_v53  ;;  %v646_v55 = vld [vmem:[%s5840_s25 + $0xf58] sm:$0xff]  ;;  %v648_v56 = vld [vmem:[%s5840_s25 + $0xf80] sm:$0xff] }
  0x8d   : > { %645 = vst [vmem:[%s5845_s26 + $0x7b0] sm:$0xff] %v644_v54  ;;  %647 = vst [vmem:[%s5845_s26 + $0x7b8] sm:$0xff] %v646_v55  ;;  %v650_v57 = vld [vmem:[%s5840_s25 + $0xf88] sm:$0xff]  ;;  %v652_v58 = vld [vmem:[%s5840_s25 + $0xf90] sm:$0xff] }
  0x8e   : > { %649 = vst [vmem:[%s5845_s26 + $0x7c0] sm:$0xff] %v648_v56  ;;  %v654_v59 = vld [vmem:[%s5840_s25 + $0xf98] sm:$0xff]  ;;  %651 = vst [vmem:[%s5845_s26 + $0x7c8] sm:$0xff] %v650_v57  ;;  %v656_v60 = vld [vmem:[%s5840_s25 + $0xfc0] sm:$0xff] }
  0x8f   : > { %653 = vst [vmem:[%s5845_s26 + $0x7d0] sm:$0xff] %v652_v58  ;;  %655 = vst [vmem:[%s5845_s26 + $0x7d8] sm:$0xff] %v654_v59  ;;  %v658_v61 = vld [vmem:[%s5840_s25 + $0xfc8] sm:$0xff]  ;;  %v660_v62 = vld [vmem:[%s5840_s25 + $0xfd0] sm:$0xff] }
  0x90   : > { %657 = vst [vmem:[%s5845_s26 + $0x7e0] sm:$0xff] %v656_v60  ;;  %659 = vst [vmem:[%s5845_s26 + $0x7e8] sm:$0xff] %v658_v61  ;;  %v662_v63 = vld [vmem:[%s5840_s25 + $0xfd8] sm:$0xff]  ;;  %v664_v0 = vld [vmem:[%s5840_s25 + $0x1000] sm:$0xff] }
  0x91   : > { %661 = vst [vmem:[%s5845_s26 + $0x7f0] sm:$0xff] %v660_v62  ;;  %v666_v1 = vld [vmem:[%s5840_s25 + $0x1008] sm:$0xff]  ;;  %663 = vst [vmem:[%s5845_s26 + $0x7f8] sm:$0xff] %v662_v63  ;;  %v668_v2 = vld [vmem:[%s5840_s25 + $0x1010] sm:$0xff] }
  0x92   : > { %665 = vst [vmem:[%s5845_s26 + $0x800] sm:$0xff] %v664_v0  ;;  %667 = vst [vmem:[%s5845_s26 + $0x808] sm:$0xff] %v666_v1  ;;  %v670_v3 = vld [vmem:[%s5840_s25 + $0x1018] sm:$0xff]  ;;  %v672_v4 = vld [vmem:[%s5840_s25 + $0x1040] sm:$0xff] }
  0x93   : > { %669 = vst [vmem:[%s5845_s26 + $0x810] sm:$0xff] %v668_v2  ;;  %671 = vst [vmem:[%s5845_s26 + $0x818] sm:$0xff] %v670_v3  ;;  %v674_v5 = vld [vmem:[%s5840_s25 + $0x1048] sm:$0xff]  ;;  %v676_v6 = vld [vmem:[%s5840_s25 + $0x1050] sm:$0xff] }
  0x94   : > { %673 = vst [vmem:[%s5845_s26 + $0x820] sm:$0xff] %v672_v4  ;;  %v678_v7 = vld [vmem:[%s5840_s25 + $0x1058] sm:$0xff]  ;;  %675 = vst [vmem:[%s5845_s26 + $0x828] sm:$0xff] %v674_v5  ;;  %v680_v8 = vld [vmem:[%s5840_s25 + $0x1080] sm:$0xff] }
  0x95   : > { %677 = vst [vmem:[%s5845_s26 + $0x830] sm:$0xff] %v676_v6  ;;  %679 = vst [vmem:[%s5845_s26 + $0x838] sm:$0xff] %v678_v7  ;;  %v682_v9 = vld [vmem:[%s5840_s25 + $0x1088] sm:$0xff]  ;;  %v684_v10 = vld [vmem:[%s5840_s25 + $0x1090] sm:$0xff] }
  0x96   : > { %681 = vst [vmem:[%s5845_s26 + $0x840] sm:$0xff] %v680_v8  ;;  %683 = vst [vmem:[%s5845_s26 + $0x848] sm:$0xff] %v682_v9  ;;  %v686_v11 = vld [vmem:[%s5840_s25 + $0x1098] sm:$0xff]  ;;  %v688_v12 = vld [vmem:[%s5840_s25 + $0x10c0] sm:$0xff] }
  0x97   : > { %685 = vst [vmem:[%s5845_s26 + $0x850] sm:$0xff] %v684_v10  ;;  %v690_v13 = vld [vmem:[%s5840_s25 + $0x10c8] sm:$0xff]  ;;  %687 = vst [vmem:[%s5845_s26 + $0x858] sm:$0xff] %v686_v11  ;;  %v692_v14 = vld [vmem:[%s5840_s25 + $0x10d0] sm:$0xff] }
  0x98   : > { %689 = vst [vmem:[%s5845_s26 + $0x860] sm:$0xff] %v688_v12  ;;  %691 = vst [vmem:[%s5845_s26 + $0x868] sm:$0xff] %v690_v13  ;;  %v694_v15 = vld [vmem:[%s5840_s25 + $0x10d8] sm:$0xff]  ;;  %v696_v16 = vld [vmem:[%s5840_s25 + $0x1100] sm:$0xff] }
  0x99   : > { %693 = vst [vmem:[%s5845_s26 + $0x870] sm:$0xff] %v692_v14  ;;  %695 = vst [vmem:[%s5845_s26 + $0x878] sm:$0xff] %v694_v15  ;;  %v698_v17 = vld [vmem:[%s5840_s25 + $0x1108] sm:$0xff]  ;;  %v700_v18 = vld [vmem:[%s5840_s25 + $0x1110] sm:$0xff] }
  0x9a   : > { %697 = vst [vmem:[%s5845_s26 + $0x880] sm:$0xff] %v696_v16  ;;  %v702_v19 = vld [vmem:[%s5840_s25 + $0x1118] sm:$0xff]  ;;  %699 = vst [vmem:[%s5845_s26 + $0x888] sm:$0xff] %v698_v17  ;;  %v704_v20 = vld [vmem:[%s5840_s25 + $0x1140] sm:$0xff] }
  0x9b   : > { %701 = vst [vmem:[%s5845_s26 + $0x890] sm:$0xff] %v700_v18  ;;  %703 = vst [vmem:[%s5845_s26 + $0x898] sm:$0xff] %v702_v19  ;;  %v706_v21 = vld [vmem:[%s5840_s25 + $0x1148] sm:$0xff]  ;;  %v708_v22 = vld [vmem:[%s5840_s25 + $0x1150] sm:$0xff] }
  0x9c   : > { %705 = vst [vmem:[%s5845_s26 + $0x8a0] sm:$0xff] %v704_v20  ;;  %707 = vst [vmem:[%s5845_s26 + $0x8a8] sm:$0xff] %v706_v21  ;;  %v710_v23 = vld [vmem:[%s5840_s25 + $0x1158] sm:$0xff]  ;;  %v712_v24 = vld [vmem:[%s5840_s25 + $0x1180] sm:$0xff] }
  0x9d   : > { %709 = vst [vmem:[%s5845_s26 + $0x8b0] sm:$0xff] %v708_v22  ;;  %v714_v25 = vld [vmem:[%s5840_s25 + $0x1188] sm:$0xff]  ;;  %711 = vst [vmem:[%s5845_s26 + $0x8b8] sm:$0xff] %v710_v23  ;;  %v716_v26 = vld [vmem:[%s5840_s25 + $0x1190] sm:$0xff] }
  0x9e   : > { %713 = vst [vmem:[%s5845_s26 + $0x8c0] sm:$0xff] %v712_v24  ;;  %715 = vst [vmem:[%s5845_s26 + $0x8c8] sm:$0xff] %v714_v25  ;;  %v718_v27 = vld [vmem:[%s5840_s25 + $0x1198] sm:$0xff]  ;;  %v720_v28 = vld [vmem:[%s5840_s25 + $0x11c0] sm:$0xff] }
  0x9f   : > { %717 = vst [vmem:[%s5845_s26 + $0x8d0] sm:$0xff] %v716_v26  ;;  %719 = vst [vmem:[%s5845_s26 + $0x8d8] sm:$0xff] %v718_v27  ;;  %v722_v29 = vld [vmem:[%s5840_s25 + $0x11c8] sm:$0xff]  ;;  %v724_v30 = vld [vmem:[%s5840_s25 + $0x11d0] sm:$0xff] }
  0xa0   : > { %721 = vst [vmem:[%s5845_s26 + $0x8e0] sm:$0xff] %v720_v28  ;;  %v726_v31 = vld [vmem:[%s5840_s25 + $0x11d8] sm:$0xff]  ;;  %723 = vst [vmem:[%s5845_s26 + $0x8e8] sm:$0xff] %v722_v29  ;;  %v728_v32 = vld [vmem:[%s5840_s25 + $0x1200] sm:$0xff] }
  0xa1   : > { %725 = vst [vmem:[%s5845_s26 + $0x8f0] sm:$0xff] %v724_v30  ;;  %727 = vst [vmem:[%s5845_s26 + $0x8f8] sm:$0xff] %v726_v31  ;;  %v730_v33 = vld [vmem:[%s5840_s25 + $0x1208] sm:$0xff]  ;;  %v732_v34 = vld [vmem:[%s5840_s25 + $0x1210] sm:$0xff] }
  0xa2   : > { %729 = vst [vmem:[%s5845_s26 + $0x900] sm:$0xff] %v728_v32  ;;  %731 = vst [vmem:[%s5845_s26 + $0x908] sm:$0xff] %v730_v33  ;;  %v734_v35 = vld [vmem:[%s5840_s25 + $0x1218] sm:$0xff]  ;;  %v736_v36 = vld [vmem:[%s5840_s25 + $0x1240] sm:$0xff] }
  0xa3   : > { %733 = vst [vmem:[%s5845_s26 + $0x910] sm:$0xff] %v732_v34  ;;  %v738_v37 = vld [vmem:[%s5840_s25 + $0x1248] sm:$0xff]  ;;  %735 = vst [vmem:[%s5845_s26 + $0x918] sm:$0xff] %v734_v35  ;;  %v740_v38 = vld [vmem:[%s5840_s25 + $0x1250] sm:$0xff] }
  0xa4   : > { %737 = vst [vmem:[%s5845_s26 + $0x920] sm:$0xff] %v736_v36  ;;  %739 = vst [vmem:[%s5845_s26 + $0x928] sm:$0xff] %v738_v37  ;;  %v742_v39 = vld [vmem:[%s5840_s25 + $0x1258] sm:$0xff]  ;;  %v744_v40 = vld [vmem:[%s5840_s25 + $0x1280] sm:$0xff] }
  0xa5   : > { %741 = vst [vmem:[%s5845_s26 + $0x930] sm:$0xff] %v740_v38  ;;  %743 = vst [vmem:[%s5845_s26 + $0x938] sm:$0xff] %v742_v39  ;;  %v746_v41 = vld [vmem:[%s5840_s25 + $0x1288] sm:$0xff]  ;;  %v748_v42 = vld [vmem:[%s5840_s25 + $0x1290] sm:$0xff] }
  0xa6   : > { %745 = vst [vmem:[%s5845_s26 + $0x940] sm:$0xff] %v744_v40  ;;  %v750_v43 = vld [vmem:[%s5840_s25 + $0x1298] sm:$0xff]  ;;  %747 = vst [vmem:[%s5845_s26 + $0x948] sm:$0xff] %v746_v41  ;;  %v752_v44 = vld [vmem:[%s5840_s25 + $0x12c0] sm:$0xff] }
  0xa7   : > { %749 = vst [vmem:[%s5845_s26 + $0x950] sm:$0xff] %v748_v42  ;;  %751 = vst [vmem:[%s5845_s26 + $0x958] sm:$0xff] %v750_v43  ;;  %v754_v45 = vld [vmem:[%s5840_s25 + $0x12c8] sm:$0xff]  ;;  %v756_v46 = vld [vmem:[%s5840_s25 + $0x12d0] sm:$0xff] }
  0xa8   : > { %753 = vst [vmem:[%s5845_s26 + $0x960] sm:$0xff] %v752_v44  ;;  %755 = vst [vmem:[%s5845_s26 + $0x968] sm:$0xff] %v754_v45  ;;  %v758_v47 = vld [vmem:[%s5840_s25 + $0x12d8] sm:$0xff]  ;;  %v760_v48 = vld [vmem:[%s5840_s25 + $0x1300] sm:$0xff] }
  0xa9   : > { %757 = vst [vmem:[%s5845_s26 + $0x970] sm:$0xff] %v756_v46  ;;  %v762_v49 = vld [vmem:[%s5840_s25 + $0x1308] sm:$0xff]  ;;  %759 = vst [vmem:[%s5845_s26 + $0x978] sm:$0xff] %v758_v47  ;;  %v764_v50 = vld [vmem:[%s5840_s25 + $0x1310] sm:$0xff] }
  0xaa   : > { %761 = vst [vmem:[%s5845_s26 + $0x980] sm:$0xff] %v760_v48  ;;  %763 = vst [vmem:[%s5845_s26 + $0x988] sm:$0xff] %v762_v49  ;;  %v766_v51 = vld [vmem:[%s5840_s25 + $0x1318] sm:$0xff]  ;;  %v768_v52 = vld [vmem:[%s5840_s25 + $0x1340] sm:$0xff] }
  0xab   : > { %765 = vst [vmem:[%s5845_s26 + $0x990] sm:$0xff] %v764_v50  ;;  %767 = vst [vmem:[%s5845_s26 + $0x998] sm:$0xff] %v766_v51  ;;  %v770_v53 = vld [vmem:[%s5840_s25 + $0x1348] sm:$0xff]  ;;  %v772_v54 = vld [vmem:[%s5840_s25 + $0x1350] sm:$0xff] }
  0xac   : > { %769 = vst [vmem:[%s5845_s26 + $0x9a0] sm:$0xff] %v768_v52  ;;  %v774_v55 = vld [vmem:[%s5840_s25 + $0x1358] sm:$0xff]  ;;  %771 = vst [vmem:[%s5845_s26 + $0x9a8] sm:$0xff] %v770_v53  ;;  %v776_v56 = vld [vmem:[%s5840_s25 + $0x1380] sm:$0xff] }
  0xad   : > { %773 = vst [vmem:[%s5845_s26 + $0x9b0] sm:$0xff] %v772_v54  ;;  %775 = vst [vmem:[%s5845_s26 + $0x9b8] sm:$0xff] %v774_v55  ;;  %v778_v57 = vld [vmem:[%s5840_s25 + $0x1388] sm:$0xff]  ;;  %v780_v58 = vld [vmem:[%s5840_s25 + $0x1390] sm:$0xff] }
  0xae   : > { %777 = vst [vmem:[%s5845_s26 + $0x9c0] sm:$0xff] %v776_v56  ;;  %779 = vst [vmem:[%s5845_s26 + $0x9c8] sm:$0xff] %v778_v57  ;;  %v782_v59 = vld [vmem:[%s5840_s25 + $0x1398] sm:$0xff]  ;;  %v784_v60 = vld [vmem:[%s5840_s25 + $0x13c0] sm:$0xff] }
  0xaf   : > { %781 = vst [vmem:[%s5845_s26 + $0x9d0] sm:$0xff] %v780_v58  ;;  %v786_v61 = vld [vmem:[%s5840_s25 + $0x13c8] sm:$0xff]  ;;  %783 = vst [vmem:[%s5845_s26 + $0x9d8] sm:$0xff] %v782_v59  ;;  %v788_v62 = vld [vmem:[%s5840_s25 + $0x13d0] sm:$0xff] }
  0xb0   : > { %785 = vst [vmem:[%s5845_s26 + $0x9e0] sm:$0xff] %v784_v60  ;;  %787 = vst [vmem:[%s5845_s26 + $0x9e8] sm:$0xff] %v786_v61  ;;  %v790_v63 = vld [vmem:[%s5840_s25 + $0x13d8] sm:$0xff]  ;;  %v792_v0 = vld [vmem:[%s5840_s25 + $0x1400] sm:$0xff] }
  0xb1   : > { %789 = vst [vmem:[%s5845_s26 + $0x9f0] sm:$0xff] %v788_v62  ;;  %791 = vst [vmem:[%s5845_s26 + $0x9f8] sm:$0xff] %v790_v63  ;;  %v794_v1 = vld [vmem:[%s5840_s25 + $0x1408] sm:$0xff]  ;;  %v796_v2 = vld [vmem:[%s5840_s25 + $0x1410] sm:$0xff] }
  0xb2   : > { %793 = vst [vmem:[%s5845_s26 + $0xa00] sm:$0xff] %v792_v0  ;;  %v798_v3 = vld [vmem:[%s5840_s25 + $0x1418] sm:$0xff]  ;;  %795 = vst [vmem:[%s5845_s26 + $0xa08] sm:$0xff] %v794_v1  ;;  %v800_v4 = vld [vmem:[%s5840_s25 + $0x1440] sm:$0xff] }
  0xb3   : > { %797 = vst [vmem:[%s5845_s26 + $0xa10] sm:$0xff] %v796_v2  ;;  %799 = vst [vmem:[%s5845_s26 + $0xa18] sm:$0xff] %v798_v3  ;;  %v802_v5 = vld [vmem:[%s5840_s25 + $0x1448] sm:$0xff]  ;;  %v804_v6 = vld [vmem:[%s5840_s25 + $0x1450] sm:$0xff] }
  0xb4   : > { %801 = vst [vmem:[%s5845_s26 + $0xa20] sm:$0xff] %v800_v4  ;;  %803 = vst [vmem:[%s5845_s26 + $0xa28] sm:$0xff] %v802_v5  ;;  %v806_v7 = vld [vmem:[%s5840_s25 + $0x1458] sm:$0xff]  ;;  %v808_v8 = vld [vmem:[%s5840_s25 + $0x1480] sm:$0xff] }
  0xb5   : > { %805 = vst [vmem:[%s5845_s26 + $0xa30] sm:$0xff] %v804_v6  ;;  %v810_v9 = vld [vmem:[%s5840_s25 + $0x1488] sm:$0xff]  ;;  %807 = vst [vmem:[%s5845_s26 + $0xa38] sm:$0xff] %v806_v7  ;;  %v812_v10 = vld [vmem:[%s5840_s25 + $0x1490] sm:$0xff] }
  0xb6   : > { %809 = vst [vmem:[%s5845_s26 + $0xa40] sm:$0xff] %v808_v8  ;;  %811 = vst [vmem:[%s5845_s26 + $0xa48] sm:$0xff] %v810_v9  ;;  %v814_v11 = vld [vmem:[%s5840_s25 + $0x1498] sm:$0xff]  ;;  %v816_v12 = vld [vmem:[%s5840_s25 + $0x14c0] sm:$0xff] }
  0xb7   : > { %813 = vst [vmem:[%s5845_s26 + $0xa50] sm:$0xff] %v812_v10  ;;  %815 = vst [vmem:[%s5845_s26 + $0xa58] sm:$0xff] %v814_v11  ;;  %v818_v13 = vld [vmem:[%s5840_s25 + $0x14c8] sm:$0xff]  ;;  %v820_v14 = vld [vmem:[%s5840_s25 + $0x14d0] sm:$0xff] }
  0xb8   : > { %817 = vst [vmem:[%s5845_s26 + $0xa60] sm:$0xff] %v816_v12  ;;  %v822_v15 = vld [vmem:[%s5840_s25 + $0x14d8] sm:$0xff]  ;;  %819 = vst [vmem:[%s5845_s26 + $0xa68] sm:$0xff] %v818_v13  ;;  %v824_v16 = vld [vmem:[%s5840_s25 + $0x1500] sm:$0xff] }
  0xb9   : > { %821 = vst [vmem:[%s5845_s26 + $0xa70] sm:$0xff] %v820_v14  ;;  %823 = vst [vmem:[%s5845_s26 + $0xa78] sm:$0xff] %v822_v15  ;;  %v826_v17 = vld [vmem:[%s5840_s25 + $0x1508] sm:$0xff]  ;;  %v828_v18 = vld [vmem:[%s5840_s25 + $0x1510] sm:$0xff] }
  0xba   : > { %825 = vst [vmem:[%s5845_s26 + $0xa80] sm:$0xff] %v824_v16  ;;  %827 = vst [vmem:[%s5845_s26 + $0xa88] sm:$0xff] %v826_v17  ;;  %v830_v19 = vld [vmem:[%s5840_s25 + $0x1518] sm:$0xff]  ;;  %v832_v20 = vld [vmem:[%s5840_s25 + $0x1540] sm:$0xff] }
  0xbb   : > { %829 = vst [vmem:[%s5845_s26 + $0xa90] sm:$0xff] %v828_v18  ;;  %v834_v21 = vld [vmem:[%s5840_s25 + $0x1548] sm:$0xff]  ;;  %831 = vst [vmem:[%s5845_s26 + $0xa98] sm:$0xff] %v830_v19  ;;  %v836_v22 = vld [vmem:[%s5840_s25 + $0x1550] sm:$0xff] }
  0xbc   : > { %833 = vst [vmem:[%s5845_s26 + $0xaa0] sm:$0xff] %v832_v20  ;;  %835 = vst [vmem:[%s5845_s26 + $0xaa8] sm:$0xff] %v834_v21  ;;  %v838_v23 = vld [vmem:[%s5840_s25 + $0x1558] sm:$0xff]  ;;  %v840_v24 = vld [vmem:[%s5840_s25 + $0x1580] sm:$0xff] }
  0xbd   : > { %837 = vst [vmem:[%s5845_s26 + $0xab0] sm:$0xff] %v836_v22  ;;  %839 = vst [vmem:[%s5845_s26 + $0xab8] sm:$0xff] %v838_v23  ;;  %v842_v25 = vld [vmem:[%s5840_s25 + $0x1588] sm:$0xff]  ;;  %v844_v26 = vld [vmem:[%s5840_s25 + $0x1590] sm:$0xff] }
  0xbe   : > { %841 = vst [vmem:[%s5845_s26 + $0xac0] sm:$0xff] %v840_v24  ;;  %v846_v27 = vld [vmem:[%s5840_s25 + $0x1598] sm:$0xff]  ;;  %843 = vst [vmem:[%s5845_s26 + $0xac8] sm:$0xff] %v842_v25  ;;  %v848_v28 = vld [vmem:[%s5840_s25 + $0x15c0] sm:$0xff] }
  0xbf   : > { %845 = vst [vmem:[%s5845_s26 + $0xad0] sm:$0xff] %v844_v26  ;;  %847 = vst [vmem:[%s5845_s26 + $0xad8] sm:$0xff] %v846_v27  ;;  %v850_v29 = vld [vmem:[%s5840_s25 + $0x15c8] sm:$0xff]  ;;  %v852_v30 = vld [vmem:[%s5840_s25 + $0x15d0] sm:$0xff] }
  0xc0   : > { %849 = vst [vmem:[%s5845_s26 + $0xae0] sm:$0xff] %v848_v28  ;;  %851 = vst [vmem:[%s5845_s26 + $0xae8] sm:$0xff] %v850_v29  ;;  %v854_v31 = vld [vmem:[%s5840_s25 + $0x15d8] sm:$0xff]  ;;  %v856_v32 = vld [vmem:[%s5840_s25 + $0x1600] sm:$0xff] }
  0xc1   : > { %853 = vst [vmem:[%s5845_s26 + $0xaf0] sm:$0xff] %v852_v30  ;;  %v858_v33 = vld [vmem:[%s5840_s25 + $0x1608] sm:$0xff]  ;;  %855 = vst [vmem:[%s5845_s26 + $0xaf8] sm:$0xff] %v854_v31  ;;  %v860_v34 = vld [vmem:[%s5840_s25 + $0x1610] sm:$0xff] }
  0xc2   : > { %857 = vst [vmem:[%s5845_s26 + $0xb00] sm:$0xff] %v856_v32  ;;  %859 = vst [vmem:[%s5845_s26 + $0xb08] sm:$0xff] %v858_v33  ;;  %v862_v35 = vld [vmem:[%s5840_s25 + $0x1618] sm:$0xff]  ;;  %v864_v36 = vld [vmem:[%s5840_s25 + $0x1640] sm:$0xff] }
  0xc3   : > { %861 = vst [vmem:[%s5845_s26 + $0xb10] sm:$0xff] %v860_v34  ;;  %863 = vst [vmem:[%s5845_s26 + $0xb18] sm:$0xff] %v862_v35  ;;  %v866_v37 = vld [vmem:[%s5840_s25 + $0x1648] sm:$0xff]  ;;  %v868_v38 = vld [vmem:[%s5840_s25 + $0x1650] sm:$0xff] }
  0xc4   : > { %865 = vst [vmem:[%s5845_s26 + $0xb20] sm:$0xff] %v864_v36  ;;  %v870_v39 = vld [vmem:[%s5840_s25 + $0x1658] sm:$0xff]  ;;  %867 = vst [vmem:[%s5845_s26 + $0xb28] sm:$0xff] %v866_v37  ;;  %v872_v40 = vld [vmem:[%s5840_s25 + $0x1680] sm:$0xff] }
  0xc5   : > { %869 = vst [vmem:[%s5845_s26 + $0xb30] sm:$0xff] %v868_v38  ;;  %871 = vst [vmem:[%s5845_s26 + $0xb38] sm:$0xff] %v870_v39  ;;  %v874_v41 = vld [vmem:[%s5840_s25 + $0x1688] sm:$0xff]  ;;  %v876_v42 = vld [vmem:[%s5840_s25 + $0x1690] sm:$0xff] }
  0xc6   : > { %873 = vst [vmem:[%s5845_s26 + $0xb40] sm:$0xff] %v872_v40  ;;  %875 = vst [vmem:[%s5845_s26 + $0xb48] sm:$0xff] %v874_v41  ;;  %v878_v43 = vld [vmem:[%s5840_s25 + $0x1698] sm:$0xff]  ;;  %v880_v44 = vld [vmem:[%s5840_s25 + $0x16c0] sm:$0xff] }
  0xc7   : > { %877 = vst [vmem:[%s5845_s26 + $0xb50] sm:$0xff] %v876_v42  ;;  %v882_v45 = vld [vmem:[%s5840_s25 + $0x16c8] sm:$0xff]  ;;  %879 = vst [vmem:[%s5845_s26 + $0xb58] sm:$0xff] %v878_v43  ;;  %v884_v46 = vld [vmem:[%s5840_s25 + $0x16d0] sm:$0xff] }
  0xc8   : > { %881 = vst [vmem:[%s5845_s26 + $0xb60] sm:$0xff] %v880_v44  ;;  %883 = vst [vmem:[%s5845_s26 + $0xb68] sm:$0xff] %v882_v45  ;;  %v886_v47 = vld [vmem:[%s5840_s25 + $0x16d8] sm:$0xff]  ;;  %v888_v48 = vld [vmem:[%s5840_s25 + $0x1700] sm:$0xff] }
  0xc9   : > { %885 = vst [vmem:[%s5845_s26 + $0xb70] sm:$0xff] %v884_v46  ;;  %887 = vst [vmem:[%s5845_s26 + $0xb78] sm:$0xff] %v886_v47  ;;  %v890_v49 = vld [vmem:[%s5840_s25 + $0x1708] sm:$0xff]  ;;  %v892_v50 = vld [vmem:[%s5840_s25 + $0x1710] sm:$0xff] }
  0xca   : > { %889 = vst [vmem:[%s5845_s26 + $0xb80] sm:$0xff] %v888_v48  ;;  %v894_v51 = vld [vmem:[%s5840_s25 + $0x1718] sm:$0xff]  ;;  %891 = vst [vmem:[%s5845_s26 + $0xb88] sm:$0xff] %v890_v49  ;;  %v896_v52 = vld [vmem:[%s5840_s25 + $0x1740] sm:$0xff] }
  0xcb   : > { %893 = vst [vmem:[%s5845_s26 + $0xb90] sm:$0xff] %v892_v50  ;;  %895 = vst [vmem:[%s5845_s26 + $0xb98] sm:$0xff] %v894_v51  ;;  %v898_v53 = vld [vmem:[%s5840_s25 + $0x1748] sm:$0xff]  ;;  %v900_v54 = vld [vmem:[%s5840_s25 + $0x1750] sm:$0xff] }
  0xcc   : > { %897 = vst [vmem:[%s5845_s26 + $0xba0] sm:$0xff] %v896_v52  ;;  %899 = vst [vmem:[%s5845_s26 + $0xba8] sm:$0xff] %v898_v53  ;;  %v902_v55 = vld [vmem:[%s5840_s25 + $0x1758] sm:$0xff]  ;;  %v904_v56 = vld [vmem:[%s5840_s25 + $0x1780] sm:$0xff] }
  0xcd   : > { %901 = vst [vmem:[%s5845_s26 + $0xbb0] sm:$0xff] %v900_v54  ;;  %v906_v57 = vld [vmem:[%s5840_s25 + $0x1788] sm:$0xff]  ;;  %903 = vst [vmem:[%s5845_s26 + $0xbb8] sm:$0xff] %v902_v55  ;;  %v908_v58 = vld [vmem:[%s5840_s25 + $0x1790] sm:$0xff] }
  0xce   : > { %905 = vst [vmem:[%s5845_s26 + $0xbc0] sm:$0xff] %v904_v56  ;;  %907 = vst [vmem:[%s5845_s26 + $0xbc8] sm:$0xff] %v906_v57  ;;  %v910_v59 = vld [vmem:[%s5840_s25 + $0x1798] sm:$0xff]  ;;  %v912_v60 = vld [vmem:[%s5840_s25 + $0x17c0] sm:$0xff] }
  0xcf   : > { %909 = vst [vmem:[%s5845_s26 + $0xbd0] sm:$0xff] %v908_v58  ;;  %911 = vst [vmem:[%s5845_s26 + $0xbd8] sm:$0xff] %v910_v59  ;;  %v914_v61 = vld [vmem:[%s5840_s25 + $0x17c8] sm:$0xff]  ;;  %v916_v62 = vld [vmem:[%s5840_s25 + $0x17d0] sm:$0xff] }
  0xd0   : > { %913 = vst [vmem:[%s5845_s26 + $0xbe0] sm:$0xff] %v912_v60  ;;  %v918_v63 = vld [vmem:[%s5840_s25 + $0x17d8] sm:$0xff]  ;;  %915 = vst [vmem:[%s5845_s26 + $0xbe8] sm:$0xff] %v914_v61  ;;  %v920_v0 = vld [vmem:[%s5840_s25 + $0x1800] sm:$0xff] }
  0xd1   : > { %917 = vst [vmem:[%s5845_s26 + $0xbf0] sm:$0xff] %v916_v62  ;;  %919 = vst [vmem:[%s5845_s26 + $0xbf8] sm:$0xff] %v918_v63  ;;  %v922_v1 = vld [vmem:[%s5840_s25 + $0x1808] sm:$0xff]  ;;  %v924_v2 = vld [vmem:[%s5840_s25 + $0x1810] sm:$0xff] }
  0xd2   : > { %921 = vst [vmem:[%s5845_s26 + $0xc00] sm:$0xff] %v920_v0  ;;  %923 = vst [vmem:[%s5845_s26 + $0xc08] sm:$0xff] %v922_v1  ;;  %v926_v3 = vld [vmem:[%s5840_s25 + $0x1818] sm:$0xff]  ;;  %v928_v4 = vld [vmem:[%s5840_s25 + $0x1840] sm:$0xff] }
  0xd3   : > { %925 = vst [vmem:[%s5845_s26 + $0xc10] sm:$0xff] %v924_v2  ;;  %v930_v5 = vld [vmem:[%s5840_s25 + $0x1848] sm:$0xff]  ;;  %927 = vst [vmem:[%s5845_s26 + $0xc18] sm:$0xff] %v926_v3  ;;  %v932_v6 = vld [vmem:[%s5840_s25 + $0x1850] sm:$0xff] }
  0xd4   : > { %929 = vst [vmem:[%s5845_s26 + $0xc20] sm:$0xff] %v928_v4  ;;  %931 = vst [vmem:[%s5845_s26 + $0xc28] sm:$0xff] %v930_v5  ;;  %v934_v7 = vld [vmem:[%s5840_s25 + $0x1858] sm:$0xff]  ;;  %v936_v8 = vld [vmem:[%s5840_s25 + $0x1880] sm:$0xff] }
  0xd5   : > { %933 = vst [vmem:[%s5845_s26 + $0xc30] sm:$0xff] %v932_v6  ;;  %935 = vst [vmem:[%s5845_s26 + $0xc38] sm:$0xff] %v934_v7  ;;  %v938_v9 = vld [vmem:[%s5840_s25 + $0x1888] sm:$0xff]  ;;  %v940_v10 = vld [vmem:[%s5840_s25 + $0x1890] sm:$0xff] }
  0xd6   : > { %937 = vst [vmem:[%s5845_s26 + $0xc40] sm:$0xff] %v936_v8  ;;  %v942_v11 = vld [vmem:[%s5840_s25 + $0x1898] sm:$0xff]  ;;  %939 = vst [vmem:[%s5845_s26 + $0xc48] sm:$0xff] %v938_v9  ;;  %v944_v12 = vld [vmem:[%s5840_s25 + $0x18c0] sm:$0xff] }
  0xd7   : > { %941 = vst [vmem:[%s5845_s26 + $0xc50] sm:$0xff] %v940_v10  ;;  %943 = vst [vmem:[%s5845_s26 + $0xc58] sm:$0xff] %v942_v11  ;;  %v946_v13 = vld [vmem:[%s5840_s25 + $0x18c8] sm:$0xff]  ;;  %v948_v14 = vld [vmem:[%s5840_s25 + $0x18d0] sm:$0xff] }
  0xd8   : > { %945 = vst [vmem:[%s5845_s26 + $0xc60] sm:$0xff] %v944_v12  ;;  %947 = vst [vmem:[%s5845_s26 + $0xc68] sm:$0xff] %v946_v13  ;;  %v950_v15 = vld [vmem:[%s5840_s25 + $0x18d8] sm:$0xff]  ;;  %v952_v16 = vld [vmem:[%s5840_s25 + $0x1900] sm:$0xff] }
  0xd9   : > { %949 = vst [vmem:[%s5845_s26 + $0xc70] sm:$0xff] %v948_v14  ;;  %v954_v17 = vld [vmem:[%s5840_s25 + $0x1908] sm:$0xff]  ;;  %951 = vst [vmem:[%s5845_s26 + $0xc78] sm:$0xff] %v950_v15  ;;  %v956_v18 = vld [vmem:[%s5840_s25 + $0x1910] sm:$0xff] }
  0xda   : > { %953 = vst [vmem:[%s5845_s26 + $0xc80] sm:$0xff] %v952_v16  ;;  %955 = vst [vmem:[%s5845_s26 + $0xc88] sm:$0xff] %v954_v17  ;;  %v958_v19 = vld [vmem:[%s5840_s25 + $0x1918] sm:$0xff]  ;;  %v960_v20 = vld [vmem:[%s5840_s25 + $0x1940] sm:$0xff] }
  0xdb   : > { %957 = vst [vmem:[%s5845_s26 + $0xc90] sm:$0xff] %v956_v18  ;;  %959 = vst [vmem:[%s5845_s26 + $0xc98] sm:$0xff] %v958_v19  ;;  %v962_v21 = vld [vmem:[%s5840_s25 + $0x1948] sm:$0xff]  ;;  %v964_v22 = vld [vmem:[%s5840_s25 + $0x1950] sm:$0xff] }
  0xdc   : > { %961 = vst [vmem:[%s5845_s26 + $0xca0] sm:$0xff] %v960_v20  ;;  %v966_v23 = vld [vmem:[%s5840_s25 + $0x1958] sm:$0xff]  ;;  %963 = vst [vmem:[%s5845_s26 + $0xca8] sm:$0xff] %v962_v21  ;;  %v968_v24 = vld [vmem:[%s5840_s25 + $0x1980] sm:$0xff] }
  0xdd   : > { %965 = vst [vmem:[%s5845_s26 + $0xcb0] sm:$0xff] %v964_v22  ;;  %967 = vst [vmem:[%s5845_s26 + $0xcb8] sm:$0xff] %v966_v23  ;;  %v970_v25 = vld [vmem:[%s5840_s25 + $0x1988] sm:$0xff]  ;;  %v972_v26 = vld [vmem:[%s5840_s25 + $0x1990] sm:$0xff] }
  0xde   : > { %969 = vst [vmem:[%s5845_s26 + $0xcc0] sm:$0xff] %v968_v24  ;;  %971 = vst [vmem:[%s5845_s26 + $0xcc8] sm:$0xff] %v970_v25  ;;  %v974_v27 = vld [vmem:[%s5840_s25 + $0x1998] sm:$0xff]  ;;  %v976_v28 = vld [vmem:[%s5840_s25 + $0x19c0] sm:$0xff] }
  0xdf   : > { %973 = vst [vmem:[%s5845_s26 + $0xcd0] sm:$0xff] %v972_v26  ;;  %v978_v29 = vld [vmem:[%s5840_s25 + $0x19c8] sm:$0xff]  ;;  %975 = vst [vmem:[%s5845_s26 + $0xcd8] sm:$0xff] %v974_v27  ;;  %v980_v30 = vld [vmem:[%s5840_s25 + $0x19d0] sm:$0xff] }
  0xe0   : > { %977 = vst [vmem:[%s5845_s26 + $0xce0] sm:$0xff] %v976_v28  ;;  %979 = vst [vmem:[%s5845_s26 + $0xce8] sm:$0xff] %v978_v29  ;;  %v982_v31 = vld [vmem:[%s5840_s25 + $0x19d8] sm:$0xff]  ;;  %v984_v32 = vld [vmem:[%s5840_s25 + $0x1a00] sm:$0xff] }
  0xe1   : > { %981 = vst [vmem:[%s5845_s26 + $0xcf0] sm:$0xff] %v980_v30  ;;  %983 = vst [vmem:[%s5845_s26 + $0xcf8] sm:$0xff] %v982_v31  ;;  %v986_v33 = vld [vmem:[%s5840_s25 + $0x1a08] sm:$0xff]  ;;  %v988_v34 = vld [vmem:[%s5840_s25 + $0x1a10] sm:$0xff] }
  0xe2   : > { %985 = vst [vmem:[%s5845_s26 + $0xd00] sm:$0xff] %v984_v32  ;;  %v990_v35 = vld [vmem:[%s5840_s25 + $0x1a18] sm:$0xff]  ;;  %987 = vst [vmem:[%s5845_s26 + $0xd08] sm:$0xff] %v986_v33  ;;  %v992_v36 = vld [vmem:[%s5840_s25 + $0x1a40] sm:$0xff] }
  0xe3   : > { %989 = vst [vmem:[%s5845_s26 + $0xd10] sm:$0xff] %v988_v34  ;;  %991 = vst [vmem:[%s5845_s26 + $0xd18] sm:$0xff] %v990_v35  ;;  %v994_v37 = vld [vmem:[%s5840_s25 + $0x1a48] sm:$0xff]  ;;  %v996_v38 = vld [vmem:[%s5840_s25 + $0x1a50] sm:$0xff] }
  0xe4   : > { %993 = vst [vmem:[%s5845_s26 + $0xd20] sm:$0xff] %v992_v36  ;;  %995 = vst [vmem:[%s5845_s26 + $0xd28] sm:$0xff] %v994_v37  ;;  %v998_v39 = vld [vmem:[%s5840_s25 + $0x1a58] sm:$0xff]  ;;  %v1000_v40 = vld [vmem:[%s5840_s25 + $0x1a80] sm:$0xff] }
  0xe5   : > { %997 = vst [vmem:[%s5845_s26 + $0xd30] sm:$0xff] %v996_v38  ;;  %v1002_v41 = vld [vmem:[%s5840_s25 + $0x1a88] sm:$0xff]  ;;  %999 = vst [vmem:[%s5845_s26 + $0xd38] sm:$0xff] %v998_v39  ;;  %v1004_v42 = vld [vmem:[%s5840_s25 + $0x1a90] sm:$0xff] }
  0xe6   : > { %1001 = vst [vmem:[%s5845_s26 + $0xd40] sm:$0xff] %v1000_v40  ;;  %1003 = vst [vmem:[%s5845_s26 + $0xd48] sm:$0xff] %v1002_v41  ;;  %v1006_v43 = vld [vmem:[%s5840_s25 + $0x1a98] sm:$0xff]  ;;  %v1008_v44 = vld [vmem:[%s5840_s25 + $0x1ac0] sm:$0xff] }
  0xe7   : > { %1005 = vst [vmem:[%s5845_s26 + $0xd50] sm:$0xff] %v1004_v42  ;;  %1007 = vst [vmem:[%s5845_s26 + $0xd58] sm:$0xff] %v1006_v43  ;;  %v1010_v45 = vld [vmem:[%s5840_s25 + $0x1ac8] sm:$0xff]  ;;  %v1012_v46 = vld [vmem:[%s5840_s25 + $0x1ad0] sm:$0xff] }
  0xe8   : > { %1009 = vst [vmem:[%s5845_s26 + $0xd60] sm:$0xff] %v1008_v44  ;;  %v1014_v47 = vld [vmem:[%s5840_s25 + $0x1ad8] sm:$0xff]  ;;  %1011 = vst [vmem:[%s5845_s26 + $0xd68] sm:$0xff] %v1010_v45  ;;  %v1016_v48 = vld [vmem:[%s5840_s25 + $0x1b00] sm:$0xff] }
  0xe9   : > { %1013 = vst [vmem:[%s5845_s26 + $0xd70] sm:$0xff] %v1012_v46  ;;  %1015 = vst [vmem:[%s5845_s26 + $0xd78] sm:$0xff] %v1014_v47  ;;  %v1018_v49 = vld [vmem:[%s5840_s25 + $0x1b08] sm:$0xff]  ;;  %v1020_v50 = vld [vmem:[%s5840_s25 + $0x1b10] sm:$0xff] }
  0xea   : > { %1017 = vst [vmem:[%s5845_s26 + $0xd80] sm:$0xff] %v1016_v48  ;;  %1019 = vst [vmem:[%s5845_s26 + $0xd88] sm:$0xff] %v1018_v49  ;;  %v1022_v51 = vld [vmem:[%s5840_s25 + $0x1b18] sm:$0xff]  ;;  %v1024_v52 = vld [vmem:[%s5840_s25 + $0x1b40] sm:$0xff] }
  0xeb   : > { %1021 = vst [vmem:[%s5845_s26 + $0xd90] sm:$0xff] %v1020_v50  ;;  %v1026_v53 = vld [vmem:[%s5840_s25 + $0x1b48] sm:$0xff]  ;;  %1023 = vst [vmem:[%s5845_s26 + $0xd98] sm:$0xff] %v1022_v51  ;;  %v1028_v54 = vld [vmem:[%s5840_s25 + $0x1b50] sm:$0xff] }
  0xec   : > { %1025 = vst [vmem:[%s5845_s26 + $0xda0] sm:$0xff] %v1024_v52  ;;  %1027 = vst [vmem:[%s5845_s26 + $0xda8] sm:$0xff] %v1026_v53  ;;  %v1030_v55 = vld [vmem:[%s5840_s25 + $0x1b58] sm:$0xff]  ;;  %v1032_v56 = vld [vmem:[%s5840_s25 + $0x1b80] sm:$0xff] }
  0xed   : > { %1029 = vst [vmem:[%s5845_s26 + $0xdb0] sm:$0xff] %v1028_v54  ;;  %1031 = vst [vmem:[%s5845_s26 + $0xdb8] sm:$0xff] %v1030_v55  ;;  %v1034_v57 = vld [vmem:[%s5840_s25 + $0x1b88] sm:$0xff]  ;;  %v1036_v58 = vld [vmem:[%s5840_s25 + $0x1b90] sm:$0xff] }
  0xee   : > { %1033 = vst [vmem:[%s5845_s26 + $0xdc0] sm:$0xff] %v1032_v56  ;;  %v1038_v59 = vld [vmem:[%s5840_s25 + $0x1b98] sm:$0xff]  ;;  %1035 = vst [vmem:[%s5845_s26 + $0xdc8] sm:$0xff] %v1034_v57  ;;  %v1040_v60 = vld [vmem:[%s5840_s25 + $0x1bc0] sm:$0xff] }
  0xef   : > { %1037 = vst [vmem:[%s5845_s26 + $0xdd0] sm:$0xff] %v1036_v58  ;;  %1039 = vst [vmem:[%s5845_s26 + $0xdd8] sm:$0xff] %v1038_v59  ;;  %v1042_v61 = vld [vmem:[%s5840_s25 + $0x1bc8] sm:$0xff]  ;;  %v1044_v62 = vld [vmem:[%s5840_s25 + $0x1bd0] sm:$0xff] }
  0xf0   : > { %1041 = vst [vmem:[%s5845_s26 + $0xde0] sm:$0xff] %v1040_v60  ;;  %1043 = vst [vmem:[%s5845_s26 + $0xde8] sm:$0xff] %v1042_v61  ;;  %v1046_v63 = vld [vmem:[%s5840_s25 + $0x1bd8] sm:$0xff]  ;;  %v1048_v0 = vld [vmem:[%s5840_s25 + $0x1c00] sm:$0xff] }
  0xf1   : > { %1045 = vst [vmem:[%s5845_s26 + $0xdf0] sm:$0xff] %v1044_v62  ;;  %v1050_v1 = vld [vmem:[%s5840_s25 + $0x1c08] sm:$0xff]  ;;  %1047 = vst [vmem:[%s5845_s26 + $0xdf8] sm:$0xff] %v1046_v63  ;;  %v1052_v2 = vld [vmem:[%s5840_s25 + $0x1c10] sm:$0xff] }
  0xf2   : > { %1049 = vst [vmem:[%s5845_s26 + $0xe00] sm:$0xff] %v1048_v0  ;;  %1051 = vst [vmem:[%s5845_s26 + $0xe08] sm:$0xff] %v1050_v1  ;;  %v1054_v3 = vld [vmem:[%s5840_s25 + $0x1c18] sm:$0xff]  ;;  %v1056_v4 = vld [vmem:[%s5840_s25 + $0x1c40] sm:$0xff] }
  0xf3   : > { %1053 = vst [vmem:[%s5845_s26 + $0xe10] sm:$0xff] %v1052_v2  ;;  %1055 = vst [vmem:[%s5845_s26 + $0xe18] sm:$0xff] %v1054_v3  ;;  %v1058_v5 = vld [vmem:[%s5840_s25 + $0x1c48] sm:$0xff]  ;;  %v1060_v6 = vld [vmem:[%s5840_s25 + $0x1c50] sm:$0xff] }
  0xf4   : > { %1057 = vst [vmem:[%s5845_s26 + $0xe20] sm:$0xff] %v1056_v4  ;;  %v1062_v7 = vld [vmem:[%s5840_s25 + $0x1c58] sm:$0xff]  ;;  %1059 = vst [vmem:[%s5845_s26 + $0xe28] sm:$0xff] %v1058_v5  ;;  %v1064_v8 = vld [vmem:[%s5840_s25 + $0x1c80] sm:$0xff] }
  0xf5   : > { %1061 = vst [vmem:[%s5845_s26 + $0xe30] sm:$0xff] %v1060_v6  ;;  %1063 = vst [vmem:[%s5845_s26 + $0xe38] sm:$0xff] %v1062_v7  ;;  %v1066_v9 = vld [vmem:[%s5840_s25 + $0x1c88] sm:$0xff]  ;;  %v1068_v10 = vld [vmem:[%s5840_s25 + $0x1c90] sm:$0xff] }
  0xf6   : > { %1065 = vst [vmem:[%s5845_s26 + $0xe40] sm:$0xff] %v1064_v8  ;;  %1067 = vst [vmem:[%s5845_s26 + $0xe48] sm:$0xff] %v1066_v9  ;;  %v1070_v11 = vld [vmem:[%s5840_s25 + $0x1c98] sm:$0xff]  ;;  %v1072_v12 = vld [vmem:[%s5840_s25 + $0x1cc0] sm:$0xff] }
  0xf7   : > { %1069 = vst [vmem:[%s5845_s26 + $0xe50] sm:$0xff] %v1068_v10  ;;  %v1074_v13 = vld [vmem:[%s5840_s25 + $0x1cc8] sm:$0xff]  ;;  %1071 = vst [vmem:[%s5845_s26 + $0xe58] sm:$0xff] %v1070_v11  ;;  %v1076_v14 = vld [vmem:[%s5840_s25 + $0x1cd0] sm:$0xff] }
  0xf8   : > { %1073 = vst [vmem:[%s5845_s26 + $0xe60] sm:$0xff] %v1072_v12  ;;  %1075 = vst [vmem:[%s5845_s26 + $0xe68] sm:$0xff] %v1074_v13  ;;  %v1078_v15 = vld [vmem:[%s5840_s25 + $0x1cd8] sm:$0xff]  ;;  %v1080_v16 = vld [vmem:[%s5840_s25 + $0x1d00] sm:$0xff] }
  0xf9   : > { %1077 = vst [vmem:[%s5845_s26 + $0xe70] sm:$0xff] %v1076_v14  ;;  %1079 = vst [vmem:[%s5845_s26 + $0xe78] sm:$0xff] %v1078_v15  ;;  %v1082_v17 = vld [vmem:[%s5840_s25 + $0x1d08] sm:$0xff]  ;;  %v1084_v18 = vld [vmem:[%s5840_s25 + $0x1d10] sm:$0xff] }
  0xfa   : > { %1081 = vst [vmem:[%s5845_s26 + $0xe80] sm:$0xff] %v1080_v16  ;;  %v1086_v19 = vld [vmem:[%s5840_s25 + $0x1d18] sm:$0xff]  ;;  %1083 = vst [vmem:[%s5845_s26 + $0xe88] sm:$0xff] %v1082_v17  ;;  %v1088_v20 = vld [vmem:[%s5840_s25 + $0x1d40] sm:$0xff] }
  0xfb   : > { %1085 = vst [vmem:[%s5845_s26 + $0xe90] sm:$0xff] %v1084_v18  ;;  %1087 = vst [vmem:[%s5845_s26 + $0xe98] sm:$0xff] %v1086_v19  ;;  %v1090_v21 = vld [vmem:[%s5840_s25 + $0x1d48] sm:$0xff]  ;;  %v1092_v22 = vld [vmem:[%s5840_s25 + $0x1d50] sm:$0xff] }
  0xfc   : > { %1089 = vst [vmem:[%s5845_s26 + $0xea0] sm:$0xff] %v1088_v20  ;;  %1091 = vst [vmem:[%s5845_s26 + $0xea8] sm:$0xff] %v1090_v21  ;;  %v1094_v23 = vld [vmem:[%s5840_s25 + $0x1d58] sm:$0xff]  ;;  %v1096_v24 = vld [vmem:[%s5840_s25 + $0x1d80] sm:$0xff] }
  0xfd   : > { %1093 = vst [vmem:[%s5845_s26 + $0xeb0] sm:$0xff] %v1092_v22  ;;  %v1098_v25 = vld [vmem:[%s5840_s25 + $0x1d88] sm:$0xff]  ;;  %1095 = vst [vmem:[%s5845_s26 + $0xeb8] sm:$0xff] %v1094_v23  ;;  %v1100_v26 = vld [vmem:[%s5840_s25 + $0x1d90] sm:$0xff] }
  0xfe   : > { %1097 = vst [vmem:[%s5845_s26 + $0xec0] sm:$0xff] %v1096_v24  ;;  %1099 = vst [vmem:[%s5845_s26 + $0xec8] sm:$0xff] %v1098_v25  ;;  %v1102_v27 = vld [vmem:[%s5840_s25 + $0x1d98] sm:$0xff]  ;;  %v1104_v28 = vld [vmem:[%s5840_s25 + $0x1dc0] sm:$0xff] }
  0xff   : > { %1101 = vst [vmem:[%s5845_s26 + $0xed0] sm:$0xff] %v1100_v26  ;;  %1103 = vst [vmem:[%s5845_s26 + $0xed8] sm:$0xff] %v1102_v27  ;;  %v1106_v29 = vld [vmem:[%s5840_s25 + $0x1dc8] sm:$0xff]  ;;  %v1108_v30 = vld [vmem:[%s5840_s25 + $0x1dd0] sm:$0xff] }
 0x100   : > { %1105 = vst [vmem:[%s5845_s26 + $0xee0] sm:$0xff] %v1104_v28  ;;  %v1110_v31 = vld [vmem:[%s5840_s25 + $0x1dd8] sm:$0xff]  ;;  %1107 = vst [vmem:[%s5845_s26 + $0xee8] sm:$0xff] %v1106_v29  ;;  %v1112_v32 = vld [vmem:[%s5840_s25 + $0x1e00] sm:$0xff] }
 0x101   : > { %1109 = vst [vmem:[%s5845_s26 + $0xef0] sm:$0xff] %v1108_v30  ;;  %1111 = vst [vmem:[%s5845_s26 + $0xef8] sm:$0xff] %v1110_v31  ;;  %v1114_v33 = vld [vmem:[%s5840_s25 + $0x1e08] sm:$0xff]  ;;  %v1116_v34 = vld [vmem:[%s5840_s25 + $0x1e10] sm:$0xff] }
 0x102   : > { %1113 = vst [vmem:[%s5845_s26 + $0xf00] sm:$0xff] %v1112_v32  ;;  %1115 = vst [vmem:[%s5845_s26 + $0xf08] sm:$0xff] %v1114_v33  ;;  %v1118_v35 = vld [vmem:[%s5840_s25 + $0x1e18] sm:$0xff]  ;;  %v1120_v36 = vld [vmem:[%s5840_s25 + $0x1e40] sm:$0xff] }
 0x103   : > { %1117 = vst [vmem:[%s5845_s26 + $0xf10] sm:$0xff] %v1116_v34  ;;  %v1122_v37 = vld [vmem:[%s5840_s25 + $0x1e48] sm:$0xff]  ;;  %1119 = vst [vmem:[%s5845_s26 + $0xf18] sm:$0xff] %v1118_v35  ;;  %v1124_v38 = vld [vmem:[%s5840_s25 + $0x1e50] sm:$0xff] }
 0x104   : > { %1121 = vst [vmem:[%s5845_s26 + $0xf20] sm:$0xff] %v1120_v36  ;;  %1123 = vst [vmem:[%s5845_s26 + $0xf28] sm:$0xff] %v1122_v37  ;;  %v1126_v39 = vld [vmem:[%s5840_s25 + $0x1e58] sm:$0xff]  ;;  %v1128_v40 = vld [vmem:[%s5840_s25 + $0x1e80] sm:$0xff] }
 0x105   : > { %1125 = vst [vmem:[%s5845_s26 + $0xf30] sm:$0xff] %v1124_v38  ;;  %1127 = vst [vmem:[%s5845_s26 + $0xf38] sm:$0xff] %v1126_v39  ;;  %v1130_v41 = vld [vmem:[%s5840_s25 + $0x1e88] sm:$0xff]  ;;  %v1132_v42 = vld [vmem:[%s5840_s25 + $0x1e90] sm:$0xff] }
 0x106   : > { %1129 = vst [vmem:[%s5845_s26 + $0xf40] sm:$0xff] %v1128_v40  ;;  %v1134_v43 = vld [vmem:[%s5840_s25 + $0x1e98] sm:$0xff]  ;;  %1131 = vst [vmem:[%s5845_s26 + $0xf48] sm:$0xff] %v1130_v41  ;;  %v1136_v44 = vld [vmem:[%s5840_s25 + $0x1ec0] sm:$0xff] }
 0x107   : > { %1133 = vst [vmem:[%s5845_s26 + $0xf50] sm:$0xff] %v1132_v42  ;;  %1135 = vst [vmem:[%s5845_s26 + $0xf58] sm:$0xff] %v1134_v43  ;;  %v1138_v45 = vld [vmem:[%s5840_s25 + $0x1ec8] sm:$0xff]  ;;  %v1140_v46 = vld [vmem:[%s5840_s25 + $0x1ed0] sm:$0xff] }
 0x108   : > { %1137 = vst [vmem:[%s5845_s26 + $0xf60] sm:$0xff] %v1136_v44  ;;  %1139 = vst [vmem:[%s5845_s26 + $0xf68] sm:$0xff] %v1138_v45  ;;  %v1142_v47 = vld [vmem:[%s5840_s25 + $0x1ed8] sm:$0xff]  ;;  %v1144_v48 = vld [vmem:[%s5840_s25 + $0x1f00] sm:$0xff] }
 0x109   : > { %1141 = vst [vmem:[%s5845_s26 + $0xf70] sm:$0xff] %v1140_v46  ;;  %v1146_v49 = vld [vmem:[%s5840_s25 + $0x1f08] sm:$0xff]  ;;  %1143 = vst [vmem:[%s5845_s26 + $0xf78] sm:$0xff] %v1142_v47  ;;  %v1148_v50 = vld [vmem:[%s5840_s25 + $0x1f10] sm:$0xff] }
 0x10a   : > { %1145 = vst [vmem:[%s5845_s26 + $0xf80] sm:$0xff] %v1144_v48  ;;  %1147 = vst [vmem:[%s5845_s26 + $0xf88] sm:$0xff] %v1146_v49  ;;  %v1150_v51 = vld [vmem:[%s5840_s25 + $0x1f18] sm:$0xff]  ;;  %v1152_v52 = vld [vmem:[%s5840_s25 + $0x1f40] sm:$0xff] }
 0x10b   : > { %1149 = vst [vmem:[%s5845_s26 + $0xf90] sm:$0xff] %v1148_v50  ;;  %1151 = vst [vmem:[%s5845_s26 + $0xf98] sm:$0xff] %v1150_v51  ;;  %v1154_v53 = vld [vmem:[%s5840_s25 + $0x1f48] sm:$0xff]  ;;  %v1156_v54 = vld [vmem:[%s5840_s25 + $0x1f50] sm:$0xff] }
 0x10c   : > { %1153 = vst [vmem:[%s5845_s26 + $0xfa0] sm:$0xff] %v1152_v52  ;;  %v1158_v55 = vld [vmem:[%s5840_s25 + $0x1f58] sm:$0xff]  ;;  %1155 = vst [vmem:[%s5845_s26 + $0xfa8] sm:$0xff] %v1154_v53  ;;  %v1160_v56 = vld [vmem:[%s5840_s25 + $0x1f80] sm:$0xff] }
 0x10d   : > { %1157 = vst [vmem:[%s5845_s26 + $0xfb0] sm:$0xff] %v1156_v54  ;;  %1159 = vst [vmem:[%s5845_s26 + $0xfb8] sm:$0xff] %v1158_v55  ;;  %v1162_v57 = vld [vmem:[%s5840_s25 + $0x1f88] sm:$0xff]  ;;  %v1164_v58 = vld [vmem:[%s5840_s25 + $0x1f90] sm:$0xff] }
 0x10e   : > { %1161 = vst [vmem:[%s5845_s26 + $0xfc0] sm:$0xff] %v1160_v56  ;;  %1163 = vst [vmem:[%s5845_s26 + $0xfc8] sm:$0xff] %v1162_v57  ;;  %v1166_v59 = vld [vmem:[%s5840_s25 + $0x1f98] sm:$0xff]  ;;  %v1168_v60 = vld [vmem:[%s5840_s25 + $0x1fc0] sm:$0xff] }
 0x10f   : > { %1165 = vst [vmem:[%s5845_s26 + $0xfd0] sm:$0xff] %v1164_v58  ;;  %v1170_v61 = vld [vmem:[%s5840_s25 + $0x1fc8] sm:$0xff]  ;;  %1167 = vst [vmem:[%s5845_s26 + $0xfd8] sm:$0xff] %v1166_v59  ;;  %v1172_v62 = vld [vmem:[%s5840_s25 + $0x1fd0] sm:$0xff] }
 0x110   : > { %1169 = vst [vmem:[%s5845_s26 + $0xfe0] sm:$0xff] %v1168_v60  ;;  %1171 = vst [vmem:[%s5845_s26 + $0xfe8] sm:$0xff] %v1170_v61  ;;  %v1174_v63 = vld [vmem:[%s5840_s25 + $0x1fd8] sm:$0xff] }
 0x111   : > { %1173 = vst [vmem:[%s5845_s26 + $0xff0] sm:$0xff] %v1172_v62  ;;  %1175 = vst [vmem:[%s5845_s26 + $0xff8] sm:$0xff] %v1174_v63 }
 0x112 PF: > { %p5130_p5 = scmp.ge.s32.totalorder %s5784_s14, 1  ;;  %p1188_p6 = scmp.lt.s32.totalorder %s5784_s14, 3 }
 0x114   : > { %p1189_p7 = pnand %p5130_p5, %p1188_p6 }
 0x115   : > { %s1195_s27 = sand.u32 (!%p1189_p7), 1, %s5776_s12   ;;  %v6874_v0 = vld [vmem:[%s7522_s0] sm:$0xff] (!%p1189_p7)  ;;  %s5132_s11 = sshll.u32 (!%p1189_p7), %s5123_s15, 3 }
 0x116   : > { %1192 = sbr.rel (%p1189_p7) target bundleno = 1025 (0x401), region = 51  ;;  %s5131_s30 = sshll.u32 (!%p1189_p7), %s1195_s27, 12  ;;  %v6878_v1 = vcombine.high (!%p1189_p7), %v6874_v0, %v6874_v0 }
 0x117   : > { %s6880_s4 = scalar_lea.vmem (!%p1189_p7), [#allocation2], %s5131_s30  ;;  %p1224_p8 = scmp.lt.s32.totalorder (!%p1189_p7), %s5132_s11, 15 }
 0x118   : > { %v1238_v2 = vld [vmem:[%s6880_s4] sm:$0xff] (!%p1189_p7)  ;;  %v1239_v4 = vld [vmem:[%s6880_s4 + $0x8] sm:$0xff] (!%p1189_p7)  ;;  %4412 = vmatprep.mubr.bf16.mxu0 (!%p1189_p7), %v6878_v1  ;;  %4576 = vmatprep.mubr.bf16.mxu1 (!%p1189_p7), %v6878_v1 }
 0x119   : > { %v1242_v3 = vld [vmem:[%s6880_s4 + $0x20] sm:$0xff] (!%p1189_p7)  ;;  %v1243_v6 = vld [vmem:[%s6880_s4 + $0x28] sm:$0xff] (!%p1189_p7) }
 0x11a   : > { %v5144_v5 = vcombine.high (!%p1189_p7), %v1238_v2, %v1242_v3  ;;  %v5143_v7 = vcombine.low (!%p1189_p7), %v1238_v2, %v1242_v3  ;;  %v1246_v8 = vld [vmem:[%s6880_s4 + $0x40] sm:$0xff] (!%p1189_p7)  ;;  %v5146_v10 = vcombine.high (!%p1189_p7), %v1239_v4, %v1243_v6  ;;  %v5145_v11 = vcombine.low (!%p1189_p7), %v1239_v4, %v1243_v6  ;;  %v1247_v13 = vld [vmem:[%s6880_s4 + $0x48] sm:$0xff] (!%p1189_p7) }
 0x11b   : > { %v1250_v9 = vld [vmem:[%s6880_s4 + $0x60] sm:$0xff] (!%p1189_p7)  ;;  %v1251_v14 = vld [vmem:[%s6880_s4 + $0x68] sm:$0xff] (!%p1189_p7) }
 0x11c   : > { %v5152_v12 = vcombine.high (!%p1189_p7), %v1246_v8, %v1250_v9  ;;  %v1254_v15 = vld [vmem:[%s6880_s4 + $0x80] sm:$0xff] (!%p1189_p7)  ;;  %4380 = vmatprep.subr.bf16.mxu0 (!%p1189_p7), %v5144_v5  ;;  %v5154_v16 = vcombine.high (!%p1189_p7), %v1247_v13, %v1251_v14  ;;  %v1255_v18 = vld [vmem:[%s6880_s4 + $0x88] sm:$0xff] (!%p1189_p7)  ;;  %4544 = vmatprep.subr.bf16.mxu1 (!%p1189_p7), %v5146_v10  ;;  %v5151_v20 = vcombine.low (!%p1189_p7), %v1246_v8, %v1250_v9 }
 0x11d   : > { %v1258_v17 = vld [vmem:[%s6880_s4 + $0xa0] sm:$0xff]  ;;  %v1259_v19 = vld [vmem:[%s6880_s4 + $0xa8] sm:$0xff]  ;;  %4381 = vmatpush1.bf16.msra.mxu0 %v5143_v7  ;;  %4545 = vmatpush1.bf16.msra.mxu1 %v5145_v11  ;;  %v5153_v21 = vcombine.low %v1247_v13, %v1251_v14  ;;  %s7530_s11 = smov (!%p1224_p8, %s5132_s11), 15 }
 0x11e   : > { %4382 = vmatprep.subr.bf16.mxu0 %v5152_v12  ;;  %v5160_v22 = vcombine.high %v1254_v15, %v1258_v17  ;;  %4546 = vmatprep.subr.bf16.mxu1 %v5154_v16  ;;  %v5162_v23 = vcombine.high %v1255_v18, %v1259_v19  ;;  %v1262_v24 = vld [vmem:[%s6880_s4 + $0xc0] sm:$0xff]  ;;  %v1263_v26 = vld [vmem:[%s6880_s4 + $0xc8] sm:$0xff]  ;;  %v5159_v28 = vcombine.low %v1254_v15, %v1258_v17  ;;  %s1226_s15 = scalar_lea.vmem %s7524_s2, %s7530_s11  ;;  %s5134_s17 = sshll.u32 %s7530_s11, 3 }
 0x11f   : > { %v1266_v25 = vld [vmem:[%s6880_s4 + $0xe0] sm:$0xff]  ;;  %v1267_v27 = vld [vmem:[%s6880_s4 + $0xe8] sm:$0xff]  ;;  %v5161_v29 = vcombine.low %v1255_v18, %v1259_v19  ;;  %s7468_s21 = scalar_lea.vmem %s7525_s3, %s5134_s17 }
 0x120   : > { %v5168_v30 = vcombine.high %v1262_v24, %v1266_v25  ;;  %v5170_v31 = vcombine.high %v1263_v26, %v1267_v27  ;;  %v1270_v32 = vld [vmem:[%s6880_s4 + $0x100] sm:$0xff]  ;;  %v1271_v34 = vld [vmem:[%s6880_s4 + $0x108] sm:$0xff]  ;;  %v5167_v36 = vcombine.low %v1262_v24, %v1266_v25  ;;  %v5169_v37 = vcombine.low %v1263_v26, %v1267_v27 }
 0x121   : > { %4383 = vmatpush1.bf16.msra.mxu0 %v5151_v20  ;;  %4547 = vmatpush1.bf16.msra.mxu1 %v5153_v21  ;;  %v1274_v33 = vld [vmem:[%s6880_s4 + $0x120] sm:$0xff]  ;;  %v1275_v35 = vld [vmem:[%s6880_s4 + $0x128] sm:$0xff] }
 0x122   : > { %4384 = vmatprep.subr.bf16.mxu0 %v5160_v22  ;;  %4548 = vmatprep.subr.bf16.mxu1 %v5162_v23  ;;  %v5176_v38 = vcombine.high %v1270_v32, %v1274_v33  ;;  %v5178_v39 = vcombine.high %v1271_v34, %v1275_v35  ;;  %v1278_v40 = vld [vmem:[%s6880_s4 + $0x140] sm:$0xff]  ;;  %v1279_v42 = vld [vmem:[%s6880_s4 + $0x148] sm:$0xff]  ;;  %v5175_v44 = vcombine.low %v1270_v32, %v1274_v33 }
 0x123   : > { %v1282_v41 = vld [vmem:[%s6880_s4 + $0x160] sm:$0xff]  ;;  %v1283_v43 = vld [vmem:[%s6880_s4 + $0x168] sm:$0xff]  ;;  %v5177_v45 = vcombine.low %v1271_v34, %v1275_v35 }
 0x124   : > { %v5184_v46 = vcombine.high %v1278_v40, %v1282_v41  ;;  %v5186_v47 = vcombine.high %v1279_v42, %v1283_v43  ;;  %v1286_v48 = vld [vmem:[%s6880_s4 + $0x180] sm:$0xff]  ;;  %v1287_v50 = vld [vmem:[%s6880_s4 + $0x188] sm:$0xff]  ;;  %v5183_v52 = vcombine.low %v1278_v40, %v1282_v41  ;;  %v5185_v53 = vcombine.low %v1279_v42, %v1283_v43 }
 0x125   : > { %4385 = vmatpush1.bf16.msra.mxu0 %v5159_v28  ;;  %4549 = vmatpush1.bf16.msra.mxu1 %v5161_v29  ;;  %v1290_v49 = vld [vmem:[%s6880_s4 + $0x1a0] sm:$0xff]  ;;  %v1291_v51 = vld [vmem:[%s6880_s4 + $0x1a8] sm:$0xff] }
 0x126   : > { %4386 = vmatprep.subr.bf16.mxu0 %v5168_v30  ;;  %4550 = vmatprep.subr.bf16.mxu1 %v5170_v31  ;;  %v5192_v54 = vcombine.high %v1286_v48, %v1290_v49  ;;  %v5194_v55 = vcombine.high %v1287_v50, %v1291_v51  ;;  %v1294_v56 = vld [vmem:[%s6880_s4 + $0x1c0] sm:$0xff]  ;;  %v1295_v58 = vld [vmem:[%s6880_s4 + $0x1c8] sm:$0xff]  ;;  %v5191_v60 = vcombine.low %v1286_v48, %v1290_v49 }
 0x127   : > { %v1298_v57 = vld [vmem:[%s6880_s4 + $0x1e0] sm:$0xff]  ;;  %v1299_v59 = vld [vmem:[%s6880_s4 + $0x1e8] sm:$0xff]  ;;  %v5193_v61 = vcombine.low %v1287_v50, %v1291_v51 }
 0x128   : > { %v5200_v62 = vcombine.high %v1294_v56, %v1298_v57  ;;  %v5202_v63 = vcombine.high %v1295_v58, %v1299_v59  ;;  %v1302_v2 = vld [vmem:[%s6880_s4 + $0x200] sm:$0xff]  ;;  %v1303_v4 = vld [vmem:[%s6880_s4 + $0x208] sm:$0xff]  ;;  %v5199_v6 = vcombine.low %v1294_v56, %v1298_v57  ;;  %v5201_v7 = vcombine.low %v1295_v58, %v1299_v59 }
 0x129   : > { %4387 = vmatpush1.bf16.msra.mxu0 %v5167_v36  ;;  %4551 = vmatpush1.bf16.msra.mxu1 %v5169_v37  ;;  %v1306_v3 = vld [vmem:[%s6880_s4 + $0x220] sm:$0xff]  ;;  %v1307_v5 = vld [vmem:[%s6880_s4 + $0x228] sm:$0xff] }
 0x12a   : > { %4388 = vmatprep.subr.bf16.mxu0 %v5176_v38  ;;  %4552 = vmatprep.subr.bf16.mxu1 %v5178_v39  ;;  %v5208_v8 = vcombine.high %v1302_v2, %v1306_v3  ;;  %v5210_v9 = vcombine.high %v1303_v4, %v1307_v5  ;;  %v1310_v10 = vld [vmem:[%s6880_s4 + $0x240] sm:$0xff]  ;;  %v1311_v12 = vld [vmem:[%s6880_s4 + $0x248] sm:$0xff]  ;;  %v5207_v14 = vcombine.low %v1302_v2, %v1306_v3 }
 0x12b   : > { %v1314_v11 = vld [vmem:[%s6880_s4 + $0x260] sm:$0xff]  ;;  %v1315_v13 = vld [vmem:[%s6880_s4 + $0x268] sm:$0xff]  ;;  %v5209_v15 = vcombine.low %v1303_v4, %v1307_v5 }
 0x12c   : > { %v5216_v16 = vcombine.high %v1310_v10, %v1314_v11  ;;  %v5218_v17 = vcombine.high %v1311_v12, %v1315_v13  ;;  %v1318_v18 = vld [vmem:[%s6880_s4 + $0x280] sm:$0xff]  ;;  %v1319_v20 = vld [vmem:[%s6880_s4 + $0x288] sm:$0xff]  ;;  %v5215_v22 = vcombine.low %v1310_v10, %v1314_v11  ;;  %v5217_v23 = vcombine.low %v1311_v12, %v1315_v13 }
 0x12d   : > { %4389 = vmatpush1.bf16.msra.mxu0 %v5175_v44  ;;  %4553 = vmatpush1.bf16.msra.mxu1 %v5177_v45  ;;  %v1322_v19 = vld [vmem:[%s6880_s4 + $0x2a0] sm:$0xff]  ;;  %v1323_v21 = vld [vmem:[%s6880_s4 + $0x2a8] sm:$0xff] }
 0x12e   : > { %4390 = vmatprep.subr.bf16.mxu0 %v5184_v46  ;;  %4554 = vmatprep.subr.bf16.mxu1 %v5186_v47  ;;  %v5224_v24 = vcombine.high %v1318_v18, %v1322_v19  ;;  %v5226_v25 = vcombine.high %v1319_v20, %v1323_v21  ;;  %v1326_v26 = vld [vmem:[%s6880_s4 + $0x2c0] sm:$0xff]  ;;  %v1327_v28 = vld [vmem:[%s6880_s4 + $0x2c8] sm:$0xff]  ;;  %v5223_v30 = vcombine.low %v1318_v18, %v1322_v19 }
 0x12f   : > { %v1330_v27 = vld [vmem:[%s6880_s4 + $0x2e0] sm:$0xff]  ;;  %v1331_v29 = vld [vmem:[%s6880_s4 + $0x2e8] sm:$0xff]  ;;  %v5225_v31 = vcombine.low %v1319_v20, %v1323_v21 }
 0x130   : > { %v5232_v32 = vcombine.high %v1326_v26, %v1330_v27  ;;  %v5234_v33 = vcombine.high %v1327_v28, %v1331_v29  ;;  %v1334_v34 = vld [vmem:[%s6880_s4 + $0x300] sm:$0xff]  ;;  %v1335_v36 = vld [vmem:[%s6880_s4 + $0x308] sm:$0xff]  ;;  %v5231_v38 = vcombine.low %v1326_v26, %v1330_v27  ;;  %v5233_v39 = vcombine.low %v1327_v28, %v1331_v29 }
 0x131   : > { %4391 = vmatpush1.bf16.msra.mxu0 %v5183_v52  ;;  %4555 = vmatpush1.bf16.msra.mxu1 %v5185_v53  ;;  %v1338_v35 = vld [vmem:[%s6880_s4 + $0x320] sm:$0xff]  ;;  %v1339_v37 = vld [vmem:[%s6880_s4 + $0x328] sm:$0xff] }
 0x132   : > { %4392 = vmatprep.subr.bf16.mxu0 %v5192_v54  ;;  %4556 = vmatprep.subr.bf16.mxu1 %v5194_v55  ;;  %v5240_v40 = vcombine.high %v1334_v34, %v1338_v35  ;;  %v5242_v41 = vcombine.high %v1335_v36, %v1339_v37  ;;  %v1342_v42 = vld [vmem:[%s6880_s4 + $0x340] sm:$0xff]  ;;  %v1343_v44 = vld [vmem:[%s6880_s4 + $0x348] sm:$0xff]  ;;  %v5239_v46 = vcombine.low %v1334_v34, %v1338_v35 }
 0x133   : > { %v1346_v43 = vld [vmem:[%s6880_s4 + $0x360] sm:$0xff]  ;;  %v1347_v45 = vld [vmem:[%s6880_s4 + $0x368] sm:$0xff]  ;;  %v5241_v47 = vcombine.low %v1335_v36, %v1339_v37 }
 0x134   : > { %v5248_v48 = vcombine.high %v1342_v42, %v1346_v43  ;;  %v5250_v49 = vcombine.high %v1343_v44, %v1347_v45  ;;  %v1350_v50 = vld [vmem:[%s6880_s4 + $0x380] sm:$0xff]  ;;  %v1351_v52 = vld [vmem:[%s6880_s4 + $0x388] sm:$0xff]  ;;  %v5247_v54 = vcombine.low %v1342_v42, %v1346_v43  ;;  %v5249_v55 = vcombine.low %v1343_v44, %v1347_v45 }
 0x135   : > { %4393 = vmatpush1.bf16.msra.mxu0 %v5191_v60  ;;  %4557 = vmatpush1.bf16.msra.mxu1 %v5193_v61  ;;  %v1354_v51 = vld [vmem:[%s6880_s4 + $0x3a0] sm:$0xff]  ;;  %v1355_v53 = vld [vmem:[%s6880_s4 + $0x3a8] sm:$0xff] }
 0x136   : > { %4394 = vmatprep.subr.bf16.mxu0 %v5200_v62  ;;  %4558 = vmatprep.subr.bf16.mxu1 %v5202_v63  ;;  %v5256_v56 = vcombine.high %v1350_v50, %v1354_v51  ;;  %v5258_v57 = vcombine.high %v1351_v52, %v1355_v53  ;;  %v1358_v58 = vld [vmem:[%s6880_s4 + $0x3c0] sm:$0xff]  ;;  %v1359_v60 = vld [vmem:[%s6880_s4 + $0x3c8] sm:$0xff]  ;;  %v5255_v62 = vcombine.low %v1350_v50, %v1354_v51 }
 0x137   : > { %v1362_v59 = vld [vmem:[%s6880_s4 + $0x3e0] sm:$0xff]  ;;  %v1363_v61 = vld [vmem:[%s6880_s4 + $0x3e8] sm:$0xff]  ;;  %v5257_v63 = vcombine.low %v1351_v52, %v1355_v53 }
 0x138   : > { %v5264_v2 = vcombine.high %v1358_v58, %v1362_v59  ;;  %v5266_v3 = vcombine.high %v1359_v60, %v1363_v61  ;;  %v1366_v4 = vld [vmem:[%s6880_s4 + $0x400] sm:$0xff] }
 0x139   : > { %4395 = vmatpush1.bf16.msra.mxu0 %v5199_v6  ;;  %4559 = vmatpush1.bf16.msra.mxu1 %v5201_v7  ;;  %v1370_v5 = vld [vmem:[%s6880_s4 + $0x420] sm:$0xff]  ;;  %v1367_v6 = vld [vmem:[%s6880_s4 + $0x408] sm:$0xff] }
 0x13a   : > { %4396 = vmatprep.subr.bf16.mxu0 %v5208_v8  ;;  %4560 = vmatprep.subr.bf16.mxu1 %v5210_v9  ;;  %v1371_v7 = vld [vmem:[%s6880_s4 + $0x428] sm:$0xff]  ;;  %v5263_v8 = vcombine.low %v1358_v58, %v1362_v59  ;;  %v5265_v9 = vcombine.low %v1359_v60, %v1363_v61  ;;  %v5272_v10 = vcombine.high %v1366_v4, %v1370_v5  ;;  %v1374_v12 = vld [vmem:[%s6880_s4 + $0x440] sm:$0xff] }
 0x13b   : > { %v5274_v11 = vcombine.high %v1367_v6, %v1371_v7  ;;  %v1378_v13 = vld [vmem:[%s6880_s4 + $0x460] sm:$0xff]  ;;  %v5271_v18 = vcombine.low %v1366_v4, %v1370_v5  ;;  %v5273_v19 = vcombine.low %v1367_v6, %v1371_v7 }
 0x13c   : > { %v5280_v20 = vcombine.high %v1374_v12, %v1378_v13  ;;  %v5279_v26 = vcombine.low %v1374_v12, %v1378_v13 }
 0x13d   : > { %4397 = vmatpush1.bf16.msra.mxu0 %v5207_v14  ;;  %4561 = vmatpush1.bf16.msra.mxu1 %v5209_v15  ;;  %v6956_v14 = vcombine.low %v6874_v0, %v6874_v0  ;;  %v1375_v15 = vld [vmem:[%s6880_s4 + $0x448] sm:$0xff]  ;;  %v1382_v0 = vld [vmem:[%s6880_s4 + $0x480] sm:$0xff] }
 0x13e   : > { %4398 = vmatprep.subr.bf16.mxu0 %v5216_v16  ;;  %4562 = vmatprep.subr.bf16.mxu1 %v5218_v17  ;;  %v1379_v16 = vld [vmem:[%s6880_s4 + $0x468] sm:$0xff] }
 0x13f   : > { %v6963_v17 = vld [vmem:[%s7522_s0 + $0x8] sm:$0xff]  ;;  %v5282_v21 = vcombine.high %v1375_v15, %v1379_v16  ;;  %v5281_v27 = vcombine.low %v1375_v15, %v1379_v16 }
 0x141   : > { %4399 = vmatpush1.bf16.msra.mxu0 %v5215_v22  ;;  %4563 = vmatpush1.bf16.msra.mxu1 %v5217_v23  ;;  %v1386_v22 = vld [vmem:[%s6880_s4 + $0x4a0] sm:$0xff]  ;;  %v6969_v23 = vcombine.high %v6963_v17, %v6963_v17 }
 0x142   : > { %4400 = vmatprep.subr.bf16.mxu0 %v5224_v24  ;;  %4564 = vmatprep.subr.bf16.mxu1 %v5226_v25  ;;  %v1383_v24 = vld [vmem:[%s6880_s4 + $0x488] sm:$0xff]  ;;  %v5288_v28 = vcombine.high %v1382_v0, %v1386_v22  ;;  %v5287_v34 = vcombine.low %v1382_v0, %v1386_v22 }
 0x143   : > { %v1387_v25 = vld [vmem:[%s6880_s4 + $0x4a8] sm:$0xff] }
 0x144   : > { %v5290_v29 = vcombine.high %v1383_v24, %v1387_v25  ;;  %v5289_v35 = vcombine.low %v1383_v24, %v1387_v25 }
 0x145   : > { %4401 = vmatpush1.bf16.msra.mxu0 %v5223_v30  ;;  %4565 = vmatpush1.bf16.msra.mxu1 %v5225_v31  ;;  %v1390_v30 = vld [vmem:[%s6880_s4 + $0x4c0] sm:$0xff] }
 0x146   : > { %4402 = vmatprep.subr.bf16.mxu0 %v5232_v32  ;;  %4566 = vmatprep.subr.bf16.mxu1 %v5234_v33  ;;  %v1394_v31 = vld [vmem:[%s6880_s4 + $0x4e0] sm:$0xff]  ;;  %v1391_v32 = vld [vmem:[%s6880_s4 + $0x4c8] sm:$0xff] }
 0x147   : > { %v1395_v33 = vld [vmem:[%s6880_s4 + $0x4e8] sm:$0xff]  ;;  %v5296_v36 = vcombine.high %v1390_v30, %v1394_v31  ;;  %v5295_v42 = vcombine.low %v1390_v30, %v1394_v31 }
 0x148   : > { %v5298_v37 = vcombine.high %v1391_v32, %v1395_v33  ;;  %v5297_v43 = vcombine.low %v1391_v32, %v1395_v33 }
 0x149   : > { %4403 = vmatpush1.bf16.msra.mxu0 %v5231_v38  ;;  %4567 = vmatpush1.bf16.msra.mxu1 %v5233_v39  ;;  %v1398_v38 = vld [vmem:[%s6880_s4 + $0x500] sm:$0xff] }
 0x14a   : > { %4404 = vmatprep.subr.bf16.mxu0 %v5240_v40  ;;  %4568 = vmatprep.subr.bf16.mxu1 %v5242_v41  ;;  %v1402_v39 = vld [vmem:[%s6880_s4 + $0x520] sm:$0xff]  ;;  %v1399_v40 = vld [vmem:[%s6880_s4 + $0x508] sm:$0xff] }
 0x14b   : > { %v1403_v41 = vld [vmem:[%s6880_s4 + $0x528] sm:$0xff]  ;;  %v5304_v44 = vcombine.high %v1398_v38, %v1402_v39  ;;  %v5303_v50 = vcombine.low %v1398_v38, %v1402_v39 }
 0x14c   : > { %v5306_v45 = vcombine.high %v1399_v40, %v1403_v41  ;;  %v5305_v51 = vcombine.low %v1399_v40, %v1403_v41 }
 0x14d   : > { %4405 = vmatpush1.bf16.msra.mxu0 %v5239_v46  ;;  %4569 = vmatpush1.bf16.msra.mxu1 %v5241_v47  ;;  %v1406_v46 = vld [vmem:[%s6880_s4 + $0x540] sm:$0xff] }
 0x14e   : > { %4406 = vmatprep.subr.bf16.mxu0 %v5248_v48  ;;  %4570 = vmatprep.subr.bf16.mxu1 %v5250_v49  ;;  %v1410_v47 = vld [vmem:[%s6880_s4 + $0x560] sm:$0xff]  ;;  %v1407_v48 = vld [vmem:[%s6880_s4 + $0x548] sm:$0xff] }
 0x14f   : > { %v1411_v49 = vld [vmem:[%s6880_s4 + $0x568] sm:$0xff]  ;;  %v5312_v52 = vcombine.high %v1406_v46, %v1410_v47  ;;  %v5311_v58 = vcombine.low %v1406_v46, %v1410_v47 }
 0x150   : > { %v5314_v53 = vcombine.high %v1407_v48, %v1411_v49  ;;  %v5313_v59 = vcombine.low %v1407_v48, %v1411_v49 }
 0x151   : > { %4407 = vmatpush1.bf16.msra.mxu0 %v5247_v54  ;;  %4571 = vmatpush1.bf16.msra.mxu1 %v5249_v55  ;;  %v1414_v54 = vld [vmem:[%s6880_s4 + $0x580] sm:$0xff] }
 0x152   : > { %4408 = vmatprep.subr.bf16.mxu0 %v5256_v56  ;;  %4572 = vmatprep.subr.bf16.mxu1 %v5258_v57  ;;  %v1418_v55 = vld [vmem:[%s6880_s4 + $0x5a0] sm:$0xff]  ;;  %v1415_v56 = vld [vmem:[%s6880_s4 + $0x588] sm:$0xff] }
 0x153   : > { %v1419_v57 = vld [vmem:[%s6880_s4 + $0x5a8] sm:$0xff]  ;;  %v5320_v60 = vcombine.high %v1414_v54, %v1418_v55  ;;  %v5319_v4 = vcombine.low %v1414_v54, %v1418_v55 }
 0x154   : > { %v5322_v61 = vcombine.high %v1415_v56, %v1419_v57  ;;  %v5321_v5 = vcombine.low %v1415_v56, %v1419_v57 }
 0x155   : > { %4409 = vmatpush1.bf16.msra.mxu0 %v5255_v62  ;;  %4573 = vmatpush1.bf16.msra.mxu1 %v5257_v63  ;;  %v1422_v62 = vld [vmem:[%s6880_s4 + $0x5c0] sm:$0xff] }
 0x156   : > { %4410 = vmatprep.subr.bf16.mxu0 %v5264_v2  ;;  %4574 = vmatprep.subr.bf16.mxu1 %v5266_v3  ;;  %v1426_v63 = vld [vmem:[%s6880_s4 + $0x5e0] sm:$0xff]  ;;  %v1423_v2 = vld [vmem:[%s6880_s4 + $0x5c8] sm:$0xff] }
 0x157   : > { %v1427_v3 = vld [vmem:[%s6880_s4 + $0x5e8] sm:$0xff]  ;;  %v5328_v6 = vcombine.high %v1422_v62, %v1426_v63  ;;  %v5327_v12 = vcombine.low %v1422_v62, %v1426_v63 }
 0x158   : > { %v5330_v7 = vcombine.high %v1423_v2, %v1427_v3  ;;  %v5329_v13 = vcombine.low %v1423_v2, %v1427_v3 }
 0x159   : > { %4411 = vmatpush1.bf16.msra.mxu0 %v5263_v8  ;;  %4575 = vmatpush1.bf16.msra.mxu1 %v5265_v9  ;;  %v1430_v8 = vld [vmem:[%s6880_s4 + $0x600] sm:$0xff] }
 0x15a   : > { %4421 = vmatprep.subr.bf16.mxu0 %v5272_v10  ;;  %4585 = vmatprep.subr.bf16.mxu1 %v5274_v11  ;;  %v1434_v9 = vld [vmem:[%s6880_s4 + $0x620] sm:$0xff]  ;;  %v1431_v10 = vld [vmem:[%s6880_s4 + $0x608] sm:$0xff] }
 0x15b   : > { %v1435_v11 = vld [vmem:[%s6880_s4 + $0x628] sm:$0xff]  ;;  %v5336_v15 = vcombine.high %v1430_v8, %v1434_v9  ;;  %v5335_v0 = vcombine.low %v1430_v8, %v1434_v9 }
 0x15c   : > { %4413 = vmatmul.mubr.bf16.vlgmr.msra.gmra.mrb[0].mxu0 %v6956_v14  ;;  %4577 = vmatmul.mubr.bf16.vlgmr.msra.gmra.mrb[0].mxu1 %v6956_v14  ;;  %v5338_v16 = vcombine.high %v1431_v10, %v1435_v11  ;;  %v5337_v22 = vcombine.low %v1431_v10, %v1435_v11 }
 0x15d   : > { %4422 = vmatpush1.bf16.msra.mxu0 %v5271_v18  ;;  %4586 = vmatpush1.bf16.msra.mxu1 %v5273_v19  ;;  %v1438_v18 = vld [vmem:[%s6880_s4 + $0x640] sm:$0xff] }
 0x15e   : > { %4423 = vmatprep.subr.bf16.mxu0 %v5280_v20  ;;  %4587 = vmatprep.subr.bf16.mxu1 %v5282_v21  ;;  %v1442_v19 = vld [vmem:[%s6880_s4 + $0x660] sm:$0xff]  ;;  %v1439_v20 = vld [vmem:[%s6880_s4 + $0x648] sm:$0xff] }
 0x15f   : > { %4453 = vmatprep.mubr.bf16.mxu0 %v6969_v23  ;;  %4617 = vmatprep.mubr.bf16.mxu1 %v6969_v23  ;;  %v1443_v21 = vld [vmem:[%s6880_s4 + $0x668] sm:$0xff]  ;;  %v5344_v24 = vcombine.high %v1438_v18, %v1442_v19  ;;  %v5343_v30 = vcombine.low %v1438_v18, %v1442_v19 }
 0x160   : > { %v5346_v25 = vcombine.high %v1439_v20, %v1443_v21  ;;  %v5345_v31 = vcombine.low %v1439_v20, %v1443_v21 }
 0x161   : > { %4424 = vmatpush1.bf16.msra.mxu0 %v5279_v26  ;;  %4588 = vmatpush1.bf16.msra.mxu1 %v5281_v27  ;;  %v1446_v26 = vld [vmem:[%s6880_s4 + $0x680] sm:$0xff] }
 0x162   : > { %4425 = vmatprep.subr.bf16.mxu0 %v5288_v28  ;;  %4589 = vmatprep.subr.bf16.mxu1 %v5290_v29  ;;  %v1450_v27 = vld [vmem:[%s6880_s4 + $0x6a0] sm:$0xff]  ;;  %v1447_v28 = vld [vmem:[%s6880_s4 + $0x688] sm:$0xff] }
 0x163   : > { %v1451_v29 = vld [vmem:[%s6880_s4 + $0x6a8] sm:$0xff]  ;;  %v5352_v32 = vcombine.high %v1446_v26, %v1450_v27  ;;  %v5351_v38 = vcombine.low %v1446_v26, %v1450_v27  ;;  %v7044_v27 = vld [vmem:[%s7522_s0 + $0x10] sm:$0xff] }
 0x164   : > { %v5354_v33 = vcombine.high %v1447_v28, %v1451_v29  ;;  %v5353_v39 = vcombine.low %v1447_v28, %v1451_v29  ;;  %v1507_v26 = vld [vmem:[%s6880_s4 + $0x868] sm:$0xff] }
 0x165   : > { %4426 = vmatpush1.bf16.msra.mxu0 %v5287_v34  ;;  %4590 = vmatpush1.bf16.msra.mxu1 %v5289_v35  ;;  %v1454_v34 = vld [vmem:[%s6880_s4 + $0x6c0] sm:$0xff] }
 0x166   : > { %4427 = vmatprep.subr.bf16.mxu0 %v5296_v36  ;;  %4591 = vmatprep.subr.bf16.mxu1 %v5298_v37  ;;  %v1458_v35 = vld [vmem:[%s6880_s4 + $0x6e0] sm:$0xff]  ;;  %v1455_v36 = vld [vmem:[%s6880_s4 + $0x6c8] sm:$0xff] }
 0x167   : > { %v1459_v37 = vld [vmem:[%s6880_s4 + $0x6e8] sm:$0xff]  ;;  %v5360_v40 = vcombine.high %v1454_v34, %v1458_v35  ;;  %v5359_v46 = vcombine.low %v1454_v34, %v1458_v35 }
 0x168   : > { %v5362_v41 = vcombine.high %v1455_v36, %v1459_v37  ;;  %v5361_v47 = vcombine.low %v1455_v36, %v1459_v37  ;;  %v1511_v34 = vld [vmem:[%s6880_s4 + $0x888] sm:$0xff] }
 0x169   : > { %4428 = vmatpush1.bf16.msra.mxu0 %v5295_v42  ;;  %4592 = vmatpush1.bf16.msra.mxu1 %v5297_v43  ;;  %v1462_v42 = vld [vmem:[%s6880_s4 + $0x700] sm:$0xff]  ;;  %v1515_v35 = vld [vmem:[%s6880_s4 + $0x8a8] sm:$0xff] }
 0x16a   : > { %4429 = vmatprep.subr.bf16.mxu0 %v5304_v44  ;;  %4593 = vmatprep.subr.bf16.mxu1 %v5306_v45  ;;  %v1466_v43 = vld [vmem:[%s6880_s4 + $0x720] sm:$0xff]  ;;  %v1463_v44 = vld [vmem:[%s6880_s4 + $0x708] sm:$0xff] }
 0x16b   : > { %v1467_v45 = vld [vmem:[%s6880_s4 + $0x728] sm:$0xff]  ;;  %v5368_v48 = vcombine.high %v1462_v42, %v1466_v43  ;;  %v5367_v54 = vcombine.low %v1462_v42, %v1466_v43 }
 0x16c   : > { %v5370_v49 = vcombine.high %v1463_v44, %v1467_v45  ;;  %v5369_v55 = vcombine.low %v1463_v44, %v1467_v45  ;;  %v1519_v42 = vld [vmem:[%s6880_s4 + $0x8c8] sm:$0xff]  ;;  %v5417_v45 = vcombine.low %v1511_v34, %v1515_v35 }
 0x16d   : > { %4430 = vmatpush1.bf16.msra.mxu0 %v5303_v50  ;;  %4594 = vmatpush1.bf16.msra.mxu1 %v5305_v51  ;;  %v1470_v50 = vld [vmem:[%s6880_s4 + $0x740] sm:$0xff]  ;;  %v1523_v43 = vld [vmem:[%s6880_s4 + $0x8e8] sm:$0xff] }
 0x16e   : > { %4431 = vmatprep.subr.bf16.mxu0 %v5312_v52  ;;  %4595 = vmatprep.subr.bf16.mxu1 %v5314_v53  ;;  %v1474_v51 = vld [vmem:[%s6880_s4 + $0x760] sm:$0xff]  ;;  %v1471_v52 = vld [vmem:[%s6880_s4 + $0x748] sm:$0xff] }
 0x16f   : > { %v1475_v53 = vld [vmem:[%s6880_s4 + $0x768] sm:$0xff]  ;;  %v5376_v56 = vcombine.high %v1470_v50, %v1474_v51  ;;  %v5375_v62 = vcombine.low %v1470_v50, %v1474_v51 }
 0x170   : > { %v5378_v57 = vcombine.high %v1471_v52, %v1475_v53  ;;  %v5377_v63 = vcombine.low %v1471_v52, %v1475_v53  ;;  %v1527_v50 = vld [vmem:[%s6880_s4 + $0x908] sm:$0xff]  ;;  %v5425_v53 = vcombine.low %v1519_v42, %v1523_v43 }
 0x171   : > { %4432 = vmatpush1.bf16.msra.mxu0 %v5311_v58  ;;  %4596 = vmatpush1.bf16.msra.mxu1 %v5313_v59  ;;  %v1478_v58 = vld [vmem:[%s6880_s4 + $0x780] sm:$0xff]  ;;  %v1531_v51 = vld [vmem:[%s6880_s4 + $0x928] sm:$0xff] }
 0x172   : > { %4433 = vmatprep.subr.bf16.mxu0 %v5320_v60  ;;  %4597 = vmatprep.subr.bf16.mxu1 %v5322_v61  ;;  %v1482_v59 = vld [vmem:[%s6880_s4 + $0x7a0] sm:$0xff]  ;;  %v1479_v60 = vld [vmem:[%s6880_s4 + $0x788] sm:$0xff] }
 0x173   : > { %v1483_v61 = vld [vmem:[%s6880_s4 + $0x7a8] sm:$0xff]  ;;  %v5384_v2 = vcombine.high %v1478_v58, %v1482_v59  ;;  %v5383_v8 = vcombine.low %v1478_v58, %v1482_v59 }
 0x174   : > { %v5386_v3 = vcombine.high %v1479_v60, %v1483_v61  ;;  %v5385_v9 = vcombine.low %v1479_v60, %v1483_v61  ;;  %v1535_v58 = vld [vmem:[%s6880_s4 + $0x948] sm:$0xff]  ;;  %v5433_v61 = vcombine.low %v1527_v50, %v1531_v51 }
 0x175   : > { %4434 = vmatpush1.bf16.msra.mxu0 %v5319_v4  ;;  %4598 = vmatpush1.bf16.msra.mxu1 %v5321_v5  ;;  %v1486_v4 = vld [vmem:[%s6880_s4 + $0x7c0] sm:$0xff]  ;;  %v1539_v59 = vld [vmem:[%s6880_s4 + $0x968] sm:$0xff] }
 0x176   : > { %4435 = vmatprep.subr.bf16.mxu0 %v5328_v6  ;;  %4599 = vmatprep.subr.bf16.mxu1 %v5330_v7  ;;  %v1490_v5 = vld [vmem:[%s6880_s4 + $0x7e0] sm:$0xff]  ;;  %v1487_v6 = vld [vmem:[%s6880_s4 + $0x7c8] sm:$0xff] }
 0x177   : > { %v1491_v7 = vld [vmem:[%s6880_s4 + $0x7e8] sm:$0xff]  ;;  %v5392_v10 = vcombine.high %v1486_v4, %v1490_v5  ;;  %v5391_v18 = vcombine.low %v1486_v4, %v1490_v5 }
 0x178   : > { %v5394_v11 = vcombine.high %v1487_v6, %v1491_v7  ;;  %v5393_v19 = vcombine.low %v1487_v6, %v1491_v7  ;;  %v1543_v4 = vld [vmem:[%s6880_s4 + $0x988] sm:$0xff]  ;;  %v5441_v7 = vcombine.low %v1535_v58, %v1539_v59 }
 0x179   : > { %4436 = vmatpush1.bf16.msra.mxu0 %v5327_v12  ;;  %4600 = vmatpush1.bf16.msra.mxu1 %v5329_v13  ;;  %v1494_v12 = vld [vmem:[%s6880_s4 + $0x800] sm:$0xff]  ;;  %v1547_v5 = vld [vmem:[%s6880_s4 + $0x9a8] sm:$0xff] }
 0x17a   : > { %4437 = vmatprep.subr.bf16.mxu0 %v5336_v15  ;;  %4601 = vmatprep.subr.bf16.mxu1 %v5338_v16  ;;  %v1498_v13 = vld [vmem:[%s6880_s4 + $0x820] sm:$0xff]  ;;  %v1495_v15 = vld [vmem:[%s6880_s4 + $0x808] sm:$0xff] }
 0x17b   : > { %v1499_v16 = vld [vmem:[%s6880_s4 + $0x828] sm:$0xff]  ;;  %v5400_v20 = vcombine.high %v1494_v12, %v1498_v13  ;;  %v5399_v28 = vcombine.low %v1494_v12, %v1498_v13 }
 0x17c   : > { %v5402_v21 = vcombine.high %v1495_v15, %v1499_v16  ;;  %v5401_v29 = vcombine.low %v1495_v15, %v1499_v16  ;;  %v1551_v12 = vld [vmem:[%s6880_s4 + $0x9c8] sm:$0xff]  ;;  %v5449_v16 = vcombine.low %v1543_v4, %v1547_v5 }
 0x17d   : > { %4438 = vmatpush1.bf16.msra.mxu0 %v5335_v0  ;;  %4602 = vmatpush1.bf16.msra.mxu1 %v5337_v22  ;;  %v1502_v0 = vld [vmem:[%s6880_s4 + $0x840] sm:$0xff]  ;;  %v1555_v13 = vld [vmem:[%s6880_s4 + $0x9e8] sm:$0xff] }
 0x17e   : > { %4439 = vmatprep.subr.bf16.mxu0 %v5344_v24  ;;  %4603 = vmatprep.subr.bf16.mxu1 %v5346_v25  ;;  %v1506_v22 = vld [vmem:[%s6880_s4 + $0x860] sm:$0xff]  ;;  %v7037_v24 = vcombine.low %v6963_v17, %v6963_v17  ;;  %v1503_v25 = vld [vmem:[%s6880_s4 + $0x848] sm:$0xff] }
 0x17f   : > { %v1510_v17 = vld [vmem:[%s6880_s4 + $0x880] sm:$0xff]  ;;  %v5407_v36 = vcombine.low %v1502_v0, %v1506_v22  ;;  %v5409_v37 = vcombine.low %v1503_v25, %v1507_v26 }
 0x181   : > { %4440 = vmatpush1.bf16.msra.mxu0 %v5343_v30  ;;  %4604 = vmatpush1.bf16.msra.mxu1 %v5345_v31  ;;  %v5408_v30 = vcombine.high %v1502_v0, %v1506_v22  ;;  %v5410_v31 = vcombine.high %v1503_v25, %v1507_v26  ;;  %v1559_v0 = vld [vmem:[%s6880_s4 + $0xa08] sm:$0xff]  ;;  %v5457_v26 = vcombine.low %v1551_v12, %v1555_v13 }
 0x182   : > { %4441 = vmatprep.subr.bf16.mxu0 %v5352_v32  ;;  %4605 = vmatprep.subr.bf16.mxu1 %v5354_v33  ;;  %v1514_v32 = vld [vmem:[%s6880_s4 + $0x8a0] sm:$0xff]  ;;  %v7050_v33 = vcombine.high %v7044_v27, %v7044_v27  ;;  %v1563_v22 = vld [vmem:[%s6880_s4 + $0xa28] sm:$0xff] }
 0x183   : > { %v5415_v44 = vcombine.low %v1510_v17, %v1514_v32 }
 0x185   : > { %4442 = vmatpush1.bf16.msra.mxu0 %v5351_v38  ;;  %4606 = vmatpush1.bf16.msra.mxu1 %v5353_v39  ;;  %v5416_v38 = vcombine.high %v1510_v17, %v1514_v32  ;;  %v5418_v39 = vcombine.high %v1511_v34, %v1515_v35  ;;  %v1567_v17 = vld [vmem:[%s6880_s4 + $0xa48] sm:$0xff]  ;;  %v5465_v35 = vcombine.low %v1559_v0, %v1563_v22 }
 0x186   : > { %4443 = vmatprep.subr.bf16.mxu0 %v5360_v40  ;;  %4607 = vmatprep.subr.bf16.mxu1 %v5362_v41  ;;  %v1518_v40 = vld [vmem:[%s6880_s4 + $0x8c0] sm:$0xff]  ;;  %v1571_v32 = vld [vmem:[%s6880_s4 + $0xa68] sm:$0xff] }
 0x187   : > { %v1522_v41 = vld [vmem:[%s6880_s4 + $0x8e0] sm:$0xff] }
 0x188   : > { %v5423_v52 = vcombine.low %v1518_v40, %v1522_v41 }
 0x189   : > { %4444 = vmatpush1.bf16.msra.mxu0 %v5359_v46  ;;  %4608 = vmatpush1.bf16.msra.mxu1 %v5361_v47  ;;  %v5424_v46 = vcombine.high %v1518_v40, %v1522_v41  ;;  %v5426_v47 = vcombine.high %v1519_v42, %v1523_v43  ;;  %v1575_v40 = vld [vmem:[%s6880_s4 + $0xa88] sm:$0xff]  ;;  %v5473_v43 = vcombine.low %v1567_v17, %v1571_v32 }
 0x18a   : > { %4445 = vmatprep.subr.bf16.mxu0 %v5368_v48  ;;  %4609 = vmatprep.subr.bf16.mxu1 %v5370_v49  ;;  %v1526_v48 = vld [vmem:[%s6880_s4 + $0x900] sm:$0xff]  ;;  %v1579_v41 = vld [vmem:[%s6880_s4 + $0xaa8] sm:$0xff] }
 0x18b   : > { %v1530_v49 = vld [vmem:[%s6880_s4 + $0x920] sm:$0xff] }
 0x18c   : > { %v5431_v60 = vcombine.low %v1526_v48, %v1530_v49 }
 0x18d   : > { %4446 = vmatpush1.bf16.msra.mxu0 %v5367_v54  ;;  %4610 = vmatpush1.bf16.msra.mxu1 %v5369_v55  ;;  %v5432_v54 = vcombine.high %v1526_v48, %v1530_v49  ;;  %v5434_v55 = vcombine.high %v1527_v50, %v1531_v51  ;;  %v1583_v48 = vld [vmem:[%s6880_s4 + $0xac8] sm:$0xff]  ;;  %v5481_v51 = vcombine.low %v1575_v40, %v1579_v41 }
 0x18e   : > { %4447 = vmatprep.subr.bf16.mxu0 %v5376_v56  ;;  %4611 = vmatprep.subr.bf16.mxu1 %v5378_v57  ;;  %v1534_v56 = vld [vmem:[%s6880_s4 + $0x940] sm:$0xff]  ;;  %v1587_v49 = vld [vmem:[%s6880_s4 + $0xae8] sm:$0xff] }
 0x18f   : > { %v1538_v57 = vld [vmem:[%s6880_s4 + $0x960] sm:$0xff] }
 0x190   : > { %v5439_v6 = vcombine.low %v1534_v56, %v1538_v57 }
 0x191   : > { %4448 = vmatpush1.bf16.msra.mxu0 %v5375_v62  ;;  %4612 = vmatpush1.bf16.msra.mxu1 %v5377_v63  ;;  %v5440_v62 = vcombine.high %v1534_v56, %v1538_v57  ;;  %v5442_v63 = vcombine.high %v1535_v58, %v1539_v59  ;;  %v1591_v56 = vld [vmem:[%s6880_s4 + $0xb08] sm:$0xff]  ;;  %v5489_v59 = vcombine.low %v1583_v48, %v1587_v49 }
 0x192   : > { %4449 = vmatprep.subr.bf16.mxu0 %v5384_v2  ;;  %4613 = vmatprep.subr.bf16.mxu1 %v5386_v3  ;;  %v1542_v2 = vld [vmem:[%s6880_s4 + $0x980] sm:$0xff]  ;;  %v1595_v57 = vld [vmem:[%s6880_s4 + $0xb28] sm:$0xff] }
 0x193   : > { %v1546_v3 = vld [vmem:[%s6880_s4 + $0x9a0] sm:$0xff] }
 0x194   : > { %v5447_v15 = vcombine.low %v1542_v2, %v1546_v3 }
 0x195   : > { %4450 = vmatpush1.bf16.msra.mxu0 %v5383_v8  ;;  %4614 = vmatpush1.bf16.msra.mxu1 %v5385_v9  ;;  %v5448_v8 = vcombine.high %v1542_v2, %v1546_v3  ;;  %v5450_v9 = vcombine.high %v1543_v4, %v1547_v5  ;;  %v1599_v2 = vld [vmem:[%s6880_s4 + $0xb48] sm:$0xff]  ;;  %v5497_v5 = vcombine.low %v1591_v56, %v1595_v57 }
 0x196   : > { %4451 = vmatprep.subr.bf16.mxu0 %v5392_v10  ;;  %4615 = vmatprep.subr.bf16.mxu1 %v5394_v11  ;;  %v1550_v10 = vld [vmem:[%s6880_s4 + $0x9c0] sm:$0xff]  ;;  %v1603_v3 = vld [vmem:[%s6880_s4 + $0xb68] sm:$0xff] }
 0x197   : > { %v1554_v11 = vld [vmem:[%s6880_s4 + $0x9e0] sm:$0xff] }
 0x198   : > { %v5455_v25 = vcombine.low %v1550_v10, %v1554_v11 }
 0x199   : > { %4452 = vmatpush1.bf16.msra.mxu0 %v5391_v18  ;;  %4616 = vmatpush1.bf16.msra.mxu1 %v5393_v19  ;;  %v5456_v18 = vcombine.high %v1550_v10, %v1554_v11  ;;  %v5458_v19 = vcombine.high %v1551_v12, %v1555_v13  ;;  %v1607_v10 = vld [vmem:[%s6880_s4 + $0xb88] sm:$0xff]  ;;  %v5505_v13 = vcombine.low %v1599_v2, %v1603_v3 }
 0x19a   : > { %4462 = vmatprep.subr.bf16.mxu0 %v5400_v20  ;;  %4626 = vmatprep.subr.bf16.mxu1 %v5402_v21  ;;  %v1558_v20 = vld [vmem:[%s6880_s4 + $0xa00] sm:$0xff]  ;;  %v1611_v11 = vld [vmem:[%s6880_s4 + $0xba8] sm:$0xff] }
 0x19b   : > { %v1562_v21 = vld [vmem:[%s6880_s4 + $0xa20] sm:$0xff] }
 0x19c   : > { %4454 = vmatmul.mubr.bf16.vlgmr.msra.gmra.mrb[0].mxu0 %v7037_v24  ;;  %4618 = vmatmul.mubr.bf16.vlgmr.msra.gmra.mrb[0].mxu1 %v7037_v24  ;;  %v5463_v34 = vcombine.low %v1558_v20, %v1562_v21 }
 0x19d   : > { %4463 = vmatpush1.bf16.msra.mxu0 %v5399_v28  ;;  %4627 = vmatpush1.bf16.msra.mxu1 %v5401_v29  ;;  %v5464_v28 = vcombine.high %v1558_v20, %v1562_v21  ;;  %v5466_v29 = vcombine.high %v1559_v0, %v1563_v22  ;;  %v1615_v20 = vld [vmem:[%s6880_s4 + $0xbc8] sm:$0xff]  ;;  %v5513_v22 = vcombine.low %v1607_v10, %v1611_v11 }
 0x19e   : > { %4464 = vmatprep.subr.bf16.mxu0 %v5408_v30  ;;  %4628 = vmatprep.subr.bf16.mxu1 %v5410_v31  ;;  %v1566_v30 = vld [vmem:[%s6880_s4 + $0xa40] sm:$0xff]  ;;  %v1619_v21 = vld [vmem:[%s6880_s4 + $0xbe8] sm:$0xff] }
 0x19f   : > { %4494 = vmatprep.mubr.bf16.mxu0 %v7050_v33  ;;  %4658 = vmatprep.mubr.bf16.mxu1 %v7050_v33  ;;  %v1570_v31 = vld [vmem:[%s6880_s4 + $0xa60] sm:$0xff] }
 0x1a0   : > { %v5471_v42 = vcombine.low %v1566_v30, %v1570_v31 }
 0x1a1   : > { %4465 = vmatpush1.bf16.msra.mxu0 %v5407_v36  ;;  %4629 = vmatpush1.bf16.msra.mxu1 %v5409_v37  ;;  %v5472_v36 = vcombine.high %v1566_v30, %v1570_v31  ;;  %v5474_v37 = vcombine.high %v1567_v17, %v1571_v32  ;;  %v1623_v30 = vld [vmem:[%s6880_s4 + $0xc08] sm:$0xff]  ;;  %v5521_v32 = vcombine.low %v1615_v20, %v1619_v21 }
 0x1a2   : > { %4466 = vmatprep.subr.bf16.mxu0 %v5416_v38  ;;  %4630 = vmatprep.subr.bf16.mxu1 %v5418_v39  ;;  %v1574_v38 = vld [vmem:[%s6880_s4 + $0xa80] sm:$0xff]  ;;  %v1627_v31 = vld [vmem:[%s6880_s4 + $0xc28] sm:$0xff] }
 0x1a3   : > { %v1578_v39 = vld [vmem:[%s6880_s4 + $0xaa0] sm:$0xff] }
 0x1a4   : > { %v5479_v50 = vcombine.low %v1574_v38, %v1578_v39 }
 0x1a5   : > { %4467 = vmatpush1.bf16.msra.mxu0 %v5415_v44  ;;  %4631 = vmatpush1.bf16.msra.mxu1 %v5417_v45  ;;  %v5480_v44 = vcombine.high %v1574_v38, %v1578_v39  ;;  %v5482_v45 = vcombine.high %v1575_v40, %v1579_v41  ;;  %v7118_v38 = vcombine.low %v7044_v27, %v7044_v27  ;;  %v1631_v39 = vld [vmem:[%s6880_s4 + $0xc48] sm:$0xff]  ;;  %v7125_v41 = vld [vmem:[%s7522_s0 + $0x18] sm:$0xff]  ;;  %v1638_v27 = vld [vmem:[%s6880_s4 + $0xc80] sm:$0xff] }
 0x1a6   : > { %4468 = vmatprep.subr.bf16.mxu0 %v5424_v46  ;;  %4632 = vmatprep.subr.bf16.mxu1 %v5426_v47  ;;  %v1582_v46 = vld [vmem:[%s6880_s4 + $0xac0] sm:$0xff]  ;;  %v1635_v40 = vld [vmem:[%s6880_s4 + $0xc68] sm:$0xff] }
 0x1a7   : > { %v1586_v47 = vld [vmem:[%s6880_s4 + $0xae0] sm:$0xff] }
 0x1a8   : > { %v5487_v58 = vcombine.low %v1582_v46, %v1586_v47 }
 0x1a9   : > { %4469 = vmatpush1.bf16.msra.mxu0 %v5423_v52  ;;  %4633 = vmatpush1.bf16.msra.mxu1 %v5425_v53  ;;  %v5488_v52 = vcombine.high %v1582_v46, %v1586_v47  ;;  %v5490_v53 = vcombine.high %v1583_v48, %v1587_v49  ;;  %v1642_v46 = vld [vmem:[%s6880_s4 + $0xca0] sm:$0xff]  ;;  %v7131_v47 = vcombine.high %v7125_v41, %v7125_v41  ;;  %v1639_v48 = vld [vmem:[%s6880_s4 + $0xc88] sm:$0xff] }
 0x1aa   : > { %4470 = vmatprep.subr.bf16.mxu0 %v5432_v54  ;;  %4634 = vmatprep.subr.bf16.mxu1 %v5434_v55  ;;  %v1590_v54 = vld [vmem:[%s6880_s4 + $0xb00] sm:$0xff]  ;;  %v1643_v49 = vld [vmem:[%s6880_s4 + $0xca8] sm:$0xff] }
 0x1ab   : > { %v1594_v55 = vld [vmem:[%s6880_s4 + $0xb20] sm:$0xff] }
 0x1ac   : > { %v5495_v4 = vcombine.low %v1590_v54, %v1594_v55 }
 0x1ad   : > { %4471 = vmatpush1.bf16.msra.mxu0 %v5431_v60  ;;  %4635 = vmatpush1.bf16.msra.mxu1 %v5433_v61  ;;  %v5496_v60 = vcombine.high %v1590_v54, %v1594_v55  ;;  %v5498_v61 = vcombine.high %v1591_v56, %v1595_v57  ;;  %v1646_v54 = vld [vmem:[%s6880_s4 + $0xcc0] sm:$0xff]  ;;  %v1647_v56 = vld [vmem:[%s6880_s4 + $0xcc8] sm:$0xff] }
 0x1ae   : > { %4472 = vmatprep.subr.bf16.mxu0 %v5440_v62  ;;  %4636 = vmatprep.subr.bf16.mxu1 %v5442_v63  ;;  %v1598_v62 = vld [vmem:[%s6880_s4 + $0xb40] sm:$0xff]  ;;  %v1651_v57 = vld [vmem:[%s6880_s4 + $0xce8] sm:$0xff] }
 0x1af   : > { %v1602_v63 = vld [vmem:[%s6880_s4 + $0xb60] sm:$0xff] }
 0x1b0   : > { %v5503_v12 = vcombine.low %v1598_v62, %v1602_v63  ;;  %v1650_v55 = vld [vmem:[%s6880_s4 + $0xce0] sm:$0xff] }
 0x1b1   : > { %4473 = vmatpush1.bf16.msra.mxu0 %v5439_v6  ;;  %4637 = vmatpush1.bf16.msra.mxu1 %v5441_v7  ;;  %v5504_v6 = vcombine.high %v1598_v62, %v1602_v63  ;;  %v5506_v7 = vcombine.high %v1599_v2, %v1603_v3  ;;  %v1654_v62 = vld [vmem:[%s6880_s4 + $0xd00] sm:$0xff]  ;;  %v1655_v2 = vld [vmem:[%s6880_s4 + $0xd08] sm:$0xff] }
 0x1b2   : > { %4474 = vmatprep.subr.bf16.mxu0 %v5448_v8  ;;  %4638 = vmatprep.subr.bf16.mxu1 %v5450_v9  ;;  %v1606_v8 = vld [vmem:[%s6880_s4 + $0xb80] sm:$0xff]  ;;  %v1659_v3 = vld [vmem:[%s6880_s4 + $0xd28] sm:$0xff] }
 0x1b3   : > { %v1610_v9 = vld [vmem:[%s6880_s4 + $0xba0] sm:$0xff] }
 0x1b4   : > { %v5511_v0 = vcombine.low %v1606_v8, %v1610_v9  ;;  %v1658_v63 = vld [vmem:[%s6880_s4 + $0xd20] sm:$0xff] }
 0x1b5   : > { %4475 = vmatpush1.bf16.msra.mxu0 %v5447_v15  ;;  %4639 = vmatpush1.bf16.msra.mxu1 %v5449_v16  ;;  %v5512_v15 = vcombine.high %v1606_v8, %v1610_v9  ;;  %v5514_v16 = vcombine.high %v1607_v10, %v1611_v11  ;;  %v1662_v8 = vld [vmem:[%s6880_s4 + $0xd40] sm:$0xff]  ;;  %v1663_v10 = vld [vmem:[%s6880_s4 + $0xd48] sm:$0xff] }
 0x1b6   : > { %4476 = vmatprep.subr.bf16.mxu0 %v5456_v18  ;;  %4640 = vmatprep.subr.bf16.mxu1 %v5458_v19  ;;  %v1614_v18 = vld [vmem:[%s6880_s4 + $0xbc0] sm:$0xff]  ;;  %v1667_v11 = vld [vmem:[%s6880_s4 + $0xd68] sm:$0xff] }
 0x1b7   : > { %v1618_v19 = vld [vmem:[%s6880_s4 + $0xbe0] sm:$0xff] }
 0x1b8   : > { %v5519_v17 = vcombine.low %v1614_v18, %v1618_v19  ;;  %v1666_v9 = vld [vmem:[%s6880_s4 + $0xd60] sm:$0xff] }
 0x1b9   : > { %4477 = vmatpush1.bf16.msra.mxu0 %v5455_v25  ;;  %4641 = vmatpush1.bf16.msra.mxu1 %v5457_v26  ;;  %v5520_v25 = vcombine.high %v1614_v18, %v1618_v19  ;;  %v5522_v26 = vcombine.high %v1615_v20, %v1619_v21  ;;  %v1670_v18 = vld [vmem:[%s6880_s4 + $0xd80] sm:$0xff]  ;;  %v1671_v20 = vld [vmem:[%s6880_s4 + $0xd88] sm:$0xff] }
 0x1ba   : > { %4478 = vmatprep.subr.bf16.mxu0 %v5464_v28  ;;  %4642 = vmatprep.subr.bf16.mxu1 %v5466_v29  ;;  %v1622_v28 = vld [vmem:[%s6880_s4 + $0xc00] sm:$0xff]  ;;  %v1675_v21 = vld [vmem:[%s6880_s4 + $0xda8] sm:$0xff] }
 0x1bb   : > { %v1626_v29 = vld [vmem:[%s6880_s4 + $0xc20] sm:$0xff] }
 0x1bc   : > { %v1674_v19 = vld [vmem:[%s6880_s4 + $0xda0] sm:$0xff] }
 0x1bd   : > { %4479 = vmatpush1.bf16.msra.mxu0 %v5463_v34  ;;  %4643 = vmatpush1.bf16.msra.mxu1 %v5465_v35  ;;  %v5528_v34 = vcombine.high %v1622_v28, %v1626_v29  ;;  %v5530_v35 = vcombine.high %v1623_v30, %v1627_v31 }
 0x1be   : > { %4480 = vmatprep.subr.bf16.mxu0 %v5472_v36  ;;  %4644 = vmatprep.subr.bf16.mxu1 %v5474_v37  ;;  %v1630_v36 = vld [vmem:[%s6880_s4 + $0xc40] sm:$0xff] }
 0x1bf   : > { %v1634_v37 = vld [vmem:[%s6880_s4 + $0xc60] sm:$0xff] }
 0x1c1   : > { %4481 = vmatpush1.bf16.msra.mxu0 %v5471_v42  ;;  %4645 = vmatpush1.bf16.msra.mxu1 %v5473_v43  ;;  %v5527_v42 = vcombine.low %v1622_v28, %v1626_v29  ;;  %v5529_v43 = vcombine.low %v1623_v30, %v1627_v31  ;;  %v1678_v28 = vld [vmem:[%s6880_s4 + $0xdc0] sm:$0xff]  ;;  %v1679_v30 = vld [vmem:[%s6880_s4 + $0xdc8] sm:$0xff] }
 0x1c2   : > { %4482 = vmatprep.subr.bf16.mxu0 %v5480_v44  ;;  %4646 = vmatprep.subr.bf16.mxu1 %v5482_v45  ;;  %v5536_v44 = vcombine.high %v1630_v36, %v1634_v37  ;;  %v5538_v45 = vcombine.high %v1631_v39, %v1635_v40  ;;  %v1682_v29 = vld [vmem:[%s6880_s4 + $0xde0] sm:$0xff]  ;;  %v1683_v31 = vld [vmem:[%s6880_s4 + $0xde8] sm:$0xff] }
 0x1c5   : > { %4483 = vmatpush1.bf16.msra.mxu0 %v5479_v50  ;;  %4647 = vmatpush1.bf16.msra.mxu1 %v5481_v51  ;;  %v5535_v50 = vcombine.low %v1630_v36, %v1634_v37  ;;  %v5537_v51 = vcombine.low %v1631_v39, %v1635_v40  ;;  %v1686_v36 = vld [vmem:[%s6880_s4 + $0xe00] sm:$0xff]  ;;  %v1687_v39 = vld [vmem:[%s6880_s4 + $0xe08] sm:$0xff] }
 0x1c6   : > { %4484 = vmatprep.subr.bf16.mxu0 %v5488_v52  ;;  %4648 = vmatprep.subr.bf16.mxu1 %v5490_v53  ;;  %v5544_v52 = vcombine.high %v1638_v27, %v1642_v46  ;;  %v5546_v53 = vcombine.high %v1639_v48, %v1643_v49  ;;  %v1690_v37 = vld [vmem:[%s6880_s4 + $0xe20] sm:$0xff]  ;;  %v1691_v40 = vld [vmem:[%s6880_s4 + $0xe28] sm:$0xff] }
 0x1c9   : > { %4485 = vmatpush1.bf16.msra.mxu0 %v5487_v58  ;;  %4649 = vmatpush1.bf16.msra.mxu1 %v5489_v59  ;;  %v5543_v58 = vcombine.low %v1638_v27, %v1642_v46  ;;  %v5545_v59 = vcombine.low %v1639_v48, %v1643_v49  ;;  %v1694_v27 = vld [vmem:[%s6880_s4 + $0xe40] sm:$0xff]  ;;  %v1695_v48 = vld [vmem:[%s6880_s4 + $0xe48] sm:$0xff] }
 0x1ca   : > { %4486 = vmatprep.subr.bf16.mxu0 %v5496_v60  ;;  %4650 = vmatprep.subr.bf16.mxu1 %v5498_v61  ;;  %v5552_v60 = vcombine.high %v1646_v54, %v1650_v55  ;;  %v5554_v61 = vcombine.high %v1647_v56, %v1651_v57  ;;  %v1698_v46 = vld [vmem:[%s6880_s4 + $0xe60] sm:$0xff]  ;;  %v1699_v49 = vld [vmem:[%s6880_s4 + $0xe68] sm:$0xff] }
 0x1cd   : > { %4487 = vmatpush1.bf16.msra.mxu0 %v5495_v4  ;;  %4651 = vmatpush1.bf16.msra.mxu1 %v5497_v5  ;;  %v5551_v4 = vcombine.low %v1646_v54, %v1650_v55  ;;  %v5553_v5 = vcombine.low %v1647_v56, %v1651_v57  ;;  %v1702_v54 = vld [vmem:[%s6880_s4 + $0xe80] sm:$0xff]  ;;  %v1703_v56 = vld [vmem:[%s6880_s4 + $0xe88] sm:$0xff] }
 0x1ce   : > { %4488 = vmatprep.subr.bf16.mxu0 %v5504_v6  ;;  %4652 = vmatprep.subr.bf16.mxu1 %v5506_v7  ;;  %v5560_v6 = vcombine.high %v1654_v62, %v1658_v63  ;;  %v5562_v7 = vcombine.high %v1655_v2, %v1659_v3  ;;  %v1706_v55 = vld [vmem:[%s6880_s4 + $0xea0] sm:$0xff]  ;;  %v1707_v57 = vld [vmem:[%s6880_s4 + $0xea8] sm:$0xff] }
 0x1d1   : > { %4489 = vmatpush1.bf16.msra.mxu0 %v5503_v12  ;;  %4653 = vmatpush1.bf16.msra.mxu1 %v5505_v13  ;;  %v5559_v12 = vcombine.low %v1654_v62, %v1658_v63  ;;  %v5561_v13 = vcombine.low %v1655_v2, %v1659_v3  ;;  %v1710_v62 = vld [vmem:[%s6880_s4 + $0xec0] sm:$0xff]  ;;  %v1711_v2 = vld [vmem:[%s6880_s4 + $0xec8] sm:$0xff] }
 0x1d2   : > { %4490 = vmatprep.subr.bf16.mxu0 %v5512_v15  ;;  %4654 = vmatprep.subr.bf16.mxu1 %v5514_v16  ;;  %v5568_v15 = vcombine.high %v1662_v8, %v1666_v9  ;;  %v5570_v16 = vcombine.high %v1663_v10, %v1667_v11  ;;  %v1714_v63 = vld [vmem:[%s6880_s4 + $0xee0] sm:$0xff]  ;;  %v1715_v3 = vld [vmem:[%s6880_s4 + $0xee8] sm:$0xff] }
 0x1d5   : > { %4491 = vmatpush1.bf16.msra.mxu0 %v5511_v0  ;;  %4655 = vmatpush1.bf16.msra.mxu1 %v5513_v22  ;;  %v5567_v0 = vcombine.low %v1662_v8, %v1666_v9  ;;  %v5569_v22 = vcombine.low %v1663_v10, %v1667_v11  ;;  %v1718_v8 = vld [vmem:[%s6880_s4 + $0xf00] sm:$0xff]  ;;  %v1719_v10 = vld [vmem:[%s6880_s4 + $0xf08] sm:$0xff] }
 0x1d6   : > { %4492 = vmatprep.subr.bf16.mxu0 %v5520_v25  ;;  %4656 = vmatprep.subr.bf16.mxu1 %v5522_v26  ;;  %v5576_v25 = vcombine.high %v1670_v18, %v1674_v19  ;;  %v5578_v26 = vcombine.high %v1671_v20, %v1675_v21  ;;  %v1722_v9 = vld [vmem:[%s6880_s4 + $0xf20] sm:$0xff]  ;;  %v1723_v11 = vld [vmem:[%s6880_s4 + $0xf28] sm:$0xff] }
 0x1d9   : > { %4493 = vmatpush1.bf16.msra.mxu0 %v5519_v17  ;;  %4657 = vmatpush1.bf16.msra.mxu1 %v5521_v32  ;;  %v5575_v17 = vcombine.low %v1670_v18, %v1674_v19  ;;  %v5577_v32 = vcombine.low %v1671_v20, %v1675_v21  ;;  %v1726_v18 = vld [vmem:[%s6880_s4 + $0xf40] sm:$0xff]  ;;  %v1727_v20 = vld [vmem:[%s6880_s4 + $0xf48] sm:$0xff] }
 0x1da   : > { %4503 = vmatprep.subr.bf16.mxu0 %v5528_v34  ;;  %4667 = vmatprep.subr.bf16.mxu1 %v5530_v35  ;;  %v5584_v34 = vcombine.high %v1678_v28, %v1682_v29  ;;  %v5586_v35 = vcombine.high %v1679_v30, %v1683_v31  ;;  %v1730_v19 = vld [vmem:[%s6880_s4 + $0xf60] sm:$0xff]  ;;  %v1731_v21 = vld [vmem:[%s6880_s4 + $0xf68] sm:$0xff] }
 0x1dc   : > { %4495 = vmatmul.mubr.bf16.vlgmr.msra.gmra.mrb[0].mxu0 %v7118_v38  ;;  %4659 = vmatmul.mubr.bf16.vlgmr.msra.gmra.mrb[0].mxu1 %v7118_v38 }
 0x1dd   : > { %4504 = vmatpush1.bf16.msra.mxu0 %v5527_v42  ;;  %4668 = vmatpush1.bf16.msra.mxu1 %v5529_v43  ;;  %v5583_v42 = vcombine.low %v1678_v28, %v1682_v29  ;;  %v5585_v43 = vcombine.low %v1679_v30, %v1683_v31  ;;  %v1734_v28 = vld [vmem:[%s6880_s4 + $0xf80] sm:$0xff]  ;;  %v1735_v30 = vld [vmem:[%s6880_s4 + $0xf88] sm:$0xff] }
 0x1de   : > { %4505 = vmatprep.subr.bf16.mxu0 %v5536_v44  ;;  %4669 = vmatprep.subr.bf16.mxu1 %v5538_v45  ;;  %v5592_v44 = vcombine.high %v1686_v36, %v1690_v37  ;;  %v5594_v45 = vcombine.high %v1687_v39, %v1691_v40  ;;  %v1738_v29 = vld [vmem:[%s6880_s4 + $0xfa0] sm:$0xff]  ;;  %v1739_v31 = vld [vmem:[%s6880_s4 + $0xfa8] sm:$0xff] }
 0x1df   : > { %4535 = vmatprep.mubr.bf16.mxu0 %v7131_v47  ;;  %4699 = vmatprep.mubr.bf16.mxu1 %v7131_v47 }
 0x1e1   : > { %4506 = vmatpush1.bf16.msra.mxu0 %v5535_v50  ;;  %4670 = vmatpush1.bf16.msra.mxu1 %v5537_v51  ;;  %v5591_v50 = vcombine.low %v1686_v36, %v1690_v37  ;;  %v5593_v51 = vcombine.low %v1687_v39, %v1691_v40  ;;  %v1742_v36 = vld [vmem:[%s6880_s4 + $0xfc0] sm:$0xff]  ;;  %v1743_v39 = vld [vmem:[%s6880_s4 + $0xfc8] sm:$0xff] }
 0x1e2   : > { %4507 = vmatprep.subr.bf16.mxu0 %v5544_v52  ;;  %4671 = vmatprep.subr.bf16.mxu1 %v5546_v53  ;;  %v5600_v52 = vcombine.high %v1694_v27, %v1698_v46  ;;  %v5602_v53 = vcombine.high %v1695_v48, %v1699_v49  ;;  %v1746_v37 = vld [vmem:[%s6880_s4 + $0xfe0] sm:$0xff]  ;;  %v1747_v40 = vld [vmem:[%s6880_s4 + $0xfe8] sm:$0xff] }
 0x1e5   : > { %4508 = vmatpush1.bf16.msra.mxu0 %v5543_v58  ;;  %4672 = vmatpush1.bf16.msra.mxu1 %v5545_v59  ;;  %v5599_v58 = vcombine.low %v1694_v27, %v1698_v46  ;;  %v5601_v59 = vcombine.low %v1695_v48, %v1699_v49  ;;  %v1240_v27 = vld [vmem:[%s6880_s4 + $0x10] sm:$0xff]  ;;  %v1241_v48 = vld [vmem:[%s6880_s4 + $0x18] sm:$0xff] }
 0x1e6   : > { %4509 = vmatprep.subr.bf16.mxu0 %v5552_v60  ;;  %4673 = vmatprep.subr.bf16.mxu1 %v5554_v61  ;;  %v5608_v60 = vcombine.high %v1702_v54, %v1706_v55  ;;  %v5610_v61 = vcombine.high %v1703_v56, %v1707_v57  ;;  %v1244_v46 = vld [vmem:[%s6880_s4 + $0x30] sm:$0xff]  ;;  %v1245_v49 = vld [vmem:[%s6880_s4 + $0x38] sm:$0xff] }
 0x1e9   : > { %4510 = vmatpush1.bf16.msra.mxu0 %v5551_v4  ;;  %4674 = vmatpush1.bf16.msra.mxu1 %v5553_v5  ;;  %v5607_v4 = vcombine.low %v1702_v54, %v1706_v55  ;;  %v5609_v5 = vcombine.low %v1703_v56, %v1707_v57  ;;  %v1248_v54 = vld [vmem:[%s6880_s4 + $0x50] sm:$0xff]  ;;  %v7199_v56 = vcombine.low %v7125_v41, %v7125_v41  ;;  %v1249_v57 = vld [vmem:[%s6880_s4 + $0x58] sm:$0xff] }
 0x1ea   : > { %4511 = vmatprep.subr.bf16.mxu0 %v5560_v6  ;;  %4675 = vmatprep.subr.bf16.mxu1 %v5562_v7  ;;  %v5616_v6 = vcombine.high %v1710_v62, %v1714_v63  ;;  %v5618_v7 = vcombine.high %v1711_v2, %v1715_v3  ;;  %v1252_v55 = vld [vmem:[%s6880_s4 + $0x70] sm:$0xff]  ;;  %v1257_v41 = vld [vmem:[%s6880_s4 + $0x98] sm:$0xff] }
 0x1ed   : > { %4512 = vmatpush1.bf16.msra.mxu0 %v5559_v12  ;;  %4676 = vmatpush1.bf16.msra.mxu1 %v5561_v13  ;;  %v5615_v12 = vcombine.low %v1710_v62, %v1714_v63  ;;  %v5617_v13 = vcombine.low %v1711_v2, %v1715_v3  ;;  %v1256_v63 = vld [vmem:[%s6880_s4 + $0x90] sm:$0xff]  ;;  %v1261_v3 = vld [vmem:[%s6880_s4 + $0xb8] sm:$0xff] }
 0x1ee   : > { %4513 = vmatprep.subr.bf16.mxu0 %v5568_v15  ;;  %4677 = vmatprep.subr.bf16.mxu1 %v5570_v16  ;;  %v5624_v15 = vcombine.high %v1718_v8, %v1722_v9  ;;  %v5626_v16 = vcombine.high %v1719_v10, %v1723_v11  ;;  %v1260_v2 = vld [vmem:[%s6880_s4 + $0xb0] sm:$0xff] }
 0x1f1   : > { %4514 = vmatpush1.bf16.msra.mxu0 %v5567_v0  ;;  %4678 = vmatpush1.bf16.msra.mxu1 %v5569_v22  ;;  %v5623_v0 = vcombine.low %v1718_v8, %v1722_v9  ;;  %v5625_v22 = vcombine.low %v1719_v10, %v1723_v11  ;;  %v1264_v8 = vld [vmem:[%s6880_s4 + $0xd0] sm:$0xff]  ;;  %v1265_v10 = vld [vmem:[%s6880_s4 + $0xd8] sm:$0xff] }
 0x1f2   : > { %4515 = vmatprep.subr.bf16.mxu0 %v5576_v25  ;;  %4679 = vmatprep.subr.bf16.mxu1 %v5578_v26  ;;  %v5632_v25 = vcombine.high %v1726_v18, %v1730_v19  ;;  %v5634_v26 = vcombine.high %v1727_v20, %v1731_v21  ;;  %v1268_v9 = vld [vmem:[%s6880_s4 + $0xf0] sm:$0xff]  ;;  %v1269_v11 = vld [vmem:[%s6880_s4 + $0xf8] sm:$0xff] }
 0x1f5   : > { %4516 = vmatpush1.bf16.msra.mxu0 %v5575_v17  ;;  %4680 = vmatpush1.bf16.msra.mxu1 %v5577_v32  ;;  %v5631_v17 = vcombine.low %v1726_v18, %v1730_v19  ;;  %v5633_v32 = vcombine.low %v1727_v20, %v1731_v21  ;;  %v1272_v18 = vld [vmem:[%s6880_s4 + $0x110] sm:$0xff]  ;;  %v1273_v20 = vld [vmem:[%s6880_s4 + $0x118] sm:$0xff] }
 0x1f6   : > { %4517 = vmatprep.subr.bf16.mxu0 %v5584_v34  ;;  %4681 = vmatprep.subr.bf16.mxu1 %v5586_v35  ;;  %v5640_v34 = vcombine.high %v1734_v28, %v1738_v29  ;;  %v5642_v35 = vcombine.high %v1735_v30, %v1739_v31  ;;  %v1276_v19 = vld [vmem:[%s6880_s4 + $0x130] sm:$0xff]  ;;  %v1277_v21 = vld [vmem:[%s6880_s4 + $0x138] sm:$0xff] }
 0x1f9   : > { %4518 = vmatpush1.bf16.msra.mxu0 %v5583_v42  ;;  %4682 = vmatpush1.bf16.msra.mxu1 %v5585_v43  ;;  %v5639_v42 = vcombine.low %v1734_v28, %v1738_v29  ;;  %v5641_v43 = vcombine.low %v1735_v30, %v1739_v31  ;;  %v1284_v28 = vld [vmem:[%s6880_s4 + $0x170] sm:$0xff]  ;;  %v1281_v29 = vld [vmem:[%s6880_s4 + $0x158] sm:$0xff]  ;;  %v5179_v31 = vcombine.low %v1272_v18, %v1276_v19 }
 0x1fa   : > { %4519 = vmatprep.subr.bf16.mxu0 %v5592_v44  ;;  %4683 = vmatprep.subr.bf16.mxu1 %v5594_v45  ;;  %v5648_v44 = vcombine.high %v1742_v36, %v1746_v37  ;;  %v5650_v45 = vcombine.high %v1743_v39, %v1747_v40  ;;  %v1285_v30 = vld [vmem:[%s6880_s4 + $0x178] sm:$0xff] }
 0x1fd   : > { %4520 = vmatpush1.bf16.msra.mxu0 %v5591_v50  ;;  %4684 = vmatpush1.bf16.msra.mxu1 %v5593_v51  ;;  %v5647_v50 = vcombine.low %v1742_v36, %v1746_v37  ;;  %v5649_v51 = vcombine.low %v1743_v39, %v1747_v40  ;;  %v1292_v36 = vld [vmem:[%s6880_s4 + $0x1b0] sm:$0xff]  ;;  %v1289_v37 = vld [vmem:[%s6880_s4 + $0x198] sm:$0xff] }
 0x1fe   : > { %4521 = vmatprep.subr.bf16.mxu0 %v5600_v52  ;;  %4685 = vmatprep.subr.bf16.mxu1 %v5602_v53  ;;  %v5148_v52 = vcombine.high %v1240_v27, %v1244_v46  ;;  %v5150_v53 = vcombine.high %v1241_v48, %v1245_v49  ;;  %v1293_v39 = vld [vmem:[%s6880_s4 + $0x1b8] sm:$0xff] }
 0x201   : > { %4522 = vmatpush1.bf16.msra.mxu0 %v5599_v58  ;;  %4686 = vmatpush1.bf16.msra.mxu1 %v5601_v59  ;;  %v1253_v58 = vld [vmem:[%s6880_s4 + $0x78] sm:$0xff]  ;;  %v5147_v59 = vcombine.low %v1240_v27, %v1244_v46  ;;  %v1300_v27 = vld [vmem:[%s6880_s4 + $0x1f0] sm:$0xff] }
 0x202   : > { %4523 = vmatprep.subr.bf16.mxu0 %v5608_v60  ;;  %4687 = vmatprep.subr.bf16.mxu1 %v5610_v61  ;;  %v5149_v60 = vcombine.low %v1241_v48, %v1245_v49  ;;  %v5156_v61 = vcombine.high %v1248_v54, %v1252_v55  ;;  %v5158_v62 = vcombine.high %v1249_v57, %v1253_v58  ;;  %v1297_v46 = vld [vmem:[%s6880_s4 + $0x1d8] sm:$0xff] }
 0x203   : > { %v1301_v48 = vld [vmem:[%s6880_s4 + $0x1f8] sm:$0xff] }
 0x205   : > { %4524 = vmatpush1.bf16.msra.mxu0 %v5607_v4  ;;  %4688 = vmatpush1.bf16.msra.mxu1 %v5609_v5  ;;  %v5155_v4 = vcombine.low %v1248_v54, %v1252_v55  ;;  %v5157_v5 = vcombine.low %v1249_v57, %v1253_v58  ;;  %v1308_v54 = vld [vmem:[%s6880_s4 + $0x230] sm:$0xff]  ;;  %v1305_v55 = vld [vmem:[%s6880_s4 + $0x218] sm:$0xff] }
 0x206   : > { %4525 = vmatprep.subr.bf16.mxu0 %v5616_v6  ;;  %4689 = vmatprep.subr.bf16.mxu1 %v5618_v7  ;;  %v5164_v6 = vcombine.high %v1256_v63, %v1260_v2  ;;  %v5166_v7 = vcombine.high %v1257_v41, %v1261_v3  ;;  %v1309_v57 = vld [vmem:[%s6880_s4 + $0x238] sm:$0xff] }
 0x209   : > { %4526 = vmatpush1.bf16.msra.mxu0 %v5615_v12  ;;  %4690 = vmatpush1.bf16.msra.mxu1 %v5617_v13  ;;  %v5163_v12 = vcombine.low %v1256_v63, %v1260_v2  ;;  %v5165_v13 = vcombine.low %v1257_v41, %v1261_v3  ;;  %v1316_v63 = vld [vmem:[%s6880_s4 + $0x270] sm:$0xff]  ;;  %v1313_v2 = vld [vmem:[%s6880_s4 + $0x258] sm:$0xff] }
 0x20a   : > { %4527 = vmatprep.subr.bf16.mxu0 %v5624_v15  ;;  %4691 = vmatprep.subr.bf16.mxu1 %v5626_v16  ;;  %v5172_v15 = vcombine.high %v1264_v8, %v1268_v9  ;;  %v5174_v16 = vcombine.high %v1265_v10, %v1269_v11  ;;  %v1317_v41 = vld [vmem:[%s6880_s4 + $0x278] sm:$0xff] }
 0x20d   : > { %4528 = vmatpush1.bf16.msra.mxu0 %v5623_v0  ;;  %4692 = vmatpush1.bf16.msra.mxu1 %v5625_v22  ;;  %v5171_v0 = vcombine.low %v1264_v8, %v1268_v9  ;;  %v5180_v22 = vcombine.high %v1272_v18, %v1276_v19  ;;  %v1324_v8 = vld [vmem:[%s6880_s4 + $0x2b0] sm:$0xff]  ;;  %v1321_v9 = vld [vmem:[%s6880_s4 + $0x298] sm:$0xff] }
 0x20e   : > { %4529 = vmatprep.subr.bf16.mxu0 %v5632_v25  ;;  %4693 = vmatprep.subr.bf16.mxu1 %v5634_v26  ;;  %v5182_v25 = vcombine.high %v1273_v20, %v1277_v21  ;;  %v1280_v26 = vld [vmem:[%s6880_s4 + $0x150] sm:$0xff]  ;;  %v1329_v19 = vld [vmem:[%s6880_s4 + $0x2d8] sm:$0xff] }
 0x20f   : > { %v5187_v40 = vcombine.low %v1280_v26, %v1284_v28  ;;  %v1332_v18 = vld [vmem:[%s6880_s4 + $0x2f0] sm:$0xff] }
 0x211   : > { %4530 = vmatpush1.bf16.msra.mxu0 %v5631_v17  ;;  %4694 = vmatpush1.bf16.msra.mxu1 %v5633_v32  ;;  %v5181_v17 = vcombine.low %v1273_v20, %v1277_v21  ;;  %v5188_v32 = vcombine.high %v1280_v26, %v1284_v28  ;;  %v1333_v20 = vld [vmem:[%s6880_s4 + $0x2f8] sm:$0xff]  ;;  %v1340_v26 = vld [vmem:[%s6880_s4 + $0x330] sm:$0xff] }
 0x212   : > { %4531 = vmatprep.subr.bf16.mxu0 %v5640_v34  ;;  %4695 = vmatprep.subr.bf16.mxu1 %v5642_v35  ;;  %v5190_v34 = vcombine.high %v1281_v29, %v1285_v30  ;;  %v1288_v35 = vld [vmem:[%s6880_s4 + $0x190] sm:$0xff]  ;;  %v1337_v28 = vld [vmem:[%s6880_s4 + $0x318] sm:$0xff] }
 0x213   : > { %v5195_v49 = vcombine.low %v1288_v35, %v1292_v36 }
 0x215   : > { %4532 = vmatpush1.bf16.msra.mxu0 %v5639_v42  ;;  %4696 = vmatpush1.bf16.msra.mxu1 %v5641_v43  ;;  %v5189_v42 = vcombine.low %v1281_v29, %v1285_v30  ;;  %v5196_v43 = vcombine.high %v1288_v35, %v1292_v36  ;;  %v1341_v29 = vld [vmem:[%s6880_s4 + $0x338] sm:$0xff]  ;;  %v1348_v35 = vld [vmem:[%s6880_s4 + $0x370] sm:$0xff] }
 0x216   : > { %4533 = vmatprep.subr.bf16.mxu0 %v5648_v44  ;;  %4697 = vmatprep.subr.bf16.mxu1 %v5650_v45  ;;  %v5198_v44 = vcombine.high %v1289_v37, %v1293_v39  ;;  %v1296_v45 = vld [vmem:[%s6880_s4 + $0x1d0] sm:$0xff]  ;;  %v1345_v36 = vld [vmem:[%s6880_s4 + $0x358] sm:$0xff] }
 0x217   : > { %v5203_v58 = vcombine.low %v1296_v45, %v1300_v27 }
 0x219   : > { %4534 = vmatpush1.bf16.msra.mxu0 %v5647_v50  ;;  %4698 = vmatpush1.bf16.msra.mxu1 %v5649_v51  ;;  %v5197_v50 = vcombine.low %v1289_v37, %v1293_v39  ;;  %v5204_v51 = vcombine.high %v1296_v45, %v1300_v27  ;;  %v1349_v37 = vld [vmem:[%s6880_s4 + $0x378] sm:$0xff]  ;;  %v1356_v45 = vld [vmem:[%s6880_s4 + $0x3b0] sm:$0xff] }
 0x21a   : > { %4708 = vmatprep.subr.bf16.mxu0 %v5148_v52  ;;  %4872 = vmatprep.subr.bf16.mxu1 %v5150_v53  ;;  %v5206_v52 = vcombine.high %v1297_v46, %v1301_v48  ;;  %v1304_v53 = vld [vmem:[%s6880_s4 + $0x210] sm:$0xff]  ;;  %v1353_v27 = vld [vmem:[%s6880_s4 + $0x398] sm:$0xff] }
 0x21b   : > { %v5211_v3 = vcombine.low %v1304_v53, %v1308_v54 }
 0x21c   : > { %4536 = vmatmul.mubr.bf16.vlgmr.msra.gmra.mrb[0].mxu0 %v7199_v56  ;;  %4700 = vmatmul.mubr.bf16.vlgmr.msra.gmra.mrb[0].mxu1 %v7199_v56 }
 0x21d   : > { %4709 = vmatpush1.bf16.msra.mxu0 %v5147_v59  ;;  %4873 = vmatpush1.bf16.msra.mxu1 %v5149_v60  ;;  %v5205_v59 = vcombine.low %v1297_v46, %v1301_v48  ;;  %v5212_v60 = vcombine.high %v1304_v53, %v1308_v54  ;;  %v1357_v46 = vld [vmem:[%s6880_s4 + $0x3b8] sm:$0xff]  ;;  %v1364_v53 = vld [vmem:[%s6880_s4 + $0x3f0] sm:$0xff] }
 0x21e   : > { %4710 = vmatprep.subr.bf16.mxu0 %v5156_v61  ;;  %4874 = vmatprep.subr.bf16.mxu1 %v5158_v62  ;;  %v5214_v61 = vcombine.high %v1305_v55, %v1309_v57  ;;  %v1312_v62 = vld [vmem:[%s6880_s4 + $0x250] sm:$0xff]  ;;  %v1361_v54 = vld [vmem:[%s6880_s4 + $0x3d8] sm:$0xff] }
 0x21f   : > { %4740 = vmatprep.mubr.bf16.mxu0 %v6878_v1  ;;  %4904 = vmatprep.mubr.bf16.mxu1 %v6878_v1  ;;  %v5173_v1 = vcombine.low %v1265_v10, %v1269_v11  ;;  %v1325_v10 = vld [vmem:[%s6880_s4 + $0x2b8] sm:$0xff]  ;;  %v5219_v11 = vcombine.low %v1312_v62, %v1316_v63 }
 0x221   : > { %4711 = vmatpush1.bf16.msra.mxu0 %v5155_v4  ;;  %4875 = vmatpush1.bf16.msra.mxu1 %v5157_v5  ;;  %v5213_v4 = vcombine.low %v1305_v55, %v1309_v57  ;;  %v5220_v5 = vcombine.high %v1312_v62, %v1316_v63  ;;  %v1365_v55 = vld [vmem:[%s6880_s4 + $0x3f8] sm:$0xff]  ;;  %v1372_v62 = vld [vmem:[%s6880_s4 + $0x430] sm:$0xff] }
 0x222   : > { %4712 = vmatprep.subr.bf16.mxu0 %v5164_v6  ;;  %4876 = vmatprep.subr.bf16.mxu1 %v5166_v7  ;;  %v5222_v6 = vcombine.high %v1313_v2, %v1317_v41  ;;  %v1320_v7 = vld [vmem:[%s6880_s4 + $0x290] sm:$0xff]  ;;  %v1369_v63 = vld [vmem:[%s6880_s4 + $0x418] sm:$0xff] }
 0x223   : > { %v5227_v21 = vcombine.low %v1320_v7, %v1324_v8 }
 0x225   : > { %4713 = vmatpush1.bf16.msra.mxu0 %v5163_v12  ;;  %4877 = vmatpush1.bf16.msra.mxu1 %v5165_v13  ;;  %v5221_v12 = vcombine.low %v1313_v2, %v1317_v41  ;;  %v5228_v13 = vcombine.high %v1320_v7, %v1324_v8  ;;  %v1373_v2 = vld [vmem:[%s6880_s4 + $0x438] sm:$0xff]  ;;  %v1380_v7 = vld [vmem:[%s6880_s4 + $0x470] sm:$0xff] }
 0x226   : > { %4714 = vmatprep.subr.bf16.mxu0 %v5172_v15  ;;  %4878 = vmatprep.subr.bf16.mxu1 %v5174_v16  ;;  %v5230_v15 = vcombine.high %v1321_v9, %v1325_v10  ;;  %v1328_v16 = vld [vmem:[%s6880_s4 + $0x2d0] sm:$0xff]  ;;  %v1377_v8 = vld [vmem:[%s6880_s4 + $0x458] sm:$0xff] }
 0x227   : > { %v5235_v30 = vcombine.low %v1328_v16, %v1332_v18 }
 0x229   : > { %4715 = vmatpush1.bf16.msra.mxu0 %v5171_v0  ;;  %4879 = vmatpush1.bf16.msra.mxu1 %v5173_v1  ;;  %v5229_v0 = vcombine.low %v1321_v9, %v1325_v10  ;;  %v5236_v1 = vcombine.high %v1328_v16, %v1332_v18  ;;  %v1381_v9 = vld [vmem:[%s6880_s4 + $0x478] sm:$0xff]  ;;  %v1388_v16 = vld [vmem:[%s6880_s4 + $0x4b0] sm:$0xff] }
 0x22a   : > { %4716 = vmatprep.subr.bf16.mxu0 %v5180_v22  ;;  %4880 = vmatprep.subr.bf16.mxu1 %v5182_v25  ;;  %v5238_v22 = vcombine.high %v1329_v19, %v1333_v20  ;;  %v1336_v25 = vld [vmem:[%s6880_s4 + $0x310] sm:$0xff]  ;;  %v1385_v18 = vld [vmem:[%s6880_s4 + $0x498] sm:$0xff] }
 0x22b   : > { %v5243_v39 = vcombine.low %v1336_v25, %v1340_v26 }
 0x22d   : > { %4717 = vmatpush1.bf16.msra.mxu0 %v5179_v31  ;;  %4881 = vmatpush1.bf16.msra.mxu1 %v5181_v17  ;;  %v5237_v31 = vcombine.low %v1329_v19, %v1333_v20  ;;  %v5244_v17 = vcombine.high %v1336_v25, %v1340_v26  ;;  %v1389_v19 = vld [vmem:[%s6880_s4 + $0x4b8] sm:$0xff]  ;;  %v1396_v25 = vld [vmem:[%s6880_s4 + $0x4f0] sm:$0xff] }
 0x22e   : > { %4718 = vmatprep.subr.bf16.mxu0 %v5188_v32  ;;  %4882 = vmatprep.subr.bf16.mxu1 %v5190_v34  ;;  %v5246_v32 = vcombine.high %v1337_v28, %v1341_v29  ;;  %v1344_v34 = vld [vmem:[%s6880_s4 + $0x350] sm:$0xff]  ;;  %v1393_v26 = vld [vmem:[%s6880_s4 + $0x4d8] sm:$0xff] }
 0x22f   : > { %v5251_v48 = vcombine.low %v1344_v34, %v1348_v35 }
 0x231   : > { %4719 = vmatpush1.bf16.msra.mxu0 %v5187_v40  ;;  %4883 = vmatpush1.bf16.msra.mxu1 %v5189_v42  ;;  %v5245_v40 = vcombine.low %v1337_v28, %v1341_v29  ;;  %v5252_v42 = vcombine.high %v1344_v34, %v1348_v35  ;;  %v1397_v28 = vld [vmem:[%s6880_s4 + $0x4f8] sm:$0xff]  ;;  %v5293_v29 = vcombine.low %v1385_v18, %v1389_v19 }
 0x232   : > { %4720 = vmatprep.subr.bf16.mxu0 %v5196_v43  ;;  %4884 = vmatprep.subr.bf16.mxu1 %v5198_v44  ;;  %v5254_v43 = vcombine.high %v1345_v36, %v1349_v37  ;;  %v1352_v44 = vld [vmem:[%s6880_s4 + $0x390] sm:$0xff]  ;;  %v1401_v34 = vld [vmem:[%s6880_s4 + $0x518] sm:$0xff] }
 0x233   : > { %v5259_v57 = vcombine.low %v1352_v44, %v1356_v45  ;;  %v1405_v35 = vld [vmem:[%s6880_s4 + $0x538] sm:$0xff] }
 0x235   : > { %4721 = vmatpush1.bf16.msra.mxu0 %v5195_v49  ;;  %4885 = vmatpush1.bf16.msra.mxu1 %v5197_v50  ;;  %v5253_v49 = vcombine.low %v1345_v36, %v1349_v37  ;;  %v5260_v50 = vcombine.high %v1352_v44, %v1356_v45  ;;  %v1413_v44 = vld [vmem:[%s6880_s4 + $0x578] sm:$0xff] }
 0x236   : > { %4722 = vmatprep.subr.bf16.mxu0 %v5204_v51  ;;  %4886 = vmatprep.subr.bf16.mxu1 %v5206_v52  ;;  %v5262_v51 = vcombine.high %v1353_v27, %v1357_v46  ;;  %v1360_v52 = vld [vmem:[%s6880_s4 + $0x3d0] sm:$0xff] }
 0x237   : > { %v5267_v41 = vcombine.low %v1360_v52, %v1364_v53 }
 0x239   : > { %4723 = vmatpush1.bf16.msra.mxu0 %v5203_v58  ;;  %4887 = vmatpush1.bf16.msra.mxu1 %v5205_v59  ;;  %v5261_v58 = vcombine.low %v1353_v27, %v1357_v46  ;;  %v5268_v59 = vcombine.high %v1360_v52, %v1364_v53  ;;  %v5309_v27 = vcombine.low %v1401_v34, %v1405_v35  ;;  %v1421_v52 = vld [vmem:[%s6880_s4 + $0x5b8] sm:$0xff] }
 0x23a   : > { %4724 = vmatprep.subr.bf16.mxu0 %v5212_v60  ;;  %4888 = vmatprep.subr.bf16.mxu1 %v5214_v61  ;;  %v5270_v60 = vcombine.high %v1361_v54, %v1365_v55  ;;  %v1368_v61 = vld [vmem:[%s6880_s4 + $0x410] sm:$0xff] }
 0x23b   : > { %v5275_v10 = vcombine.low %v1368_v61, %v1372_v62 }
 0x23d   : > { %4725 = vmatpush1.bf16.msra.mxu0 %v5211_v3  ;;  %4889 = vmatpush1.bf16.msra.mxu1 %v5213_v4  ;;  %v5269_v3 = vcombine.low %v1361_v54, %v1365_v55  ;;  %v5276_v4 = vcombine.high %v1368_v61, %v1372_v62  ;;  %v1429_v61 = vld [vmem:[%s6880_s4 + $0x5f8] sm:$0xff] }
 0x23e   : > { %4726 = vmatprep.subr.bf16.mxu0 %v5220_v5  ;;  %4890 = vmatprep.subr.bf16.mxu1 %v5222_v6  ;;  %v5278_v5 = vcombine.high %v1369_v63, %v1373_v2  ;;  %v1376_v6 = vld [vmem:[%s6880_s4 + $0x450] sm:$0xff] }
 0x23f   : > { %v5283_v20 = vcombine.low %v1376_v6, %v1380_v7 }
 0x241   : > { %4727 = vmatpush1.bf16.msra.mxu0 %v5219_v11  ;;  %4891 = vmatpush1.bf16.msra.mxu1 %v5221_v12  ;;  %v5277_v11 = vcombine.low %v1369_v63, %v1373_v2  ;;  %v5284_v12 = vcombine.high %v1376_v6, %v1380_v7  ;;  %v1437_v6 = vld [vmem:[%s6880_s4 + $0x638] sm:$0xff] }
 0x242   : > { %4728 = vmatprep.subr.bf16.mxu0 %v5228_v13  ;;  %4892 = vmatprep.subr.bf16.mxu1 %v5230_v15  ;;  %v5286_v13 = vcombine.high %v1377_v8, %v1381_v9  ;;  %v1384_v15 = vld [vmem:[%s6880_s4 + $0x490] sm:$0xff] }
 0x245   : > { %4729 = vmatpush1.bf16.msra.mxu0 %v5227_v21  ;;  %4893 = vmatpush1.bf16.msra.mxu1 %v5229_v0  ;;  %v5285_v21 = vcombine.low %v1377_v8, %v1381_v9  ;;  %v5292_v0 = vcombine.high %v1384_v15, %v1388_v16 }
 0x246   : > { %4730 = vmatprep.subr.bf16.mxu0 %v5236_v1  ;;  %4894 = vmatprep.subr.bf16.mxu1 %v5238_v22  ;;  %v5294_v1 = vcombine.high %v1385_v18, %v1389_v19  ;;  %v1392_v22 = vld [vmem:[%s6880_s4 + $0x4d0] sm:$0xff] }
 0x247   : > { %v5299_v36 = vcombine.low %v1392_v22, %v1396_v25 }
 0x249   : > { %4731 = vmatpush1.bf16.msra.mxu0 %v5235_v30  ;;  %4895 = vmatpush1.bf16.msra.mxu1 %v5237_v31  ;;  %v5300_v30 = vcombine.high %v1392_v22, %v1396_v25  ;;  %v5302_v31 = vcombine.high %v1393_v26, %v1397_v28  ;;  %v1453_v22 = vld [vmem:[%s6880_s4 + $0x6b8] sm:$0xff] }
 0x24a   : > { %4732 = vmatprep.subr.bf16.mxu0 %v5244_v17  ;;  %4896 = vmatprep.subr.bf16.mxu1 %v5246_v32  ;;  %v1400_v17 = vld [vmem:[%s6880_s4 + $0x510] sm:$0xff] }
 0x24b   : > { %v1404_v32 = vld [vmem:[%s6880_s4 + $0x530] sm:$0xff] }
 0x24c   : > { %v5308_v37 = vcombine.high %v1400_v17, %v1404_v32  ;;  %v5307_v45 = vcombine.low %v1400_v17, %v1404_v32  ;;  %v1461_v17 = vld [vmem:[%s6880_s4 + $0x6f8] sm:$0xff] }
 0x24d   : > { %4733 = vmatpush1.bf16.msra.mxu0 %v5243_v39  ;;  %4897 = vmatpush1.bf16.msra.mxu1 %v5245_v40  ;;  %v5310_v39 = vcombine.high %v1401_v34, %v1405_v35  ;;  %v1408_v40 = vld [vmem:[%s6880_s4 + $0x550] sm:$0xff] }
 0x24e   : > { %4734 = vmatprep.subr.bf16.mxu0 %v5252_v42  ;;  %4898 = vmatprep.subr.bf16.mxu1 %v5254_v43  ;;  %v1412_v42 = vld [vmem:[%s6880_s4 + $0x570] sm:$0xff]  ;;  %v1409_v43 = vld [vmem:[%s6880_s4 + $0x558] sm:$0xff] }
 0x24f   : > { %v5316_v46 = vcombine.high %v1408_v40, %v1412_v42  ;;  %v5315_v53 = vcombine.low %v1408_v40, %v1412_v42  ;;  %v5317_v54 = vcombine.low %v1409_v43, %v1413_v44  ;;  %v1469_v40 = vld [vmem:[%s6880_s4 + $0x738] sm:$0xff] }
 0x251   : > { %4735 = vmatpush1.bf16.msra.mxu0 %v5251_v48  ;;  %4899 = vmatpush1.bf16.msra.mxu1 %v5253_v49  ;;  %v5318_v48 = vcombine.high %v1409_v43, %v1413_v44  ;;  %v1416_v49 = vld [vmem:[%s6880_s4 + $0x590] sm:$0xff] }
 0x252   : > { %4736 = vmatprep.subr.bf16.mxu0 %v5260_v50  ;;  %4900 = vmatprep.subr.bf16.mxu1 %v5262_v51  ;;  %v1420_v50 = vld [vmem:[%s6880_s4 + $0x5b0] sm:$0xff]  ;;  %v1417_v51 = vld [vmem:[%s6880_s4 + $0x598] sm:$0xff] }
 0x253   : > { %v5324_v55 = vcombine.high %v1416_v49, %v1420_v50  ;;  %v5323_v62 = vcombine.low %v1416_v49, %v1420_v50  ;;  %v5325_v63 = vcombine.low %v1417_v51, %v1421_v52  ;;  %v1477_v49 = vld [vmem:[%s6880_s4 + $0x778] sm:$0xff] }
 0x255   : > { %4737 = vmatpush1.bf16.msra.mxu0 %v5259_v57  ;;  %4901 = vmatpush1.bf16.msra.mxu1 %v5261_v58  ;;  %v5326_v57 = vcombine.high %v1417_v51, %v1421_v52  ;;  %v1424_v58 = vld [vmem:[%s6880_s4 + $0x5d0] sm:$0xff] }
 0x256   : > { %4738 = vmatprep.subr.bf16.mxu0 %v5268_v59  ;;  %4902 = vmatprep.subr.bf16.mxu1 %v5270_v60  ;;  %v1428_v59 = vld [vmem:[%s6880_s4 + $0x5f0] sm:$0xff]  ;;  %v1425_v60 = vld [vmem:[%s6880_s4 + $0x5d8] sm:$0xff] }
 0x257   : > { %v5332_v2 = vcombine.high %v1424_v58, %v1428_v59  ;;  %v5331_v7 = vcombine.low %v1424_v58, %v1428_v59  ;;  %v5333_v8 = vcombine.low %v1425_v60, %v1429_v61  ;;  %v1485_v58 = vld [vmem:[%s6880_s4 + $0x7b8] sm:$0xff] }
 0x259   : > { %4739 = vmatpush1.bf16.msra.mxu0 %v5267_v41  ;;  %4903 = vmatpush1.bf16.msra.mxu1 %v5269_v3  ;;  %v5334_v41 = vcombine.high %v1425_v60, %v1429_v61  ;;  %v1432_v3 = vld [vmem:[%s6880_s4 + $0x610] sm:$0xff] }
 0x25a   : > { %4749 = vmatprep.subr.bf16.mxu0 %v5276_v4  ;;  %4913 = vmatprep.subr.bf16.mxu1 %v5278_v5  ;;  %v1436_v4 = vld [vmem:[%s6880_s4 + $0x630] sm:$0xff]  ;;  %v1433_v5 = vld [vmem:[%s6880_s4 + $0x618] sm:$0xff] }
 0x25b   : > { %v5340_v9 = vcombine.high %v1432_v3, %v1436_v4  ;;  %v5341_v18 = vcombine.low %v1433_v5, %v1437_v6 }
 0x25c   : > { %4741 = vmatmul.mubr.bf16.vlgmr.msra.gmra.mrb[4].mxu0 %v6956_v14  ;;  %4905 = vmatmul.mubr.bf16.vlgmr.msra.gmra.mrb[4].mxu1 %v6956_v14  ;;  %v5291_v14 = vcombine.low %v1384_v15, %v1388_v16  ;;  %v1445_v15 = vld [vmem:[%s6880_s4 + $0x678] sm:$0xff]  ;;  %v5339_v16 = vcombine.low %v1432_v3, %v1436_v4 }
 0x25d   : > { %4750 = vmatpush1.bf16.msra.mxu0 %v5275_v10  ;;  %4914 = vmatpush1.bf16.msra.mxu1 %v5277_v11  ;;  %v5342_v10 = vcombine.high %v1433_v5, %v1437_v6  ;;  %v1440_v11 = vld [vmem:[%s6880_s4 + $0x650] sm:$0xff]  ;;  %v1493_v3 = vld [vmem:[%s6880_s4 + $0x7f8] sm:$0xff] }
 0x25e   : > { %4751 = vmatprep.subr.bf16.mxu0 %v5284_v12  ;;  %4915 = vmatprep.subr.bf16.mxu1 %v5286_v13  ;;  %v1444_v12 = vld [vmem:[%s6880_s4 + $0x670] sm:$0xff]  ;;  %v1441_v13 = vld [vmem:[%s6880_s4 + $0x658] sm:$0xff] }
 0x25f   : > { %4781 = vmatprep.mubr.bf16.mxu0 %v6969_v23  ;;  %4945 = vmatprep.mubr.bf16.mxu1 %v6969_v23  ;;  %v5301_v23 = vcombine.low %v1393_v26, %v1397_v28  ;;  %v5348_v19 = vcombine.high %v1440_v11, %v1444_v12  ;;  %v5347_v25 = vcombine.low %v1440_v11, %v1444_v12  ;;  %v1501_v11 = vld [vmem:[%s6880_s4 + $0x838] sm:$0xff] }
 0x260   : > { %v5349_v26 = vcombine.low %v1441_v13, %v1445_v15 }
 0x261   : > { %4752 = vmatpush1.bf16.msra.mxu0 %v5283_v20  ;;  %4916 = vmatpush1.bf16.msra.mxu1 %v5285_v21  ;;  %v5350_v20 = vcombine.high %v1441_v13, %v1445_v15  ;;  %v1448_v21 = vld [vmem:[%s6880_s4 + $0x690] sm:$0xff] }
 0x262   : > { %4753 = vmatprep.subr.bf16.mxu0 %v5292_v0  ;;  %4917 = vmatprep.subr.bf16.mxu1 %v5294_v1  ;;  %v1452_v0 = vld [vmem:[%s6880_s4 + $0x6b0] sm:$0xff]  ;;  %v1449_v1 = vld [vmem:[%s6880_s4 + $0x698] sm:$0xff] }
 0x263   : > { %v5356_v28 = vcombine.high %v1448_v21, %v1452_v0  ;;  %v5355_v32 = vcombine.low %v1448_v21, %v1452_v0  ;;  %v5357_v34 = vcombine.low %v1449_v1, %v1453_v22  ;;  %v1509_v21 = vld [vmem:[%s6880_s4 + $0x878] sm:$0xff] }
 0x265   : > { %4754 = vmatpush1.bf16.msra.mxu0 %v5291_v14  ;;  %4918 = vmatpush1.bf16.msra.mxu1 %v5293_v29  ;;  %v5358_v14 = vcombine.high %v1449_v1, %v1453_v22  ;;  %v1456_v29 = vld [vmem:[%s6880_s4 + $0x6d0] sm:$0xff] }
 0x266   : > { %4755 = vmatprep.subr.bf16.mxu0 %v5300_v30  ;;  %4919 = vmatprep.subr.bf16.mxu1 %v5302_v31  ;;  %v1460_v30 = vld [vmem:[%s6880_s4 + $0x6f0] sm:$0xff]  ;;  %v1457_v31 = vld [vmem:[%s6880_s4 + $0x6d8] sm:$0xff] }
 0x267   : > { %v5364_v35 = vcombine.high %v1456_v29, %v1460_v30  ;;  %v5363_v42 = vcombine.low %v1456_v29, %v1460_v30  ;;  %v5365_v43 = vcombine.low %v1457_v31, %v1461_v17  ;;  %v1517_v29 = vld [vmem:[%s6880_s4 + $0x8b8] sm:$0xff] }
 0x269   : > { %4756 = vmatpush1.bf16.msra.mxu0 %v5299_v36  ;;  %4920 = vmatpush1.bf16.msra.mxu1 %v5301_v23  ;;  %v5366_v36 = vcombine.high %v1457_v31, %v1461_v17  ;;  %v1464_v23 = vld [vmem:[%s6880_s4 + $0x710] sm:$0xff] }
 0x26a   : > { %4757 = vmatprep.subr.bf16.mxu0 %v5308_v37  ;;  %4921 = vmatprep.subr.bf16.mxu1 %v5310_v39  ;;  %v1468_v37 = vld [vmem:[%s6880_s4 + $0x730] sm:$0xff]  ;;  %v1465_v39 = vld [vmem:[%s6880_s4 + $0x718] sm:$0xff] }
 0x26b   : > { %v5372_v44 = vcombine.high %v1464_v23, %v1468_v37  ;;  %v5371_v50 = vcombine.low %v1464_v23, %v1468_v37  ;;  %v5373_v51 = vcombine.low %v1465_v39, %v1469_v40  ;;  %v1525_v23 = vld [vmem:[%s6880_s4 + $0x8f8] sm:$0xff] }
 0x26d   : > { %4758 = vmatpush1.bf16.msra.mxu0 %v5307_v45  ;;  %4922 = vmatpush1.bf16.msra.mxu1 %v5309_v27  ;;  %v5374_v45 = vcombine.high %v1465_v39, %v1469_v40  ;;  %v1472_v27 = vld [vmem:[%s6880_s4 + $0x750] sm:$0xff] }
 0x26e   : > { %4759 = vmatprep.subr.bf16.mxu0 %v5316_v46  ;;  %4923 = vmatprep.subr.bf16.mxu1 %v5318_v48  ;;  %v1476_v46 = vld [vmem:[%s6880_s4 + $0x770] sm:$0xff]  ;;  %v1473_v48 = vld [vmem:[%s6880_s4 + $0x758] sm:$0xff] }
 0x26f   : > { %v5380_v52 = vcombine.high %v1472_v27, %v1476_v46  ;;  %v5379_v59 = vcombine.low %v1472_v27, %v1476_v46  ;;  %v5381_v60 = vcombine.low %v1473_v48, %v1477_v49 }
 0x271   : > { %4760 = vmatpush1.bf16.msra.mxu0 %v5315_v53  ;;  %4924 = vmatpush1.bf16.msra.mxu1 %v5317_v54  ;;  %v5382_v53 = vcombine.high %v1473_v48, %v1477_v49  ;;  %v1480_v54 = vld [vmem:[%s6880_s4 + $0x790] sm:$0xff] }
 0x272   : > { %4761 = vmatprep.subr.bf16.mxu0 %v5324_v55  ;;  %4925 = vmatprep.subr.bf16.mxu1 %v5326_v57  ;;  %v1484_v55 = vld [vmem:[%s6880_s4 + $0x7b0] sm:$0xff]  ;;  %v1481_v57 = vld [vmem:[%s6880_s4 + $0x798] sm:$0xff] }
 0x273   : > { %v5388_v61 = vcombine.high %v1480_v54, %v1484_v55  ;;  %v5387_v4 = vcombine.low %v1480_v54, %v1484_v55  ;;  %v5389_v5 = vcombine.low %v1481_v57, %v1485_v58  ;;  %v1536_v49 = vld [vmem:[%s6880_s4 + $0x950] sm:$0xff] }
 0x275   : > { %4762 = vmatpush1.bf16.msra.mxu0 %v5323_v62  ;;  %4926 = vmatpush1.bf16.msra.mxu1 %v5325_v63  ;;  %v5390_v62 = vcombine.high %v1481_v57, %v1485_v58  ;;  %v1488_v63 = vld [vmem:[%s6880_s4 + $0x7d0] sm:$0xff] }
 0x276   : > { %4763 = vmatprep.subr.bf16.mxu0 %v5332_v2  ;;  %4927 = vmatprep.subr.bf16.mxu1 %v5334_v41  ;;  %v1492_v2 = vld [vmem:[%s6880_s4 + $0x7f0] sm:$0xff]  ;;  %v1489_v41 = vld [vmem:[%s6880_s4 + $0x7d8] sm:$0xff] }
 0x277   : > { %v5396_v6 = vcombine.high %v1488_v63, %v1492_v2  ;;  %v5395_v12 = vcombine.low %v1488_v63, %v1492_v2  ;;  %v5397_v13 = vcombine.low %v1489_v41, %v1493_v3  ;;  %v1544_v58 = vld [vmem:[%s6880_s4 + $0x990] sm:$0xff] }
 0x279   : > { %4764 = vmatpush1.bf16.msra.mxu0 %v5331_v7  ;;  %4928 = vmatpush1.bf16.msra.mxu1 %v5333_v8  ;;  %v5398_v7 = vcombine.high %v1489_v41, %v1493_v3  ;;  %v1496_v8 = vld [vmem:[%s6880_s4 + $0x810] sm:$0xff] }
 0x27a   : > { %4765 = vmatprep.subr.bf16.mxu0 %v5340_v9  ;;  %4929 = vmatprep.subr.bf16.mxu1 %v5342_v10  ;;  %v1500_v9 = vld [vmem:[%s6880_s4 + $0x830] sm:$0xff]  ;;  %v1497_v10 = vld [vmem:[%s6880_s4 + $0x818] sm:$0xff] }
 0x27b   : > { %v5404_v15 = vcombine.high %v1496_v8, %v1500_v9  ;;  %v5403_v0 = vcombine.low %v1496_v8, %v1500_v9  ;;  %v5405_v1 = vcombine.low %v1497_v10, %v1501_v11  ;;  %v1552_v3 = vld [vmem:[%s6880_s4 + $0x9d0] sm:$0xff] }
 0x27d   : > { %4766 = vmatpush1.bf16.msra.mxu0 %v5339_v16  ;;  %4930 = vmatpush1.bf16.msra.mxu1 %v5341_v18  ;;  %v5406_v16 = vcombine.high %v1497_v10, %v1501_v11  ;;  %v1504_v18 = vld [vmem:[%s6880_s4 + $0x850] sm:$0xff] }
 0x27e   : > { %4767 = vmatprep.subr.bf16.mxu0 %v5348_v19  ;;  %4931 = vmatprep.subr.bf16.mxu1 %v5350_v20  ;;  %v1508_v19 = vld [vmem:[%s6880_s4 + $0x870] sm:$0xff]  ;;  %v1505_v20 = vld [vmem:[%s6880_s4 + $0x858] sm:$0xff] }
 0x27f   : > { %v5412_v22 = vcombine.high %v1504_v18, %v1508_v19  ;;  %v5411_v30 = vcombine.low %v1504_v18, %v1508_v19  ;;  %v5413_v31 = vcombine.low %v1505_v20, %v1509_v21  ;;  %v1560_v11 = vld [vmem:[%s6880_s4 + $0xa10] sm:$0xff] }
 0x281   : > { %4768 = vmatpush1.bf16.msra.mxu0 %v5347_v25  ;;  %4932 = vmatpush1.bf16.msra.mxu1 %v5349_v26  ;;  %v5414_v25 = vcombine.high %v1505_v20, %v1509_v21  ;;  %v1512_v26 = vld [vmem:[%s6880_s4 + $0x890] sm:$0xff] }
 0x282   : > { %4769 = vmatprep.subr.bf16.mxu0 %v5356_v28  ;;  %4933 = vmatprep.subr.bf16.mxu1 %v5358_v14  ;;  %v1516_v28 = vld [vmem:[%s6880_s4 + $0x8b0] sm:$0xff]  ;;  %v1513_v14 = vld [vmem:[%s6880_s4 + $0x898] sm:$0xff] }
 0x283   : > { %v5420_v17 = vcombine.high %v1512_v26, %v1516_v28  ;;  %v5421_v37 = vcombine.low %v1513_v14, %v1517_v29  ;;  %v1568_v21 = vld [vmem:[%s6880_s4 + $0xa50] sm:$0xff] }
 0x285   : > { %4770 = vmatpush1.bf16.msra.mxu0 %v5355_v32  ;;  %4934 = vmatpush1.bf16.msra.mxu1 %v5357_v34  ;;  %v5422_v32 = vcombine.high %v1513_v14, %v1517_v29  ;;  %v1520_v34 = vld [vmem:[%s6880_s4 + $0x8d0] sm:$0xff] }
 0x286   : > { %4771 = vmatprep.subr.bf16.mxu0 %v5364_v35  ;;  %4935 = vmatprep.subr.bf16.mxu1 %v5366_v36  ;;  %v1524_v35 = vld [vmem:[%s6880_s4 + $0x8f0] sm:$0xff]  ;;  %v1521_v36 = vld [vmem:[%s6880_s4 + $0x8d8] sm:$0xff] }
 0x287   : > { %v5428_v39 = vcombine.high %v1520_v34, %v1524_v35  ;;  %v5430_v40 = vcombine.high %v1521_v36, %v1525_v23  ;;  %v5427_v27 = vcombine.low %v1520_v34, %v1524_v35  ;;  %v1576_v29 = vld [vmem:[%s6880_s4 + $0xa90] sm:$0xff] }
 0x289   : > { %4772 = vmatpush1.bf16.msra.mxu0 %v5363_v42  ;;  %4936 = vmatpush1.bf16.msra.mxu1 %v5365_v43  ;;  %v1528_v42 = vld [vmem:[%s6880_s4 + $0x910] sm:$0xff] }
 0x28a   : > { %4773 = vmatprep.subr.bf16.mxu0 %v5372_v44  ;;  %4937 = vmatprep.subr.bf16.mxu1 %v5374_v45  ;;  %v1532_v43 = vld [vmem:[%s6880_s4 + $0x930] sm:$0xff]  ;;  %v1529_v44 = vld [vmem:[%s6880_s4 + $0x918] sm:$0xff] }
 0x28b   : > { %v1533_v45 = vld [vmem:[%s6880_s4 + $0x938] sm:$0xff]  ;;  %v5436_v46 = vcombine.high %v1528_v42, %v1532_v43 }
 0x28c   : > { %v5438_v48 = vcombine.high %v1529_v44, %v1533_v45  ;;  %v5437_v54 = vcombine.low %v1529_v44, %v1533_v45  ;;  %v1592_v45 = vld [vmem:[%s6880_s4 + $0xb10] sm:$0xff] }
 0x28d   : > { %4774 = vmatpush1.bf16.msra.mxu0 %v5371_v50  ;;  %4938 = vmatpush1.bf16.msra.mxu1 %v5373_v51  ;;  %v1540_v50 = vld [vmem:[%s6880_s4 + $0x970] sm:$0xff]  ;;  %v1537_v51 = vld [vmem:[%s6880_s4 + $0x958] sm:$0xff] }
 0x28e   : > { %4775 = vmatprep.subr.bf16.mxu0 %v5380_v52  ;;  %4939 = vmatprep.subr.bf16.mxu1 %v5382_v53  ;;  %v1541_v52 = vld [vmem:[%s6880_s4 + $0x978] sm:$0xff]  ;;  %v5435_v53 = vcombine.low %v1528_v42, %v1532_v43  ;;  %v5444_v55 = vcombine.high %v1536_v49, %v1540_v50 }
 0x28f   : > { %v5446_v57 = vcombine.high %v1537_v51, %v1541_v52  ;;  %v5445_v63 = vcombine.low %v1537_v51, %v1541_v52  ;;  %v1600_v52 = vld [vmem:[%s6880_s4 + $0xb50] sm:$0xff] }
 0x291   : > { %4776 = vmatpush1.bf16.msra.mxu0 %v5379_v59  ;;  %4940 = vmatpush1.bf16.msra.mxu1 %v5381_v60  ;;  %v1548_v59 = vld [vmem:[%s6880_s4 + $0x9b0] sm:$0xff]  ;;  %v1545_v60 = vld [vmem:[%s6880_s4 + $0x998] sm:$0xff] }
 0x292   : > { %4777 = vmatprep.subr.bf16.mxu0 %v5388_v61  ;;  %4941 = vmatprep.subr.bf16.mxu1 %v5390_v62  ;;  %v1549_v61 = vld [vmem:[%s6880_s4 + $0x9b8] sm:$0xff]  ;;  %v5443_v62 = vcombine.low %v1536_v49, %v1540_v50  ;;  %v5452_v2 = vcombine.high %v1544_v58, %v1548_v59 }
 0x293   : > { %v5454_v41 = vcombine.high %v1545_v60, %v1549_v61  ;;  %v5453_v8 = vcombine.low %v1545_v60, %v1549_v61  ;;  %v1608_v61 = vld [vmem:[%s6880_s4 + $0xb90] sm:$0xff] }
 0x295   : > { %4778 = vmatpush1.bf16.msra.mxu0 %v5387_v4  ;;  %4942 = vmatpush1.bf16.msra.mxu1 %v5389_v5  ;;  %v1556_v4 = vld [vmem:[%s6880_s4 + $0x9f0] sm:$0xff]  ;;  %v1553_v5 = vld [vmem:[%s6880_s4 + $0x9d8] sm:$0xff] }
 0x296   : > { %4779 = vmatprep.subr.bf16.mxu0 %v5396_v6  ;;  %4943 = vmatprep.subr.bf16.mxu1 %v5398_v7  ;;  %v1557_v6 = vld [vmem:[%s6880_s4 + $0x9f8] sm:$0xff]  ;;  %v5451_v7 = vcombine.low %v1544_v58, %v1548_v59  ;;  %v5460_v9 = vcombine.high %v1552_v3, %v1556_v4 }
 0x297   : > { %v5462_v10 = vcombine.high %v1553_v5, %v1557_v6  ;;  %v5461_v18 = vcombine.low %v1553_v5, %v1557_v6  ;;  %v1616_v6 = vld [vmem:[%s6880_s4 + $0xbd0] sm:$0xff] }
 0x299   : > { %4780 = vmatpush1.bf16.msra.mxu0 %v5395_v12  ;;  %4944 = vmatpush1.bf16.msra.mxu1 %v5397_v13  ;;  %v1564_v12 = vld [vmem:[%s6880_s4 + $0xa30] sm:$0xff]  ;;  %v1561_v13 = vld [vmem:[%s6880_s4 + $0xa18] sm:$0xff] }
 0x29a   : > { %4790 = vmatprep.subr.bf16.mxu0 %v5404_v15  ;;  %4954 = vmatprep.subr.bf16.mxu1 %v5406_v16  ;;  %v1565_v15 = vld [vmem:[%s6880_s4 + $0xa38] sm:$0xff]  ;;  %v5459_v16 = vcombine.low %v1552_v3, %v1556_v4  ;;  %v5468_v19 = vcombine.high %v1560_v11, %v1564_v12 }
 0x29b   : > { %v5470_v20 = vcombine.high %v1561_v13, %v1565_v15 }
 0x29c   : > { %4782 = vmatmul.mubr.bf16.vlgmr.msra.gmra.mrb[4].mxu0 %v7037_v24  ;;  %4946 = vmatmul.mubr.bf16.vlgmr.msra.gmra.mrb[4].mxu1 %v7037_v24  ;;  %v5419_v24 = vcombine.low %v1512_v26, %v1516_v28  ;;  %v5469_v26 = vcombine.low %v1561_v13, %v1565_v15  ;;  %v1624_v15 = vld [vmem:[%s6880_s4 + $0xc10] sm:$0xff] }
 0x29d   : > { %4791 = vmatpush1.bf16.msra.mxu0 %v5403_v0  ;;  %4955 = vmatpush1.bf16.msra.mxu1 %v5405_v1  ;;  %v1572_v0 = vld [vmem:[%s6880_s4 + $0xa70] sm:$0xff]  ;;  %v1569_v1 = vld [vmem:[%s6880_s4 + $0xa58] sm:$0xff] }
 0x29e   : > { %4792 = vmatprep.subr.bf16.mxu0 %v5412_v22  ;;  %4956 = vmatprep.subr.bf16.mxu1 %v5414_v25  ;;  %v1573_v22 = vld [vmem:[%s6880_s4 + $0xa78] sm:$0xff]  ;;  %v5467_v25 = vcombine.low %v1560_v11, %v1564_v12  ;;  %v5476_v28 = vcombine.high %v1568_v21, %v1572_v0 }
 0x29f   : > { %4822 = vmatprep.mubr.bf16.mxu0 %v7050_v33  ;;  %4986 = vmatprep.mubr.bf16.mxu1 %v7050_v33  ;;  %v5429_v33 = vcombine.low %v1521_v36, %v1525_v23  ;;  %v5478_v14 = vcombine.high %v1569_v1, %v1573_v22  ;;  %v5477_v34 = vcombine.low %v1569_v1, %v1573_v22  ;;  %v1584_v23 = vld [vmem:[%s6880_s4 + $0xad0] sm:$0xff] }
 0x2a0   : > { %v1632_v22 = vld [vmem:[%s6880_s4 + $0xc50] sm:$0xff] }
 0x2a1   : > { %4793 = vmatpush1.bf16.msra.mxu0 %v5411_v30  ;;  %4957 = vmatpush1.bf16.msra.mxu1 %v5413_v31  ;;  %v1580_v30 = vld [vmem:[%s6880_s4 + $0xab0] sm:$0xff]  ;;  %v1577_v31 = vld [vmem:[%s6880_s4 + $0xa98] sm:$0xff] }
 0x2a2   : > { %4794 = vmatprep.subr.bf16.mxu0 %v5420_v17  ;;  %4958 = vmatprep.subr.bf16.mxu1 %v5422_v32  ;;  %v1581_v17 = vld [vmem:[%s6880_s4 + $0xab8] sm:$0xff]  ;;  %v5475_v32 = vcombine.low %v1568_v21, %v1572_v0  ;;  %v5484_v35 = vcombine.high %v1576_v29, %v1580_v30 }
 0x2a3   : > { %v5486_v36 = vcombine.high %v1577_v31, %v1581_v17  ;;  %v5485_v42 = vcombine.low %v1577_v31, %v1581_v17  ;;  %v1640_v17 = vld [vmem:[%s6880_s4 + $0xc90] sm:$0xff] }
 0x2a5   : > { %4795 = vmatpush1.bf16.msra.mxu0 %v5419_v24  ;;  %4959 = vmatpush1.bf16.msra.mxu1 %v5421_v37  ;;  %v1588_v24 = vld [vmem:[%s6880_s4 + $0xaf0] sm:$0xff]  ;;  %v1585_v37 = vld [vmem:[%s6880_s4 + $0xad8] sm:$0xff] }
 0x2a6   : > { %4796 = vmatprep.subr.bf16.mxu0 %v5428_v39  ;;  %4960 = vmatprep.subr.bf16.mxu1 %v5430_v40  ;;  %v1589_v39 = vld [vmem:[%s6880_s4 + $0xaf8] sm:$0xff]  ;;  %v5483_v40 = vcombine.low %v1576_v29, %v1580_v30  ;;  %v5492_v43 = vcombine.high %v1584_v23, %v1588_v24 }
 0x2a7   : > { %v5494_v44 = vcombine.high %v1585_v37, %v1589_v39  ;;  %v5493_v49 = vcombine.low %v1585_v37, %v1589_v39  ;;  %v1648_v39 = vld [vmem:[%s6880_s4 + $0xcd0] sm:$0xff] }
 0x2a9   : > { %4797 = vmatpush1.bf16.msra.mxu0 %v5427_v27  ;;  %4961 = vmatpush1.bf16.msra.mxu1 %v5429_v33  ;;  %v1596_v27 = vld [vmem:[%s6880_s4 + $0xb30] sm:$0xff]  ;;  %v1593_v33 = vld [vmem:[%s6880_s4 + $0xb18] sm:$0xff] }
 0x2aa   : > { %4798 = vmatprep.subr.bf16.mxu0 %v5436_v46  ;;  %4962 = vmatprep.subr.bf16.mxu1 %v5438_v48  ;;  %v1597_v46 = vld [vmem:[%s6880_s4 + $0xb38] sm:$0xff]  ;;  %v5491_v48 = vcombine.low %v1584_v23, %v1588_v24  ;;  %v5500_v50 = vcombine.high %v1592_v45, %v1596_v27 }
 0x2ab   : > { %v5502_v51 = vcombine.high %v1593_v33, %v1597_v46  ;;  %v5501_v58 = vcombine.low %v1593_v33, %v1597_v46  ;;  %v1656_v46 = vld [vmem:[%s6880_s4 + $0xd10] sm:$0xff] }
 0x2ad   : > { %4799 = vmatpush1.bf16.msra.mxu0 %v5435_v53  ;;  %4963 = vmatpush1.bf16.msra.mxu1 %v5437_v54  ;;  %v1604_v53 = vld [vmem:[%s6880_s4 + $0xb70] sm:$0xff]  ;;  %v1601_v54 = vld [vmem:[%s6880_s4 + $0xb58] sm:$0xff] }
 0x2ae   : > { %4800 = vmatprep.subr.bf16.mxu0 %v5444_v55  ;;  %4964 = vmatprep.subr.bf16.mxu1 %v5446_v57  ;;  %v1605_v55 = vld [vmem:[%s6880_s4 + $0xb78] sm:$0xff]  ;;  %v5499_v57 = vcombine.low %v1592_v45, %v1596_v27  ;;  %v5508_v59 = vcombine.high %v1600_v52, %v1604_v53 }
 0x2af   : > { %v5510_v60 = vcombine.high %v1601_v54, %v1605_v55  ;;  %v5509_v3 = vcombine.low %v1601_v54, %v1605_v55  ;;  %v1664_v55 = vld [vmem:[%s6880_s4 + $0xd50] sm:$0xff] }
 0x2b1   : > { %4801 = vmatpush1.bf16.msra.mxu0 %v5443_v62  ;;  %4965 = vmatpush1.bf16.msra.mxu1 %v5445_v63  ;;  %v1612_v62 = vld [vmem:[%s6880_s4 + $0xbb0] sm:$0xff]  ;;  %v1609_v63 = vld [vmem:[%s6880_s4 + $0xb98] sm:$0xff] }
 0x2b2   : > { %4802 = vmatprep.subr.bf16.mxu0 %v5452_v2  ;;  %4966 = vmatprep.subr.bf16.mxu1 %v5454_v41  ;;  %v1613_v2 = vld [vmem:[%s6880_s4 + $0xbb8] sm:$0xff]  ;;  %v5507_v41 = vcombine.low %v1600_v52, %v1604_v53  ;;  %v5516_v4 = vcombine.high %v1608_v61, %v1612_v62 }
 0x2b3   : > { %v5518_v5 = vcombine.high %v1609_v63, %v1613_v2  ;;  %v5517_v11 = vcombine.low %v1609_v63, %v1613_v2 }
 0x2b5   : > { %4803 = vmatpush1.bf16.msra.mxu0 %v5451_v7  ;;  %4967 = vmatpush1.bf16.msra.mxu1 %v5453_v8  ;;  %v1620_v7 = vld [vmem:[%s6880_s4 + $0xbf0] sm:$0xff]  ;;  %v1617_v8 = vld [vmem:[%s6880_s4 + $0xbd8] sm:$0xff] }
 0x2b6   : > { %4804 = vmatprep.subr.bf16.mxu0 %v5460_v9  ;;  %4968 = vmatprep.subr.bf16.mxu1 %v5462_v10  ;;  %v1621_v9 = vld [vmem:[%s6880_s4 + $0xbf8] sm:$0xff]  ;;  %v5515_v10 = vcombine.low %v1608_v61, %v1612_v62  ;;  %v5524_v12 = vcombine.high %v1616_v6, %v1620_v7  ;;  %v7439_v62 = vld [vmem:[%s1226_s15] sm:$0xff] }
 0x2b7   : > { %v5526_v13 = vcombine.high %v1617_v8, %v1621_v9  ;;  %v5525_v21 = vcombine.low %v1617_v8, %v1621_v9  ;;  %v1673_v9 = vld [vmem:[%s6880_s4 + $0xd98] sm:$0xff] }
 0x2b9   : > { %4805 = vmatpush1.bf16.msra.mxu0 %v5459_v16  ;;  %4969 = vmatpush1.bf16.msra.mxu1 %v5461_v18  ;;  %v1628_v16 = vld [vmem:[%s6880_s4 + $0xc30] sm:$0xff]  ;;  %v1625_v18 = vld [vmem:[%s6880_s4 + $0xc18] sm:$0xff] }
 0x2ba   : > { %4806 = vmatprep.subr.bf16.mxu0 %v5468_v19  ;;  %4970 = vmatprep.subr.bf16.mxu1 %v5470_v20  ;;  %v1629_v19 = vld [vmem:[%s6880_s4 + $0xc38] sm:$0xff]  ;;  %v5523_v20 = vcombine.low %v1616_v6, %v1620_v7  ;;  %v5532_v0 = vcombine.high %v1624_v15, %v1628_v16  ;;  %v1672_v6 = vld [vmem:[%s6880_s4 + $0xd90] sm:$0xff] }
 0x2bb   : > { %v5534_v1 = vcombine.high %v1625_v18, %v1629_v19  ;;  %v5533_v29 = vcombine.low %v1625_v18, %v1629_v19  ;;  %v1676_v7 = vld [vmem:[%s6880_s4 + $0xdb0] sm:$0xff] }
 0x2bc   : > { %v5580_v18 = vcombine.high %v1672_v6, %v1676_v7 }
 0x2bd   : > { %4807 = vmatpush1.bf16.msra.mxu0 %v5467_v25  ;;  %4971 = vmatpush1.bf16.msra.mxu1 %v5469_v26  ;;  %v1636_v25 = vld [vmem:[%s6880_s4 + $0xc70] sm:$0xff]  ;;  %v1633_v26 = vld [vmem:[%s6880_s4 + $0xc58] sm:$0xff] }
 0x2be   : > { %4808 = vmatprep.subr.bf16.mxu0 %v5476_v28  ;;  %4972 = vmatprep.subr.bf16.mxu1 %v5478_v14  ;;  %v1637_v28 = vld [vmem:[%s6880_s4 + $0xc78] sm:$0xff]  ;;  %v5531_v14 = vcombine.low %v1624_v15, %v1628_v16  ;;  %v5540_v30 = vcombine.high %v1632_v22, %v1636_v25 }
 0x2bf   : > { %v5542_v31 = vcombine.high %v1633_v26, %v1637_v28  ;;  %v5541_v23 = vcombine.low %v1633_v26, %v1637_v28  ;;  %v1681_v26 = vld [vmem:[%s6880_s4 + $0xdd8] sm:$0xff] }
 0x2c0   : > { %v1685_v28 = vld [vmem:[%s6880_s4 + $0xdf8] sm:$0xff] }
 0x2c1   : > { %4809 = vmatpush1.bf16.msra.mxu0 %v5475_v32  ;;  %4973 = vmatpush1.bf16.msra.mxu1 %v5477_v34  ;;  %v1644_v32 = vld [vmem:[%s6880_s4 + $0xcb0] sm:$0xff]  ;;  %v1641_v34 = vld [vmem:[%s6880_s4 + $0xc98] sm:$0xff] }
 0x2c2   : > { %4810 = vmatprep.subr.bf16.mxu0 %v5484_v35  ;;  %4974 = vmatprep.subr.bf16.mxu1 %v5486_v36  ;;  %v1645_v35 = vld [vmem:[%s6880_s4 + $0xcb8] sm:$0xff]  ;;  %v5539_v36 = vcombine.low %v1632_v22, %v1636_v25  ;;  %v5548_v24 = vcombine.high %v1640_v17, %v1644_v32 }
 0x2c3   : > { %v5550_v37 = vcombine.high %v1641_v34, %v1645_v35  ;;  %v5549_v45 = vcombine.low %v1641_v34, %v1645_v35 }
 0x2c5   : > { %4811 = vmatpush1.bf16.msra.mxu0 %v5483_v40  ;;  %4975 = vmatpush1.bf16.msra.mxu1 %v5485_v42  ;;  %v1652_v40 = vld [vmem:[%s6880_s4 + $0xcf0] sm:$0xff]  ;;  %v1649_v42 = vld [vmem:[%s6880_s4 + $0xcd8] sm:$0xff] }
 0x2c6   : > { %4812 = vmatprep.subr.bf16.mxu0 %v5492_v43  ;;  %4976 = vmatprep.subr.bf16.mxu1 %v5494_v44  ;;  %v1653_v43 = vld [vmem:[%s6880_s4 + $0xcf8] sm:$0xff]  ;;  %v1752_v44 = vlaneseq  ;;  %v5556_v27 = vcombine.high %v1648_v39, %v1652_v40 }
 0x2c7   : > { %v5558_v33 = vcombine.high %v1649_v42, %v1653_v43  ;;  %v5557_v52 = vcombine.low %v1649_v42, %v1653_v43  ;;  %v1689_v42 = vld [vmem:[%s6880_s4 + $0xe18] sm:$0xff] }
 0x2c8   : > { %v1693_v43 = vld [vmem:[%s6880_s4 + $0xe38] sm:$0xff] }
 0x2c9   : > { %4813 = vmatpush1.bf16.msra.mxu0 %v5491_v48  ;;  %4977 = vmatpush1.bf16.msra.mxu1 %v5493_v49  ;;  %v1660_v48 = vld [vmem:[%s6880_s4 + $0xd30] sm:$0xff]  ;;  %v1657_v49 = vld [vmem:[%s6880_s4 + $0xd18] sm:$0xff] }
 0x2ca   : > { %4814 = vmatprep.subr.bf16.mxu0 %v5500_v50  ;;  %4978 = vmatprep.subr.bf16.mxu1 %v5502_v51  ;;  %v7428_v50 = vshrl.u32 %v1752_v44, 7  ;;  %v5555_v51 = vcombine.low %v1648_v39, %v1652_v40  ;;  %v5564_v53 = vcombine.high %v1656_v46, %v1660_v48  ;;  %v5563_v61 = vcombine.low %v1656_v46, %v1660_v48  ;;  %v1688_v39 = vld [vmem:[%s6880_s4 + $0xe10] sm:$0xff]  ;;  %v1697_v48 = vld [vmem:[%s6880_s4 + $0xe58] sm:$0xff] }
 0x2cb   : > { %v1692_v40 = vld [vmem:[%s6880_s4 + $0xe30] sm:$0xff] }
 0x2cc   : > { %v1762_v63 = vsub.s32 2, %v7428_v50  ;;  %v1758_v2 = vsub.s32 1, %v7428_v50  ;;  %v1700_v46 = vld [vmem:[%s6880_s4 + $0xe70] sm:$0xff] }
 0x2cd   : > { %4815 = vmatpush1.bf16.msra.mxu0 %v5499_v57  ;;  %4979 = vmatpush1.bf16.msra.mxu1 %v5501_v58  ;;  %v1668_v57 = vld [vmem:[%s6880_s4 + $0xd70] sm:$0xff]  ;;  %v1754_v58 = vsub.s32 0, %v7428_v50 }
 0x2ce   : > { %4816 = vmatprep.subr.bf16.mxu0 %v5508_v59  ;;  %4980 = vmatprep.subr.bf16.mxu1 %v5510_v60  ;;  %v1665_v59 = vld [vmem:[%s6880_s4 + $0xd58] sm:$0xff] }
 0x2cf   : > { %v1669_v60 = vld [vmem:[%s6880_s4 + $0xd78] sm:$0xff]  ;;  %v1755_v8 = vrot.slane %v7439_v62, %v1754_v58 }
 0x2d0   : > { %v5573_v16 = vcombine.low %v1665_v59, %v1669_v60  ;;  %v1705_v58 = vld [vmem:[%s6880_s4 + $0xe98] sm:$0xff] }
 0x2d1   : > { %4817 = vmatpush1.bf16.msra.mxu0 %v5507_v41  ;;  %4981 = vmatpush1.bf16.msra.mxu1 %v5509_v3  ;;  %v1766_v3 = vsub.s32 3, %v7428_v50 }
 0x2d2   : > { %4818 = vmatprep.subr.bf16.mxu0 %v5516_v4  ;;  %4982 = vmatprep.subr.bf16.mxu1 %v5518_v5  ;;  %v5572_v4 = vcombine.high %v1664_v55, %v1668_v57  ;;  %v5574_v5 = vcombine.high %v1665_v59, %v1669_v60  ;;  %v1709_v59 = vld [vmem:[%s6880_s4 + $0xeb8] sm:$0xff] }
 0x2d3   : > { %v1767_v15 = vrot.slane %v7439_v62, %v1766_v3 }
 0x2d5   : > { %4819 = vmatpush1.bf16.msra.mxu0 %v5515_v10  ;;  %4983 = vmatpush1.bf16.msra.mxu1 %v5517_v11  ;;  %v1677_v10 = vld [vmem:[%s6880_s4 + $0xdb8] sm:$0xff]  ;;  %v1763_v11 = vrot.slane %v7439_v62, %v1762_v63 }
 0x2d6   : > { %4820 = vmatprep.subr.bf16.mxu0 %v5524_v12  ;;  %4984 = vmatprep.subr.bf16.mxu1 %v5526_v13  ;;  %v1759_v12 = vrot.slane %v7439_v62, %v1758_v2  ;;  %v5571_v13 = vcombine.low %v1664_v55, %v1668_v57  ;;  %v1708_v55 = vld [vmem:[%s6880_s4 + $0xeb0] sm:$0xff] }
 0x2d9   : > { %4821 = vmatpush1.bf16.msra.mxu0 %v5523_v20  ;;  %4985 = vmatpush1.bf16.msra.mxu1 %v5525_v21  ;;  %v5582_v20 = vcombine.high %v1673_v9, %v1677_v10  ;;  %v1680_v21 = vld [vmem:[%s6880_s4 + $0xdd0] sm:$0xff] }
 0x2da   : > { %4831 = vmatprep.subr.bf16.mxu0 %v5532_v0  ;;  %4995 = vmatprep.subr.bf16.mxu1 %v5534_v1  ;;  %v1684_v0 = vld [vmem:[%s6880_s4 + $0xdf0] sm:$0xff] }
 0x2db   : > { %v5587_v44 = vcombine.low %v1680_v21, %v1684_v0 }
 0x2dc   : > { %4823 = vmatmul.mubr.bf16.vlgmr.msra.gmra.mrb[4].mxu0 %v7118_v38  ;;  %4987 = vmatmul.mubr.bf16.vlgmr.msra.gmra.mrb[4].mxu1 %v7118_v38  ;;  %v5547_v38 = vcombine.low %v1640_v17, %v1644_v32  ;;  %v5579_v17 = vcombine.low %v1672_v6, %v1676_v7  ;;  %v1716_v6 = vld [vmem:[%s6880_s4 + $0xef0] sm:$0xff]  ;;  %v1713_v7 = vld [vmem:[%s6880_s4 + $0xed8] sm:$0xff] }
 0x2dd   : > { %4832 = vmatpush1.bf16.msra.mxu0 %v5531_v14  ;;  %4996 = vmatpush1.bf16.msra.mxu1 %v5533_v29 }
 0x2de   : > { %4833 = vmatprep.subr.bf16.mxu0 %v5540_v30  ;;  %4997 = vmatprep.subr.bf16.mxu1 %v5542_v31 }
 0x2df   : > { %4863 = vmatprep.mubr.bf16.mxu0 %v7131_v47  ;;  %5027 = vmatprep.mubr.bf16.mxu1 %v7131_v47  ;;  %v1661_v47 = vld [vmem:[%s6880_s4 + $0xd38] sm:$0xff] }
 0x2e0   : > { %v5566_v54 = vcombine.high %v1657_v49, %v1661_v47  ;;  %v5565_v41 = vcombine.low %v1657_v49, %v1661_v47  ;;  %v1701_v49 = vld [vmem:[%s6880_s4 + $0xe78] sm:$0xff]  ;;  %v5595_v47 = vcombine.low %v1688_v39, %v1692_v40 }
 0x2e1   : > { %4834 = vmatpush1.bf16.msra.mxu0 %v5539_v36  ;;  %4998 = vmatpush1.bf16.msra.mxu1 %v5541_v23  ;;  %v5581_v36 = vcombine.low %v1673_v9, %v1677_v10  ;;  %v5588_v23 = vcombine.high %v1680_v21, %v1684_v0  ;;  %v5605_v2 = vcombine.low %v1697_v48, %v1701_v49 }
 0x2e2   : > { %4835 = vmatprep.subr.bf16.mxu0 %v5548_v24  ;;  %4999 = vmatprep.subr.bf16.mxu1 %v5550_v37  ;;  %v5590_v37 = vcombine.high %v1681_v26, %v1685_v28  ;;  %v5613_v10 = vcombine.low %v1705_v58, %v1709_v59 }
 0x2e5   : > { %4836 = vmatpush1.bf16.msra.mxu0 %v5547_v38  ;;  %5000 = vmatpush1.bf16.msra.mxu1 %v5549_v45  ;;  %v5589_v38 = vcombine.low %v1681_v26, %v1685_v28  ;;  %v5596_v45 = vcombine.high %v1688_v39, %v1692_v40  ;;  %v1733_v26 = vld [vmem:[%s6880_s4 + $0xf78] sm:$0xff]  ;;  %v1748_v39 = vld [vmem:[%s6880_s4 + $0xff0] sm:$0xff] }
 0x2e6   : > { %4837 = vmatprep.subr.bf16.mxu0 %v5556_v27  ;;  %5001 = vmatprep.subr.bf16.mxu1 %v5558_v33  ;;  %v5598_v27 = vcombine.high %v1689_v42, %v1693_v43  ;;  %v1696_v33 = vld [vmem:[%s6880_s4 + $0xe50] sm:$0xff]  ;;  %v1745_v40 = vld [vmem:[%s6880_s4 + $0xfd8] sm:$0xff] }
 0x2e9   : > { %4838 = vmatpush1.bf16.msra.mxu0 %v5555_v51  ;;  %5002 = vmatpush1.bf16.msra.mxu1 %v5557_v52  ;;  %v5597_v51 = vcombine.low %v1689_v42, %v1693_v43  ;;  %v5604_v52 = vcombine.high %v1696_v33, %v1700_v46  ;;  %v1749_v42 = vld [vmem:[%s6880_s4 + $0xff8] sm:$0xff] }
 0x2ea   : > { %4839 = vmatprep.subr.bf16.mxu0 %v5564_v53  ;;  %5003 = vmatprep.subr.bf16.mxu1 %v5566_v54  ;;  %v5606_v53 = vcombine.high %v1697_v48, %v1701_v49  ;;  %v1704_v54 = vld [vmem:[%s6880_s4 + $0xe90] sm:$0xff]  ;;  %v1778_v48 = vsub.s32 6, %v7428_v50  ;;  %v1774_v49 = vsub.s32 5, %v7428_v50 }
 0x2eb   : > { %v5611_v9 = vcombine.low %v1704_v54, %v1708_v55 }
 0x2ed   : > { %4840 = vmatpush1.bf16.msra.mxu0 %v5563_v61  ;;  %5004 = vmatpush1.bf16.msra.mxu1 %v5565_v41  ;;  %v5603_v61 = vcombine.low %v1696_v33, %v1700_v46  ;;  %v5612_v41 = vcombine.high %v1704_v54, %v1708_v55  ;;  %v5653_v33 = vcombine.low %v1745_v40, %v1749_v42  ;;  %v1770_v46 = vsub.s32 4, %v7428_v50 }
 0x2ee   : > { %4841 = vmatprep.subr.bf16.mxu0 %v5572_v4  ;;  %5005 = vmatprep.subr.bf16.mxu1 %v5574_v5  ;;  %v5614_v4 = vcombine.high %v1705_v58, %v1709_v59  ;;  %v1712_v5 = vld [vmem:[%s6880_s4 + $0xed0] sm:$0xff] }
 0x2ef   : > { %v4537_v19 = vpop.f32.mrb[0].mxu0  ;;  %v4701_v22 = vpop.f32.mrb[0].mxu1 }
 0x2f0   : > { %v5658_v1 = vadd.f32 %v4537_v19, %v1755_v8  ;;  %v4539_v25 = vpop.f32.mrb[1].mxu0  ;;  %v5660_v14 = vadd.f32 %v4701_v22, %v1763_v11  ;;  %v4703_v30 = vpop.f32.mrb[1].mxu1  ;;  %v1717_v8 = vld [vmem:[%s6880_s4 + $0xef8] sm:$0xff]  ;;  %v5620_v11 = vcombine.high %v1712_v5, %v1716_v6  ;;  %v5619_v19 = vcombine.low %v1712_v5, %v1716_v6  ;;  %v1732_v22 = vld [vmem:[%s6880_s4 + $0xf70] sm:$0xff] }
 0x2f1   : > { %v5659_v29 = vadd.f32 %v4539_v25, %v1759_v12  ;;  %v4541_v31 = vpop.f32.mrb[2].mxu0  ;;  %4842 = vmatpush1.bf16.msra.mxu0 %v5571_v13  ;;  %v5661_v32 = vadd.f32 %v4703_v30, %v1767_v15  ;;  %v4705_v34 = vpop.f32.mrb[2].mxu1  ;;  %5006 = vmatpush1.bf16.msra.mxu1 %v5573_v16  ;;  %v5622_v12 = vcombine.high %v1713_v7, %v1717_v8  ;;  %v1720_v13 = vld [vmem:[%s6880_s4 + $0xf10] sm:$0xff]  ;;  %v1721_v16 = vld [vmem:[%s6880_s4 + $0xf18] sm:$0xff] }
 0x2f2   : > { %5746 = vtanh.f32 %v5658_v1  ;;  %v4542_v35 = vpop.f32.mrb[3].mxu0  ;;  %4843 = vmatprep.subr.bf16.mxu0 %v5580_v18  ;;  %v4706_v24 = vpop.f32.mrb[3].mxu1  ;;  %5007 = vmatprep.subr.bf16.mxu1 %v5582_v20  ;;  %v1724_v15 = vld [vmem:[%s6880_s4 + $0xf30] sm:$0xff]  ;;  %v1725_v18 = vld [vmem:[%s6880_s4 + $0xf38] sm:$0xff]  ;;  %v5621_v20 = vcombine.low %v1713_v7, %v1717_v8 }
 0x2f3   : > { %5748 = vtanh.f32 %v5660_v14  ;;  %v5628_v21 = vcombine.high %v1720_v13, %v1724_v15  ;;  %v5630_v0 = vcombine.high %v1721_v16, %v1725_v18  ;;  %v1728_v1 = vld [vmem:[%s6880_s4 + $0xf50] sm:$0xff]  ;;  %v1729_v25 = vld [vmem:[%s6880_s4 + $0xf58] sm:$0xff]  ;;  %v5627_v28 = vcombine.low %v1720_v13, %v1724_v15 }
 0x2f4   : > { %5750 = vtanh.f32 %v5659_v29  ;;  %v5629_v14 = vcombine.low %v1721_v16, %v1725_v18  ;;  %v5636_v29 = vcombine.high %v1728_v1, %v1732_v22  ;;  %v5638_v30 = vcombine.high %v1729_v25, %v1733_v26  ;;  %v1736_v31 = vld [vmem:[%s6880_s4 + $0xf90] sm:$0xff]  ;;  %v1741_v34 = vld [vmem:[%s6880_s4 + $0xfb8] sm:$0xff] }
 0x2f5   : > { %5752 = vtanh.f32 %v5661_v32  ;;  %4844 = vmatpush1.bf16.msra.mxu0 %v5579_v17  ;;  %5008 = vmatpush1.bf16.msra.mxu1 %v5581_v36  ;;  %v1740_v17 = vld [vmem:[%s6880_s4 + $0xfb0] sm:$0xff]  ;;  %v1737_v32 = vld [vmem:[%s6880_s4 + $0xf98] sm:$0xff]  ;;  %v5635_v35 = vcombine.low %v1728_v1, %v1732_v22  ;;  %v5637_v36 = vcombine.low %v1729_v25, %v1733_v26 }
 0x2f6   : > { %4845 = vmatprep.subr.bf16.mxu0 %v5588_v23  ;;  %5009 = vmatprep.subr.bf16.mxu1 %v5590_v37  ;;  %v5644_v23 = vcombine.high %v1736_v31, %v1740_v17  ;;  %v5646_v24 = vcombine.high %v1737_v32, %v1741_v34  ;;  %v1744_v37 = vld [vmem:[%s6880_s4 + $0xfd0] sm:$0xff]  ;;  %v5643_v43 = vcombine.low %v1736_v31, %v1740_v17 }
 0x2f9   : > { %4846 = vmatpush1.bf16.msra.mxu0 %v5587_v44  ;;  %5010 = vmatpush1.bf16.msra.mxu1 %v5589_v38  ;;  %v5645_v44 = vcombine.low %v1737_v32, %v1741_v34  ;;  %v5652_v38 = vcombine.high %v1744_v37, %v1748_v39 }
 0x2fa   : > { %4847 = vmatprep.subr.bf16.mxu0 %v5596_v45  ;;  %5011 = vmatprep.subr.bf16.mxu1 %v5598_v27  ;;  %v5654_v45 = vcombine.high %v1745_v40, %v1749_v42  ;;  %v5651_v27 = vcombine.low %v1744_v37, %v1748_v39 }
 0x2fc   : > { %v5747_v57 = vpop.eup %5746 }
 0x2fd   : > { %v5749_v60 = vpop.eup %5748  ;;  %5044 = vst [vmem:[%s7468_s21] sm:$0xff] %v5747_v57  ;;  %4848 = vmatpush1.bf16.msra.mxu0 %v5595_v47  ;;  %5012 = vmatpush1.bf16.msra.mxu1 %v5597_v51  ;;  %v1782_v47 = vsub.s32 7, %v7428_v50  ;;  %v1771_v51 = vrot.slane %v7439_v62, %v1770_v46 }
 0x2fe   : > { %v5751_v63 = vpop.eup %5750  ;;  %5046 = vst [vmem:[%s7468_s21 + $0x10] sm:$0xff] %v5749_v60  ;;  %4849 = vmatprep.subr.bf16.mxu0 %v5604_v52  ;;  %5013 = vmatprep.subr.bf16.mxu1 %v5606_v53  ;;  %v1779_v52 = vrot.slane %v7439_v62, %v1778_v48  ;;  %v1775_v53 = vrot.slane %v7439_v62, %v1774_v49 }
 0x2ff   : > { %v5753_v3 = vpop.eup %5752  ;;  %5045 = vst [vmem:[%s7468_s21 + $0x8] sm:$0xff] %v5751_v63  ;;  %v1783_v54 = vrot.slane %v7439_v62, %v1782_v47 }
 0x300   : > { %5047 = vst [vmem:[%s7468_s21 + $0x18] sm:$0xff] %v5753_v3 }
 0x301   : > { %4850 = vmatpush1.bf16.msra.mxu0 %v5603_v61  ;;  %5014 = vmatpush1.bf16.msra.mxu1 %v5605_v2 }
 0x302   : > { %4851 = vmatprep.subr.bf16.mxu0 %v5612_v41  ;;  %5015 = vmatprep.subr.bf16.mxu1 %v5614_v4 }
 0x305   : > { %4852 = vmatpush1.bf16.msra.mxu0 %v5611_v9  ;;  %5016 = vmatpush1.bf16.msra.mxu1 %v5613_v10 }
 0x306   : > { %4853 = vmatprep.subr.bf16.mxu0 %v5620_v11  ;;  %5017 = vmatprep.subr.bf16.mxu1 %v5622_v12 }
 0x309   : > { %4854 = vmatpush1.bf16.msra.mxu0 %v5619_v19  ;;  %5018 = vmatpush1.bf16.msra.mxu1 %v5621_v20 }
 0x30a   : > { %4855 = vmatprep.subr.bf16.mxu0 %v5628_v21  ;;  %5019 = vmatprep.subr.bf16.mxu1 %v5630_v0 }
 0x30d   : > { %4856 = vmatpush1.bf16.msra.mxu0 %v5627_v28  ;;  %5020 = vmatpush1.bf16.msra.mxu1 %v5629_v14 }
 0x30e   : > { %4857 = vmatprep.subr.bf16.mxu0 %v5636_v29  ;;  %5021 = vmatprep.subr.bf16.mxu1 %v5638_v30 }
 0x311   : > { %4858 = vmatpush1.bf16.msra.mxu0 %v5635_v35  ;;  %5022 = vmatpush1.bf16.msra.mxu1 %v5637_v36 }
 0x312   : > { %4859 = vmatprep.subr.bf16.mxu0 %v5644_v23  ;;  %5023 = vmatprep.subr.bf16.mxu1 %v5646_v24 }
 0x315   : > { %4860 = vmatpush1.bf16.msra.mxu0 %v5643_v43  ;;  %5024 = vmatpush1.bf16.msra.mxu1 %v5645_v44 }
 0x316   : > { %4861 = vmatprep.subr.bf16.mxu0 %v5652_v38  ;;  %5025 = vmatprep.subr.bf16.mxu1 %v5654_v45 }
 0x319   : > { %4862 = vmatpush1.bf16.msra.mxu0 %v5651_v27  ;;  %5026 = vmatpush1.bf16.msra.mxu1 %v5653_v33 }
 0x31c   : > { %4864 = vmatmul.mubr.bf16.vlgmr.msra.gmra.mrb[4].mxu0 %v7199_v56  ;;  %5028 = vmatmul.mubr.bf16.vlgmr.msra.gmra.mrb[4].mxu1 %v7199_v56 }
 0x3ef   : > { %v4865_v55 = vpop.f32.mrb[4].mxu0  ;;  %v5029_v58 = vpop.f32.mrb[4].mxu1 }
 0x3f0   : > { %v5662_v57 = vadd.f32 %v4865_v55, %v1771_v51  ;;  %v4867_v56 = vpop.f32.mrb[5].mxu0  ;;  %v5664_v59 = vadd.f32 %v5029_v58, %v1779_v52  ;;  %v5031_v61 = vpop.f32.mrb[5].mxu1 }
 0x3f1   : > { %v5663_v60 = vadd.f32 %v4867_v56, %v1775_v53  ;;  %v4869_v63 = vpop.f32.mrb[6].mxu0  ;;  %v5665_v50 = vadd.f32 %v5031_v61, %v1783_v54  ;;  %v5033_v2 = vpop.f32.mrb[6].mxu1 }
 0x3f2   : > { %5754 = vtanh.f32 %v5662_v57  ;;  %v4870_v41 = vpop.f32.mrb[7].mxu0  ;;  %v5034_v3 = vpop.f32.mrb[7].mxu1 }
 0x3f3   : > { %5756 = vtanh.f32 %v5664_v59 }
 0x3f4   : > { %5758 = vtanh.f32 %v5663_v60 }
 0x3f5   : > { %5760 = vtanh.f32 %v5665_v50 }
 0x3fc   : > { %v5755_v62 = vpop.eup %5754 }
 0x3fd   : > { %v5757_v4 = vpop.eup %5756  ;;  %5048 = vst [vmem:[%s7468_s21 + $0x20] sm:$0xff] %v5755_v62 }
 0x3fe   : > { %v5759_v5 = vpop.eup %5758  ;;  %5050 = vst [vmem:[%s7468_s21 + $0x30] sm:$0xff] %v5757_v4 }
 0x3ff   : > { %v5761_v6 = vpop.eup %5760  ;;  %5049 = vst [vmem:[%s7468_s21 + $0x28] sm:$0xff] %v5759_v5 }
 0x400   : > { %5051 = vst [vmem:[%s7468_s21 + $0x38] sm:$0xff] %v5761_v6 }
 0x401 PF: > { %p10_p9 = scmp.ge.s32.totalorder %s5823_s16, 4   ;;  %s7526_s12 = smov %s5780_s13 }
 0x402   : > { %s7527_s13 = smov %s5832_s19  ;;  %s7528_s14 = smov %s5823_s16 }
 0x403   :  { %12 = sbr.rel (!%p10_p9) target bundleno = 2 (0x2), region = 93 }

</bundles_post_ra>
